<compile_context>
chip_gen: v5e
topology: v5e:2x2
jax: 0.10.0
libtpu: 0.0.40
codegen_flags: <defaults>
</compile_context>

<pallas_src>
import functools

import jax
import jax.numpy as jnp
from jax.experimental import pallas as pl
from jax.experimental.pallas import tpu as pltpu

LEAKY_SLOPE = 0.01
VMEM_LIMIT = 32 * 1024 * 1024  # modest headroom; per-step footprint << this


def _round_up(x, m):
    return (x + m - 1) // m * m


# ---------------------------------------------------------------------------
# Pallas kernel 1: fused  out = leaky_relu(A @ W + b)   (activation optional)
#   A tile: bf16 [tm, Kp]   W: bf16 [Kp, Np] (resident)   b: f32 [1, Np]
#   epilogue in f32 (v5e-friendly), f32 output
# ---------------------------------------------------------------------------
def _fused_matmul_kernel(a_ref, w_ref, b_ref, o_ref, *, activate, slope):
    acc = jnp.dot(a_ref[...], w_ref[...], preferred_element_type=jnp.float32)
    acc = acc + b_ref[...]
    if activate:
        acc = jnp.where(acc > 0, acc, slope * acc)
    o_ref[...] = acc


def fused_linear(a, w_p, b_p, *, activate, slope=LEAKY_SLOPE, tile_m=256):
    """a: [M, K] (f32/bf16), w_p: [Kp, Np] bf16 pre-padded, b_p: [1, Np] f32.

    Returns f32 [M, Np] (caller slices valid N columns)."""
    M, K = a.shape
    Kp, Np = w_p.shape
    assert Kp >= K and Kp % 128 == 0 and Np % 128 == 0

    tm = min(tile_m, _round_up(M, 8))
    Mp = _round_up(M, tm)

    a_p = a.astype(jnp.bfloat16)
    if Mp != M or Kp != K:
        a_p = jnp.pad(a_p, ((0, Mp - M), (0, Kp - K)))

    out = pl.pallas_call(
        functools.partial(_fused_matmul_kernel, activate=activate, slope=slope),
        grid=(Mp // tm,),
        in_specs=[
            pl.BlockSpec((tm, Kp), lambda i: (i, 0)),     # A tiles stream over M
            pl.BlockSpec((Kp, Np), lambda i: (0, 0)),     # W resident
            pl.BlockSpec((1, Np), lambda i: (0, 0)),      # bias resident
        ],
        out_specs=pl.BlockSpec((tm, Np), lambda i: (i, 0)),
        out_shape=jax.ShapeDtypeStruct((Mp, Np), jnp.float32),
        compiler_params=pltpu.CompilerParams(
            dimension_semantics=("parallel",),
            vmem_limit_bytes=VMEM_LIMIT),
    )(a_p, w_p, b_p)
    return out[:M, :]


# ---------------------------------------------------------------------------
# Pallas kernel 2: fused MLP head  out = leaky_relu(x@W1+b1) @ W2 + b2
#   single launch, hidden activation never leaves VMEM
# ---------------------------------------------------------------------------
def _fused_mlp_kernel(x_ref, w1_ref, b1_ref, w2_ref, b2_ref, o_ref, *, slope):
    h = jnp.dot(x_ref[...], w1_ref[...], preferred_element_type=jnp.float32)
    h = h + b1_ref[...]
    h = jnp.where(h > 0, h, slope * h)
    o = jnp.dot(h.astype(jnp.bfloat16), w2_ref[...],
                preferred_element_type=jnp.float32)
    o_ref[...] = o + b2_ref[...]


def fused_mlp(x, w1_p, b1_p, w2_p, b2_p, *, slope=LEAKY_SLOPE, tile_m=256):
    """x: [B, K] f32.  w1_p: [Kp, H] bf16, w2_p: [H, Np] bf16.  Returns [B, Np] f32."""
    M, K = x.shape
    Kp, H = w1_p.shape
    H2, Np = w2_p.shape
    assert H == H2

    tm = min(tile_m, _round_up(M, 8))
    Mp = _round_up(M, tm)

    x_p = x.astype(jnp.bfloat16)
    if Mp != M or Kp != K:
        x_p = jnp.pad(x_p, ((0, Mp - M), (0, Kp - K)))

    out = pl.pallas_call(
        functools.partial(_fused_mlp_kernel, slope=slope),
        grid=(Mp // tm,),
        in_specs=[
            pl.BlockSpec((tm, Kp), lambda i: (i, 0)),
            pl.BlockSpec((Kp, H), lambda i: (0, 0)),
            pl.BlockSpec((1, H), lambda i: (0, 0)),
            pl.BlockSpec((H, Np), lambda i: (0, 0)),
            pl.BlockSpec((1, Np), lambda i: (0, 0)),
        ],
        out_specs=pl.BlockSpec((tm, Np), lambda i: (i, 0)),
        out_shape=jax.ShapeDtypeStruct((Mp, Np), jnp.float32),
        compiler_params=pltpu.CompilerParams(
            dimension_semantics=("parallel",),
            vmem_limit_bytes=VMEM_LIMIT),
    )(x_p, w1_p, b1_p, w2_p, b2_p)
    return out[:M, :]


# ---------------------------------------------------------------------------
# Conv-as-GEMM: patch extraction is a single fused XLA op; GEMM is Pallas.
# ---------------------------------------------------------------------------
def conv2d_leaky(x, w_p, b_p, *, kh, kw, stride, oc, slope=LEAKY_SLOPE):
    """x: [B, C, H, W] NCHW f32.  w_p: [Kp, 128] bf16 pre-packed (K = C*kh*kw,
    column order (C, kh, kw) — matches PyTorch OIHW flatten).  b_p: [1, 128] f32."""
    B, C, H, W = x.shape
    oh = (H - kh) // stride + 1
    ow = (W - kw) // stride + 1
    # Output feature dim of patches is ordered channel-major: (C, kh, kw).
    patches = jax.lax.conv_general_dilated_patches(
        x, (kh, kw), (stride, stride), padding="VALID")      # [B, C*kh*kw, oh, ow]
    a = patches.transpose(0, 2, 3, 1).reshape(B * oh * ow, C * kh * kw)
    y = fused_linear(a, w_p, b_p, activate=True, slope=slope)  # [B*oh*ow, 128]
    return y[:, :oc].reshape(B, oh, ow, oc).transpose(0, 3, 1, 2)  # back to NCHW


# ---------------------------------------------------------------------------
# Parameter init (kaiming-style, deterministic) + one-time packing
# ---------------------------------------------------------------------------
def init_dqn_params(key, n_actions):
    def kaiming(k, shape, fan_in, gain):
        return gain / jnp.sqrt(fan_in) * jax.random.normal(k, shape, jnp.float32)

    ks = jax.random.split(key, 10)
    g_lrelu = jnp.sqrt(2.0)   # PyTorch kaiming gain for leaky_relu (a=0 default)
    g_lin = 1.0
    return {
        "conv1_w": kaiming(ks[0], (32, 4, 8, 8), 4 * 8 * 8, g_lrelu),
        "conv1_b": 0.01 * jax.random.normal(ks[1], (32,), jnp.float32),
        "conv2_w": kaiming(ks[2], (64, 32, 4, 4), 32 * 4 * 4, g_lrelu),
        "conv2_b": 0.01 * jax.random.normal(ks[3], (64,), jnp.float32),
        "conv3_w": kaiming(ks[4], (64, 64, 3, 3), 64 * 3 * 3, g_lrelu),
        "conv3_b": 0.01 * jax.random.normal(ks[5], (64,), jnp.float32),
        "fc1_w":   kaiming(ks[6], (512, 7 * 7 * 64), 7 * 7 * 64, g_lrelu),
        "fc1_b":   0.01 * jax.random.normal(ks[7], (512,), jnp.float32),
        "fc2_w":   kaiming(ks[8], (n_actions, 512), 512, g_lin),
        "fc2_b":   0.01 * jax.random.normal(ks[9], (n_actions,), jnp.float32),
    }


def _pack_matrix(w2d, kp, np_):
    """[N, K] (PyTorch layout) -> transposed, zero-padded [Kp, Np] bf16."""
    n, k = w2d.shape
    wt = w2d.T.astype(jnp.bfloat16)
    return jnp.pad(wt, ((0, kp - k), (0, np_ - n)))


def _pack_bias(b, np_):
    return jnp.pad(b.astype(jnp.float32).reshape(1, -1), ((0, 0), (0, np_ - b.shape[0])))


def pack_params(params, n_actions):
    """One-time pre-transpose / pre-pad / bf16 cast of all weights (off hot path)."""
    return {
        "conv1_w": _pack_matrix(params["conv1_w"].reshape(32, 4 * 8 * 8), 256, 128),
        "conv1_b": _pack_bias(params["conv1_b"], 128),
        "conv2_w": _pack_matrix(params["conv2_w"].reshape(64, 32 * 4 * 4), 512, 128),
        "conv2_b": _pack_bias(params["conv2_b"], 128),
        "conv3_w": _pack_matrix(params["conv3_w"].reshape(64, 64 * 3 * 3), 640, 128),
        "conv3_b": _pack_bias(params["conv3_b"], 128),
        "fc1_w":   _pack_matrix(params["fc1_w"], 3200, 512),
        "fc1_b":   _pack_bias(params["fc1_b"], 512),
        "fc2_w":   _pack_matrix(params["fc2_w"], 512, 128),
        "fc2_b":   _pack_bias(params["fc2_b"], 128),
        "n_actions": n_actions,
    }


# ---------------------------------------------------------------------------
# Forward pass
# ---------------------------------------------------------------------------
def dqn_forward(packed, x):
    """x: [B, 4, 84, 84] NCHW f32 -> [B, n_actions] f32."""
    x = conv2d_leaky(x, packed["conv1_w"], packed["conv1_b"],
                     kh=8, kw=8, stride=4, oc=32)          # [B, 32, 20, 20]
    x = conv2d_leaky(x, packed["conv2_w"], packed["conv2_b"],
                     kh=4, kw=4, stride=2, oc=64)          # [B, 64,  9,  9]
    x = conv2d_leaky(x, packed["conv3_w"], packed["conv3_b"],
                     kh=3, kw=3, stride=1, oc=64)          # [B, 64,  7,  7]
    B = x.shape[0]
    x = x.reshape(B, -1)                                   # C-major flatten == torch.flatten
    out = fused_mlp(x, packed["fc1_w"], packed["fc1_b"],
                    packed["fc2_w"], packed["fc2_b"])      # fc1+fc2 fused, [B, 128]
    return out[:, :packed["n_actions"]]


if __name__ == "__main__":
    key = jax.random.PRNGKey(0)
    k_param, k_input = jax.random.split(key)

    n_actions = 6   # synthetic env.action_space.n
    params = init_dqn_params(k_param, n_actions)
    packed = pack_params(params, n_actions)   # one-time weight packing

    # Spatial size is fixed by the architecture (fc1 expects 7*7*64 -> 84x84).
    batch = 2
    x = jax.random.uniform(k_input, (batch, 4, 84, 84), jnp.float32)

    fwd = jax.jit(functools.partial(dqn_forward, packed))
    out = jax.block_until_ready(fwd(x))

    assert out.shape == (batch, n_actions), out.shape
    assert bool(jnp.all(jnp.isfinite(out)))
    print("KERNEL_OK")
</pallas_src>

<mosaic_0001>
module attributes {stable_mosaic.version = 11 : i64} {
  func.func @_fused_matmul_kernel(%arg0: i32, %arg1: memref<256x256xbf16, #tpu.memory_space<vmem>>, %arg2: memref<256x128xbf16, #tpu.memory_space<vmem>>, %arg3: memref<1x128xf32, #tpu.memory_space<vmem>>, %arg4: memref<256x128xf32, #tpu.memory_space<vmem>>) attributes {dimension_semantics = [#tpu.dimension_semantics<parallel>], iteration_bounds = array<i64: 4>, scalar_prefetch = 0 : i64, scratch_operands = 0 : i64, tpu.core_type = #tpu.core_type<tc>, window_params = [{transform_indices = @transform_0, window_bounds = array<i64: 256, 256>}, {pipeline_mode = #tpu.pipeline_mode<synchronous>, transform_indices = @transform_1, window_bounds = array<i64: 256, 128>}, {pipeline_mode = #tpu.pipeline_mode<synchronous>, transform_indices = @transform_2, window_bounds = array<i64: 1, 128>}, {transform_indices = @transform_3, window_bounds = array<i64: 256, 128>}]} {
    %c0 = arith.constant 0 : index
    %c0_0 = arith.constant 0 : index
    %0 = vector.load %arg1[%c0, %c0_0] : memref<256x256xbf16, #tpu.memory_space<vmem>>, vector<256x256xbf16>
    %c0_1 = arith.constant 0 : index
    %c0_2 = arith.constant 0 : index
    %1 = vector.load %arg2[%c0_1, %c0_2] : memref<256x128xbf16, #tpu.memory_space<vmem>>, vector<256x128xbf16>
    %cst = arith.constant dense<0.000000e+00> : vector<256x128xf32>
    %2 = tpu.matmul %0, %1, %cst {dimension_numbers = #tpu.dot_dimension_numbers<[1], [0], [0], [1], [0, 0, 1, 1], [], []>} : vector<256x256xbf16>, vector<256x128xbf16>, vector<256x128xf32> -> vector<256x128xf32>
    %c0_3 = arith.constant 0 : index
    %c0_4 = arith.constant 0 : index
    %3 = vector.load %arg3[%c0_3, %c0_4] : memref<1x128xf32, #tpu.memory_space<vmem>>, vector<1x128xf32>
    %4 = vector.broadcast %3 : vector<1x128xf32> to vector<256x128xf32>
    %5 = arith.addf %2, %4 : vector<256x128xf32>
    %cst_5 = arith.constant 0.000000e+00 : f32
    %6 = vector.broadcast %cst_5 : f32 to vector<256x128xf32>
    %7 = arith.cmpf ogt, %5, %6 : vector<256x128xf32>
    %cst_6 = arith.constant 0.00999999977 : f32
    %8 = vector.broadcast %cst_6 : f32 to vector<256x128xf32>
    %9 = arith.mulf %8, %5 : vector<256x128xf32>
    %10 = arith.select %7, %5, %9 : vector<256x128xi1>, vector<256x128xf32>
    %c0_7 = arith.constant 0 : index
    %c0_8 = arith.constant 0 : index
    %11 = vector.load %arg4[%c0_7, %c0_8] : memref<256x128xf32, #tpu.memory_space<vmem>>, vector<256x128xf32>
    tpu.vector_store %arg4[%c0_7, %c0_8], %10 {strides = array<i32>} : memref<256x128xf32, #tpu.memory_space<vmem>>, vector<256x128xf32>,
    return
  }
  func.func @transform_0(%arg0: i32) -> (i32, i32) {
    %c0_i32 = arith.constant 0 : i32
    %c0_i32_0 = arith.constant 0 : i32
    return %arg0, %c0_i32 : i32, i32
  }
  func.func @transform_1(%arg0: i32) -> (i32, i32) {
    %c0_i32 = arith.constant 0 : i32
    %c0_i32_0 = arith.constant 0 : i32
    %c0_i32_1 = arith.constant 0 : i32
    return %c0_i32, %c0_i32_0 : i32, i32
  }
  func.func @transform_2(%arg0: i32) -> (i32, i32) {
    %c0_i32 = arith.constant 0 : i32
    %c0_i32_0 = arith.constant 0 : i32
    %c0_i32_1 = arith.constant 0 : i32
    return %c0_i32, %c0_i32_0 : i32, i32
  }
  func.func @transform_3(%arg0: i32) -> (i32, i32) {
    %c0_i32 = arith.constant 0 : i32
    %c0_i32_0 = arith.constant 0 : i32
    return %arg0, %c0_i32 : i32, i32
  }
}

module attributes {stable_mosaic.version = 11 : i64} {
  func.func @_fused_matmul_kernel(%arg0: i32, %arg1: memref<168x512xbf16, #tpu.memory_space<vmem>>, %arg2: memref<512x128xbf16, #tpu.memory_space<vmem>>, %arg3: memref<1x128xf32, #tpu.memory_space<vmem>>, %arg4: memref<168x128xf32, #tpu.memory_space<vmem>>) attributes {dimension_semantics = [#tpu.dimension_semantics<parallel>], iteration_bounds = array<i64: 1>, scalar_prefetch = 0 : i64, scratch_operands = 0 : i64, tpu.core_type = #tpu.core_type<tc>, window_params = [{transform_indices = @transform_0, window_bounds = array<i64: 168, 512>}, {pipeline_mode = #tpu.pipeline_mode<synchronous>, transform_indices = @transform_1, window_bounds = array<i64: 512, 128>}, {pipeline_mode = #tpu.pipeline_mode<synchronous>, transform_indices = @transform_2, window_bounds = array<i64: 1, 128>}, {transform_indices = @transform_3, window_bounds = array<i64: 168, 128>}]} {
    %c0 = arith.constant 0 : index
    %c0_0 = arith.constant 0 : index
    %0 = vector.load %arg1[%c0, %c0_0] : memref<168x512xbf16, #tpu.memory_space<vmem>>, vector<168x512xbf16>
    %c0_1 = arith.constant 0 : index
    %c0_2 = arith.constant 0 : index
    %1 = vector.load %arg2[%c0_1, %c0_2] : memref<512x128xbf16, #tpu.memory_space<vmem>>, vector<512x128xbf16>
    %cst = arith.constant dense<0.000000e+00> : vector<168x128xf32>
    %2 = tpu.matmul %0, %1, %cst {dimension_numbers = #tpu.dot_dimension_numbers<[1], [0], [0], [1], [0, 0, 1, 1], [], []>} : vector<168x512xbf16>, vector<512x128xbf16>, vector<168x128xf32> -> vector<168x128xf32>
    %c0_3 = arith.constant 0 : index
    %c0_4 = arith.constant 0 : index
    %3 = vector.load %arg3[%c0_3, %c0_4] : memref<1x128xf32, #tpu.memory_space<vmem>>, vector<1x128xf32>
    %4 = vector.broadcast %3 : vector<1x128xf32> to vector<168x128xf32>
    %5 = arith.addf %2, %4 : vector<168x128xf32>
    %cst_5 = arith.constant 0.000000e+00 : f32
    %6 = vector.broadcast %cst_5 : f32 to vector<168x128xf32>
    %7 = arith.cmpf ogt, %5, %6 : vector<168x128xf32>
    %cst_6 = arith.constant 0.00999999977 : f32
    %8 = vector.broadcast %cst_6 : f32 to vector<168x128xf32>
    %9 = arith.mulf %8, %5 : vector<168x128xf32>
    %10 = arith.select %7, %5, %9 : vector<168x128xi1>, vector<168x128xf32>
    %c0_7 = arith.constant 0 : index
    %c0_8 = arith.constant 0 : index
    %11 = vector.load %arg4[%c0_7, %c0_8] : memref<168x128xf32, #tpu.memory_space<vmem>>, vector<168x128xf32>
    tpu.vector_store %arg4[%c0_7, %c0_8], %10 {strides = array<i32>} : memref<168x128xf32, #tpu.memory_space<vmem>>, vector<168x128xf32>,
    return
  }
  func.func @transform_0(%arg0: i32) -> (i32, i32) {
    %c0_i32 = arith.constant 0 : i32
    %c0_i32_0 = arith.constant 0 : i32
    return %arg0, %c0_i32 : i32, i32
  }
  func.func @transform_1(%arg0: i32) -> (i32, i32) {
    %c0_i32 = arith.constant 0 : i32
    %c0_i32_0 = arith.constant 0 : i32
    %c0_i32_1 = arith.constant 0 : i32
    return %c0_i32, %c0_i32_0 : i32, i32
  }
  func.func @transform_2(%arg0: i32) -> (i32, i32) {
    %c0_i32 = arith.constant 0 : i32
    %c0_i32_0 = arith.constant 0 : i32
    %c0_i32_1 = arith.constant 0 : i32
    return %c0_i32, %c0_i32_0 : i32, i32
  }
  func.func @transform_3(%arg0: i32) -> (i32, i32) {
    %c0_i32 = arith.constant 0 : i32
    %c0_i32_0 = arith.constant 0 : i32
    return %arg0, %c0_i32 : i32, i32
  }
}

module attributes {stable_mosaic.version = 11 : i64} {
  func.func @_fused_matmul_kernel(%arg0: i32, %arg1: memref<104x640xbf16, #tpu.memory_space<vmem>>, %arg2: memref<640x128xbf16, #tpu.memory_space<vmem>>, %arg3: memref<1x128xf32, #tpu.memory_space<vmem>>, %arg4: memref<104x128xf32, #tpu.memory_space<vmem>>) attributes {dimension_semantics = [#tpu.dimension_semantics<parallel>], iteration_bounds = array<i64: 1>, scalar_prefetch = 0 : i64, scratch_operands = 0 : i64, tpu.core_type = #tpu.core_type<tc>, window_params = [{transform_indices = @transform_0, window_bounds = array<i64: 104, 640>}, {pipeline_mode = #tpu.pipeline_mode<synchronous>, transform_indices = @transform_1, window_bounds = array<i64: 640, 128>}, {pipeline_mode = #tpu.pipeline_mode<synchronous>, transform_indices = @transform_2, window_bounds = array<i64: 1, 128>}, {transform_indices = @transform_3, window_bounds = array<i64: 104, 128>}]} {
    %c0 = arith.constant 0 : index
    %c0_0 = arith.constant 0 : index
    %0 = vector.load %arg1[%c0, %c0_0] : memref<104x640xbf16, #tpu.memory_space<vmem>>, vector<104x640xbf16>
    %c0_1 = arith.constant 0 : index
    %c0_2 = arith.constant 0 : index
    %1 = vector.load %arg2[%c0_1, %c0_2] : memref<640x128xbf16, #tpu.memory_space<vmem>>, vector<640x128xbf16>
    %cst = arith.constant dense<0.000000e+00> : vector<104x128xf32>
    %2 = tpu.matmul %0, %1, %cst {dimension_numbers = #tpu.dot_dimension_numbers<[1], [0], [0], [1], [0, 0, 1, 1], [], []>} : vector<104x640xbf16>, vector<640x128xbf16>, vector<104x128xf32> -> vector<104x128xf32>
    %c0_3 = arith.constant 0 : index
    %c0_4 = arith.constant 0 : index
    %3 = vector.load %arg3[%c0_3, %c0_4] : memref<1x128xf32, #tpu.memory_space<vmem>>, vector<1x128xf32>
    %4 = vector.broadcast %3 : vector<1x128xf32> to vector<104x128xf32>
    %5 = arith.addf %2, %4 : vector<104x128xf32>
    %cst_5 = arith.constant 0.000000e+00 : f32
    %6 = vector.broadcast %cst_5 : f32 to vector<104x128xf32>
    %7 = arith.cmpf ogt, %5, %6 : vector<104x128xf32>
    %cst_6 = arith.constant 0.00999999977 : f32
    %8 = vector.broadcast %cst_6 : f32 to vector<104x128xf32>
    %9 = arith.mulf %8, %5 : vector<104x128xf32>
    %10 = arith.select %7, %5, %9 : vector<104x128xi1>, vector<104x128xf32>
    %c0_7 = arith.constant 0 : index
    %c0_8 = arith.constant 0 : index
    %11 = vector.load %arg4[%c0_7, %c0_8] : memref<104x128xf32, #tpu.memory_space<vmem>>, vector<104x128xf32>
    tpu.vector_store %arg4[%c0_7, %c0_8], %10 {strides = array<i32>} : memref<104x128xf32, #tpu.memory_space<vmem>>, vector<104x128xf32>,
    return
  }
  func.func @transform_0(%arg0: i32) -> (i32, i32) {
    %c0_i32 = arith.constant 0 : i32
    %c0_i32_0 = arith.constant 0 : i32
    return %arg0, %c0_i32 : i32, i32
  }
  func.func @transform_1(%arg0: i32) -> (i32, i32) {
    %c0_i32 = arith.constant 0 : i32
    %c0_i32_0 = arith.constant 0 : i32
    %c0_i32_1 = arith.constant 0 : i32
    return %c0_i32, %c0_i32_0 : i32, i32
  }
  func.func @transform_2(%arg0: i32) -> (i32, i32) {
    %c0_i32 = arith.constant 0 : i32
    %c0_i32_0 = arith.constant 0 : i32
    %c0_i32_1 = arith.constant 0 : i32
    return %c0_i32, %c0_i32_0 : i32, i32
  }
  func.func @transform_3(%arg0: i32) -> (i32, i32) {
    %c0_i32 = arith.constant 0 : i32
    %c0_i32_0 = arith.constant 0 : i32
    return %arg0, %c0_i32 : i32, i32
  }
}

module attributes {stable_mosaic.version = 11 : i64} {
  func.func @_fused_mlp_kernel(%arg0: i32, %arg1: memref<8x3200xbf16, #tpu.memory_space<vmem>>, %arg2: memref<3200x512xbf16, #tpu.memory_space<vmem>>, %arg3: memref<1x512xf32, #tpu.memory_space<vmem>>, %arg4: memref<512x128xbf16, #tpu.memory_space<vmem>>, %arg5: memref<1x128xf32, #tpu.memory_space<vmem>>, %arg6: memref<8x128xf32, #tpu.memory_space<vmem>>) attributes {dimension_semantics = [#tpu.dimension_semantics<parallel>], iteration_bounds = array<i64: 1>, scalar_prefetch = 0 : i64, scratch_operands = 0 : i64, tpu.core_type = #tpu.core_type<tc>, window_params = [{transform_indices = @transform_0, window_bounds = array<i64: 8, 3200>}, {pipeline_mode = #tpu.pipeline_mode<synchronous>, transform_indices = @transform_1, window_bounds = array<i64: 3200, 512>}, {pipeline_mode = #tpu.pipeline_mode<synchronous>, transform_indices = @transform_2, window_bounds = array<i64: 1, 512>}, {pipeline_mode = #tpu.pipeline_mode<synchronous>, transform_indices = @transform_3, window_bounds = array<i64: 512, 128>}, {pipeline_mode = #tpu.pipeline_mode<synchronous>, transform_indices = @transform_4, window_bounds = array<i64: 1, 128>}, {transform_indices = @transform_5, window_bounds = array<i64: 8, 128>}]} {
    %c0 = arith.constant 0 : index
    %c0_0 = arith.constant 0 : index
    %0 = vector.load %arg1[%c0, %c0_0] : memref<8x3200xbf16, #tpu.memory_space<vmem>>, vector<8x3200xbf16>
    %c0_1 = arith.constant 0 : index
    %c0_2 = arith.constant 0 : index
    %1 = vector.load %arg2[%c0_1, %c0_2] : memref<3200x512xbf16, #tpu.memory_space<vmem>>, vector<3200x512xbf16>
    %cst = arith.constant dense<0.000000e+00> : vector<8x512xf32>
    %2 = tpu.matmul %0, %1, %cst {dimension_numbers = #tpu.dot_dimension_numbers<[1], [0], [0], [1], [0, 0, 1, 1], [], []>} : vector<8x3200xbf16>, vector<3200x512xbf16>, vector<8x512xf32> -> vector<8x512xf32>
    %c0_3 = arith.constant 0 : index
    %c0_4 = arith.constant 0 : index
    %3 = vector.load %arg3[%c0_3, %c0_4] : memref<1x512xf32, #tpu.memory_space<vmem>>, vector<1x512xf32>
    %4 = vector.broadcast %3 : vector<1x512xf32> to vector<8x512xf32>
    %5 = arith.addf %2, %4 : vector<8x512xf32>
    %cst_5 = arith.constant 0.000000e+00 : f32
    %6 = vector.broadcast %cst_5 : f32 to vector<8x512xf32>
    %7 = arith.cmpf ogt, %5, %6 : vector<8x512xf32>
    %cst_6 = arith.constant 0.00999999977 : f32
    %8 = vector.broadcast %cst_6 : f32 to vector<8x512xf32>
    %9 = arith.mulf %8, %5 : vector<8x512xf32>
    %10 = arith.select %7, %5, %9 : vector<8x512xi1>, vector<8x512xf32>
    %11 = arith.truncf %10 : vector<8x512xf32> to vector<8x512xbf16>
    %c0_7 = arith.constant 0 : index
    %c0_8 = arith.constant 0 : index
    %12 = vector.load %arg4[%c0_7, %c0_8] : memref<512x128xbf16, #tpu.memory_space<vmem>>, vector<512x128xbf16>
    %cst_9 = arith.constant dense<0.000000e+00> : vector<8x128xf32>
    %13 = tpu.matmul %11, %12, %cst_9 {dimension_numbers = #tpu.dot_dimension_numbers<[1], [0], [0], [1], [0, 0, 1, 1], [], []>} : vector<8x512xbf16>, vector<512x128xbf16>, vector<8x128xf32> -> vector<8x128xf32>
    %c0_10 = arith.constant 0 : index
    %c0_11 = arith.constant 0 : index
    %14 = vector.load %arg5[%c0_10, %c0_11] : memref<1x128xf32, #tpu.memory_space<vmem>>, vector<1x128xf32>
    %15 = vector.broadcast %14 : vector<1x128xf32> to vector<8x128xf32>
    %16 = arith.addf %13, %15 : vector<8x128xf32>
    %c0_12 = arith.constant 0 : index
    %c0_13 = arith.constant 0 : index
    %17 = vector.load %arg6[%c0_12, %c0_13] : memref<8x128xf32, #tpu.memory_space<vmem>>, vector<8x128xf32>
    tpu.vector_store %arg6[%c0_12, %c0_13], %16 {strides = array<i32>} : memref<8x128xf32, #tpu.memory_space<vmem>>, vector<8x128xf32>,
    return
  }
  func.func @transform_0(%arg0: i32) -> (i32, i32) {
    %c0_i32 = arith.constant 0 : i32
    %c0_i32_0 = arith.constant 0 : i32
    return %arg0, %c0_i32 : i32, i32
  }
  func.func @transform_1(%arg0: i32) -> (i32, i32) {
    %c0_i32 = arith.constant 0 : i32
    %c0_i32_0 = arith.constant 0 : i32
    %c0_i32_1 = arith.constant 0 : i32
    return %c0_i32, %c0_i32_0 : i32, i32
  }
  func.func @transform_2(%arg0: i32) -> (i32, i32) {
    %c0_i32 = arith.constant 0 : i32
    %c0_i32_0 = arith.constant 0 : i32
    %c0_i32_1 = arith.constant 0 : i32
    return %c0_i32, %c0_i32_0 : i32, i32
  }
  func.func @transform_3(%arg0: i32) -> (i32, i32) {
    %c0_i32 = arith.constant 0 : i32
    %c0_i32_0 = arith.constant 0 : i32
    %c0_i32_1 = arith.constant 0 : i32
    return %c0_i32, %c0_i32_0 : i32, i32
  }
  func.func @transform_4(%arg0: i32) -> (i32, i32) {
    %c0_i32 = arith.constant 0 : i32
    %c0_i32_0 = arith.constant 0 : i32
    %c0_i32_1 = arith.constant 0 : i32
    return %c0_i32, %c0_i32_0 : i32, i32
  }
  func.func @transform_5(%arg0: i32) -> (i32, i32) {
    %c0_i32 = arith.constant 0 : i32
    %c0_i32_0 = arith.constant 0 : i32
    return %arg0, %c0_i32 : i32, i32
  }
}

</mosaic_0001>

<bundles_post_ra>
// kernel: dqn_forward.4
= control target key start
LH: loop header
LB: loop body
LE: loop exit
PB: predicated region body
PF: predicated region fallthrough
CT: control target
= control target key end

     0   :  { %s1169_s12 = smov 0   ;;  %s1378_s0 = inlined_call_operand.vmem [shape: bf16[1024,256], index: 0, kind: input, shape index: {}]   ;;  %s1379_s1 = inlined_call_operand.vmem [shape: bf16[256,128], index: 1, kind: input, shape index: {}]   ;;  %s1380_s2 = inlined_call_operand.vmem [shape: f32[1,128], index: 2, kind: input, shape index: {}]   ;;  %s1381_s3 = inlined_call_operand.vmem [shape: f32[1024,128], index: 3, kind: output, shape index: {}]  }
   0x1 LB: > { %s863_s13 = sadd.s32 4294967295, %s1147_s12   ;;  %p867_p0 = scmp.ge.s32.totalorder %s1147_s12, 1  ;;  %s1147_s12 = sphi %s1169_s12, %s13_s12  }
   0x2   : > { %p139_p1 = scmp.lt.s32.totalorder %s1147_s12, 5 }
   0x4   : > { %p140_p2 = pnand %p867_p0, %p139_p1 }
   0x5   : > { %s868_s26 = sshll.u32 (!%p140_p2), %s863_s13, 5 }
   0x6   : > { %143 = sbr.rel (%p140_p2) target bundleno = 303 (0x12f), region = 32  ;;  %p165_p3 = scmp.lt.s32.totalorder (!%p140_p2), %s868_s26, 127 }
   0xb   : > { %v1107_v0 = vld [vmem:[%s1379_s1 + $0x38] sm:$0xff]  ;;  %v1106_v2 = vld [vmem:[%s1379_s1 + $0x30] sm:$0xff]  ;;  %v1105_v4 = vld [vmem:[%s1379_s1 + $0x28] sm:$0xff]  ;;  %s1383_s26 = smov (!%p165_p3, %s868_s26), 127 }
   0xc   : > { %v1115_v1 = vld [vmem:[%s1379_s1 + $0x78] sm:$0xff]  ;;  %501 = vmatpush.bf16.msra.mxu0 %v1107_v0  ;;  %1116 = vmatpush.bf16.msra.mxu2 %v1107_v0  ;;  %v1114_v3 = vld [vmem:[%s1379_s1 + $0x70] sm:$0xff]  ;;  %v1113_v5 = vld [vmem:[%s1379_s1 + $0x68] sm:$0xff]  ;;  %s1067_s13 = sshll.u32 %s1383_s26, 3 }
   0xd   : > { %590 = vmatpush.bf16.msra.mxu1 %v1115_v1  ;;  %1124 = vmatpush.bf16.msra.mxu3 %v1115_v1  ;;  %v1104_v6 = vld [vmem:[%s1379_s1 + $0x20] sm:$0xff]  ;;  %v1103_v8 = vld [vmem:[%s1379_s1 + $0x18] sm:$0xff]  ;;  %v1102_v10 = vld [vmem:[%s1379_s1 + $0x10] sm:$0xff]  ;;  %s1224_s18 = scalar_lea.vmem %s1378_s0, %s1067_s13  ;;  %s1310_s30 = scalar_lea.vmem %s1381_s3, %s1067_s13 }
   0xe   : > { %v1112_v7 = vld [vmem:[%s1379_s1 + $0x60] sm:$0xff]  ;;  %v1111_v9 = vld [vmem:[%s1379_s1 + $0x58] sm:$0xff]  ;;  %v1110_v11 = vld [vmem:[%s1379_s1 + $0x50] sm:$0xff] }
   0xf   : > { %v1101_v12 = vld [vmem:[%s1379_s1 + $0x8] sm:$0xff]  ;;  %v1100_v14 = vld [vmem:[%s1379_s1] sm:$0xff]  ;;  %v883_v28 = vld [vmem:[%s1224_s18 + $0x10] sm:$0xf] }
  0x10   : > { %502 = vmatpush.bf16.msra.mxu0 %v1106_v2  ;;  %1117 = vmatpush.bf16.msra.mxu2 %v1106_v2  ;;  %v1109_v13 = vld [vmem:[%s1379_s1 + $0x48] sm:$0xff]  ;;  %v1108_v15 = vld [vmem:[%s1379_s1 + $0x40] sm:$0xff]  ;;  %v1071_v29 = vld [vmem:[%s1224_s18 + $0x14] sm:$0xf0] }
  0x11   : > { %591 = vmatpush.bf16.msra.mxu1 %v1114_v3  ;;  %1125 = vmatpush.bf16.msra.mxu3 %v1114_v3  ;;  %v875_v16 = vld [vmem:[%s1224_s18] sm:$0xf]  ;;  %v1069_v17 = vld [vmem:[%s1224_s18 + $0x4] sm:$0xf0]  ;;  %v1068_v20 = vld [vmem:[%s1224_s18 + $0x4] sm:$0xf]  ;;  %v884_v36 = vor.u32 %v1071_v29, %v883_v28 }
  0x12   : > { %v939_v18 = vld [vmem:[%s1224_s18 + $0x80] sm:$0xf]  ;;  %v1085_v19 = vld [vmem:[%s1224_s18 + $0x84] sm:$0xf0]  ;;  %v877_v21 = vld [vmem:[%s1224_s18 + $0x8] sm:$0xf0]  ;;  %v876_v24 = vor.u32 %v1069_v17, %v875_v16 }
  0x13   : > { %v1084_v22 = vld [vmem:[%s1224_s18 + $0x84] sm:$0xf]  ;;  %v941_v23 = vld [vmem:[%s1224_s18 + $0x88] sm:$0xf0]  ;;  %v940_v25 = vor.u32 %v1085_v19, %v939_v18  ;;  %v880_v26 = vor.u32 %v1068_v20, %v877_v21  ;;  %v947_v30 = vld [vmem:[%s1224_s18 + $0x90] sm:$0xf] }
  0x14   : > { %503 = vmatpush.bf16.msra.mxu0 %v1105_v4  ;;  %1118 = vmatpush.bf16.msra.mxu2 %v1105_v4  ;;  %v944_v27 = vor.u32 %v1084_v22, %v941_v23  ;;  %v1087_v31 = vld [vmem:[%s1224_s18 + $0x94] sm:$0xf0]  ;;  %v1070_v32 = vld [vmem:[%s1224_s18 + $0x14] sm:$0xf]  ;;  %v885_v33 = vld [vmem:[%s1224_s18 + $0x18] sm:$0xf0] }
  0x15   : > { %592 = vmatpush.bf16.msra.mxu1 %v1113_v5  ;;  %1126 = vmatpush.bf16.msra.mxu3 %v1113_v5  ;;  %v1086_v34 = vld [vmem:[%s1224_s18 + $0x94] sm:$0xf]  ;;  %v949_v35 = vld [vmem:[%s1224_s18 + $0x98] sm:$0xf0]  ;;  %v948_v37 = vor.u32 %v1087_v31, %v947_v30  ;;  %v888_v38 = vor.u32 %v1070_v32, %v885_v33  ;;  %v891_v40 = vld [vmem:[%s1224_s18 + $0x20] sm:$0xf] }
  0x16   : > { %v952_v39 = vor.u32 %v1086_v34, %v949_v35  ;;  %v1073_v41 = vld [vmem:[%s1224_s18 + $0x24] sm:$0xf0]  ;;  %v955_v42 = vld [vmem:[%s1224_s18 + $0xa0] sm:$0xf]  ;;  %v1072_v44 = vld [vmem:[%s1224_s18 + $0x24] sm:$0xf] }
  0x17   : > { %v1089_v43 = vld [vmem:[%s1224_s18 + $0xa4] sm:$0xf0]  ;;  %v893_v45 = vld [vmem:[%s1224_s18 + $0x28] sm:$0xf0]  ;;  %v1088_v46 = vld [vmem:[%s1224_s18 + $0xa4] sm:$0xf]  ;;  %v892_v48 = vor.u32 %v1073_v41, %v891_v40 }
  0x18   : > { %504 = vmatpush.bf16.msra.mxu0 %v1104_v6  ;;  %1119 = vmatpush.bf16.msra.mxu2 %v1104_v6  ;;  %v957_v47 = vld [vmem:[%s1224_s18 + $0xa8] sm:$0xf0]  ;;  %v956_v49 = vor.u32 %v1089_v43, %v955_v42  ;;  %v896_v50 = vor.u32 %v1072_v44, %v893_v45  ;;  %v899_v52 = vld [vmem:[%s1224_s18 + $0x30] sm:$0xf]  ;;  %v1075_v53 = vld [vmem:[%s1224_s18 + $0x34] sm:$0xf0] }
  0x19   : > { %593 = vmatpush.bf16.msra.mxu1 %v1112_v7  ;;  %1127 = vmatpush.bf16.msra.mxu3 %v1112_v7  ;;  %v960_v51 = vor.u32 %v1088_v46, %v957_v47  ;;  %v963_v54 = vld [vmem:[%s1224_s18 + $0xb0] sm:$0xf]  ;;  %v1091_v55 = vld [vmem:[%s1224_s18 + $0xb4] sm:$0xf0]  ;;  %v1074_v56 = vld [vmem:[%s1224_s18 + $0x34] sm:$0xf]  ;;  %v900_v60 = vor.u32 %v1075_v53, %v899_v52 }
  0x1a   : > { %v901_v57 = vld [vmem:[%s1224_s18 + $0x38] sm:$0xf0]  ;;  %v1090_v58 = vld [vmem:[%s1224_s18 + $0xb4] sm:$0xf]  ;;  %v964_v61 = vor.u32 %v1091_v55, %v963_v54  ;;  %v907_v0 = vld [vmem:[%s1224_s18 + $0x40] sm:$0xf] }
  0x1b   : > { %v965_v59 = vld [vmem:[%s1224_s18 + $0xb8] sm:$0xf0]  ;;  %v904_v62 = vor.u32 %v1074_v56, %v901_v57  ;;  %v1077_v1 = vld [vmem:[%s1224_s18 + $0x44] sm:$0xf0]  ;;  %v971_v2 = vld [vmem:[%s1224_s18 + $0xc0] sm:$0xf] }
  0x1c   : > { %505 = vmatpush.bf16.msra.mxu0 %v1103_v8  ;;  %1120 = vmatpush.bf16.msra.mxu2 %v1103_v8  ;;  %v968_v63 = vor.u32 %v1090_v58, %v965_v59  ;;  %v1093_v3 = vld [vmem:[%s1224_s18 + $0xc4] sm:$0xf0]  ;;  %v1076_v4 = vld [vmem:[%s1224_s18 + $0x44] sm:$0xf]  ;;  %v909_v5 = vld [vmem:[%s1224_s18 + $0x48] sm:$0xf0]  ;;  %v908_v8 = vor.u32 %v1077_v1, %v907_v0 }
  0x1d   : > { %594 = vmatpush.bf16.msra.mxu1 %v1111_v9  ;;  %1128 = vmatpush.bf16.msra.mxu3 %v1111_v9  ;;  %v1092_v6 = vld [vmem:[%s1224_s18 + $0xc4] sm:$0xf]  ;;  %v973_v7 = vld [vmem:[%s1224_s18 + $0xc8] sm:$0xf0]  ;;  %v972_v9 = vor.u32 %v1093_v3, %v971_v2  ;;  %v1078_v16 = vld [vmem:[%s1224_s18 + $0x54] sm:$0xf] }
  0x1e   : > { %v917_v17 = vld [vmem:[%s1224_s18 + $0x58] sm:$0xf0]  ;;  %v1094_v18 = vld [vmem:[%s1224_s18 + $0xd4] sm:$0xf]  ;;  %v1080_v28 = vld [vmem:[%s1224_s18 + $0x64] sm:$0xf] }
  0x1f   : > { %v981_v19 = vld [vmem:[%s1224_s18 + $0xd8] sm:$0xf0]  ;;  %v920_v22 = vor.u32 %v1078_v16, %v917_v17  ;;  %v925_v29 = vld [vmem:[%s1224_s18 + $0x68] sm:$0xf0]  ;;  %v1096_v30 = vld [vmem:[%s1224_s18 + $0xe4] sm:$0xf] }
  0x20   : > { %506 = vmatpush.bf16.msra.mxu0 %v1102_v10  ;;  %1121 = vmatpush.bf16.msra.mxu2 %v1102_v10  ;;  %v912_v10 = vor.u32 %v1076_v4, %v909_v5  ;;  %v984_v23 = vor.u32 %v1094_v18, %v981_v19  ;;  %v989_v31 = vld [vmem:[%s1224_s18 + $0xe8] sm:$0xf0]  ;;  %v928_v34 = vor.u32 %v1080_v28, %v925_v29  ;;  %v1082_v40 = vld [vmem:[%s1224_s18 + $0x74] sm:$0xf]  ;;  %v933_v41 = vld [vmem:[%s1224_s18 + $0x78] sm:$0xf0] }
  0x21   : > { %595 = vmatpush.bf16.msra.mxu1 %v1110_v11  ;;  %1129 = vmatpush.bf16.msra.mxu3 %v1110_v11  ;;  %v976_v11 = vor.u32 %v1092_v6, %v973_v7  ;;  %v992_v35 = vor.u32 %v1096_v30, %v989_v31  ;;  %v1098_v42 = vld [vmem:[%s1224_s18 + $0xf4] sm:$0xf]  ;;  %v997_v43 = vld [vmem:[%s1224_s18 + $0xf8] sm:$0xf0]  ;;  %v936_v46 = vor.u32 %v1082_v40, %v933_v41 }
  0x22   : > { %v1000_v47 = vor.u32 %v1098_v42, %v997_v43 }
  0x24   : > { %507 = vmatpush.bf16.msra.mxu0 %v1101_v12  ;;  %1122 = vmatpush.bf16.msra.mxu2 %v1101_v12  ;;  %v915_v12 = vld [vmem:[%s1224_s18 + $0x50] sm:$0xf] }
  0x25   : > { %596 = vmatpush.bf16.msra.mxu1 %v1109_v13  ;;  %1130 = vmatpush.bf16.msra.mxu3 %v1109_v13  ;;  %v1079_v13 = vld [vmem:[%s1224_s18 + $0x54] sm:$0xf0] }
  0x26   : > { %v916_v20 = vor.u32 %v1079_v13, %v915_v12 }
  0x28   : > { %508 = vmatpush.bf16.msra.mxu0 %v1100_v14  ;;  %1123 = vmatpush.bf16.msra.mxu2 %v1100_v14  ;;  %v979_v14 = vld [vmem:[%s1224_s18 + $0xd0] sm:$0xf] }
  0x29   : > { %597 = vmatpush.bf16.msra.mxu1 %v1108_v15  ;;  %1131 = vmatpush.bf16.msra.mxu3 %v1108_v15  ;;  %v1095_v15 = vld [vmem:[%s1224_s18 + $0xd4] sm:$0xf0] }
  0x2a   : > { %v980_v21 = vor.u32 %v1095_v15, %v979_v14 }
  0x2b   : > { %509 = vmatmul.bf16.vlgmr.msra.gmra.mxu0 %v876_v24  ;;  %549 = vmatmul.bf16.vlgmr.msra.gmra.mxu2 %v940_v25  ;;  %v923_v24 = vld [vmem:[%s1224_s18 + $0x60] sm:$0xf]  ;;  %v1081_v25 = vld [vmem:[%s1224_s18 + $0x64] sm:$0xf0] }
  0x2c   : > { %598 = vmatmul.bf16.vlgmr.msra.gmra.mxu1 %v880_v26  ;;  %638 = vmatmul.bf16.vlgmr.msra.gmra.mxu3 %v944_v27  ;;  %v987_v26 = vld [vmem:[%s1224_s18 + $0xe0] sm:$0xf]  ;;  %v1097_v27 = vld [vmem:[%s1224_s18 + $0xe4] sm:$0xf0]  ;;  %v924_v32 = vor.u32 %v1081_v25, %v923_v24 }
  0x2d   : > { %v988_v33 = vor.u32 %v1097_v27, %v987_v26 }
  0x3b   : > { %514 = vmatmul.bf16.gmra.mxu0 %v884_v36  ;;  %554 = vmatmul.bf16.gmra.mxu2 %v948_v37  ;;  %v931_v36 = vld [vmem:[%s1224_s18 + $0x70] sm:$0xf]  ;;  %v1083_v37 = vld [vmem:[%s1224_s18 + $0x74] sm:$0xf0] }
  0x3c   : > { %603 = vmatmul.bf16.gmra.mxu1 %v888_v38  ;;  %643 = vmatmul.bf16.gmra.mxu3 %v952_v39  ;;  %v995_v38 = vld [vmem:[%s1224_s18 + $0xf0] sm:$0xf]  ;;  %v1099_v39 = vld [vmem:[%s1224_s18 + $0xf4] sm:$0xf0]  ;;  %v932_v44 = vor.u32 %v1083_v37, %v931_v36 }
  0x3d   : > { %v996_v45 = vor.u32 %v1099_v39, %v995_v38 }
  0x4b   : > { %519 = vmatmul.bf16.gmra.mxu0 %v892_v48  ;;  %559 = vmatmul.bf16.gmra.mxu2 %v956_v49  ;;  %v1302_v48 = vld [vmem:[%s1380_s2] ss:$0 sm:$0xff] }
  0x4c   : > { %608 = vmatmul.bf16.gmra.mxu1 %v896_v50  ;;  %648 = vmatmul.bf16.gmra.mxu3 %v960_v51 }
  0x5b   : > { %524 = vmatmul.bf16.gmra.mxu0 %v900_v60  ;;  %564 = vmatmul.bf16.gmra.mxu2 %v964_v61 }
  0x5c   : > { %613 = vmatmul.bf16.gmra.mxu1 %v904_v62  ;;  %653 = vmatmul.bf16.gmra.mxu3 %v968_v63 }
  0x6b   : > { %529 = vmatmul.bf16.gmra.mxu0 %v908_v8  ;;  %569 = vmatmul.bf16.gmra.mxu2 %v972_v9 }
  0x6c   : > { %618 = vmatmul.bf16.gmra.mxu1 %v912_v10  ;;  %658 = vmatmul.bf16.gmra.mxu3 %v976_v11 }
  0x7b   : > { %534 = vmatmul.bf16.gmra.mxu0 %v916_v20  ;;  %574 = vmatmul.bf16.gmra.mxu2 %v980_v21 }
  0x7c   : > { %623 = vmatmul.bf16.gmra.mxu1 %v920_v22  ;;  %663 = vmatmul.bf16.gmra.mxu3 %v984_v23 }
  0x8b   : > { %539 = vmatmul.bf16.gmra.mxu0 %v924_v32  ;;  %579 = vmatmul.bf16.gmra.mxu2 %v988_v33 }
  0x8c   : > { %628 = vmatmul.bf16.gmra.mxu1 %v928_v34  ;;  %668 = vmatmul.bf16.gmra.mxu3 %v992_v35 }
  0x9b   : > { %544 = vmatmul.bf16.gmra.mxu0 %v932_v44  ;;  %584 = vmatmul.bf16.gmra.mxu2 %v996_v45 }
  0x9c   : > { %633 = vmatmul.bf16.gmra.mxu1 %v936_v46  ;;  %673 = vmatmul.bf16.gmra.mxu3 %v1000_v47 }
  0xa8   : > { %v510_v49 = vpop.f32.mrf.mxu0 }
  0xa9   : > { %v511_v50 = vadd.f32 %v1302_v48, %v510_v49  ;;  %v599_v51 = vpop.f32.mrf.mxu1 }
  0xab   : > { %v600_v52 = vadd.f32 %v599_v51, %v511_v50 }
  0xad   : > { %vm679_vm0 = vcmp.gt.f32.partialorder %v600_v52, 0.0  ;;  %v711_v53 = vmul.f32 0.01, %v600_v52 }
  0xae   : > { %v550_v54 = vpop.f32.mrf.mxu2 }
  0xaf   : > { %v743_v55 = vsel %vm679_vm0, %v600_v52, %v711_v53  ;;  %v551_v56 = vadd.f32 %v1302_v48, %v550_v54  ;;  %v639_v57 = vpop.f32.mrf.mxu3 }
  0xb0   : > { %775 = vst [vmem:[%s1310_s30] sm:$0xff] %v743_v55  ;;  %v512_v58 = vpop.f32.mrf.mxu0 }
  0xb1   : > { %v640_v59 = vadd.f32 %v639_v57, %v551_v56  ;;  %v513_v60 = vadd.f32 %v1302_v48, %v512_v58  ;;  %v601_v61 = vpop.f32.mrf.mxu1 }
  0xb3   : > { %vm695_vm1 = vcmp.gt.f32.partialorder %v640_v59, 0.0  ;;  %v727_v62 = vmul.f32 0.01, %v640_v59  ;;  %v602_v63 = vadd.f32 %v601_v61, %v513_v60 }
  0xb5   : > { %v759_v0 = vsel %vm695_vm1, %v640_v59, %v727_v62  ;;  %vm680_vm2 = vcmp.gt.f32.partialorder %v602_v63, 0.0  ;;  %v712_v1 = vmul.f32 0.01, %v602_v63 }
  0xb6   : > { %791 = vst [vmem:[%s1310_s30 + $0x80] sm:$0xff] %v759_v0  ;;  %v552_v2 = vpop.f32.mrf.mxu2 }
  0xb7   : > { %v744_v3 = vsel %vm680_vm2, %v602_v63, %v712_v1  ;;  %v553_v4 = vadd.f32 %v1302_v48, %v552_v2  ;;  %v641_v5 = vpop.f32.mrf.mxu3 }
  0xb8   : > { %776 = vst [vmem:[%s1310_s30 + $0x8] sm:$0xff] %v744_v3  ;;  %v515_v6 = vpop.f32.mrf.mxu0 }
  0xb9   : > { %v642_v7 = vadd.f32 %v641_v5, %v553_v4  ;;  %v516_v8 = vadd.f32 %v1302_v48, %v515_v6  ;;  %v604_v9 = vpop.f32.mrf.mxu1 }
  0xbb   : > { %vm696_vm3 = vcmp.gt.f32.partialorder %v642_v7, 0.0  ;;  %v728_v10 = vmul.f32 0.01, %v642_v7  ;;  %v605_v11 = vadd.f32 %v604_v9, %v516_v8 }
  0xbd   : > { %v760_v12 = vsel %vm696_vm3, %v642_v7, %v728_v10  ;;  %vm681_vm4 = vcmp.gt.f32.partialorder %v605_v11, 0.0  ;;  %v713_v13 = vmul.f32 0.01, %v605_v11 }
  0xbe   : > { %792 = vst [vmem:[%s1310_s30 + $0x88] sm:$0xff] %v760_v12  ;;  %v555_v14 = vpop.f32.mrf.mxu2 }
  0xbf   : > { %v745_v15 = vsel %vm681_vm4, %v605_v11, %v713_v13  ;;  %v556_v16 = vadd.f32 %v1302_v48, %v555_v14  ;;  %v644_v17 = vpop.f32.mrf.mxu3 }
  0xc0   : > { %777 = vst [vmem:[%s1310_s30 + $0x10] sm:$0xff] %v745_v15  ;;  %v517_v18 = vpop.f32.mrf.mxu0 }
  0xc1   : > { %v645_v19 = vadd.f32 %v644_v17, %v556_v16  ;;  %v518_v20 = vadd.f32 %v1302_v48, %v517_v18  ;;  %v606_v21 = vpop.f32.mrf.mxu1 }
  0xc3   : > { %vm697_vm5 = vcmp.gt.f32.partialorder %v645_v19, 0.0  ;;  %v729_v22 = vmul.f32 0.01, %v645_v19  ;;  %v607_v23 = vadd.f32 %v606_v21, %v518_v20 }
  0xc5   : > { %v761_v24 = vsel %vm697_vm5, %v645_v19, %v729_v22  ;;  %vm682_vm6 = vcmp.gt.f32.partialorder %v607_v23, 0.0  ;;  %v714_v25 = vmul.f32 0.01, %v607_v23 }
  0xc6   : > { %793 = vst [vmem:[%s1310_s30 + $0x90] sm:$0xff] %v761_v24  ;;  %v557_v26 = vpop.f32.mrf.mxu2 }
  0xc7   : > { %v746_v27 = vsel %vm682_vm6, %v607_v23, %v714_v25  ;;  %v558_v28 = vadd.f32 %v1302_v48, %v557_v26  ;;  %v646_v29 = vpop.f32.mrf.mxu3 }
  0xc8   : > { %778 = vst [vmem:[%s1310_s30 + $0x18] sm:$0xff] %v746_v27  ;;  %v520_v30 = vpop.f32.mrf.mxu0 }
  0xc9   : > { %v647_v31 = vadd.f32 %v646_v29, %v558_v28  ;;  %v521_v32 = vadd.f32 %v1302_v48, %v520_v30  ;;  %v609_v33 = vpop.f32.mrf.mxu1 }
  0xcb   : > { %vm698_vm7 = vcmp.gt.f32.partialorder %v647_v31, 0.0  ;;  %v730_v34 = vmul.f32 0.01, %v647_v31  ;;  %v610_v35 = vadd.f32 %v609_v33, %v521_v32 }
  0xcd   : > { %v762_v36 = vsel %vm698_vm7, %v647_v31, %v730_v34  ;;  %vm683_vm8 = vcmp.gt.f32.partialorder %v610_v35, 0.0  ;;  %v715_v37 = vmul.f32 0.01, %v610_v35 }
  0xce   : > { %794 = vst [vmem:[%s1310_s30 + $0x98] sm:$0xff] %v762_v36  ;;  %v560_v38 = vpop.f32.mrf.mxu2 }
  0xcf   : > { %v747_v39 = vsel %vm683_vm8, %v610_v35, %v715_v37  ;;  %v561_v40 = vadd.f32 %v1302_v48, %v560_v38  ;;  %v649_v41 = vpop.f32.mrf.mxu3 }
  0xd0   : > { %779 = vst [vmem:[%s1310_s30 + $0x20] sm:$0xff] %v747_v39  ;;  %v522_v42 = vpop.f32.mrf.mxu0 }
  0xd1   : > { %v650_v43 = vadd.f32 %v649_v41, %v561_v40  ;;  %v523_v44 = vadd.f32 %v1302_v48, %v522_v42  ;;  %v611_v45 = vpop.f32.mrf.mxu1 }
  0xd3   : > { %vm699_vm9 = vcmp.gt.f32.partialorder %v650_v43, 0.0  ;;  %v731_v46 = vmul.f32 0.01, %v650_v43  ;;  %v612_v47 = vadd.f32 %v611_v45, %v523_v44 }
  0xd5   : > { %v763_v49 = vsel %vm699_vm9, %v650_v43, %v731_v46  ;;  %vm684_vm10 = vcmp.gt.f32.partialorder %v612_v47, 0.0  ;;  %v716_v50 = vmul.f32 0.01, %v612_v47 }
  0xd6   : > { %795 = vst [vmem:[%s1310_s30 + $0xa0] sm:$0xff] %v763_v49  ;;  %v562_v51 = vpop.f32.mrf.mxu2 }
  0xd7   : > { %v748_v52 = vsel %vm684_vm10, %v612_v47, %v716_v50  ;;  %v563_v53 = vadd.f32 %v1302_v48, %v562_v51  ;;  %v651_v54 = vpop.f32.mrf.mxu3 }
  0xd8   : > { %780 = vst [vmem:[%s1310_s30 + $0x28] sm:$0xff] %v748_v52  ;;  %v525_v55 = vpop.f32.mrf.mxu0 }
  0xd9   : > { %v652_v56 = vadd.f32 %v651_v54, %v563_v53  ;;  %v526_v57 = vadd.f32 %v1302_v48, %v525_v55  ;;  %v614_v58 = vpop.f32.mrf.mxu1 }
  0xdb   : > { %vm700_vm11 = vcmp.gt.f32.partialorder %v652_v56, 0.0  ;;  %v732_v59 = vmul.f32 0.01, %v652_v56  ;;  %v615_v60 = vadd.f32 %v614_v58, %v526_v57 }
  0xdd   : > { %v764_v61 = vsel %vm700_vm11, %v652_v56, %v732_v59  ;;  %vm685_vm12 = vcmp.gt.f32.partialorder %v615_v60, 0.0  ;;  %v717_v62 = vmul.f32 0.01, %v615_v60 }
  0xde   : > { %796 = vst [vmem:[%s1310_s30 + $0xa8] sm:$0xff] %v764_v61  ;;  %v565_v63 = vpop.f32.mrf.mxu2 }
  0xdf   : > { %v749_v0 = vsel %vm685_vm12, %v615_v60, %v717_v62  ;;  %v566_v1 = vadd.f32 %v1302_v48, %v565_v63  ;;  %v654_v2 = vpop.f32.mrf.mxu3 }
  0xe0   : > { %781 = vst [vmem:[%s1310_s30 + $0x30] sm:$0xff] %v749_v0  ;;  %v527_v3 = vpop.f32.mrf.mxu0 }
  0xe1   : > { %v655_v4 = vadd.f32 %v654_v2, %v566_v1  ;;  %v528_v5 = vadd.f32 %v1302_v48, %v527_v3  ;;  %v616_v6 = vpop.f32.mrf.mxu1 }
  0xe3   : > { %vm701_vm13 = vcmp.gt.f32.partialorder %v655_v4, 0.0  ;;  %v733_v7 = vmul.f32 0.01, %v655_v4  ;;  %v617_v8 = vadd.f32 %v616_v6, %v528_v5 }
  0xe5   : > { %v765_v9 = vsel %vm701_vm13, %v655_v4, %v733_v7  ;;  %vm686_vm14 = vcmp.gt.f32.partialorder %v617_v8, 0.0  ;;  %v718_v10 = vmul.f32 0.01, %v617_v8 }
  0xe6   : > { %797 = vst [vmem:[%s1310_s30 + $0xb0] sm:$0xff] %v765_v9  ;;  %v567_v11 = vpop.f32.mrf.mxu2 }
  0xe7   : > { %v750_v12 = vsel %vm686_vm14, %v617_v8, %v718_v10  ;;  %v568_v13 = vadd.f32 %v1302_v48, %v567_v11  ;;  %v656_v14 = vpop.f32.mrf.mxu3 }
  0xe8   : > { %782 = vst [vmem:[%s1310_s30 + $0x38] sm:$0xff] %v750_v12  ;;  %v530_v15 = vpop.f32.mrf.mxu0 }
  0xe9   : > { %v657_v16 = vadd.f32 %v656_v14, %v568_v13  ;;  %v531_v17 = vadd.f32 %v1302_v48, %v530_v15  ;;  %v619_v18 = vpop.f32.mrf.mxu1 }
  0xeb   : > { %vm702_vm15 = vcmp.gt.f32.partialorder %v657_v16, 0.0  ;;  %v734_v19 = vmul.f32 0.01, %v657_v16  ;;  %v620_v20 = vadd.f32 %v619_v18, %v531_v17 }
  0xed   : > { %v766_v21 = vsel %vm702_vm15, %v657_v16, %v734_v19  ;;  %vm687_vm0 = vcmp.gt.f32.partialorder %v620_v20, 0.0  ;;  %v719_v22 = vmul.f32 0.01, %v620_v20 }
  0xee   : > { %798 = vst [vmem:[%s1310_s30 + $0xb8] sm:$0xff] %v766_v21  ;;  %v570_v23 = vpop.f32.mrf.mxu2 }
  0xef   : > { %v751_v24 = vsel %vm687_vm0, %v620_v20, %v719_v22  ;;  %v571_v25 = vadd.f32 %v1302_v48, %v570_v23  ;;  %v659_v26 = vpop.f32.mrf.mxu3 }
  0xf0   : > { %783 = vst [vmem:[%s1310_s30 + $0x40] sm:$0xff] %v751_v24  ;;  %v532_v27 = vpop.f32.mrf.mxu0 }
  0xf1   : > { %v660_v28 = vadd.f32 %v659_v26, %v571_v25  ;;  %v533_v29 = vadd.f32 %v1302_v48, %v532_v27  ;;  %v621_v30 = vpop.f32.mrf.mxu1 }
  0xf3   : > { %vm703_vm1 = vcmp.gt.f32.partialorder %v660_v28, 0.0  ;;  %v735_v31 = vmul.f32 0.01, %v660_v28  ;;  %v622_v32 = vadd.f32 %v621_v30, %v533_v29 }
  0xf5   : > { %v767_v33 = vsel %vm703_vm1, %v660_v28, %v735_v31  ;;  %vm688_vm2 = vcmp.gt.f32.partialorder %v622_v32, 0.0  ;;  %v720_v34 = vmul.f32 0.01, %v622_v32 }
  0xf6   : > { %799 = vst [vmem:[%s1310_s30 + $0xc0] sm:$0xff] %v767_v33  ;;  %v572_v35 = vpop.f32.mrf.mxu2 }
  0xf7   : > { %v752_v36 = vsel %vm688_vm2, %v622_v32, %v720_v34  ;;  %v573_v37 = vadd.f32 %v1302_v48, %v572_v35  ;;  %v661_v38 = vpop.f32.mrf.mxu3 }
  0xf8   : > { %784 = vst [vmem:[%s1310_s30 + $0x48] sm:$0xff] %v752_v36  ;;  %v535_v39 = vpop.f32.mrf.mxu0 }
  0xf9   : > { %v662_v40 = vadd.f32 %v661_v38, %v573_v37  ;;  %v536_v41 = vadd.f32 %v1302_v48, %v535_v39  ;;  %v624_v42 = vpop.f32.mrf.mxu1 }
  0xfb   : > { %vm704_vm3 = vcmp.gt.f32.partialorder %v662_v40, 0.0  ;;  %v736_v43 = vmul.f32 0.01, %v662_v40  ;;  %v625_v44 = vadd.f32 %v624_v42, %v536_v41 }
  0xfd   : > { %v768_v45 = vsel %vm704_vm3, %v662_v40, %v736_v43  ;;  %vm689_vm4 = vcmp.gt.f32.partialorder %v625_v44, 0.0  ;;  %v721_v46 = vmul.f32 0.01, %v625_v44 }
  0xfe   : > { %800 = vst [vmem:[%s1310_s30 + $0xc8] sm:$0xff] %v768_v45  ;;  %v575_v47 = vpop.f32.mrf.mxu2 }
  0xff   : > { %v753_v49 = vsel %vm689_vm4, %v625_v44, %v721_v46  ;;  %v576_v50 = vadd.f32 %v1302_v48, %v575_v47  ;;  %v664_v51 = vpop.f32.mrf.mxu3 }
 0x100   : > { %785 = vst [vmem:[%s1310_s30 + $0x50] sm:$0xff] %v753_v49  ;;  %v537_v52 = vpop.f32.mrf.mxu0 }
 0x101   : > { %v665_v53 = vadd.f32 %v664_v51, %v576_v50  ;;  %v538_v54 = vadd.f32 %v1302_v48, %v537_v52  ;;  %v626_v55 = vpop.f32.mrf.mxu1 }
 0x103   : > { %vm705_vm5 = vcmp.gt.f32.partialorder %v665_v53, 0.0  ;;  %v737_v56 = vmul.f32 0.01, %v665_v53  ;;  %v627_v57 = vadd.f32 %v626_v55, %v538_v54 }
 0x105   : > { %v769_v58 = vsel %vm705_vm5, %v665_v53, %v737_v56  ;;  %vm690_vm6 = vcmp.gt.f32.partialorder %v627_v57, 0.0  ;;  %v722_v59 = vmul.f32 0.01, %v627_v57 }
 0x106   : > { %801 = vst [vmem:[%s1310_s30 + $0xd0] sm:$0xff] %v769_v58  ;;  %v577_v60 = vpop.f32.mrf.mxu2 }
 0x107   : > { %v754_v61 = vsel %vm690_vm6, %v627_v57, %v722_v59  ;;  %v578_v62 = vadd.f32 %v1302_v48, %v577_v60  ;;  %v666_v63 = vpop.f32.mrf.mxu3 }
 0x108   : > { %786 = vst [vmem:[%s1310_s30 + $0x58] sm:$0xff] %v754_v61  ;;  %v540_v0 = vpop.f32.mrf.mxu0 }
 0x109   : > { %v667_v1 = vadd.f32 %v666_v63, %v578_v62  ;;  %v541_v2 = vadd.f32 %v1302_v48, %v540_v0  ;;  %v629_v3 = vpop.f32.mrf.mxu1 }
 0x10b   : > { %vm706_vm7 = vcmp.gt.f32.partialorder %v667_v1, 0.0  ;;  %v738_v4 = vmul.f32 0.01, %v667_v1  ;;  %v630_v5 = vadd.f32 %v629_v3, %v541_v2 }
 0x10d   : > { %v770_v6 = vsel %vm706_vm7, %v667_v1, %v738_v4  ;;  %vm691_vm8 = vcmp.gt.f32.partialorder %v630_v5, 0.0  ;;  %v723_v7 = vmul.f32 0.01, %v630_v5 }
 0x10e   : > { %802 = vst [vmem:[%s1310_s30 + $0xd8] sm:$0xff] %v770_v6  ;;  %v580_v8 = vpop.f32.mrf.mxu2 }
 0x10f   : > { %v755_v9 = vsel %vm691_vm8, %v630_v5, %v723_v7  ;;  %v581_v10 = vadd.f32 %v1302_v48, %v580_v8  ;;  %v669_v11 = vpop.f32.mrf.mxu3 }
 0x110   : > { %787 = vst [vmem:[%s1310_s30 + $0x60] sm:$0xff] %v755_v9  ;;  %v542_v12 = vpop.f32.mrf.mxu0 }
 0x111   : > { %v670_v13 = vadd.f32 %v669_v11, %v581_v10  ;;  %v543_v14 = vadd.f32 %v1302_v48, %v542_v12  ;;  %v631_v15 = vpop.f32.mrf.mxu1 }
 0x113   : > { %vm707_vm9 = vcmp.gt.f32.partialorder %v670_v13, 0.0  ;;  %v739_v16 = vmul.f32 0.01, %v670_v13  ;;  %v632_v17 = vadd.f32 %v631_v15, %v543_v14 }
 0x115   : > { %v771_v18 = vsel %vm707_vm9, %v670_v13, %v739_v16  ;;  %vm692_vm10 = vcmp.gt.f32.partialorder %v632_v17, 0.0  ;;  %v724_v19 = vmul.f32 0.01, %v632_v17 }
 0x116   : > { %803 = vst [vmem:[%s1310_s30 + $0xe0] sm:$0xff] %v771_v18  ;;  %v582_v20 = vpop.f32.mrf.mxu2 }
 0x117   : > { %v756_v21 = vsel %vm692_vm10, %v632_v17, %v724_v19  ;;  %v583_v22 = vadd.f32 %v1302_v48, %v582_v20  ;;  %v671_v23 = vpop.f32.mrf.mxu3 }
 0x118   : > { %788 = vst [vmem:[%s1310_s30 + $0x68] sm:$0xff] %v756_v21  ;;  %v545_v24 = vpop.f32.mrf.mxu0 }
 0x119   : > { %v672_v25 = vadd.f32 %v671_v23, %v583_v22  ;;  %v546_v26 = vadd.f32 %v1302_v48, %v545_v24  ;;  %v634_v27 = vpop.f32.mrf.mxu1 }
 0x11b   : > { %vm708_vm11 = vcmp.gt.f32.partialorder %v672_v25, 0.0  ;;  %v740_v28 = vmul.f32 0.01, %v672_v25  ;;  %v635_v29 = vadd.f32 %v634_v27, %v546_v26 }
 0x11d   : > { %v772_v30 = vsel %vm708_vm11, %v672_v25, %v740_v28  ;;  %vm693_vm12 = vcmp.gt.f32.partialorder %v635_v29, 0.0  ;;  %v725_v31 = vmul.f32 0.01, %v635_v29 }
 0x11e   : > { %804 = vst [vmem:[%s1310_s30 + $0xe8] sm:$0xff] %v772_v30  ;;  %v585_v32 = vpop.f32.mrf.mxu2 }
 0x11f   : > { %v757_v33 = vsel %vm693_vm12, %v635_v29, %v725_v31  ;;  %v586_v34 = vadd.f32 %v1302_v48, %v585_v32  ;;  %v674_v35 = vpop.f32.mrf.mxu3 }
 0x120   : > { %789 = vst [vmem:[%s1310_s30 + $0x70] sm:$0xff] %v757_v33  ;;  %v547_v36 = vpop.f32.mrf.mxu0 }
 0x121   : > { %v675_v37 = vadd.f32 %v674_v35, %v586_v34  ;;  %v548_v38 = vadd.f32 %v1302_v48, %v547_v36  ;;  %v636_v39 = vpop.f32.mrf.mxu1 }
 0x123   : > { %vm709_vm13 = vcmp.gt.f32.partialorder %v675_v37, 0.0  ;;  %v741_v40 = vmul.f32 0.01, %v675_v37  ;;  %v637_v41 = vadd.f32 %v636_v39, %v548_v38 }
 0x125   : > { %v773_v42 = vsel %vm709_vm13, %v675_v37, %v741_v40  ;;  %vm694_vm14 = vcmp.gt.f32.partialorder %v637_v41, 0.0  ;;  %v726_v43 = vmul.f32 0.01, %v637_v41 }
 0x126   : > { %805 = vst [vmem:[%s1310_s30 + $0xf0] sm:$0xff] %v773_v42  ;;  %v587_v44 = vpop.f32.mrf.mxu2 }
 0x127   : > { %v758_v45 = vsel %vm694_vm14, %v637_v41, %v726_v43  ;;  %v588_v46 = vadd.f32 %v1302_v48, %v587_v44  ;;  %v676_v47 = vpop.f32.mrf.mxu3 }
 0x128   : > { %790 = vst [vmem:[%s1310_s30 + $0x78] sm:$0xff] %v758_v45 }
 0x129   : > { %v677_v49 = vadd.f32 %v676_v47, %v588_v46 }
 0x12b   : > { %vm710_vm15 = vcmp.gt.f32.partialorder %v677_v49, 0.0  ;;  %v742_v50 = vmul.f32 0.01, %v677_v49 }
 0x12d   : > { %v774_v51 = vsel %vm710_vm15, %v677_v49, %v742_v50 }
 0x12e   : > { %806 = vst [vmem:[%s1310_s30 + $0xf8] sm:$0xff] %v774_v51 }
 0x12f PF: > { %s13_s12 = sadd.s32 1, %s1147_s12  }
 0x130   : > { %p10_p4 = scmp.ge.s32.totalorder %s13_s12, 6  }
 0x132   :  { %12 = sbr.rel (!%p10_p4) target bundleno = 1 (0x1), region = 62 }

// kernel: dqn_forward.5
= control target key start
LH: loop header
LB: loop body
LE: loop exit
PB: predicated region body
PF: predicated region fallthrough
CT: control target
= control target key end

     0   :  { %s1682_s1 = inlined_call_operand.vmem [shape: bf16[512,128], index: 1, kind: input, shape index: {}]   ;;  %s1683_s2 = inlined_call_operand.vmem [shape: f32[1,128], index: 2, kind: input, shape index: {}]   ;;  %s1684_s0 = inlined_call_operand.vmem [shape: bf16[168,512], index: 0, kind: input, shape index: {}]   ;;  %s1685_s3 = inlined_call_operand.vmem [shape: f32[168,128], index: 3, kind: output, shape index: {}]  }
   0x1   :  { %v1205_v0 = vld [vmem:[%s1682_s1 + $0x38] sm:$0xff]  ;;  %v1204_v4 = vld [vmem:[%s1682_s1 + $0x30] sm:$0xff]  ;;  %v1203_v8 = vld [vmem:[%s1682_s1 + $0x28] sm:$0xff] }
   0x2   :  { %v1213_v1 = vld [vmem:[%s1682_s1 + $0x78] sm:$0xff]  ;;  %530 = vmatpush.bf16.msra.mxu0 %v1205_v0  ;;  %v1212_v5 = vld [vmem:[%s1682_s1 + $0x70] sm:$0xff]  ;;  %v1211_v9 = vld [vmem:[%s1682_s1 + $0x68] sm:$0xff] }
   0x3   :  { %v1221_v2 = vld [vmem:[%s1682_s1 + $0xb8] sm:$0xff]  ;;  %593 = vmatpush.bf16.msra.mxu1 %v1213_v1  ;;  %v1220_v6 = vld [vmem:[%s1682_s1 + $0xb0] sm:$0xff]  ;;  %v1219_v10 = vld [vmem:[%s1682_s1 + $0xa8] sm:$0xff] }
   0x4   :  { %v1229_v3 = vld [vmem:[%s1682_s1 + $0xf8] sm:$0xff]  ;;  %656 = vmatpush.bf16.msra.mxu2 %v1221_v2  ;;  %v1228_v7 = vld [vmem:[%s1682_s1 + $0xf0] sm:$0xff]  ;;  %v1227_v11 = vld [vmem:[%s1682_s1 + $0xe8] sm:$0xff] }
   0x5   :  { %719 = vmatpush.bf16.msra.mxu3 %v1229_v3  ;;  %v1202_v12 = vld [vmem:[%s1682_s1 + $0x20] sm:$0xff]  ;;  %v1201_v16 = vld [vmem:[%s1682_s1 + $0x18] sm:$0xff]  ;;  %v1200_v20 = vld [vmem:[%s1682_s1 + $0x10] sm:$0xff] }
   0x6   :  { %531 = vmatpush.bf16.msra.mxu0 %v1204_v4  ;;  %v1210_v13 = vld [vmem:[%s1682_s1 + $0x60] sm:$0xff]  ;;  %v1209_v17 = vld [vmem:[%s1682_s1 + $0x58] sm:$0xff]  ;;  %v1208_v21 = vld [vmem:[%s1682_s1 + $0x50] sm:$0xff] }
   0x7   :  { %594 = vmatpush.bf16.msra.mxu1 %v1212_v5  ;;  %v1218_v14 = vld [vmem:[%s1682_s1 + $0xa0] sm:$0xff]  ;;  %v1217_v18 = vld [vmem:[%s1682_s1 + $0x98] sm:$0xff]  ;;  %v1216_v22 = vld [vmem:[%s1682_s1 + $0x90] sm:$0xff] }
   0x8   :  { %657 = vmatpush.bf16.msra.mxu2 %v1220_v6  ;;  %v1226_v15 = vld [vmem:[%s1682_s1 + $0xe0] sm:$0xff]  ;;  %v1225_v19 = vld [vmem:[%s1682_s1 + $0xd8] sm:$0xff]  ;;  %v1224_v23 = vld [vmem:[%s1682_s1 + $0xd0] sm:$0xff] }
   0x9   :  { %720 = vmatpush.bf16.msra.mxu3 %v1228_v7  ;;  %v1199_v24 = vld [vmem:[%s1682_s1 + $0x8] sm:$0xff]  ;;  %v1198_v28 = vld [vmem:[%s1682_s1] sm:$0xff]  ;;  %v1160_v33 = vld [vmem:[%s1684_s0 + $0xc] sm:$0xf0] }
   0xa   :  { %532 = vmatpush.bf16.msra.mxu0 %v1203_v8  ;;  %v1207_v25 = vld [vmem:[%s1682_s1 + $0x48] sm:$0xff]  ;;  %v1206_v29 = vld [vmem:[%s1682_s1 + $0x40] sm:$0xff]  ;;  %v874_v35 = vld [vmem:[%s1684_s0 + $0x10] sm:$0xf0] }
   0xb   :  { %595 = vmatpush.bf16.msra.mxu1 %v1211_v9  ;;  %v1215_v26 = vld [vmem:[%s1682_s1 + $0x88] sm:$0xff]  ;;  %v1214_v30 = vld [vmem:[%s1682_s1 + $0x80] sm:$0xff]  ;;  %v1161_v37 = vld [vmem:[%s1684_s0 + $0x14] sm:$0xf0] }
   0xc   :  { %658 = vmatpush.bf16.msra.mxu2 %v1219_v10  ;;  %v1223_v27 = vld [vmem:[%s1682_s1 + $0xc8] sm:$0xff]  ;;  %v1222_v31 = vld [vmem:[%s1682_s1 + $0xc0] sm:$0xff]  ;;  %v882_v39 = vld [vmem:[%s1684_s0 + $0x18] sm:$0xf0] }
   0xd   :  { %721 = vmatpush.bf16.msra.mxu3 %v1227_v11  ;;  %v872_v32 = vld [vmem:[%s1684_s0] sm:$0xf]  ;;  %v1158_v34 = vld [vmem:[%s1684_s0 + $0x4] sm:$0xf]  ;;  %v880_v36 = vld [vmem:[%s1684_s0 + $0x8] sm:$0xf] }
   0xe   :  { %533 = vmatpush.bf16.msra.mxu0 %v1202_v12  ;;  %v1159_v38 = vld [vmem:[%s1684_s0 + $0xc] sm:$0xf]  ;;  %v873_v40 = vor.u32 %v1160_v33, %v872_v32  ;;  %v877_v41 = vor.u32 %v1158_v34, %v874_v35  ;;  %v881_v42 = vor.u32 %v1161_v37, %v880_v36  ;;  %v888_v44 = vld [vmem:[%s1684_s0 + $0x20] sm:$0xf]  ;;  %v1164_v45 = vld [vmem:[%s1684_s0 + $0x2c] sm:$0xf0] }
   0xf   :  { %596 = vmatpush.bf16.msra.mxu1 %v1210_v13  ;;  %v885_v43 = vor.u32 %v1159_v38, %v882_v39  ;;  %v1162_v46 = vld [vmem:[%s1684_s0 + $0x24] sm:$0xf]  ;;  %v890_v47 = vld [vmem:[%s1684_s0 + $0x30] sm:$0xf0]  ;;  %v896_v48 = vld [vmem:[%s1684_s0 + $0x28] sm:$0xf]  ;;  %v889_v52 = vor.u32 %v1164_v45, %v888_v44 }
  0x10   :  { %659 = vmatpush.bf16.msra.mxu2 %v1218_v14  ;;  %v1165_v49 = vld [vmem:[%s1684_s0 + $0x34] sm:$0xf0]  ;;  %v1163_v50 = vld [vmem:[%s1684_s0 + $0x2c] sm:$0xf]  ;;  %v898_v51 = vld [vmem:[%s1684_s0 + $0x38] sm:$0xf0]  ;;  %v893_v53 = vor.u32 %v1162_v46, %v890_v47 }
  0x11   :  { %722 = vmatpush.bf16.msra.mxu3 %v1226_v15  ;;  %v897_v54 = vor.u32 %v1165_v49, %v896_v48  ;;  %v901_v55 = vor.u32 %v1163_v50, %v898_v51  ;;  %v904_v56 = vld [vmem:[%s1684_s0 + $0x40] sm:$0xf]  ;;  %v1168_v57 = vld [vmem:[%s1684_s0 + $0x4c] sm:$0xf0]  ;;  %v1166_v58 = vld [vmem:[%s1684_s0 + $0x44] sm:$0xf] }
  0x12   :  { %534 = vmatpush.bf16.msra.mxu0 %v1201_v16  ;;  %v906_v59 = vld [vmem:[%s1684_s0 + $0x50] sm:$0xf0]  ;;  %v912_v60 = vld [vmem:[%s1684_s0 + $0x48] sm:$0xf]  ;;  %v1169_v61 = vld [vmem:[%s1684_s0 + $0x54] sm:$0xf0]  ;;  %v905_v0 = vor.u32 %v1168_v57, %v904_v56 }
  0x13   :  { %597 = vmatpush.bf16.msra.mxu1 %v1209_v17  ;;  %v1167_v62 = vld [vmem:[%s1684_s0 + $0x4c] sm:$0xf]  ;;  %v914_v63 = vld [vmem:[%s1684_s0 + $0x58] sm:$0xf0]  ;;  %v909_v1 = vor.u32 %v1166_v58, %v906_v59  ;;  %v913_v2 = vor.u32 %v1169_v61, %v912_v60  ;;  %v920_v4 = vld [vmem:[%s1684_s0 + $0x60] sm:$0xf] }
  0x14   :  { %660 = vmatpush.bf16.msra.mxu2 %v1217_v18  ;;  %v917_v3 = vor.u32 %v1167_v62, %v914_v63  ;;  %v1172_v5 = vld [vmem:[%s1684_s0 + $0x6c] sm:$0xf0]  ;;  %v1170_v6 = vld [vmem:[%s1684_s0 + $0x64] sm:$0xf]  ;;  %v922_v7 = vld [vmem:[%s1684_s0 + $0x70] sm:$0xf0] }
  0x15   :  { %723 = vmatpush.bf16.msra.mxu3 %v1225_v19  ;;  %v928_v8 = vld [vmem:[%s1684_s0 + $0x68] sm:$0xf]  ;;  %v1173_v9 = vld [vmem:[%s1684_s0 + $0x74] sm:$0xf0]  ;;  %v1171_v10 = vld [vmem:[%s1684_s0 + $0x6c] sm:$0xf]  ;;  %v921_v12 = vor.u32 %v1172_v5, %v920_v4  ;;  %v925_v13 = vor.u32 %v1170_v6, %v922_v7 }
  0x16   :  { %535 = vmatpush.bf16.msra.mxu0 %v1200_v20  ;;  %v930_v11 = vld [vmem:[%s1684_s0 + $0x78] sm:$0xf0]  ;;  %v929_v14 = vor.u32 %v1173_v9, %v928_v8  ;;  %v936_v16 = vld [vmem:[%s1684_s0 + $0x80] sm:$0xf]  ;;  %v1176_v17 = vld [vmem:[%s1684_s0 + $0x8c] sm:$0xf0] }
  0x17   :  { %598 = vmatpush.bf16.msra.mxu1 %v1208_v21  ;;  %v933_v15 = vor.u32 %v1171_v10, %v930_v11  ;;  %v1174_v18 = vld [vmem:[%s1684_s0 + $0x84] sm:$0xf]  ;;  %v938_v19 = vld [vmem:[%s1684_s0 + $0x90] sm:$0xf0]  ;;  %v944_v20 = vld [vmem:[%s1684_s0 + $0x88] sm:$0xf] }
  0x18   :  { %661 = vmatpush.bf16.msra.mxu2 %v1216_v22  ;;  %v1177_v21 = vld [vmem:[%s1684_s0 + $0x94] sm:$0xf0]  ;;  %v1175_v22 = vld [vmem:[%s1684_s0 + $0x8c] sm:$0xf]  ;;  %v960_v32 = vld [vmem:[%s1684_s0 + $0xa8] sm:$0xf] }
  0x19   :  { %724 = vmatpush.bf16.msra.mxu3 %v1224_v23  ;;  %v946_v23 = vld [vmem:[%s1684_s0 + $0x98] sm:$0xf0]  ;;  %v1181_v33 = vld [vmem:[%s1684_s0 + $0xb4] sm:$0xf0]  ;;  %v1179_v34 = vld [vmem:[%s1684_s0 + $0xac] sm:$0xf] }
  0x1a   :  { %536 = vmatpush.bf16.msra.mxu0 %v1199_v24  ;;  %v937_v24 = vor.u32 %v1176_v17, %v936_v16  ;;  %v962_v35 = vld [vmem:[%s1684_s0 + $0xb8] sm:$0xf0]  ;;  %v961_v38 = vor.u32 %v1181_v33, %v960_v32  ;;  %v976_v44 = vld [vmem:[%s1684_s0 + $0xc8] sm:$0xf]  ;;  %v1185_v45 = vld [vmem:[%s1684_s0 + $0xd4] sm:$0xf0] }
  0x1b   :  { %599 = vmatpush.bf16.msra.mxu1 %v1207_v25  ;;  %v941_v25 = vor.u32 %v1174_v18, %v938_v19  ;;  %v965_v39 = vor.u32 %v1179_v34, %v962_v35  ;;  %v1183_v46 = vld [vmem:[%s1684_s0 + $0xcc] sm:$0xf]  ;;  %v978_v47 = vld [vmem:[%s1684_s0 + $0xd8] sm:$0xf0]  ;;  %v977_v50 = vor.u32 %v1185_v45, %v976_v44  ;;  %v992_v56 = vld [vmem:[%s1684_s0 + $0xe8] sm:$0xf] }
  0x1c   :  { %662 = vmatpush.bf16.msra.mxu2 %v1215_v26  ;;  %v945_v26 = vor.u32 %v1177_v21, %v944_v20  ;;  %v981_v51 = vor.u32 %v1183_v46, %v978_v47  ;;  %v1189_v57 = vld [vmem:[%s1684_s0 + $0xf4] sm:$0xf0]  ;;  %v1187_v58 = vld [vmem:[%s1684_s0 + $0xec] sm:$0xf]  ;;  %v994_v59 = vld [vmem:[%s1684_s0 + $0xf8] sm:$0xf0] }
  0x1d   :  { %725 = vmatpush.bf16.msra.mxu3 %v1223_v27  ;;  %v949_v27 = vor.u32 %v1175_v22, %v946_v23  ;;  %v993_v62 = vor.u32 %v1189_v57, %v992_v56  ;;  %v997_v63 = vor.u32 %v1187_v58, %v994_v59  ;;  %v1002_v4 = vld [vmem:[%s1684_s0 + $0x110] sm:$0xf0]  ;;  %v1008_v5 = vld [vmem:[%s1684_s0 + $0x108] sm:$0xf]  ;;  %v1193_v6 = vld [vmem:[%s1684_s0 + $0x114] sm:$0xf0] }
  0x1e   :  { %537 = vmatpush.bf16.msra.mxu0 %v1198_v28  ;;  %v952_v28 = vld [vmem:[%s1684_s0 + $0xa0] sm:$0xf]  ;;  %v1191_v7 = vld [vmem:[%s1684_s0 + $0x10c] sm:$0xf]  ;;  %v1010_v8 = vld [vmem:[%s1684_s0 + $0x118] sm:$0xf0] }
  0x1f   :  { %600 = vmatpush.bf16.msra.mxu1 %v1206_v29  ;;  %v1180_v29 = vld [vmem:[%s1684_s0 + $0xac] sm:$0xf0]  ;;  %v1026_v32 = vld [vmem:[%s1684_s0 + $0x138] sm:$0xf0] }
  0x20   :  { %663 = vmatpush.bf16.msra.mxu2 %v1214_v30  ;;  %v1178_v30 = vld [vmem:[%s1684_s0 + $0xa4] sm:$0xf]  ;;  %v953_v36 = vor.u32 %v1180_v29, %v952_v28  ;;  %v1024_v29 = vld [vmem:[%s1684_s0 + $0x128] sm:$0xf] }
  0x21   :  { %726 = vmatpush.bf16.msra.mxu3 %v1222_v31  ;;  %538 = vmatmul.bf16.vlgmr.msra.gmra.mxu0 %v873_v40  ;;  %v954_v31 = vld [vmem:[%s1684_s0 + $0xb0] sm:$0xf0]  ;;  %v968_v40 = vld [vmem:[%s1684_s0 + $0xc0] sm:$0xf] }
  0x22   :  { %601 = vmatmul.bf16.vlgmr.msra.gmra.mxu1 %v877_v41  ;;  %v957_v37 = vor.u32 %v1178_v30, %v954_v31  ;;  %v1184_v41 = vld [vmem:[%s1684_s0 + $0xcc] sm:$0xf0]  ;;  %v1197_v30 = vld [vmem:[%s1684_s0 + $0x134] sm:$0xf0]  ;;  %v1195_v31 = vld [vmem:[%s1684_s0 + $0x12c] sm:$0xf] }
  0x23   :  { %664 = vmatmul.bf16.vlgmr.msra.gmra.mxu2 %v881_v42  ;;  %v1182_v42 = vld [vmem:[%s1684_s0 + $0xc4] sm:$0xf]  ;;  %v969_v48 = vor.u32 %v1184_v41, %v968_v40 }
  0x24   :  { %727 = vmatmul.bf16.vlgmr.msra.gmra.mxu3 %v885_v43  ;;  %v970_v43 = vld [vmem:[%s1684_s0 + $0xd0] sm:$0xf0] }
  0x25   :  { %v973_v49 = vor.u32 %v1182_v42, %v970_v43  ;;  %v1025_v42 = vor.u32 %v1197_v30, %v1024_v29  ;;  %v1029_v43 = vor.u32 %v1195_v31, %v1026_v32 }
  0x31   :  { %543 = vmatmul.bf16.gmra.mxu0 %v889_v52  ;;  %v984_v52 = vld [vmem:[%s1684_s0 + $0xe0] sm:$0xf] }
  0x32   :  { %606 = vmatmul.bf16.gmra.mxu1 %v893_v53  ;;  %v1188_v53 = vld [vmem:[%s1684_s0 + $0xec] sm:$0xf0] }
  0x33   :  { %669 = vmatmul.bf16.gmra.mxu2 %v897_v54  ;;  %v1186_v54 = vld [vmem:[%s1684_s0 + $0xe4] sm:$0xf]  ;;  %v985_v60 = vor.u32 %v1188_v53, %v984_v52 }
  0x34   :  { %732 = vmatmul.bf16.gmra.mxu3 %v901_v55  ;;  %v986_v55 = vld [vmem:[%s1684_s0 + $0xf0] sm:$0xf0] }
  0x35   :  { %v989_v61 = vor.u32 %v1186_v54, %v986_v55  ;;  %v54_v54 = vld [vmem:[%s1684_s0 + $0x140] sm:$0xff]  ;;  %v55_v55 = vld [vmem:[%s1684_s0 + $0x148] sm:$0xff] }
  0x36   :  { %v246_v58 = vunpack.c.l.b16 %v54_v54  ;;  %v247_v59 = vunpack.c.h.b16 %v54_v54 }
  0x41   :  { %548 = vmatmul.bf16.gmra.mxu0 %v905_v0  ;;  %v1542_v0 = vld [vmem:[%s1683_s2] ss:$0 sm:$0xff] }
  0x42   :  { %611 = vmatmul.bf16.gmra.mxu1 %v909_v1  ;;  %v1000_v1 = vld [vmem:[%s1684_s0 + $0x100] sm:$0xf] }
  0x43   :  { %674 = vmatmul.bf16.gmra.mxu2 %v913_v2  ;;  %v1192_v2 = vld [vmem:[%s1684_s0 + $0x10c] sm:$0xf0] }
  0x44   :  { %737 = vmatmul.bf16.gmra.mxu3 %v917_v3  ;;  %v1190_v3 = vld [vmem:[%s1684_s0 + $0x104] sm:$0xf]  ;;  %v1001_v9 = vor.u32 %v1192_v2, %v1000_v1 }
  0x45   :  { %v1005_v10 = vor.u32 %v1190_v3, %v1002_v4  ;;  %v290_v4 = vpack.c.b16 %v246_v58, %v246_v58 }
  0x51   :  { %553 = vmatmul.bf16.gmra.mxu0 %v921_v12 }
  0x52   :  { %616 = vmatmul.bf16.gmra.mxu1 %v925_v13  ;;  %v1009_v13 = vor.u32 %v1193_v6, %v1008_v5  ;;  %v291_v5 = vpack.c.b16 %v247_v59, %v247_v59 }
  0x53   :  { %679 = vmatmul.bf16.gmra.mxu2 %v929_v14  ;;  %v1013_v14 = vor.u32 %v1191_v7, %v1010_v8 }
  0x54   :  { %742 = vmatmul.bf16.gmra.mxu3 %v933_v15 }
  0x61   :  { %558 = vmatmul.bf16.gmra.mxu0 %v937_v24  ;;  %v1016_v24 = vld [vmem:[%s1684_s0 + $0x120] sm:$0xf] }
  0x62   :  { %621 = vmatmul.bf16.gmra.mxu1 %v941_v25  ;;  %v1196_v25 = vld [vmem:[%s1684_s0 + $0x12c] sm:$0xf0] }
  0x63   :  { %684 = vmatmul.bf16.gmra.mxu2 %v945_v26  ;;  %v1194_v26 = vld [vmem:[%s1684_s0 + $0x124] sm:$0xf] }
  0x64   :  { %747 = vmatmul.bf16.gmra.mxu3 %v949_v27  ;;  %v1018_v27 = vld [vmem:[%s1684_s0 + $0x130] sm:$0xf0] }
  0x71   :  { %563 = vmatmul.bf16.gmra.mxu0 %v953_v36 }
  0x72   :  { %626 = vmatmul.bf16.gmra.mxu1 %v957_v37  ;;  %v1017_v37 = vor.u32 %v1196_v25, %v1016_v24 }
  0x73   :  { %689 = vmatmul.bf16.gmra.mxu2 %v961_v38  ;;  %v1021_v38 = vor.u32 %v1194_v26, %v1018_v27 }
  0x74   :  { %752 = vmatmul.bf16.gmra.mxu3 %v965_v39 }
  0x81   :  { %568 = vmatmul.bf16.gmra.mxu0 %v969_v48 }
  0x82   :  { %631 = vmatmul.bf16.gmra.mxu1 %v973_v49 }
  0x83   :  { %694 = vmatmul.bf16.gmra.mxu2 %v977_v50 }
  0x84   :  { %757 = vmatmul.bf16.gmra.mxu3 %v981_v51 }
  0x91   :  { %573 = vmatmul.bf16.gmra.mxu0 %v985_v60 }
  0x92   :  { %636 = vmatmul.bf16.gmra.mxu1 %v989_v61  ;;  %v248_v61 = vunpack.c.l.b16 %v55_v55 }
  0x93   :  { %699 = vmatmul.bf16.gmra.mxu2 %v993_v62  ;;  %v249_v62 = vunpack.c.h.b16 %v55_v55 }
  0x94   :  { %762 = vmatmul.bf16.gmra.mxu3 %v997_v63 }
  0x9e   :  { %v539_v11 = vpop.f32.mrf.mxu0 }
  0x9f   :  { %v602_v12 = vpop.f32.mrf.mxu1  ;;  %v540_v15 = vadd.f32 %v1542_v0, %v539_v11 }
  0xa1   :  { %578 = vmatmul.bf16.gmra.mxu0 %v1001_v9  ;;  %v603_v16 = vadd.f32 %v602_v12, %v540_v15  ;;  %v292_v9 = vpack.c.b16 %v248_v61, %v248_v61 }
  0xa2   :  { %641 = vmatmul.bf16.gmra.mxu1 %v1005_v10  ;;  %v293_v10 = vpack.c.b16 %v249_v62, %v249_v62 }
  0xa3   :  { %704 = vmatmul.bf16.gmra.mxu2 %v1009_v13 }
  0xa4   :  { %767 = vmatmul.bf16.gmra.mxu3 %v1013_v14 }
  0xa6   :  { %v665_v17 = vpop.f32.mrf.mxu2  ;;  %v541_v20 = vpop.f32.mrf.mxu0 }
  0xa7   :  { %v728_v18 = vpop.f32.mrf.mxu3  ;;  %v666_v19 = vadd.f32 %v665_v17, %v603_v16  ;;  %v604_v21 = vpop.f32.mrf.mxu1  ;;  %v542_v23 = vadd.f32 %v1542_v0, %v541_v20 }
  0xa9   :  { %v729_v22 = vadd.f32 %v728_v18, %v666_v19  ;;  %v605_v34 = vadd.f32 %v604_v21, %v542_v23 }
  0xab   :  { %vm782_vm0 = vcmp.gt.f32.partialorder %v729_v22, 0.0  ;;  %v803_v28 = vmul.f32 0.01, %v729_v22 }
  0xad   :  { %v824_v33 = vsel %vm782_vm0, %v729_v22, %v803_v28 }
  0xae   :  { %845 = vst [vmem:[%s1685_s3] sm:$0xff] %v824_v33  ;;  %v667_v35 = vpop.f32.mrf.mxu2  ;;  %v544_v40 = vpop.f32.mrf.mxu0 }
  0xaf   :  { %v730_v36 = vpop.f32.mrf.mxu3  ;;  %v668_v39 = vadd.f32 %v667_v35, %v605_v34  ;;  %v607_v41 = vpop.f32.mrf.mxu1  ;;  %v545_v44 = vadd.f32 %v1542_v0, %v544_v40 }
  0xb1   :  { %v731_v45 = vadd.f32 %v730_v36, %v668_v39  ;;  %583 = vmatmul.bf16.gmra.mxu0 %v1017_v37  ;;  %v608_v47 = vadd.f32 %v607_v41, %v545_v44 }
  0xb2   :  { %646 = vmatmul.bf16.gmra.mxu1 %v1021_v38 }
  0xb3   :  { %vm783_vm1 = vcmp.gt.f32.partialorder %v731_v45, 0.0  ;;  %v804_v46 = vmul.f32 0.01, %v731_v45  ;;  %709 = vmatmul.bf16.gmra.mxu2 %v1025_v42 }
  0xb4   :  { %772 = vmatmul.bf16.gmra.mxu3 %v1029_v43 }
  0xb5   :  { %v825_v48 = vsel %vm783_vm1, %v731_v45, %v804_v46 }
  0xb6   :  { %846 = vst [vmem:[%s1685_s3 + $0x8] sm:$0xff] %v825_v48  ;;  %v670_v49 = vpop.f32.mrf.mxu2  ;;  %v546_v52 = vpop.f32.mrf.mxu0 }
  0xb7   :  { %v733_v50 = vpop.f32.mrf.mxu3  ;;  %v671_v51 = vadd.f32 %v670_v49, %v608_v47  ;;  %v609_v53 = vpop.f32.mrf.mxu1  ;;  %v547_v57 = vadd.f32 %v1542_v0, %v546_v52 }
  0xb9   :  { %v734_v56 = vadd.f32 %v733_v50, %v671_v51  ;;  %v610_v1 = vadd.f32 %v609_v53, %v547_v57 }
  0xbb   :  { %vm784_vm2 = vcmp.gt.f32.partialorder %v734_v56, 0.0  ;;  %v805_v60 = vmul.f32 0.01, %v734_v56 }
  0xbd   :  { %v826_v63 = vsel %vm784_vm2, %v734_v56, %v805_v60 }
  0xbe   :  { %847 = vst [vmem:[%s1685_s3 + $0x10] sm:$0xff] %v826_v63  ;;  %v672_v2 = vpop.f32.mrf.mxu2  ;;  %v549_v7 = vpop.f32.mrf.mxu0 }
  0xbf   :  { %v735_v3 = vpop.f32.mrf.mxu3  ;;  %v673_v6 = vadd.f32 %v672_v2, %v610_v1  ;;  %v612_v8 = vpop.f32.mrf.mxu1  ;;  %v550_v11 = vadd.f32 %v1542_v0, %v549_v7 }
  0xc1   :  { %v736_v12 = vadd.f32 %v735_v3, %v673_v6  ;;  %588 = vmatmul.bf16.gmra.mxu0 %v290_v4  ;;  %v613_v14 = vadd.f32 %v612_v8, %v550_v11 }
  0xc2   :  { %651 = vmatmul.bf16.gmra.mxu1 %v291_v5 }
  0xc3   :  { %vm785_vm3 = vcmp.gt.f32.partialorder %v736_v12, 0.0  ;;  %v806_v13 = vmul.f32 0.01, %v736_v12  ;;  %714 = vmatmul.bf16.gmra.mxu2 %v292_v9 }
  0xc4   :  { %777 = vmatmul.bf16.gmra.mxu3 %v293_v10 }
  0xc5   :  { %v827_v15 = vsel %vm785_vm3, %v736_v12, %v806_v13 }
  0xc6   :  { %848 = vst [vmem:[%s1685_s3 + $0x18] sm:$0xff] %v827_v15  ;;  %v675_v16 = vpop.f32.mrf.mxu2  ;;  %v551_v19 = vpop.f32.mrf.mxu0 }
  0xc7   :  { %v738_v17 = vpop.f32.mrf.mxu3  ;;  %v676_v18 = vadd.f32 %v675_v16, %v613_v14  ;;  %v614_v20 = vpop.f32.mrf.mxu1  ;;  %v552_v22 = vadd.f32 %v1542_v0, %v551_v19 }
  0xc9   :  { %v739_v21 = vadd.f32 %v738_v17, %v676_v18  ;;  %v615_v25 = vadd.f32 %v614_v20, %v552_v22 }
  0xcb   :  { %vm786_vm4 = vcmp.gt.f32.partialorder %v739_v21, 0.0  ;;  %v807_v23 = vmul.f32 0.01, %v739_v21 }
  0xcd   :  { %v828_v24 = vsel %vm786_vm4, %v739_v21, %v807_v23 }
  0xce   :  { %849 = vst [vmem:[%s1685_s3 + $0x20] sm:$0xff] %v828_v24  ;;  %v677_v26 = vpop.f32.mrf.mxu2  ;;  %v554_v29 = vpop.f32.mrf.mxu0 }
  0xcf   :  { %v740_v27 = vpop.f32.mrf.mxu3  ;;  %v678_v28 = vadd.f32 %v677_v26, %v615_v25  ;;  %v617_v30 = vpop.f32.mrf.mxu1  ;;  %v555_v31 = vadd.f32 %v1542_v0, %v554_v29 }
  0xd1   :  { %v741_v32 = vadd.f32 %v740_v27, %v678_v28  ;;  %v618_v34 = vadd.f32 %v617_v30, %v555_v31 }
  0xd3   :  { %vm787_vm5 = vcmp.gt.f32.partialorder %v741_v32, 0.0  ;;  %v808_v33 = vmul.f32 0.01, %v741_v32 }
  0xd5   :  { %v829_v35 = vsel %vm787_vm5, %v741_v32, %v808_v33 }
  0xd6   :  { %850 = vst [vmem:[%s1685_s3 + $0x28] sm:$0xff] %v829_v35  ;;  %v680_v36 = vpop.f32.mrf.mxu2  ;;  %v556_v39 = vpop.f32.mrf.mxu0 }
  0xd7   :  { %v743_v37 = vpop.f32.mrf.mxu3  ;;  %v681_v38 = vadd.f32 %v680_v36, %v618_v34  ;;  %v619_v40 = vpop.f32.mrf.mxu1  ;;  %v557_v42 = vadd.f32 %v1542_v0, %v556_v39 }
  0xd9   :  { %v744_v41 = vadd.f32 %v743_v37, %v681_v38  ;;  %v620_v45 = vadd.f32 %v619_v40, %v557_v42 }
  0xdb   :  { %vm788_vm6 = vcmp.gt.f32.partialorder %v744_v41, 0.0  ;;  %v809_v43 = vmul.f32 0.01, %v744_v41 }
  0xdd   :  { %v830_v44 = vsel %vm788_vm6, %v744_v41, %v809_v43 }
  0xde   :  { %851 = vst [vmem:[%s1685_s3 + $0x30] sm:$0xff] %v830_v44  ;;  %v682_v46 = vpop.f32.mrf.mxu2  ;;  %v559_v49 = vpop.f32.mrf.mxu0 }
  0xdf   :  { %v745_v47 = vpop.f32.mrf.mxu3  ;;  %v683_v48 = vadd.f32 %v682_v46, %v620_v45  ;;  %v622_v50 = vpop.f32.mrf.mxu1  ;;  %v560_v51 = vadd.f32 %v1542_v0, %v559_v49 }
  0xe1   :  { %v746_v52 = vadd.f32 %v745_v47, %v683_v48  ;;  %v623_v54 = vadd.f32 %v622_v50, %v560_v51 }
  0xe3   :  { %vm789_vm7 = vcmp.gt.f32.partialorder %v746_v52, 0.0  ;;  %v810_v53 = vmul.f32 0.01, %v746_v52 }
  0xe5   :  { %v831_v55 = vsel %vm789_vm7, %v746_v52, %v810_v53 }
  0xe6   :  { %852 = vst [vmem:[%s1685_s3 + $0x38] sm:$0xff] %v831_v55  ;;  %v685_v56 = vpop.f32.mrf.mxu2  ;;  %v561_v59 = vpop.f32.mrf.mxu0 }
  0xe7   :  { %v748_v57 = vpop.f32.mrf.mxu3  ;;  %v686_v58 = vadd.f32 %v685_v56, %v623_v54  ;;  %v624_v60 = vpop.f32.mrf.mxu1  ;;  %v562_v62 = vadd.f32 %v1542_v0, %v561_v59 }
  0xe9   :  { %v749_v61 = vadd.f32 %v748_v57, %v686_v58  ;;  %v625_v2 = vadd.f32 %v624_v60, %v562_v62 }
  0xeb   :  { %vm790_vm8 = vcmp.gt.f32.partialorder %v749_v61, 0.0  ;;  %v811_v63 = vmul.f32 0.01, %v749_v61 }
  0xed   :  { %v832_v1 = vsel %vm790_vm8, %v749_v61, %v811_v63 }
  0xee   :  { %853 = vst [vmem:[%s1685_s3 + $0x40] sm:$0xff] %v832_v1  ;;  %v687_v3 = vpop.f32.mrf.mxu2  ;;  %v564_v6 = vpop.f32.mrf.mxu0 }
  0xef   :  { %v750_v4 = vpop.f32.mrf.mxu3  ;;  %v688_v5 = vadd.f32 %v687_v3, %v625_v2  ;;  %v627_v7 = vpop.f32.mrf.mxu1  ;;  %v565_v8 = vadd.f32 %v1542_v0, %v564_v6 }
  0xf1   :  { %v751_v9 = vadd.f32 %v750_v4, %v688_v5  ;;  %v628_v11 = vadd.f32 %v627_v7, %v565_v8 }
  0xf3   :  { %vm791_vm9 = vcmp.gt.f32.partialorder %v751_v9, 0.0  ;;  %v812_v10 = vmul.f32 0.01, %v751_v9 }
  0xf5   :  { %v833_v12 = vsel %vm791_vm9, %v751_v9, %v812_v10 }
  0xf6   :  { %854 = vst [vmem:[%s1685_s3 + $0x48] sm:$0xff] %v833_v12  ;;  %v690_v13 = vpop.f32.mrf.mxu2  ;;  %v566_v16 = vpop.f32.mrf.mxu0 }
  0xf7   :  { %v753_v14 = vpop.f32.mrf.mxu3  ;;  %v691_v15 = vadd.f32 %v690_v13, %v628_v11  ;;  %v629_v17 = vpop.f32.mrf.mxu1  ;;  %v567_v19 = vadd.f32 %v1542_v0, %v566_v16 }
  0xf9   :  { %v754_v18 = vadd.f32 %v753_v14, %v691_v15  ;;  %v630_v22 = vadd.f32 %v629_v17, %v567_v19 }
  0xfb   :  { %vm792_vm10 = vcmp.gt.f32.partialorder %v754_v18, 0.0  ;;  %v813_v20 = vmul.f32 0.01, %v754_v18 }
  0xfd   :  { %v834_v21 = vsel %vm792_vm10, %v754_v18, %v813_v20 }
  0xfe   :  { %855 = vst [vmem:[%s1685_s3 + $0x50] sm:$0xff] %v834_v21  ;;  %v692_v23 = vpop.f32.mrf.mxu2  ;;  %v569_v26 = vpop.f32.mrf.mxu0 }
  0xff   :  { %v755_v24 = vpop.f32.mrf.mxu3  ;;  %v693_v25 = vadd.f32 %v692_v23, %v630_v22  ;;  %v632_v27 = vpop.f32.mrf.mxu1  ;;  %v570_v28 = vadd.f32 %v1542_v0, %v569_v26 }
 0x101   :  { %v756_v29 = vadd.f32 %v755_v24, %v693_v25  ;;  %v633_v31 = vadd.f32 %v632_v27, %v570_v28 }
 0x103   :  { %vm793_vm11 = vcmp.gt.f32.partialorder %v756_v29, 0.0  ;;  %v814_v30 = vmul.f32 0.01, %v756_v29 }
 0x105   :  { %v835_v32 = vsel %vm793_vm11, %v756_v29, %v814_v30 }
 0x106   :  { %856 = vst [vmem:[%s1685_s3 + $0x58] sm:$0xff] %v835_v32  ;;  %v695_v33 = vpop.f32.mrf.mxu2  ;;  %v571_v36 = vpop.f32.mrf.mxu0 }
 0x107   :  { %v758_v34 = vpop.f32.mrf.mxu3  ;;  %v696_v35 = vadd.f32 %v695_v33, %v633_v31  ;;  %v634_v37 = vpop.f32.mrf.mxu1  ;;  %v572_v39 = vadd.f32 %v1542_v0, %v571_v36 }
 0x109   :  { %v759_v38 = vadd.f32 %v758_v34, %v696_v35  ;;  %v635_v42 = vadd.f32 %v634_v37, %v572_v39 }
 0x10b   :  { %vm794_vm12 = vcmp.gt.f32.partialorder %v759_v38, 0.0  ;;  %v815_v40 = vmul.f32 0.01, %v759_v38 }
 0x10d   :  { %v836_v41 = vsel %vm794_vm12, %v759_v38, %v815_v40 }
 0x10e   :  { %857 = vst [vmem:[%s1685_s3 + $0x60] sm:$0xff] %v836_v41  ;;  %v697_v43 = vpop.f32.mrf.mxu2  ;;  %v574_v46 = vpop.f32.mrf.mxu0 }
 0x10f   :  { %v760_v44 = vpop.f32.mrf.mxu3  ;;  %v698_v45 = vadd.f32 %v697_v43, %v635_v42  ;;  %v637_v47 = vpop.f32.mrf.mxu1  ;;  %v575_v48 = vadd.f32 %v1542_v0, %v574_v46 }
 0x111   :  { %v761_v49 = vadd.f32 %v760_v44, %v698_v45  ;;  %v638_v51 = vadd.f32 %v637_v47, %v575_v48 }
 0x113   :  { %vm795_vm13 = vcmp.gt.f32.partialorder %v761_v49, 0.0  ;;  %v816_v50 = vmul.f32 0.01, %v761_v49 }
 0x115   :  { %v837_v52 = vsel %vm795_vm13, %v761_v49, %v816_v50 }
 0x116   :  { %858 = vst [vmem:[%s1685_s3 + $0x68] sm:$0xff] %v837_v52  ;;  %v700_v53 = vpop.f32.mrf.mxu2  ;;  %v576_v56 = vpop.f32.mrf.mxu0 }
 0x117   :  { %v763_v54 = vpop.f32.mrf.mxu3  ;;  %v701_v55 = vadd.f32 %v700_v53, %v638_v51  ;;  %v639_v57 = vpop.f32.mrf.mxu1  ;;  %v577_v59 = vadd.f32 %v1542_v0, %v576_v56 }
 0x119   :  { %v764_v58 = vadd.f32 %v763_v54, %v701_v55  ;;  %v640_v62 = vadd.f32 %v639_v57, %v577_v59 }
 0x11b   :  { %vm796_vm14 = vcmp.gt.f32.partialorder %v764_v58, 0.0  ;;  %v817_v60 = vmul.f32 0.01, %v764_v58 }
 0x11d   :  { %v838_v61 = vsel %vm796_vm14, %v764_v58, %v817_v60 }
 0x11e   :  { %859 = vst [vmem:[%s1685_s3 + $0x70] sm:$0xff] %v838_v61  ;;  %v702_v63 = vpop.f32.mrf.mxu2  ;;  %v579_v3 = vpop.f32.mrf.mxu0 }
 0x11f   :  { %v765_v1 = vpop.f32.mrf.mxu3  ;;  %v703_v2 = vadd.f32 %v702_v63, %v640_v62  ;;  %v642_v4 = vpop.f32.mrf.mxu1  ;;  %v580_v5 = vadd.f32 %v1542_v0, %v579_v3 }
 0x121   :  { %v766_v6 = vadd.f32 %v765_v1, %v703_v2  ;;  %v643_v8 = vadd.f32 %v642_v4, %v580_v5 }
 0x123   :  { %vm797_vm15 = vcmp.gt.f32.partialorder %v766_v6, 0.0  ;;  %v818_v7 = vmul.f32 0.01, %v766_v6 }
 0x125   :  { %v839_v9 = vsel %vm797_vm15, %v766_v6, %v818_v7 }
 0x126   :  { %860 = vst [vmem:[%s1685_s3 + $0x78] sm:$0xff] %v839_v9  ;;  %v705_v10 = vpop.f32.mrf.mxu2  ;;  %v581_v13 = vpop.f32.mrf.mxu0 }
 0x127   :  { %v768_v11 = vpop.f32.mrf.mxu3  ;;  %v706_v12 = vadd.f32 %v705_v10, %v643_v8  ;;  %v644_v14 = vpop.f32.mrf.mxu1  ;;  %v582_v16 = vadd.f32 %v1542_v0, %v581_v13 }
 0x129   :  { %v769_v15 = vadd.f32 %v768_v11, %v706_v12  ;;  %v645_v19 = vadd.f32 %v644_v14, %v582_v16 }
 0x12b   :  { %vm798_vm0 = vcmp.gt.f32.partialorder %v769_v15, 0.0  ;;  %v819_v17 = vmul.f32 0.01, %v769_v15 }
 0x12d   :  { %v840_v18 = vsel %vm798_vm0, %v769_v15, %v819_v17 }
 0x12e   :  { %861 = vst [vmem:[%s1685_s3 + $0x80] sm:$0xff] %v840_v18  ;;  %v707_v20 = vpop.f32.mrf.mxu2  ;;  %v584_v23 = vpop.f32.mrf.mxu0 }
 0x12f   :  { %v770_v21 = vpop.f32.mrf.mxu3  ;;  %v708_v22 = vadd.f32 %v707_v20, %v645_v19  ;;  %v647_v24 = vpop.f32.mrf.mxu1  ;;  %v585_v25 = vadd.f32 %v1542_v0, %v584_v23 }
 0x131   :  { %v771_v26 = vadd.f32 %v770_v21, %v708_v22  ;;  %v648_v28 = vadd.f32 %v647_v24, %v585_v25 }
 0x133   :  { %vm799_vm1 = vcmp.gt.f32.partialorder %v771_v26, 0.0  ;;  %v820_v27 = vmul.f32 0.01, %v771_v26 }
 0x135   :  { %v841_v29 = vsel %vm799_vm1, %v771_v26, %v820_v27 }
 0x136   :  { %862 = vst [vmem:[%s1685_s3 + $0x88] sm:$0xff] %v841_v29  ;;  %v710_v30 = vpop.f32.mrf.mxu2  ;;  %v586_v33 = vpop.f32.mrf.mxu0 }
 0x137   :  { %v773_v31 = vpop.f32.mrf.mxu3  ;;  %v711_v32 = vadd.f32 %v710_v30, %v648_v28  ;;  %v649_v34 = vpop.f32.mrf.mxu1  ;;  %v587_v36 = vadd.f32 %v1542_v0, %v586_v33 }
 0x139   :  { %v774_v35 = vadd.f32 %v773_v31, %v711_v32  ;;  %v650_v39 = vadd.f32 %v649_v34, %v587_v36 }
 0x13b   :  { %vm800_vm2 = vcmp.gt.f32.partialorder %v774_v35, 0.0  ;;  %v821_v37 = vmul.f32 0.01, %v774_v35 }
 0x13d   :  { %v842_v38 = vsel %vm800_vm2, %v774_v35, %v821_v37 }
 0x13e   :  { %863 = vst [vmem:[%s1685_s3 + $0x90] sm:$0xff] %v842_v38  ;;  %v712_v40 = vpop.f32.mrf.mxu2  ;;  %v589_v43 = vpop.f32.mrf.mxu0 }
 0x13f   :  { %v775_v41 = vpop.f32.mrf.mxu3  ;;  %v713_v42 = vadd.f32 %v712_v40, %v650_v39  ;;  %v652_v44 = vpop.f32.mrf.mxu1  ;;  %v590_v45 = vadd.f32 %v1542_v0, %v589_v43 }
 0x141   :  { %v776_v46 = vadd.f32 %v775_v41, %v713_v42  ;;  %v653_v48 = vadd.f32 %v652_v44, %v590_v45 }
 0x143   :  { %vm801_vm3 = vcmp.gt.f32.partialorder %v776_v46, 0.0  ;;  %v822_v47 = vmul.f32 0.01, %v776_v46 }
 0x145   :  { %v843_v49 = vsel %vm801_vm3, %v776_v46, %v822_v47 }
 0x146   :  { %864 = vst [vmem:[%s1685_s3 + $0x98] sm:$0xff] %v843_v49  ;;  %v715_v50 = vpop.f32.mrf.mxu2  ;;  %v591_v53 = vpop.f32.mrf.mxu0 }
 0x147   :  { %v778_v51 = vpop.f32.mrf.mxu3  ;;  %v716_v52 = vadd.f32 %v715_v50, %v653_v48  ;;  %v654_v54 = vpop.f32.mrf.mxu1 }
 0x149   :  { %v779_v55 = vadd.f32 %v778_v51, %v716_v52 }
 0x14b   :  { %vm802_vm4 = vcmp.gt.f32.partialorder %v779_v55, 0.0  ;;  %v823_v56 = vmul.f32 0.01, %v779_v55 }
 0x14d   :  { %v844_v57 = vsel %vm802_vm4, %v779_v55, %v823_v56 }
 0x14e   :  { %865 = vst [vmem:[%s1685_s3 + $0xa0] sm:$0xff] %v844_v57  ;;  %v717_v0 = vpop.f32.mrf.mxu2 }
 0x14f   :  { %v780_v58 = vpop.f32.mrf.mxu3 }

// kernel: dqn_forward.6
= control target key start
LH: loop header
LB: loop body
LE: loop exit
PB: predicated region body
PF: predicated region fallthrough
CT: control target
= control target key end

     0   :  { %s1614_s1 = inlined_call_operand.vmem [shape: bf16[640,128], index: 1, kind: input, shape index: {}]   ;;  %s1615_s2 = inlined_call_operand.vmem [shape: f32[1,128], index: 2, kind: input, shape index: {}]   ;;  %s1616_s0 = inlined_call_operand.vmem [shape: bf16[104,640], index: 0, kind: input, shape index: {}]   ;;  %s1617_s3 = inlined_call_operand.vmem [shape: f32[104,128], index: 3, kind: output, shape index: {}]  }
   0x1   :  { %v1139_v0 = vld [vmem:[%s1614_s1 + $0x38] sm:$0xff]  ;;  %v1138_v1 = vld [vmem:[%s1614_s1 + $0x30] sm:$0xff]  ;;  %v1137_v2 = vld [vmem:[%s1614_s1 + $0x28] sm:$0xff] }
   0x2   :  { %551 = vmatpush.bf16.msra.mxu0 %v1139_v0  ;;  %1172 = vmatpush.bf16.msra.mxu1 %v1139_v0  ;;  %v1136_v3 = vld [vmem:[%s1614_s1 + $0x20] sm:$0xff]  ;;  %v1135_v4 = vld [vmem:[%s1614_s1 + $0x18] sm:$0xff]  ;;  %v1134_v5 = vld [vmem:[%s1614_s1 + $0x10] sm:$0xff] }
   0x3   :  { %1173 = vmatpush.bf16.msra.mxu2 %v1139_v0  ;;  %1174 = vmatpush.bf16.msra.mxu3 %v1139_v0  ;;  %v1133_v6 = vld [vmem:[%s1614_s1 + $0x8] sm:$0xff]  ;;  %v1241_v7 = vld [vmem:[%s1616_s0 + $0xf0] sm:$0xff]  ;;  %v1132_v8 = vld [vmem:[%s1614_s1] sm:$0xff] }
   0x4   :  { %v824_v9 = vld [vmem:[%s1616_s0] sm:$0xf]  ;;  %v1104_v10 = vld [vmem:[%s1616_s0 + $0x10] sm:$0xf0]  ;;  %v864_v11 = vld [vmem:[%s1616_s0 + $0x50] sm:$0xf]  ;;  %v236_v15 = vunpack.c.l.b16 %v1241_v7 }
   0x5   :  { %v1114_v12 = vld [vmem:[%s1616_s0 + $0x60] sm:$0xf0]  ;;  %v904_v13 = vld [vmem:[%s1616_s0 + $0xa0] sm:$0xf]  ;;  %v1124_v14 = vld [vmem:[%s1616_s0 + $0xb0] sm:$0xf0]  ;;  %v825_v18 = vor.u32 %v1104_v10, %v824_v9 }
   0x6   :  { %552 = vmatpush.bf16.msra.mxu0 %v1138_v1  ;;  %1175 = vmatpush.bf16.msra.mxu1 %v1138_v1  ;;  %v1163_v16 = vld [vmem:[%s1614_s1 + $0xf8] sm:$0xff]  ;;  %v865_v19 = vor.u32 %v1114_v12, %v864_v11  ;;  %v905_v20 = vor.u32 %v1124_v14, %v904_v13  ;;  %v271_v23 = vpack.c.b16 %v236_v15, %v236_v15  ;;  %v1162_v24 = vld [vmem:[%s1614_s1 + $0xf0] sm:$0xff]  ;;  %v1161_v28 = vld [vmem:[%s1614_s1 + $0xe8] sm:$0xff] }
   0x7   :  { %1176 = vmatpush.bf16.msra.mxu2 %v1138_v1  ;;  %1177 = vmatpush.bf16.msra.mxu3 %v1138_v1  ;;  %v1155_v17 = vld [vmem:[%s1614_s1 + $0xb8] sm:$0xff]  ;;  %v1154_v25 = vld [vmem:[%s1614_s1 + $0xb0] sm:$0xff]  ;;  %v1153_v29 = vld [vmem:[%s1614_s1 + $0xa8] sm:$0xff] }
   0x8   :  { %v1147_v21 = vld [vmem:[%s1614_s1 + $0x78] sm:$0xff]  ;;  %v1146_v26 = vld [vmem:[%s1614_s1 + $0x70] sm:$0xff]  ;;  %v1145_v30 = vld [vmem:[%s1614_s1 + $0x68] sm:$0xff] }
   0x9   :  { %v1171_v22 = vld [vmem:[%s1614_s1 + $0x138] sm:$0xff]  ;;  %v1170_v27 = vld [vmem:[%s1614_s1 + $0x130] sm:$0xff]  ;;  %v1169_v31 = vld [vmem:[%s1614_s1 + $0x128] sm:$0xff] }
   0xa   :  { %553 = vmatpush.bf16.msra.mxu0 %v1137_v2  ;;  %1178 = vmatpush.bf16.msra.mxu1 %v1137_v2  ;;  %v1160_v32 = vld [vmem:[%s1614_s1 + $0xe0] sm:$0xff]  ;;  %v844_v35 = vld [vmem:[%s1616_s0 + $0x28] sm:$0xf]  ;;  %v1109_v36 = vld [vmem:[%s1616_s0 + $0x38] sm:$0xf0] }
   0xb   :  { %1179 = vmatpush.bf16.msra.mxu2 %v1137_v2  ;;  %1180 = vmatpush.bf16.msra.mxu3 %v1137_v2  ;;  %v1152_v33 = vld [vmem:[%s1614_s1 + $0xa0] sm:$0xff]  ;;  %v884_v37 = vld [vmem:[%s1616_s0 + $0x78] sm:$0xf]  ;;  %v1119_v38 = vld [vmem:[%s1616_s0 + $0x88] sm:$0xf0]  ;;  %v845_v44 = vor.u32 %v1109_v36, %v844_v35 }
   0xc   :  { %v1144_v34 = vld [vmem:[%s1614_s1 + $0x60] sm:$0xff]  ;;  %v924_v40 = vld [vmem:[%s1616_s0 + $0xc8] sm:$0xf]  ;;  %v1129_v41 = vld [vmem:[%s1616_s0 + $0xd8] sm:$0xf0]  ;;  %v885_v45 = vor.u32 %v1119_v38, %v884_v37 }
   0xd   :  { %v1168_v39 = vld [vmem:[%s1614_s1 + $0x120] sm:$0xff]  ;;  %v1159_v42 = vld [vmem:[%s1614_s1 + $0xd8] sm:$0xff]  ;;  %v925_v46 = vor.u32 %v1129_v41, %v924_v40  ;;  %v1158_v49 = vld [vmem:[%s1614_s1 + $0xd0] sm:$0xff] }
   0xe   :  { %554 = vmatpush.bf16.msra.mxu0 %v1136_v3  ;;  %1181 = vmatpush.bf16.msra.mxu1 %v1136_v3  ;;  %v1151_v43 = vld [vmem:[%s1614_s1 + $0x98] sm:$0xff]  ;;  %v1150_v50 = vld [vmem:[%s1614_s1 + $0x90] sm:$0xff]  ;;  %v1157_v53 = vld [vmem:[%s1614_s1 + $0xc8] sm:$0xff] }
   0xf   :  { %1182 = vmatpush.bf16.msra.mxu2 %v1136_v3  ;;  %1183 = vmatpush.bf16.msra.mxu3 %v1136_v3  ;;  %v1143_v47 = vld [vmem:[%s1614_s1 + $0x58] sm:$0xff]  ;;  %v1142_v51 = vld [vmem:[%s1614_s1 + $0x50] sm:$0xff]  ;;  %v1149_v54 = vld [vmem:[%s1614_s1 + $0x88] sm:$0xff] }
  0x10   :  { %v1167_v48 = vld [vmem:[%s1614_s1 + $0x118] sm:$0xff]  ;;  %v1166_v52 = vld [vmem:[%s1614_s1 + $0x110] sm:$0xff]  ;;  %v1141_v55 = vld [vmem:[%s1614_s1 + $0x48] sm:$0xff] }
  0x11   :  { %v1165_v56 = vld [vmem:[%s1614_s1 + $0x108] sm:$0xff]  ;;  %v1156_v57 = vld [vmem:[%s1614_s1 + $0xc0] sm:$0xff]  ;;  %v826_v0 = vld [vmem:[%s1616_s0 + $0x14] sm:$0xf0] }
  0x12   :  { %555 = vmatpush.bf16.msra.mxu0 %v1135_v4  ;;  %1184 = vmatpush.bf16.msra.mxu1 %v1135_v4  ;;  %v1148_v58 = vld [vmem:[%s1614_s1 + $0x80] sm:$0xff]  ;;  %v1103_v59 = vld [vmem:[%s1616_s0 + $0xc] sm:$0xf]  ;;  %v832_v1 = vld [vmem:[%s1616_s0 + $0x8] sm:$0xf] }
  0x13   :  { %1185 = vmatpush.bf16.msra.mxu2 %v1135_v4  ;;  %1186 = vmatpush.bf16.msra.mxu3 %v1135_v4  ;;  %v834_v60 = vld [vmem:[%s1616_s0 + $0x1c] sm:$0xf0]  ;;  %v1102_v63 = vld [vmem:[%s1616_s0 + $0x4] sm:$0xf]  ;;  %v1105_v3 = vld [vmem:[%s1616_s0 + $0x18] sm:$0xf0] }
  0x14   :  { %v1140_v61 = vld [vmem:[%s1614_s1 + $0x40] sm:$0xff]  ;;  %v837_v2 = vor.u32 %v1103_v59, %v834_v60  ;;  %v840_v4 = vld [vmem:[%s1616_s0 + $0x10] sm:$0xf]  ;;  %v1108_v10 = vld [vmem:[%s1616_s0 + $0x34] sm:$0xf] }
  0x15   :  { %v1164_v62 = vld [vmem:[%s1614_s1 + $0x100] sm:$0xff]  ;;  %v854_v11 = vld [vmem:[%s1616_s0 + $0x44] sm:$0xf0]  ;;  %v1107_v12 = vld [vmem:[%s1616_s0 + $0x2c] sm:$0xf] }
  0x16   :  { %556 = vmatpush.bf16.msra.mxu0 %v1134_v5  ;;  %1187 = vmatpush.bf16.msra.mxu1 %v1134_v5  ;;  %v846_v13 = vld [vmem:[%s1616_s0 + $0x3c] sm:$0xf0]  ;;  %v852_v14 = vld [vmem:[%s1616_s0 + $0x30] sm:$0xf]  ;;  %v857_v15 = vor.u32 %v1108_v10, %v854_v11  ;;  %v894_v35 = vld [vmem:[%s1616_s0 + $0x94] sm:$0xf0]  ;;  %v237_v10 = vunpack.c.h.b16 %v1241_v7 }
  0x17   :  { %1188 = vmatpush.bf16.msra.mxu2 %v1134_v5  ;;  %1189 = vmatpush.bf16.msra.mxu3 %v1134_v5  ;;  %v1106_v5 = vld [vmem:[%s1616_s0 + $0x20] sm:$0xf0]  ;;  %v1117_v36 = vld [vmem:[%s1616_s0 + $0x7c] sm:$0xf]  ;;  %v886_v37 = vld [vmem:[%s1616_s0 + $0x8c] sm:$0xf0] }
  0x18   :  { %v841_v9 = vor.u32 %v1106_v5, %v840_v4  ;;  %v892_v38 = vld [vmem:[%s1616_s0 + $0x80] sm:$0xf]  ;;  %v1120_v40 = vld [vmem:[%s1616_s0 + $0x90] sm:$0xf0]  ;;  %v900_v41 = vld [vmem:[%s1616_s0 + $0x88] sm:$0xf] }
  0x19   :  { %v934_v59 = vld [vmem:[%s1616_s0 + $0xe4] sm:$0xf0]  ;;  %v1127_v60 = vld [vmem:[%s1616_s0 + $0xcc] sm:$0xf] }
  0x1a   :  { %557 = vmatpush.bf16.msra.mxu0 %v1133_v6  ;;  %1190 = vmatpush.bf16.msra.mxu1 %v1133_v6 }
  0x1b   :  { %1191 = vmatpush.bf16.msra.mxu2 %v1133_v6  ;;  %1192 = vmatpush.bf16.msra.mxu3 %v1133_v6  ;;  %v829_v6 = vor.u32 %v1102_v63, %v826_v0  ;;  %v1130_v0 = vld [vmem:[%s1616_s0 + $0xe0] sm:$0xf0] }
  0x1e   :  { %558 = vmatpush.bf16.msra.mxu0 %v1132_v8  ;;  %1193 = vmatpush.bf16.msra.mxu1 %v1132_v8 }
  0x1f   :  { %1194 = vmatpush.bf16.msra.mxu2 %v1132_v8  ;;  %1195 = vmatpush.bf16.msra.mxu3 %v1132_v8  ;;  %v833_v8 = vor.u32 %v1105_v3, %v832_v1  ;;  %v940_v1 = vld [vmem:[%s1616_s0 + $0xd8] sm:$0xf] }
  0x21   :  { %559 = vmatmul.bf16.vlgmr.msra.gmra.mxu0 %v825_v18  ;;  %569 = vmatmul.bf16.vlgmr.msra.gmra.mxu1 %v865_v19  ;;  %v1111_v18 = vld [vmem:[%s1616_s0 + $0x48] sm:$0xf0]  ;;  %v849_v19 = vor.u32 %v1107_v12, %v846_v13 }
  0x22   :  { %579 = vmatmul.bf16.vlgmr.msra.gmra.mxu2 %v905_v20  ;;  %594 = vmatpush.bf16.msrb.mxu1 %v1147_v21 }
  0x23   :  { %680 = vmatpush.bf16.msrb.mxu3 %v1163_v16  ;;  %637 = vmatpush.bf16.msrb.mxu2 %v1155_v17  ;;  %v1110_v16 = vld [vmem:[%s1616_s0 + $0x40] sm:$0xf0]  ;;  %v860_v17 = vld [vmem:[%s1616_s0 + $0x38] sm:$0xf] }
  0x24   :  { %723 = vmatpush.bf16.msrb.mxu0 %v1171_v22  ;;  %589 = vmatmul.bf16.vlgmr.msra.gmra.mxu3 %v271_v23  ;;  %v853_v20 = vor.u32 %v1110_v16, %v852_v14  ;;  %v861_v21 = vor.u32 %v1111_v18, %v860_v17  ;;  %v1113_v22 = vld [vmem:[%s1616_s0 + $0x5c] sm:$0xf]  ;;  %v874_v23 = vld [vmem:[%s1616_s0 + $0x6c] sm:$0xf0]  ;;  %v272_v14 = vpack.c.b16 %v237_v10, %v237_v10 }
  0x26   :  { %595 = vmatpush.bf16.msrb.mxu1 %v1146_v26  ;;  %v872_v26 = vld [vmem:[%s1616_s0 + $0x58] sm:$0xf] }
  0x27   :  { %681 = vmatpush.bf16.msrb.mxu3 %v1162_v24  ;;  %638 = vmatpush.bf16.msrb.mxu2 %v1154_v25  ;;  %v1112_v24 = vld [vmem:[%s1616_s0 + $0x54] sm:$0xf]  ;;  %v866_v25 = vld [vmem:[%s1616_s0 + $0x64] sm:$0xf0] }
  0x28   :  { %724 = vmatpush.bf16.msrb.mxu0 %v1170_v27  ;;  %v877_v27 = vor.u32 %v1113_v22, %v874_v23 }
  0x2a   :  { %596 = vmatpush.bf16.msrb.mxu1 %v1145_v30  ;;  %v1116_v30 = vld [vmem:[%s1616_s0 + $0x70] sm:$0xf0] }
  0x2b   :  { %682 = vmatpush.bf16.msrb.mxu3 %v1161_v28  ;;  %639 = vmatpush.bf16.msrb.mxu2 %v1153_v29  ;;  %v1115_v28 = vld [vmem:[%s1616_s0 + $0x68] sm:$0xf0]  ;;  %v880_v29 = vld [vmem:[%s1616_s0 + $0x60] sm:$0xf] }
  0x2c   :  { %725 = vmatpush.bf16.msrb.mxu0 %v1169_v31  ;;  %v869_v31 = vor.u32 %v1112_v24, %v866_v25 }
  0x2e   :  { %597 = vmatpush.bf16.msrb.mxu1 %v1144_v34  ;;  %v1118_v34 = vld [vmem:[%s1616_s0 + $0x84] sm:$0xf] }
  0x2f   :  { %683 = vmatpush.bf16.msrb.mxu3 %v1160_v32  ;;  %640 = vmatpush.bf16.msrb.mxu2 %v1152_v33  ;;  %v873_v32 = vor.u32 %v1115_v28, %v872_v26  ;;  %v881_v33 = vor.u32 %v1116_v30, %v880_v29 }
  0x30   :  { %726 = vmatpush.bf16.msrb.mxu0 %v1168_v39  ;;  %v897_v39 = vor.u32 %v1118_v34, %v894_v35 }
  0x31   :  { %564 = vmatmul.bf16.gmra.mxu0 %v845_v44  ;;  %574 = vmatmul.bf16.gmra.mxu1 %v885_v45  ;;  %v893_v44 = vor.u32 %v1120_v40, %v892_v38 }
  0x32   :  { %584 = vmatmul.bf16.gmra.mxu2 %v925_v46  ;;  %598 = vmatpush.bf16.msrb.mxu1 %v1143_v47  ;;  %v1123_v46 = vld [vmem:[%s1616_s0 + $0xac] sm:$0xf]  ;;  %v914_v47 = vld [vmem:[%s1616_s0 + $0xbc] sm:$0xf0] }
  0x33   :  { %684 = vmatpush.bf16.msrb.mxu3 %v1159_v42  ;;  %641 = vmatpush.bf16.msrb.mxu2 %v1151_v43  ;;  %v1121_v42 = vld [vmem:[%s1616_s0 + $0x98] sm:$0xf0]  ;;  %v889_v43 = vor.u32 %v1117_v36, %v886_v37 }
  0x34   :  { %727 = vmatpush.bf16.msrb.mxu0 %v1167_v48  ;;  %v901_v45 = vor.u32 %v1121_v42, %v900_v41  ;;  %v1122_v48 = vld [vmem:[%s1616_s0 + $0xa4] sm:$0xf] }
  0x36   :  { %599 = vmatpush.bf16.msrb.mxu1 %v1142_v51  ;;  %v917_v51 = vor.u32 %v1123_v46, %v914_v47 }
  0x37   :  { %685 = vmatpush.bf16.msrb.mxu3 %v1158_v49  ;;  %642 = vmatpush.bf16.msrb.mxu2 %v1150_v50  ;;  %v906_v49 = vld [vmem:[%s1616_s0 + $0xb4] sm:$0xf0]  ;;  %v912_v50 = vld [vmem:[%s1616_s0 + $0xa8] sm:$0xf] }
  0x38   :  { %728 = vmatpush.bf16.msrb.mxu0 %v1166_v52  ;;  %v1125_v52 = vld [vmem:[%s1616_s0 + $0xb8] sm:$0xf0] }
  0x3a   :  { %600 = vmatpush.bf16.msrb.mxu1 %v1141_v55  ;;  %v909_v55 = vor.u32 %v1122_v48, %v906_v49 }
  0x3b   :  { %686 = vmatpush.bf16.msrb.mxu3 %v1157_v53  ;;  %643 = vmatpush.bf16.msrb.mxu2 %v1149_v54  ;;  %v920_v53 = vld [vmem:[%s1616_s0 + $0xb0] sm:$0xf]  ;;  %v1126_v54 = vld [vmem:[%s1616_s0 + $0xc0] sm:$0xf0] }
  0x3c   :  { %729 = vmatpush.bf16.msrb.mxu0 %v1165_v56  ;;  %v913_v56 = vor.u32 %v1125_v52, %v912_v50 }
  0x3e   :  { %601 = vmatpush.bf16.msrb.mxu1 %v1140_v61  ;;  %v926_v61 = vld [vmem:[%s1616_s0 + $0xdc] sm:$0xf0] }
  0x3f   :  { %687 = vmatpush.bf16.msrb.mxu3 %v1156_v57  ;;  %644 = vmatpush.bf16.msrb.mxu2 %v1148_v58  ;;  %v921_v57 = vor.u32 %v1126_v54, %v920_v53  ;;  %v1128_v58 = vld [vmem:[%s1616_s0 + $0xd4] sm:$0xf]  ;;  %v929_v3 = vor.u32 %v1127_v60, %v926_v61 }
  0x40   :  { %730 = vmatpush.bf16.msrb.mxu0 %v1164_v62  ;;  %v932_v62 = vld [vmem:[%s1616_s0 + $0xd0] sm:$0xf]  ;;  %v937_v63 = vor.u32 %v1128_v58, %v934_v59 }
  0x41   :  { %602 = vmatmul.bf16.vlgmr.msrb.gmra.mxu1 %v829_v6  ;;  %v933_v4 = vor.u32 %v1130_v0, %v932_v62  ;;  %v51_v6 = vld [vmem:[%s1616_s0 + $0xf8] sm:$0xff] }
  0x42   :  { %688 = vmatmul.bf16.vlgmr.msrb.gmra.mxu3 %v837_v2  ;;  %645 = vmatmul.bf16.vlgmr.msrb.gmra.mxu2 %v833_v8  ;;  %v1131_v2 = vld [vmem:[%s1616_s0 + $0xe8] sm:$0xf0]  ;;  %v239_v8 = vunpack.c.h.b16 %v51_v6  ;;  %v238_v11 = vunpack.c.l.b16 %v51_v6 }
  0x43   :  { %731 = vmatmul.bf16.vlgmr.msrb.gmra.mxu0 %v841_v9  ;;  %v941_v5 = vor.u32 %v1131_v2, %v940_v1  ;;  %v52_v9 = vld [vmem:[%s1616_s0 + $0x100] sm:$0xf] }
  0x44   :  { %v240_v12 = vunpack.c.l.b16 %v52_v9  ;;  %v274_v13 = vpack.c.b16 %v239_v8, %v239_v8  ;;  %v273_v17 = vpack.c.b16 %v238_v11, %v238_v11 }
  0x46   :  { %v275_v18 = vpack.c.b16 %v240_v12, %v240_v12 }
  0x51   :  { %607 = vmatmul.bf16.gmra.mxu1 %v849_v19  ;;  %v1535_v19 = vld [vmem:[%s1615_s2] ss:$0 sm:$0xff] }
  0x52   :  { %693 = vmatmul.bf16.gmra.mxu3 %v857_v15  ;;  %650 = vmatmul.bf16.gmra.mxu2 %v853_v20 }
  0x53   :  { %736 = vmatmul.bf16.gmra.mxu0 %v861_v21 }
  0x61   :  { %612 = vmatmul.bf16.gmra.mxu1 %v869_v31 }
  0x62   :  { %698 = vmatmul.bf16.gmra.mxu3 %v877_v27  ;;  %655 = vmatmul.bf16.gmra.mxu2 %v873_v32 }
  0x63   :  { %741 = vmatmul.bf16.gmra.mxu0 %v881_v33 }
  0x71   :  { %617 = vmatmul.bf16.gmra.mxu1 %v889_v43 }
  0x72   :  { %703 = vmatmul.bf16.gmra.mxu3 %v897_v39  ;;  %660 = vmatmul.bf16.gmra.mxu2 %v893_v44 }
  0x73   :  { %746 = vmatmul.bf16.gmra.mxu0 %v901_v45 }
  0x81   :  { %622 = vmatmul.bf16.gmra.mxu1 %v909_v55 }
  0x82   :  { %708 = vmatmul.bf16.gmra.mxu3 %v917_v51  ;;  %665 = vmatmul.bf16.gmra.mxu2 %v913_v56 }
  0x83   :  { %751 = vmatmul.bf16.gmra.mxu0 %v921_v57 }
  0x91   :  { %627 = vmatmul.bf16.gmra.mxu1 %v929_v3 }
  0x92   :  { %713 = vmatmul.bf16.gmra.mxu3 %v937_v63  ;;  %670 = vmatmul.bf16.gmra.mxu2 %v933_v4 }
  0x93   :  { %756 = vmatmul.bf16.gmra.mxu0 %v941_v5 }
  0x9e   :  { %v560_v15 = vpop.f32.mrf.mxu0  ;;  %v1530_v16 = vpop.f32.mrf.mxu1 }
  0x9f   :  { %v561_v38 = vadd.f32 %v1535_v19, %v560_v15 }
  0xa1   :  { %632 = vmatmul.bf16.gmra.mxu1 %v272_v14 }
  0xa2   :  { %718 = vmatmul.bf16.gmra.mxu3 %v274_v13  ;;  %675 = vmatmul.bf16.gmra.mxu2 %v273_v17  ;;  %v571_v17 = vadd.f32 %v1535_v19, %v1530_v16 }
  0xa3   :  { %761 = vmatmul.bf16.gmra.mxu0 %v275_v18 }
  0xa5   :  { %v580_v20 = vpop.f32.mrf.mxu2 }
  0xa6   :  { %v1538_v7 = vadd.f32 %v1535_v19, %v580_v20  ;;  %v562_v21 = vpop.f32.mrf.mxu0  ;;  %v1540_v22 = vpop.f32.mrf.mxu1 }
  0xa7   :  { %v590_v23 = vpop.f32.mrf.mxu3  ;;  %v563_v46 = vadd.f32 %v1535_v19, %v562_v21 }
  0xa8   :  { %v1543_v24 = vadd.f32 %v1535_v19, %v590_v23 }
  0xad   :  { %v582_v25 = vpop.f32.mrf.mxu2 }
  0xae   :  { %v1546_v26 = vadd.f32 %v1535_v19, %v582_v25  ;;  %v565_v27 = vpop.f32.mrf.mxu0  ;;  %v1548_v28 = vpop.f32.mrf.mxu1 }
  0xaf   :  { %v592_v29 = vpop.f32.mrf.mxu3  ;;  %v566_v57 = vadd.f32 %v1535_v19, %v565_v27 }
  0xb5   :  { %v585_v30 = vpop.f32.mrf.mxu2 }
  0xb6   :  { %v1551_v31 = vadd.f32 %v1535_v19, %v585_v30  ;;  %v567_v32 = vpop.f32.mrf.mxu0  ;;  %v1553_v33 = vpop.f32.mrf.mxu1 }
  0xb7   :  { %v568_v4 = vadd.f32 %v1535_v19, %v567_v32 }
  0xbd   :  { %v587_v34 = vpop.f32.mrf.mxu2 }
  0xbe   :  { %v1556_v35 = vadd.f32 %v1535_v19, %v587_v34  ;;  %v603_v36 = vpop.f32.mrf.mxu1 }
  0xbf   :  { %v604_v40 = vadd.f32 %v603_v36, %v561_v38  ;;  %v573_v36 = vadd.f32 %v1535_v19, %v1540_v22 }
  0xc0   :  { %v732_v37 = vpop.f32.mrf.mxu0 }
  0xc5   :  { %v689_v39 = vpop.f32.mrf.mxu3  ;;  %v646_v41 = vpop.f32.mrf.mxu2 }
  0xc6   :  { %v647_v42 = vadd.f32 %v646_v41, %v604_v40  ;;  %v605_v43 = vpop.f32.mrf.mxu1 }
  0xc7   :  { %v606_v50 = vadd.f32 %v605_v43, %v563_v46  ;;  %v576_v46 = vadd.f32 %v1535_v19, %v1548_v28 }
  0xc8   :  { %v734_v44 = vpop.f32.mrf.mxu0  ;;  %v690_v45 = vadd.f32 %v689_v39, %v647_v42 }
  0xca   :  { %v733_v47 = vadd.f32 %v732_v37, %v690_v45 }
  0xcc   :  { %vm766_vm0 = vcmp.gt.f32.partialorder %v733_v47, 0.0  ;;  %v779_v49 = vmul.f32 0.01, %v733_v47 }
  0xcd   :  { %v691_v48 = vpop.f32.mrf.mxu3  ;;  %v648_v51 = vpop.f32.mrf.mxu2 }
  0xce   :  { %v792_v52 = vsel %vm766_vm0, %v733_v47, %v779_v49  ;;  %v649_v53 = vadd.f32 %v648_v51, %v606_v50  ;;  %v608_v54 = vpop.f32.mrf.mxu1 }
  0xcf   :  { %805 = vst [vmem:[%s1617_s3] sm:$0xff] %v792_v52  ;;  %v609_v61 = vadd.f32 %v608_v54, %v566_v57 }
  0xd0   :  { %v737_v55 = vpop.f32.mrf.mxu0  ;;  %v692_v56 = vadd.f32 %v691_v48, %v649_v53 }
  0xd2   :  { %v735_v58 = vadd.f32 %v734_v44, %v692_v56  ;;  %v578_v56 = vadd.f32 %v1535_v19, %v1553_v33 }
  0xd4   :  { %vm767_vm1 = vcmp.gt.f32.partialorder %v735_v58, 0.0  ;;  %v780_v60 = vmul.f32 0.01, %v735_v58 }
  0xd5   :  { %v694_v59 = vpop.f32.mrf.mxu3  ;;  %v651_v62 = vpop.f32.mrf.mxu2 }
  0xd6   :  { %v793_v63 = vsel %vm767_vm1, %v735_v58, %v780_v60  ;;  %v652_v0 = vadd.f32 %v651_v62, %v609_v61  ;;  %v610_v1 = vpop.f32.mrf.mxu1 }
  0xd7   :  { %806 = vst [vmem:[%s1617_s3 + $0x8] sm:$0xff] %v793_v63  ;;  %v611_v9 = vadd.f32 %v610_v1, %v568_v4 }
  0xd8   :  { %v739_v2 = vpop.f32.mrf.mxu0  ;;  %v695_v3 = vadd.f32 %v694_v59, %v652_v0 }
  0xda   :  { %v738_v5 = vadd.f32 %v737_v55, %v695_v3 }
  0xdc   :  { %vm768_vm2 = vcmp.gt.f32.partialorder %v738_v5, 0.0  ;;  %v781_v8 = vmul.f32 0.01, %v738_v5 }
  0xdd   :  { %v696_v6 = vpop.f32.mrf.mxu3  ;;  %v653_v10 = vpop.f32.mrf.mxu2 }
  0xde   :  { %v794_v11 = vsel %vm768_vm2, %v738_v5, %v781_v8  ;;  %v654_v12 = vadd.f32 %v653_v10, %v611_v9  ;;  %v613_v13 = vpop.f32.mrf.mxu1 }
  0xdf   :  { %807 = vst [vmem:[%s1617_s3 + $0x10] sm:$0xff] %v794_v11  ;;  %v614_v23 = vadd.f32 %v613_v13, %v571_v17 }
  0xe0   :  { %v742_v14 = vpop.f32.mrf.mxu0  ;;  %v697_v15 = vadd.f32 %v696_v6, %v654_v12 }
  0xe2   :  { %v740_v18 = vadd.f32 %v739_v2, %v697_v15 }
  0xe4   :  { %vm769_vm3 = vcmp.gt.f32.partialorder %v740_v18, 0.0  ;;  %v782_v21 = vmul.f32 0.01, %v740_v18 }
  0xe5   :  { %v699_v20 = vpop.f32.mrf.mxu3  ;;  %v656_v25 = vpop.f32.mrf.mxu2 }
  0xe6   :  { %v795_v27 = vsel %vm769_vm3, %v740_v18, %v782_v21  ;;  %v657_v29 = vadd.f32 %v656_v25, %v614_v23  ;;  %v615_v30 = vpop.f32.mrf.mxu1 }
  0xe7   :  { %808 = vst [vmem:[%s1617_s3 + $0x18] sm:$0xff] %v795_v27  ;;  %v616_v39 = vadd.f32 %v615_v30, %v573_v36 }
  0xe8   :  { %v744_v32 = vpop.f32.mrf.mxu0  ;;  %v700_v34 = vadd.f32 %v699_v20, %v657_v29 }
  0xea   :  { %v743_v37 = vadd.f32 %v742_v14, %v700_v34 }
  0xec   :  { %vm770_vm4 = vcmp.gt.f32.partialorder %v743_v37, 0.0  ;;  %v783_v38 = vmul.f32 0.01, %v743_v37 }
  0xed   :  { %v701_v16 = vpop.f32.mrf.mxu3  ;;  %v658_v40 = vpop.f32.mrf.mxu2 }
  0xee   :  { %v796_v41 = vsel %vm770_vm4, %v743_v37, %v783_v38  ;;  %v659_v42 = vadd.f32 %v658_v40, %v616_v39  ;;  %v618_v43 = vpop.f32.mrf.mxu1 }
  0xef   :  { %809 = vst [vmem:[%s1617_s3 + $0x20] sm:$0xff] %v796_v41  ;;  %v619_v49 = vadd.f32 %v618_v43, %v576_v46 }
  0xf0   :  { %v747_v44 = vpop.f32.mrf.mxu0  ;;  %v702_v45 = vadd.f32 %v701_v16, %v659_v42 }
  0xf2   :  { %v745_v47 = vadd.f32 %v744_v32, %v702_v45 }
  0xf4   :  { %vm771_vm5 = vcmp.gt.f32.partialorder %v745_v47, 0.0  ;;  %v784_v48 = vmul.f32 0.01, %v745_v47 }
  0xf5   :  { %v704_v22 = vpop.f32.mrf.mxu3  ;;  %v661_v50 = vpop.f32.mrf.mxu2 }
  0xf6   :  { %v797_v51 = vsel %vm771_vm5, %v745_v47, %v784_v48  ;;  %v662_v52 = vadd.f32 %v661_v50, %v619_v49  ;;  %v620_v53 = vpop.f32.mrf.mxu1 }
  0xf7   :  { %810 = vst [vmem:[%s1617_s3 + $0x28] sm:$0xff] %v797_v51  ;;  %v621_v59 = vadd.f32 %v620_v53, %v578_v56 }
  0xf8   :  { %v749_v54 = vpop.f32.mrf.mxu0  ;;  %v705_v55 = vadd.f32 %v704_v22, %v662_v52 }
  0xfa   :  { %v748_v57 = vadd.f32 %v747_v44, %v705_v55 }
  0xfc   :  { %vm772_vm6 = vcmp.gt.f32.partialorder %v748_v57, 0.0  ;;  %v785_v58 = vmul.f32 0.01, %v748_v57 }
  0xfd   :  { %v706_v28 = vpop.f32.mrf.mxu3  ;;  %v663_v60 = vpop.f32.mrf.mxu2 }
  0xfe   :  { %v798_v61 = vsel %vm772_vm6, %v748_v57, %v785_v58  ;;  %v664_v62 = vadd.f32 %v663_v60, %v621_v59  ;;  %v623_v63 = vpop.f32.mrf.mxu1 }
  0xff   :  { %811 = vst [vmem:[%s1617_s3 + $0x30] sm:$0xff] %v798_v61  ;;  %v624_v19 = vadd.f32 %v623_v63, %v1538_v7 }
 0x100   :  { %v752_v0 = vpop.f32.mrf.mxu0  ;;  %v707_v1 = vadd.f32 %v706_v28, %v664_v62 }
 0x102   :  { %v750_v2 = vadd.f32 %v749_v54, %v707_v1 }
 0x104   :  { %vm773_vm7 = vcmp.gt.f32.partialorder %v750_v2, 0.0  ;;  %v786_v4 = vmul.f32 0.01, %v750_v2 }
 0x105   :  { %v709_v3 = vpop.f32.mrf.mxu3  ;;  %v666_v33 = vpop.f32.mrf.mxu2 }
 0x106   :  { %v799_v5 = vsel %vm773_vm7, %v750_v2, %v786_v4  ;;  %v667_v6 = vadd.f32 %v666_v33, %v624_v19  ;;  %v625_v8 = vpop.f32.mrf.mxu1 }
 0x107   :  { %812 = vst [vmem:[%s1617_s3 + $0x38] sm:$0xff] %v799_v5  ;;  %v626_v14 = vadd.f32 %v625_v8, %v1546_v26 }
 0x108   :  { %v754_v9 = vpop.f32.mrf.mxu0  ;;  %v710_v10 = vadd.f32 %v709_v3, %v667_v6 }
 0x10a   :  { %v753_v11 = vadd.f32 %v752_v0, %v710_v10 }
 0x10c   :  { %vm774_vm8 = vcmp.gt.f32.partialorder %v753_v11, 0.0  ;;  %v787_v13 = vmul.f32 0.01, %v753_v11 }
 0x10d   :  { %v711_v12 = vpop.f32.mrf.mxu3  ;;  %v668_v15 = vpop.f32.mrf.mxu2 }
 0x10e   :  { %v800_v17 = vsel %vm774_vm8, %v753_v11, %v787_v13  ;;  %v669_v18 = vadd.f32 %v668_v15, %v626_v14  ;;  %v628_v7 = vpop.f32.mrf.mxu1 }
 0x10f   :  { %813 = vst [vmem:[%s1617_s3 + $0x40] sm:$0xff] %v800_v17  ;;  %v629_v29 = vadd.f32 %v628_v7, %v1551_v31 }
 0x110   :  { %v757_v20 = vpop.f32.mrf.mxu0  ;;  %v712_v21 = vadd.f32 %v711_v12, %v669_v18 }
 0x112   :  { %v755_v23 = vadd.f32 %v754_v9, %v712_v21 }
 0x114   :  { %vm775_vm9 = vcmp.gt.f32.partialorder %v755_v23, 0.0  ;;  %v788_v27 = vmul.f32 0.01, %v755_v23 }
 0x115   :  { %v714_v25 = vpop.f32.mrf.mxu3  ;;  %v671_v30 = vpop.f32.mrf.mxu2 }
 0x116   :  { %v801_v32 = vsel %vm775_vm9, %v755_v23, %v788_v27  ;;  %v672_v34 = vadd.f32 %v671_v30, %v629_v29  ;;  %v630_v26 = vpop.f32.mrf.mxu1 }
 0x117   :  { %814 = vst [vmem:[%s1617_s3 + $0x48] sm:$0xff] %v801_v32  ;;  %v631_v40 = vadd.f32 %v630_v26, %v1556_v35 }
 0x118   :  { %v759_v36 = vpop.f32.mrf.mxu0  ;;  %v715_v37 = vadd.f32 %v714_v25, %v672_v34 }
 0x11a   :  { %v758_v16 = vadd.f32 %v757_v20, %v715_v37 }
 0x11c   :  { %vm776_vm10 = vcmp.gt.f32.partialorder %v758_v16, 0.0  ;;  %v789_v39 = vmul.f32 0.01, %v758_v16 }
 0x11d   :  { %v716_v38 = vpop.f32.mrf.mxu3  ;;  %v673_v41 = vpop.f32.mrf.mxu2 }
 0x11e   :  { %v802_v42 = vsel %vm776_vm10, %v758_v16, %v789_v39  ;;  %v674_v43 = vadd.f32 %v673_v41, %v631_v40  ;;  %v633_v31 = vpop.f32.mrf.mxu1 }
 0x11f   :  { %815 = vst [vmem:[%s1617_s3 + $0x50] sm:$0xff] %v802_v42  ;;  %v634_v48 = vadd.f32 %v633_v31, %v1543_v24 }
 0x120   :  { %v762_v44 = vpop.f32.mrf.mxu0  ;;  %v717_v45 = vadd.f32 %v716_v38, %v674_v43 }
 0x122   :  { %v760_v46 = vadd.f32 %v759_v36, %v717_v45 }
 0x124   :  { %vm777_vm11 = vcmp.gt.f32.partialorder %v760_v46, 0.0  ;;  %v790_v22 = vmul.f32 0.01, %v760_v46 }
 0x125   :  { %v719_v47 = vpop.f32.mrf.mxu3  ;;  %v676_v49 = vpop.f32.mrf.mxu2 }
 0x126   :  { %v803_v50 = vsel %vm777_vm11, %v760_v46, %v790_v22  ;;  %v677_v51 = vadd.f32 %v676_v49, %v634_v48  ;;  %v635_v35 = vpop.f32.mrf.mxu1 }
 0x127   :  { %816 = vst [vmem:[%s1617_s3 + $0x58] sm:$0xff] %v803_v50 }
 0x128   :  { %v764_v52 = vpop.f32.mrf.mxu0  ;;  %v720_v53 = vadd.f32 %v719_v47, %v677_v51 }
 0x12a   :  { %v763_v54 = vadd.f32 %v762_v44, %v720_v53 }
 0x12c   :  { %vm778_vm12 = vcmp.gt.f32.partialorder %v763_v54, 0.0  ;;  %v791_v56 = vmul.f32 0.01, %v763_v54 }
 0x12d   :  { %v721_v55 = vpop.f32.mrf.mxu3  ;;  %v678_v57 = vpop.f32.mrf.mxu2 }
 0x12e   :  { %v804_v28 = vsel %vm778_vm12, %v763_v54, %v791_v56 }
 0x12f   :  { %817 = vst [vmem:[%s1617_s3 + $0x60] sm:$0xff] %v804_v28 }

// kernel: dqn_forward.7
= control target key start
LH: loop header
LB: loop body
LE: loop exit
PB: predicated region body
PF: predicated region fallthrough
CT: control target
= control target key end

     0   :  { %s15936_s1 = inlined_call_operand.vmem [shape: bf16[3200,512], index: 1, kind: input, shape index: {}]   ;;  %s15937_s0 = inlined_call_operand.vmem [shape: bf16[8,3200], index: 0, kind: input, shape index: {}]   ;;  %s15938_s2 = inlined_call_operand.vmem [shape: f32[1,512], index: 2, kind: input, shape index: {}]   ;;  %s15939_s3 = inlined_call_operand.vmem [shape: bf16[512,128], index: 3, kind: input, shape index: {}]   ;;  %s15940_s4 = inlined_call_operand.vmem [shape: f32[1,128], index: 4, kind: input, shape index: {}]   ;;  %s15941_s5 = inlined_call_operand.vmem [shape: f32[8,128], index: 5, kind: output, shape index: {}]  }
   0x1   :  { %v6678_v0 = vld [vmem:[%s15936_s1 + $0xe0] sm:$0xf]  ;;  %v9922_v1 = vld [vmem:[%s15936_s1 + $0xec] sm:$0xf0] }
   0x2   :  { %v6806_v2 = vld [vmem:[%s15936_s1 + $0x1e0] sm:$0xf]  ;;  %v6679_v3 = vor.u32 %v9922_v1, %v6678_v0  ;;  %v9954_v4 = vld [vmem:[%s15936_s1 + $0x1ec] sm:$0xf0] }
   0x3   :  { %v6934_v5 = vld [vmem:[%s15936_s1 + $0x2e0] sm:$0xf]  ;;  %v9986_v6 = vld [vmem:[%s15936_s1 + $0x2ec] sm:$0xf0]  ;;  %v6807_v7 = vor.u32 %v9954_v4, %v6806_v2 }
   0x4   :  { %v6935_v8 = vor.u32 %v9986_v6, %v6934_v5  ;;  %v7062_v9 = vld [vmem:[%s15936_s1 + $0x3e0] sm:$0xf]  ;;  %v10018_v10 = vld [vmem:[%s15936_s1 + $0x3ec] sm:$0xf0]  ;;  %4931 = vmatpush.bf16.msra.mxu0 %v6679_v3 }
   0x5   :  { %v6662_v11 = vld [vmem:[%s15936_s1 + $0xc0] sm:$0xf]  ;;  %v7063_v12 = vor.u32 %v10018_v10, %v7062_v9  ;;  %v9918_v13 = vld [vmem:[%s15936_s1 + $0xcc] sm:$0xf0]  ;;  %4944 = vmatpush.bf16.msra.mxu1 %v6807_v7 }
   0x6   :  { %v6790_v14 = vld [vmem:[%s15936_s1 + $0x1c0] sm:$0xf]  ;;  %v9950_v15 = vld [vmem:[%s15936_s1 + $0x1cc] sm:$0xf0]  ;;  %4957 = vmatpush.bf16.msra.mxu2 %v6935_v8  ;;  %v6663_v16 = vor.u32 %v9918_v13, %v6662_v11 }
   0x7   :  { %v6791_v17 = vor.u32 %v9950_v15, %v6790_v14  ;;  %v6918_v18 = vld [vmem:[%s15936_s1 + $0x2c0] sm:$0xf]  ;;  %v9982_v19 = vld [vmem:[%s15936_s1 + $0x2cc] sm:$0xf0]  ;;  %4970 = vmatpush.bf16.msra.mxu3 %v7063_v12 }
   0x8   :  { %v7046_v20 = vld [vmem:[%s15936_s1 + $0x3c0] sm:$0xf]  ;;  %v6919_v21 = vor.u32 %v9982_v19, %v6918_v18  ;;  %v10014_v22 = vld [vmem:[%s15936_s1 + $0x3cc] sm:$0xf0]  ;;  %4932 = vmatpush.bf16.msra.mxu0 %v6663_v16 }
   0x9   :  { %v6646_v23 = vld [vmem:[%s15936_s1 + $0xa0] sm:$0xf]  ;;  %v9914_v24 = vld [vmem:[%s15936_s1 + $0xac] sm:$0xf0]  ;;  %v7047_v25 = vor.u32 %v10014_v22, %v7046_v20  ;;  %4945 = vmatpush.bf16.msra.mxu1 %v6791_v17 }
   0xa   :  { %v6774_v26 = vld [vmem:[%s15936_s1 + $0x1a0] sm:$0xf]  ;;  %v9946_v27 = vld [vmem:[%s15936_s1 + $0x1ac] sm:$0xf0]  ;;  %v6647_v29 = vor.u32 %v9914_v24, %v6646_v23  ;;  %4958 = vmatpush.bf16.msra.mxu2 %v6919_v21 }
   0xb   :  { %v6902_v28 = vld [vmem:[%s15936_s1 + $0x2a0] sm:$0xf]  ;;  %v9978_v30 = vld [vmem:[%s15936_s1 + $0x2ac] sm:$0xf0]  ;;  %v6775_v33 = vor.u32 %v9946_v27, %v6774_v26  ;;  %4971 = vmatpush.bf16.msra.mxu3 %v7047_v25 }
   0xc   :  { %v7030_v31 = vld [vmem:[%s15936_s1 + $0x3a0] sm:$0xf]  ;;  %v10010_v32 = vld [vmem:[%s15936_s1 + $0x3ac] sm:$0xf0]  ;;  %v6903_v34 = vor.u32 %v9978_v30, %v6902_v28  ;;  %4933 = vmatpush.bf16.msra.mxu0 %v6647_v29 }
   0xd   :  { %v6630_v35 = vld [vmem:[%s15936_s1 + $0x80] sm:$0xf]  ;;  %v9910_v36 = vld [vmem:[%s15936_s1 + $0x8c] sm:$0xf0]  ;;  %v7031_v38 = vor.u32 %v10010_v32, %v7030_v31  ;;  %4946 = vmatpush.bf16.msra.mxu1 %v6775_v33 }
   0xe   :  { %v6758_v37 = vld [vmem:[%s15936_s1 + $0x180] sm:$0xf]  ;;  %v9942_v39 = vld [vmem:[%s15936_s1 + $0x18c] sm:$0xf0]  ;;  %v6631_v44 = vor.u32 %v9910_v36, %v6630_v35  ;;  %4959 = vmatpush.bf16.msra.mxu2 %v6903_v34 }
   0xf   :  { %v6886_v40 = vld [vmem:[%s15936_s1 + $0x280] sm:$0xf]  ;;  %v9974_v41 = vld [vmem:[%s15936_s1 + $0x28c] sm:$0xf0]  ;;  %v6759_v45 = vor.u32 %v9942_v39, %v6758_v37  ;;  %4972 = vmatpush.bf16.msra.mxu3 %v7031_v38 }
  0x10   :  { %v7014_v42 = vld [vmem:[%s15936_s1 + $0x380] sm:$0xf]  ;;  %v10006_v43 = vld [vmem:[%s15936_s1 + $0x38c] sm:$0xf0]  ;;  %v6887_v46 = vor.u32 %v9974_v41, %v6886_v40  ;;  %4934 = vmatpush.bf16.msra.mxu0 %v6631_v44 }
  0x11   :  { %v6614_v47 = vld [vmem:[%s15936_s1 + $0x60] sm:$0xf]  ;;  %v9906_v48 = vld [vmem:[%s15936_s1 + $0x6c] sm:$0xf0]  ;;  %v7015_v50 = vor.u32 %v10006_v43, %v7014_v42  ;;  %4947 = vmatpush.bf16.msra.mxu1 %v6759_v45 }
  0x12   :  { %v6742_v49 = vld [vmem:[%s15936_s1 + $0x160] sm:$0xf]  ;;  %v9938_v51 = vld [vmem:[%s15936_s1 + $0x16c] sm:$0xf0]  ;;  %v6615_v56 = vor.u32 %v9906_v48, %v6614_v47  ;;  %4960 = vmatpush.bf16.msra.mxu2 %v6887_v46 }
  0x13   :  { %v6870_v52 = vld [vmem:[%s15936_s1 + $0x260] sm:$0xf]  ;;  %v9970_v53 = vld [vmem:[%s15936_s1 + $0x26c] sm:$0xf0]  ;;  %v6743_v57 = vor.u32 %v9938_v51, %v6742_v49  ;;  %4973 = vmatpush.bf16.msra.mxu3 %v7015_v50 }
  0x14   :  { %v6998_v54 = vld [vmem:[%s15936_s1 + $0x360] sm:$0xf]  ;;  %v10002_v55 = vld [vmem:[%s15936_s1 + $0x36c] sm:$0xf0]  ;;  %v6871_v58 = vor.u32 %v9970_v53, %v6870_v52  ;;  %4935 = vmatpush.bf16.msra.mxu0 %v6615_v56 }
  0x15   :  { %v6598_v59 = vld [vmem:[%s15936_s1 + $0x40] sm:$0xf]  ;;  %v9902_v60 = vld [vmem:[%s15936_s1 + $0x4c] sm:$0xf0]  ;;  %v6999_v62 = vor.u32 %v10002_v55, %v6998_v54  ;;  %4948 = vmatpush.bf16.msra.mxu1 %v6743_v57 }
  0x16   :  { %v6726_v61 = vld [vmem:[%s15936_s1 + $0x140] sm:$0xf]  ;;  %v9934_v63 = vld [vmem:[%s15936_s1 + $0x14c] sm:$0xf0]  ;;  %v6599_v4 = vor.u32 %v9902_v60, %v6598_v59  ;;  %4961 = vmatpush.bf16.msra.mxu2 %v6871_v58 }
  0x17   :  { %v6854_v0 = vld [vmem:[%s15936_s1 + $0x240] sm:$0xf]  ;;  %v9966_v1 = vld [vmem:[%s15936_s1 + $0x24c] sm:$0xf0]  ;;  %v6727_v5 = vor.u32 %v9934_v63, %v6726_v61  ;;  %4974 = vmatpush.bf16.msra.mxu3 %v6999_v62 }
  0x18   :  { %v6982_v2 = vld [vmem:[%s15936_s1 + $0x340] sm:$0xf]  ;;  %v9998_v3 = vld [vmem:[%s15936_s1 + $0x34c] sm:$0xf0]  ;;  %v6855_v6 = vor.u32 %v9966_v1, %v6854_v0  ;;  %4936 = vmatpush.bf16.msra.mxu0 %v6599_v4 }
  0x19   :  { %v6582_v7 = vld [vmem:[%s15936_s1 + $0x20] sm:$0xf]  ;;  %v9898_v8 = vld [vmem:[%s15936_s1 + $0x2c] sm:$0xf0]  ;;  %v6983_v10 = vor.u32 %v9998_v3, %v6982_v2  ;;  %4949 = vmatpush.bf16.msra.mxu1 %v6727_v5  ;;  %v21_v2 = vld [vmem:[%s15937_s0 + $0x8] sm:$0xff] }
  0x1a   :  { %v6710_v9 = vld [vmem:[%s15936_s1 + $0x120] sm:$0xf]  ;;  %v9930_v11 = vld [vmem:[%s15936_s1 + $0x12c] sm:$0xf0]  ;;  %v6583_v16 = vor.u32 %v9898_v8, %v6582_v7  ;;  %4962 = vmatpush.bf16.msra.mxu2 %v6855_v6  ;;  %v858_v8 = vunpack.c.l.b16 %v21_v2 }
  0x1b   :  { %v6838_v12 = vld [vmem:[%s15936_s1 + $0x220] sm:$0xf]  ;;  %v9962_v13 = vld [vmem:[%s15936_s1 + $0x22c] sm:$0xf0]  ;;  %v6711_v19 = vor.u32 %v9930_v11, %v6710_v9  ;;  %4975 = vmatpush.bf16.msra.mxu3 %v6983_v10  ;;  %v859_v10 = vunpack.c.h.b16 %v21_v2 }
  0x1c   :  { %v6966_v14 = vld [vmem:[%s15936_s1 + $0x320] sm:$0xf]  ;;  %v9994_v15 = vld [vmem:[%s15936_s1 + $0x32c] sm:$0xf0]  ;;  %v6839_v20 = vor.u32 %v9962_v13, %v6838_v12  ;;  %4937 = vmatpush.bf16.msra.mxu0 %v6583_v16 }
  0x1d   :  { %v6566_v17 = vld [vmem:[%s15936_s1] sm:$0xf]  ;;  %v9894_v18 = vld [vmem:[%s15936_s1 + $0xc] sm:$0xf0]  ;;  %v6967_v24 = vor.u32 %v9994_v15, %v6966_v14  ;;  %4950 = vmatpush.bf16.msra.mxu1 %v6711_v19 }
  0x1e   :  { %v6694_v21 = vld [vmem:[%s15936_s1 + $0x100] sm:$0xf]  ;;  %v9926_v22 = vld [vmem:[%s15936_s1 + $0x10c] sm:$0xf0]  ;;  %v6567_v31 = vor.u32 %v9894_v18, %v6566_v17  ;;  %4963 = vmatpush.bf16.msra.mxu2 %v6839_v20  ;;  %v11052_v18 = vpack.c.b16 %v858_v8, %v858_v8  ;;  %v11056_v20 = vpack.c.b16 %v859_v10, %v859_v10 }
  0x1f   :  { %v6822_v23 = vld [vmem:[%s15936_s1 + $0x200] sm:$0xf]  ;;  %v9958_v25 = vld [vmem:[%s15936_s1 + $0x20c] sm:$0xf0]  ;;  %v6695_v35 = vor.u32 %v9926_v22, %v6694_v21  ;;  %4976 = vmatpush.bf16.msra.mxu3 %v6967_v24 }
  0x20   :  { %v6950_v26 = vld [vmem:[%s15936_s1 + $0x300] sm:$0xf]  ;;  %v9990_v27 = vld [vmem:[%s15936_s1 + $0x30c] sm:$0xf0]  ;;  %v6823_v36 = vor.u32 %v9958_v25, %v6822_v23  ;;  %4938 = vmatpush.bf16.msra.mxu0 %v6567_v31 }
  0x21   :  { %v7190_v28 = vld [vmem:[%s15936_s1 + $0x4e0] sm:$0xf]  ;;  %v10050_v29 = vld [vmem:[%s15936_s1 + $0x4ec] sm:$0xf0]  ;;  %v6951_v39 = vor.u32 %v9990_v27, %v6950_v26  ;;  %4951 = vmatpush.bf16.msra.mxu1 %v6695_v35 }
  0x22   :  { %v7318_v30 = vld [vmem:[%s15936_s1 + $0x5e0] sm:$0xf]  ;;  %v10082_v32 = vld [vmem:[%s15936_s1 + $0x5ec] sm:$0xf0]  ;;  %v7191_v40 = vor.u32 %v10050_v29, %v7190_v28  ;;  %4964 = vmatpush.bf16.msra.mxu2 %v6823_v36 }
  0x23   :  { %v7446_v33 = vld [vmem:[%s15936_s1 + $0x6e0] sm:$0xf]  ;;  %v10114_v34 = vld [vmem:[%s15936_s1 + $0x6ec] sm:$0xf0]  ;;  %v7319_v41 = vor.u32 %v10082_v32, %v7318_v30  ;;  %4977 = vmatpush.bf16.msra.mxu3 %v6951_v39 }
  0x24   :  { %v7574_v37 = vld [vmem:[%s15936_s1 + $0x7e0] sm:$0xf]  ;;  %v10146_v38 = vld [vmem:[%s15936_s1 + $0x7ec] sm:$0xf0]  ;;  %v7447_v42 = vor.u32 %v10114_v34, %v7446_v33  ;;  %4983 = vmatpush.bf16.msrb.mxu0 %v7191_v40 }
  0x25   :  { %v7174_v43 = vld [vmem:[%s15936_s1 + $0x4c0] sm:$0xf]  ;;  %v10046_v44 = vld [vmem:[%s15936_s1 + $0x4cc] sm:$0xf0]  ;;  %v7575_v46 = vor.u32 %v10146_v38, %v7574_v37  ;;  %4996 = vmatpush.bf16.msrb.mxu1 %v7319_v41  ;;  %4965 = vmatmul.bf16.vlgmr.msra.gmra.mxu2 %v11052_v18 }
  0x26   :  { %v7302_v45 = vld [vmem:[%s15936_s1 + $0x5c0] sm:$0xf]  ;;  %v10078_v47 = vld [vmem:[%s15936_s1 + $0x5cc] sm:$0xf0]  ;;  %v7175_v52 = vor.u32 %v10046_v44, %v7174_v43  ;;  %5009 = vmatpush.bf16.msrb.mxu2 %v7447_v42  ;;  %4978 = vmatmul.bf16.vlgmr.msra.gmra.mxu3 %v11056_v20 }
  0x27   :  { %v7430_v48 = vld [vmem:[%s15936_s1 + $0x6c0] sm:$0xf]  ;;  %v10110_v49 = vld [vmem:[%s15936_s1 + $0x6cc] sm:$0xf0]  ;;  %v7303_v54 = vor.u32 %v10078_v47, %v7302_v45  ;;  %5022 = vmatpush.bf16.msrb.mxu3 %v7575_v46 }
  0x28   :  { %v7558_v50 = vld [vmem:[%s15936_s1 + $0x7c0] sm:$0xf]  ;;  %v10142_v51 = vld [vmem:[%s15936_s1 + $0x7cc] sm:$0xf0]  ;;  %v7431_v55 = vor.u32 %v10110_v49, %v7430_v48  ;;  %4984 = vmatpush.bf16.msrb.mxu0 %v7175_v52 }
  0x29   :  { %v7158_v53 = vld [vmem:[%s15936_s1 + $0x4a0] sm:$0xf]  ;;  %v10042_v56 = vld [vmem:[%s15936_s1 + $0x4ac] sm:$0xf0]  ;;  %v7559_v59 = vor.u32 %v10142_v51, %v7558_v50  ;;  %4997 = vmatpush.bf16.msrb.mxu1 %v7303_v54 }
  0x2a   :  { %v7286_v57 = vld [vmem:[%s15936_s1 + $0x5a0] sm:$0xf]  ;;  %v10074_v58 = vld [vmem:[%s15936_s1 + $0x5ac] sm:$0xf0]  ;;  %v7159_v0 = vor.u32 %v10042_v56, %v7158_v53  ;;  %5010 = vmatpush.bf16.msrb.mxu2 %v7431_v55 }
  0x2b   :  { %v7414_v60 = vld [vmem:[%s15936_s1 + $0x6a0] sm:$0xf]  ;;  %v10106_v61 = vld [vmem:[%s15936_s1 + $0x6ac] sm:$0xf0]  ;;  %v7287_v1 = vor.u32 %v10074_v58, %v7286_v57  ;;  %5023 = vmatpush.bf16.msrb.mxu3 %v7559_v59 }
  0x2c   :  { %v7542_v62 = vld [vmem:[%s15936_s1 + $0x7a0] sm:$0xf]  ;;  %v10138_v63 = vld [vmem:[%s15936_s1 + $0x7ac] sm:$0xf0]  ;;  %v7415_v4 = vor.u32 %v10106_v61, %v7414_v60  ;;  %4985 = vmatpush.bf16.msrb.mxu0 %v7159_v0 }
  0x2d   :  { %v20_v3 = vld [vmem:[%s15937_s0] sm:$0xff]  ;;  %v10038_v6 = vld [vmem:[%s15936_s1 + $0x48c] sm:$0xf0]  ;;  %v7543_v11 = vor.u32 %v10138_v63, %v7542_v62  ;;  %4998 = vmatpush.bf16.msrb.mxu1 %v7287_v1 }
  0x2e   :  { %v7142_v5 = vld [vmem:[%s15936_s1 + $0x480] sm:$0xf]  ;;  %v856_v9 = vunpack.c.l.b16 %v20_v3  ;;  %v10070_v12 = vld [vmem:[%s15936_s1 + $0x58c] sm:$0xf0]  ;;  %v857_v15 = vunpack.c.h.b16 %v20_v3  ;;  %5011 = vmatpush.bf16.msrb.mxu2 %v7415_v4  ;;  %v23_v3 = vld [vmem:[%s15937_s0 + $0x18] sm:$0xff] }
  0x2f   :  { %v7270_v7 = vld [vmem:[%s15936_s1 + $0x580] sm:$0xf]  ;;  %v10102_v14 = vld [vmem:[%s15936_s1 + $0x68c] sm:$0xf0]  ;;  %v7143_v21 = vor.u32 %v10038_v6, %v7142_v5  ;;  %5024 = vmatpush.bf16.msrb.mxu3 %v7543_v11 }
  0x30   :  { %v7398_v13 = vld [vmem:[%s15936_s1 + $0x680] sm:$0xf]  ;;  %v10134_v17 = vld [vmem:[%s15936_s1 + $0x78c] sm:$0xf0]  ;;  %v11054_v19 = vpack.c.b16 %v856_v9, %v856_v9  ;;  %v11058_v22 = vpack.c.b16 %v857_v15, %v857_v15  ;;  %v7271_v23 = vor.u32 %v10070_v12, %v7270_v7  ;;  %v862_v15 = vunpack.c.l.b16 %v23_v3 }
  0x31   :  { %v7526_v16 = vld [vmem:[%s15936_s1 + $0x780] sm:$0xf]  ;;  %v7399_v24 = vor.u32 %v10102_v14, %v7398_v13  ;;  %v10034_v26 = vld [vmem:[%s15936_s1 + $0x46c] sm:$0xf0]  ;;  %4986 = vmatpush.bf16.msrb.mxu0 %v7143_v21 }
  0x32   :  { %v7126_v25 = vld [vmem:[%s15936_s1 + $0x460] sm:$0xf]  ;;  %v7527_v28 = vor.u32 %v10134_v17, %v7526_v16  ;;  %v10066_v29 = vld [vmem:[%s15936_s1 + $0x56c] sm:$0xf0]  ;;  %4939 = vmatmul.bf16.vlgmr.msra.gmra.mxu0 %v11054_v19  ;;  %4952 = vmatmul.bf16.vlgmr.msra.gmra.mxu1 %v11058_v22 }
  0x33   :  { %v7254_v27 = vld [vmem:[%s15936_s1 + $0x560] sm:$0xf]  ;;  %v10098_v31 = vld [vmem:[%s15936_s1 + $0x66c] sm:$0xf0]  ;;  %v7127_v34 = vor.u32 %v10034_v26, %v7126_v25  ;;  %4999 = vmatpush.bf16.msrb.mxu1 %v7271_v23  ;;  %5012 = vmatpush.bf16.msrb.mxu2 %v7399_v24  ;;  %v863_v25 = vunpack.c.h.b16 %v23_v3 }
  0x34   :  { %v7382_v30 = vld [vmem:[%s15936_s1 + $0x660] sm:$0xf]  ;;  %v10130_v33 = vld [vmem:[%s15936_s1 + $0x76c] sm:$0xf0]  ;;  %v7255_v35 = vor.u32 %v10066_v29, %v7254_v27  ;;  %5025 = vmatpush.bf16.msrb.mxu3 %v7527_v28 }
  0x35   :  { %v7510_v32 = vld [vmem:[%s15936_s1 + $0x760] sm:$0xf]  ;;  %v7383_v36 = vor.u32 %v10098_v31, %v7382_v30  ;;  %v10030_v38 = vld [vmem:[%s15936_s1 + $0x44c] sm:$0xf0]  ;;  %4987 = vmatpush.bf16.msrb.mxu0 %v7127_v34 }
  0x36   :  { %v7110_v37 = vld [vmem:[%s15936_s1 + $0x440] sm:$0xf]  ;;  %v7511_v40 = vor.u32 %v10130_v33, %v7510_v32  ;;  %v10062_v41 = vld [vmem:[%s15936_s1 + $0x54c] sm:$0xf0] }
  0x37   :  { %v7238_v39 = vld [vmem:[%s15936_s1 + $0x540] sm:$0xf]  ;;  %v10094_v43 = vld [vmem:[%s15936_s1 + $0x64c] sm:$0xf0]  ;;  %v7111_v46 = vor.u32 %v10030_v38, %v7110_v37  ;;  %5000 = vmatpush.bf16.msrb.mxu1 %v7255_v35  ;;  %5013 = vmatpush.bf16.msrb.mxu2 %v7383_v36  ;;  %v11208_v38 = vpack.c.b16 %v862_v15, %v862_v15 }
  0x38   :  { %v7366_v42 = vld [vmem:[%s15936_s1 + $0x640] sm:$0xf]  ;;  %v10126_v45 = vld [vmem:[%s15936_s1 + $0x74c] sm:$0xf0]  ;;  %v7239_v47 = vor.u32 %v10062_v41, %v7238_v39  ;;  %5026 = vmatpush.bf16.msrb.mxu3 %v7511_v40 }
  0x39   :  { %v7494_v44 = vld [vmem:[%s15936_s1 + $0x740] sm:$0xf]  ;;  %v7367_v48 = vor.u32 %v10094_v43, %v7366_v42  ;;  %v10026_v50 = vld [vmem:[%s15936_s1 + $0x42c] sm:$0xf0]  ;;  %4988 = vmatpush.bf16.msrb.mxu0 %v7111_v46  ;;  %v11218_v42 = vpack.c.b16 %v863_v25, %v863_v25 }
  0x3a   :  { %v7094_v49 = vld [vmem:[%s15936_s1 + $0x420] sm:$0xf]  ;;  %v7495_v52 = vor.u32 %v10126_v45, %v7494_v44  ;;  %v10058_v53 = vld [vmem:[%s15936_s1 + $0x52c] sm:$0xf0] }
  0x3b   :  { %v7222_v51 = vld [vmem:[%s15936_s1 + $0x520] sm:$0xf]  ;;  %v10090_v55 = vld [vmem:[%s15936_s1 + $0x62c] sm:$0xf0]  ;;  %v7095_v59 = vor.u32 %v10026_v50, %v7094_v49  ;;  %5001 = vmatpush.bf16.msrb.mxu1 %v7239_v47  ;;  %5014 = vmatpush.bf16.msrb.mxu2 %v7367_v48 }
  0x3c   :  { %v7350_v54 = vld [vmem:[%s15936_s1 + $0x620] sm:$0xf]  ;;  %v10122_v57 = vld [vmem:[%s15936_s1 + $0x72c] sm:$0xf0]  ;;  %v7223_v63 = vor.u32 %v10058_v53, %v7222_v51  ;;  %5027 = vmatpush.bf16.msrb.mxu3 %v7495_v52 }
  0x3d   :  { %v7478_v56 = vld [vmem:[%s15936_s1 + $0x720] sm:$0xf]  ;;  %v10022_v60 = vld [vmem:[%s15936_s1 + $0x40c] sm:$0xf0]  ;;  %v7351_v0 = vor.u32 %v10090_v55, %v7350_v54  ;;  %4989 = vmatpush.bf16.msrb.mxu0 %v7095_v59 }
  0x3e   :  { %v7078_v58 = vld [vmem:[%s15936_s1 + $0x400] sm:$0xf]  ;;  %v10054_v62 = vld [vmem:[%s15936_s1 + $0x50c] sm:$0xf0]  ;;  %v7479_v4 = vor.u32 %v10122_v57, %v7478_v56 }
  0x3f   :  { %v7206_v61 = vld [vmem:[%s15936_s1 + $0x500] sm:$0xf]  ;;  %v10086_v2 = vld [vmem:[%s15936_s1 + $0x60c] sm:$0xf0]  ;;  %v7079_v11 = vor.u32 %v10022_v60, %v7078_v58  ;;  %5002 = vmatpush.bf16.msrb.mxu1 %v7223_v63  ;;  %5015 = vmatpush.bf16.msrb.mxu2 %v7351_v0 }
  0x40   :  { %v7334_v1 = vld [vmem:[%s15936_s1 + $0x600] sm:$0xf]  ;;  %v10118_v6 = vld [vmem:[%s15936_s1 + $0x70c] sm:$0xf0]  ;;  %v7207_v16 = vor.u32 %v10054_v62, %v7206_v61  ;;  %5028 = vmatpush.bf16.msrb.mxu3 %v7479_v4 }
  0x41   :  { %v7462_v5 = vld [vmem:[%s15936_s1 + $0x700] sm:$0xf]  ;;  %v22_v7 = vld [vmem:[%s15937_s0 + $0x10] sm:$0xff]  ;;  %v7335_v17 = vor.u32 %v10086_v2, %v7334_v1  ;;  %4990 = vmatpush.bf16.msrb.mxu0 %v7079_v11 }
  0x42   :  { %v7702_v8 = vld [vmem:[%s15936_s1 + $0x8e0] sm:$0xf]  ;;  %v10178_v9 = vld [vmem:[%s15936_s1 + $0x8ec] sm:$0xf0]  ;;  %v860_v24 = vunpack.c.l.b16 %v22_v7  ;;  %v7463_v26 = vor.u32 %v10118_v6, %v7462_v5  ;;  %v861_v28 = vunpack.c.h.b16 %v22_v7 }
  0x43   :  { %v7830_v10 = vld [vmem:[%s15936_s1 + $0x9e0] sm:$0xf]  ;;  %v10210_v12 = vld [vmem:[%s15936_s1 + $0x9ec] sm:$0xf0]  ;;  %v7703_v27 = vor.u32 %v10178_v9, %v7702_v8  ;;  %5003 = vmatpush.bf16.msrb.mxu1 %v7207_v16  ;;  %5016 = vmatpush.bf16.msrb.mxu2 %v7335_v17 }
  0x44   :  { %v7958_v13 = vld [vmem:[%s15936_s1 + $0xae0] sm:$0xf]  ;;  %v10242_v14 = vld [vmem:[%s15936_s1 + $0xaec] sm:$0xf0]  ;;  %v7831_v29 = vor.u32 %v10210_v12, %v7830_v10  ;;  %v11216_v41 = vpack.c.b16 %v860_v24, %v860_v24  ;;  %5029 = vmatpush.bf16.msrb.mxu3 %v7463_v26  ;;  %v11220_v44 = vpack.c.b16 %v861_v28, %v861_v28 }
  0x45   :  { %v8086_v21 = vld [vmem:[%s15936_s1 + $0xbe0] sm:$0xf]  ;;  %v10274_v23 = vld [vmem:[%s15936_s1 + $0xbec] sm:$0xf0]  ;;  %v7959_v30 = vor.u32 %v10242_v14, %v7958_v13  ;;  %5035 = vmatpush.bf16.msra.mxu0 %v7703_v27 }
  0x46   :  { %v7686_v31 = vld [vmem:[%s15936_s1 + $0x8c0] sm:$0xf]  ;;  %v10174_v32 = vld [vmem:[%s15936_s1 + $0x8cc] sm:$0xf0]  ;;  %v8087_v34 = vor.u32 %v10274_v23, %v8086_v21  ;;  %5017 = vmatmul.bf16.vlgmr.msrb.gmra.mxu2 %v11208_v38  ;;  %4991 = vmatmul.bf16.vlgmr.msrb.gmra.mxu0 %v11216_v41 }
  0x47   :  { %v7814_v33 = vld [vmem:[%s15936_s1 + $0x9c0] sm:$0xf]  ;;  %v10206_v35 = vld [vmem:[%s15936_s1 + $0x9cc] sm:$0xf0]  ;;  %v7687_v43 = vor.u32 %v10174_v32, %v7686_v31  ;;  %5048 = vmatpush.bf16.msra.mxu1 %v7831_v29  ;;  %5061 = vmatpush.bf16.msra.mxu2 %v7959_v30 }
  0x48   :  { %v7942_v36 = vld [vmem:[%s15936_s1 + $0xac0] sm:$0xf]  ;;  %v10238_v37 = vld [vmem:[%s15936_s1 + $0xacc] sm:$0xf0]  ;;  %v7815_v45 = vor.u32 %v10206_v35, %v7814_v33  ;;  %5074 = vmatpush.bf16.msra.mxu3 %v8087_v34  ;;  %5004 = vmatmul.bf16.vlgmr.msrb.gmra.mxu1 %v11220_v44 }
  0x49   :  { %v8070_v39 = vld [vmem:[%s15936_s1 + $0xbc0] sm:$0xf]  ;;  %v10270_v40 = vld [vmem:[%s15936_s1 + $0xbcc] sm:$0xf0]  ;;  %v7943_v46 = vor.u32 %v10238_v37, %v7942_v36  ;;  %5030 = vmatmul.bf16.vlgmr.msrb.gmra.mxu3 %v11218_v42  ;;  %5036 = vmatpush.bf16.msra.mxu0 %v7687_v43 }
  0x4a   :  { %v7670_v47 = vld [vmem:[%s15936_s1 + $0x8a0] sm:$0xf]  ;;  %v10170_v48 = vld [vmem:[%s15936_s1 + $0x8ac] sm:$0xf0]  ;;  %v8071_v50 = vor.u32 %v10270_v40, %v8070_v39 }
  0x4b   :  { %v7798_v49 = vld [vmem:[%s15936_s1 + $0x9a0] sm:$0xf]  ;;  %v10202_v51 = vld [vmem:[%s15936_s1 + $0x9ac] sm:$0xf0]  ;;  %v7671_v56 = vor.u32 %v10170_v48, %v7670_v47  ;;  %5049 = vmatpush.bf16.msra.mxu1 %v7815_v45  ;;  %5062 = vmatpush.bf16.msra.mxu2 %v7943_v46 }
  0x4c   :  { %v7926_v52 = vld [vmem:[%s15936_s1 + $0xaa0] sm:$0xf]  ;;  %v10234_v53 = vld [vmem:[%s15936_s1 + $0xaac] sm:$0xf0]  ;;  %v7799_v57 = vor.u32 %v10202_v51, %v7798_v49  ;;  %5075 = vmatpush.bf16.msra.mxu3 %v8071_v50 }
  0x4d   :  { %v8054_v54 = vld [vmem:[%s15936_s1 + $0xba0] sm:$0xf]  ;;  %v10266_v55 = vld [vmem:[%s15936_s1 + $0xbac] sm:$0xf0]  ;;  %v7927_v58 = vor.u32 %v10234_v53, %v7926_v52  ;;  %5037 = vmatpush.bf16.msra.mxu0 %v7671_v56 }
  0x4e   :  { %v7654_v59 = vld [vmem:[%s15936_s1 + $0x880] sm:$0xf]  ;;  %v10166_v60 = vld [vmem:[%s15936_s1 + $0x88c] sm:$0xf0]  ;;  %v8055_v62 = vor.u32 %v10266_v55, %v8054_v54 }
  0x4f   :  { %v7782_v61 = vld [vmem:[%s15936_s1 + $0x980] sm:$0xf]  ;;  %v10198_v63 = vld [vmem:[%s15936_s1 + $0x98c] sm:$0xf0]  ;;  %v7655_v4 = vor.u32 %v10166_v60, %v7654_v59  ;;  %5050 = vmatpush.bf16.msra.mxu1 %v7799_v57  ;;  %5063 = vmatpush.bf16.msra.mxu2 %v7927_v58 }
  0x50   :  { %v7910_v0 = vld [vmem:[%s15936_s1 + $0xa80] sm:$0xf]  ;;  %v10230_v1 = vld [vmem:[%s15936_s1 + $0xa8c] sm:$0xf0]  ;;  %v7783_v5 = vor.u32 %v10198_v63, %v7782_v61  ;;  %5076 = vmatpush.bf16.msra.mxu3 %v8055_v62  ;;  %v25_v61 = vld [vmem:[%s15937_s0 + $0x28] sm:$0xff] }
  0x51   :  { %v8038_v2 = vld [vmem:[%s15936_s1 + $0xb80] sm:$0xf]  ;;  %v10262_v3 = vld [vmem:[%s15936_s1 + $0xb8c] sm:$0xf0]  ;;  %v7911_v6 = vor.u32 %v10230_v1, %v7910_v0  ;;  %5038 = vmatpush.bf16.msra.mxu0 %v7655_v4 }
  0x52   :  { %v7638_v7 = vld [vmem:[%s15936_s1 + $0x860] sm:$0xf]  ;;  %v10162_v8 = vld [vmem:[%s15936_s1 + $0x86c] sm:$0xf0]  ;;  %v8039_v10 = vor.u32 %v10262_v3, %v8038_v2 }
  0x53   :  { %v7766_v9 = vld [vmem:[%s15936_s1 + $0x960] sm:$0xf]  ;;  %v10194_v11 = vld [vmem:[%s15936_s1 + $0x96c] sm:$0xf0]  ;;  %v7639_v16 = vor.u32 %v10162_v8, %v7638_v7  ;;  %5051 = vmatpush.bf16.msra.mxu1 %v7783_v5  ;;  %5064 = vmatpush.bf16.msra.mxu2 %v7911_v6 }
  0x54   :  { %v7894_v12 = vld [vmem:[%s15936_s1 + $0xa60] sm:$0xf]  ;;  %v10226_v13 = vld [vmem:[%s15936_s1 + $0xa6c] sm:$0xf0]  ;;  %v7767_v17 = vor.u32 %v10194_v11, %v7766_v9  ;;  %5077 = vmatpush.bf16.msra.mxu3 %v8039_v10  ;;  %v866_v10 = vunpack.c.l.b16 %v25_v61 }
  0x55   :  { %v8022_v14 = vld [vmem:[%s15936_s1 + $0xb60] sm:$0xf]  ;;  %v10258_v15 = vld [vmem:[%s15936_s1 + $0xb6c] sm:$0xf0]  ;;  %v7895_v21 = vor.u32 %v10226_v13, %v7894_v12  ;;  %5039 = vmatpush.bf16.msra.mxu0 %v7639_v16 }
  0x56   :  { %v7622_v23 = vld [vmem:[%s15936_s1 + $0x840] sm:$0xf]  ;;  %v10158_v24 = vld [vmem:[%s15936_s1 + $0x84c] sm:$0xf0]  ;;  %v8023_v26 = vor.u32 %v10258_v15, %v8022_v14  ;;  %v867_v14 = vunpack.c.h.b16 %v25_v61 }
  0x57   :  { %v7750_v25 = vld [vmem:[%s15936_s1 + $0x940] sm:$0xf]  ;;  %v10190_v27 = vld [vmem:[%s15936_s1 + $0x94c] sm:$0xf0]  ;;  %v7623_v32 = vor.u32 %v10158_v24, %v7622_v23  ;;  %5052 = vmatpush.bf16.msra.mxu1 %v7767_v17  ;;  %5065 = vmatpush.bf16.msra.mxu2 %v7895_v21 }
  0x58   :  { %v7878_v28 = vld [vmem:[%s15936_s1 + $0xa40] sm:$0xf]  ;;  %v10222_v29 = vld [vmem:[%s15936_s1 + $0xa4c] sm:$0xf0]  ;;  %v7751_v33 = vor.u32 %v10190_v27, %v7750_v25  ;;  %5078 = vmatpush.bf16.msra.mxu3 %v8023_v26 }
  0x59   :  { %v8006_v30 = vld [vmem:[%s15936_s1 + $0xb40] sm:$0xf]  ;;  %v10254_v31 = vld [vmem:[%s15936_s1 + $0xb4c] sm:$0xf0]  ;;  %v7879_v34 = vor.u32 %v10222_v29, %v7878_v28  ;;  %5040 = vmatpush.bf16.msra.mxu0 %v7623_v32  ;;  %v11420_v29 = vpack.c.b16 %v866_v10, %v866_v10 }
  0x5a   :  { %v7606_v35 = vld [vmem:[%s15936_s1 + $0x820] sm:$0xf]  ;;  %v10154_v36 = vld [vmem:[%s15936_s1 + $0x82c] sm:$0xf0]  ;;  %v8007_v39 = vor.u32 %v10254_v31, %v8006_v30 }
  0x5b   :  { %v7734_v37 = vld [vmem:[%s15936_s1 + $0x920] sm:$0xf]  ;;  %v10186_v40 = vld [vmem:[%s15936_s1 + $0x92c] sm:$0xf0]  ;;  %v7607_v49 = vor.u32 %v10154_v36, %v7606_v35  ;;  %5053 = vmatpush.bf16.msra.mxu1 %v7751_v33  ;;  %5066 = vmatpush.bf16.msra.mxu2 %v7879_v34  ;;  %v11430_v33 = vpack.c.b16 %v867_v14, %v867_v14 }
  0x5c   :  { %v7862_v43 = vld [vmem:[%s15936_s1 + $0xa20] sm:$0xf]  ;;  %v10218_v45 = vld [vmem:[%s15936_s1 + $0xa2c] sm:$0xf0]  ;;  %v7735_v53 = vor.u32 %v10186_v40, %v7734_v37  ;;  %5079 = vmatpush.bf16.msra.mxu3 %v8007_v39 }
  0x5d   :  { %v7990_v46 = vld [vmem:[%s15936_s1 + $0xb20] sm:$0xf]  ;;  %v10250_v47 = vld [vmem:[%s15936_s1 + $0xb2c] sm:$0xf0]  ;;  %v7863_v54 = vor.u32 %v10218_v45, %v7862_v43  ;;  %5041 = vmatpush.bf16.msra.mxu0 %v7607_v49 }
  0x5e   :  { %v7590_v48 = vld [vmem:[%s15936_s1 + $0x800] sm:$0xf]  ;;  %v10150_v50 = vld [vmem:[%s15936_s1 + $0x80c] sm:$0xf0]  ;;  %v7991_v58 = vor.u32 %v10250_v47, %v7990_v46 }
  0x5f   :  { %v7718_v51 = vld [vmem:[%s15936_s1 + $0x900] sm:$0xf]  ;;  %v10182_v52 = vld [vmem:[%s15936_s1 + $0x90c] sm:$0xf0]  ;;  %v7591_v1 = vor.u32 %v10150_v50, %v7590_v48  ;;  %5054 = vmatpush.bf16.msra.mxu1 %v7735_v53  ;;  %5067 = vmatpush.bf16.msra.mxu2 %v7863_v54 }
  0x60   :  { %v7846_v55 = vld [vmem:[%s15936_s1 + $0xa00] sm:$0xf]  ;;  %v10214_v56 = vld [vmem:[%s15936_s1 + $0xa0c] sm:$0xf0]  ;;  %v7719_v6 = vor.u32 %v10182_v52, %v7718_v51  ;;  %5080 = vmatpush.bf16.msra.mxu3 %v7991_v58 }
  0x61   :  { %v24_v57 = vld [vmem:[%s15937_s0 + $0x20] sm:$0xff]  ;;  %v10246_v60 = vld [vmem:[%s15936_s1 + $0xb0c] sm:$0xf0]  ;;  %v7847_v7 = vor.u32 %v10214_v56, %v7846_v55  ;;  %5042 = vmatpush.bf16.msra.mxu0 %v7591_v1 }
  0x62   :  { %v7974_v59 = vld [vmem:[%s15936_s1 + $0xb00] sm:$0xf]  ;;  %v10306_v63 = vld [vmem:[%s15936_s1 + $0xcec] sm:$0xf0]  ;;  %v864_v5 = vunpack.c.l.b16 %v24_v57  ;;  %v865_v11 = vunpack.c.h.b16 %v24_v57 }
  0x63   :  { %v8214_v62 = vld [vmem:[%s15936_s1 + $0xce0] sm:$0xf]  ;;  %v10338_v2 = vld [vmem:[%s15936_s1 + $0xdec] sm:$0xf0]  ;;  %v7975_v12 = vor.u32 %v10246_v60, %v7974_v59  ;;  %5055 = vmatpush.bf16.msra.mxu1 %v7719_v6  ;;  %5068 = vmatpush.bf16.msra.mxu2 %v7847_v7 }
  0x64   :  { %v8342_v0 = vld [vmem:[%s15936_s1 + $0xde0] sm:$0xf]  ;;  %v10370_v4 = vld [vmem:[%s15936_s1 + $0xeec] sm:$0xf0]  ;;  %v8215_v13 = vor.u32 %v10306_v63, %v8214_v62  ;;  %v11409_v25 = vpack.c.b16 %v864_v5, %v864_v5  ;;  %v11422_v30 = vpack.c.b16 %v865_v11, %v865_v11 }
  0x65   :  { %v8470_v3 = vld [vmem:[%s15936_s1 + $0xee0] sm:$0xf]  ;;  %v10402_v9 = vld [vmem:[%s15936_s1 + $0xfec] sm:$0xf0]  ;;  %v8343_v15 = vor.u32 %v10338_v2, %v8342_v0  ;;  %5081 = vmatpush.bf16.msra.mxu3 %v7975_v12 }
  0x66   :  { %v8598_v8 = vld [vmem:[%s15936_s1 + $0xfe0] sm:$0xf]  ;;  %v8471_v16 = vor.u32 %v10370_v4, %v8470_v3  ;;  %v10302_v21 = vld [vmem:[%s15936_s1 + $0xccc] sm:$0xf0]  ;;  %5087 = vmatpush.bf16.msrb.mxu0 %v8215_v13  ;;  %5069 = vmatmul.bf16.vlgmr.msra.gmra.mxu2 %v11420_v29 }
  0x67   :  { %v8198_v17 = vld [vmem:[%s15936_s1 + $0xcc0] sm:$0xf]  ;;  %v8599_v24 = vor.u32 %v10402_v9, %v8598_v8  ;;  %v10334_v26 = vld [vmem:[%s15936_s1 + $0xdcc] sm:$0xf0]  ;;  %5100 = vmatpush.bf16.msrb.mxu1 %v8343_v15  ;;  %5043 = vmatmul.bf16.vlgmr.msra.gmra.mxu0 %v11409_v25 }
  0x68   :  { %v8326_v23 = vld [vmem:[%s15936_s1 + $0xdc0] sm:$0xf]  ;;  %v10366_v28 = vld [vmem:[%s15936_s1 + $0xecc] sm:$0xf0]  ;;  %v8199_v34 = vor.u32 %v10302_v21, %v8198_v17  ;;  %5113 = vmatpush.bf16.msrb.mxu2 %v8471_v16  ;;  %5056 = vmatmul.bf16.vlgmr.msra.gmra.mxu1 %v11422_v30 }
  0x69   :  { %v8454_v27 = vld [vmem:[%s15936_s1 + $0xec0] sm:$0xf]  ;;  %v10398_v32 = vld [vmem:[%s15936_s1 + $0xfcc] sm:$0xf0]  ;;  %v8327_v35 = vor.u32 %v10334_v26, %v8326_v23  ;;  %5126 = vmatpush.bf16.msrb.mxu3 %v8599_v24 }
  0x6a   :  { %v8582_v31 = vld [vmem:[%s15936_s1 + $0xfc0] sm:$0xf]  ;;  %v8455_v36 = vor.u32 %v10366_v28, %v8454_v27  ;;  %v10298_v39 = vld [vmem:[%s15936_s1 + $0xcac] sm:$0xf0]  ;;  %5082 = vmatmul.bf16.vlgmr.msra.gmra.mxu3 %v11430_v33  ;;  %5088 = vmatpush.bf16.msrb.mxu0 %v8199_v34 }
  0x6b   :  { %v8182_v37 = vld [vmem:[%s15936_s1 + $0xca0] sm:$0xf]  ;;  %v8583_v43 = vor.u32 %v10398_v32, %v8582_v31  ;;  %v10330_v45 = vld [vmem:[%s15936_s1 + $0xdac] sm:$0xf0]  ;;  %5101 = vmatpush.bf16.msrb.mxu1 %v8327_v35 }
  0x6c   :  { %v8310_v40 = vld [vmem:[%s15936_s1 + $0xda0] sm:$0xf]  ;;  %v10362_v47 = vld [vmem:[%s15936_s1 + $0xeac] sm:$0xf0]  ;;  %v8183_v50 = vor.u32 %v10298_v39, %v8182_v37  ;;  %5114 = vmatpush.bf16.msrb.mxu2 %v8455_v36 }
  0x6d   :  { %v8438_v46 = vld [vmem:[%s15936_s1 + $0xea0] sm:$0xf]  ;;  %v10394_v49 = vld [vmem:[%s15936_s1 + $0xfac] sm:$0xf0]  ;;  %v8311_v51 = vor.u32 %v10330_v45, %v8310_v40  ;;  %5127 = vmatpush.bf16.msrb.mxu3 %v8583_v43 }
  0x6e   :  { %v8566_v48 = vld [vmem:[%s15936_s1 + $0xfa0] sm:$0xf]  ;;  %v8439_v52 = vor.u32 %v10362_v47, %v8438_v46  ;;  %v10294_v54 = vld [vmem:[%s15936_s1 + $0xc8c] sm:$0xf0]  ;;  %5089 = vmatpush.bf16.msrb.mxu0 %v8183_v50 }
  0x6f   :  { %v8166_v53 = vld [vmem:[%s15936_s1 + $0xc80] sm:$0xf]  ;;  %v8567_v56 = vor.u32 %v10394_v49, %v8566_v48  ;;  %v10326_v57 = vld [vmem:[%s15936_s1 + $0xd8c] sm:$0xf0]  ;;  %5102 = vmatpush.bf16.msrb.mxu1 %v8311_v51 }
  0x70   :  { %v8294_v55 = vld [vmem:[%s15936_s1 + $0xd80] sm:$0xf]  ;;  %v10358_v59 = vld [vmem:[%s15936_s1 + $0xe8c] sm:$0xf0]  ;;  %v8167_v62 = vor.u32 %v10294_v54, %v8166_v53  ;;  %5115 = vmatpush.bf16.msrb.mxu2 %v8439_v52 }
  0x71   :  { %v8422_v58 = vld [vmem:[%s15936_s1 + $0xe80] sm:$0xf]  ;;  %v10390_v61 = vld [vmem:[%s15936_s1 + $0xf8c] sm:$0xf0]  ;;  %v8295_v63 = vor.u32 %v10326_v57, %v8294_v55  ;;  %5128 = vmatpush.bf16.msrb.mxu3 %v8567_v56 }
  0x72   :  { %v8550_v60 = vld [vmem:[%s15936_s1 + $0xf80] sm:$0xf]  ;;  %v8423_v0 = vor.u32 %v10358_v59, %v8422_v58  ;;  %v10290_v2 = vld [vmem:[%s15936_s1 + $0xc6c] sm:$0xf0]  ;;  %5090 = vmatpush.bf16.msrb.mxu0 %v8167_v62  ;;  %v27_v59 = vld [vmem:[%s15937_s0 + $0x38] sm:$0xff] }
  0x73   :  { %v8150_v1 = vld [vmem:[%s15936_s1 + $0xc60] sm:$0xf]  ;;  %v8551_v4 = vor.u32 %v10390_v61, %v8550_v60  ;;  %v10322_v5 = vld [vmem:[%s15936_s1 + $0xd6c] sm:$0xf0]  ;;  %5103 = vmatpush.bf16.msrb.mxu1 %v8295_v63 }
  0x74   :  { %v8278_v3 = vld [vmem:[%s15936_s1 + $0xd60] sm:$0xf]  ;;  %v10354_v7 = vld [vmem:[%s15936_s1 + $0xe6c] sm:$0xf0]  ;;  %v8151_v10 = vor.u32 %v10290_v2, %v8150_v1  ;;  %5116 = vmatpush.bf16.msrb.mxu2 %v8423_v0 }
  0x75   :  { %v8406_v6 = vld [vmem:[%s15936_s1 + $0xe60] sm:$0xf]  ;;  %v10386_v9 = vld [vmem:[%s15936_s1 + $0xf6c] sm:$0xf0]  ;;  %v8279_v11 = vor.u32 %v10322_v5, %v8278_v3  ;;  %5129 = vmatpush.bf16.msrb.mxu3 %v8551_v4 }
  0x76   :  { %v8534_v8 = vld [vmem:[%s15936_s1 + $0xf60] sm:$0xf]  ;;  %v8407_v12 = vor.u32 %v10354_v7, %v8406_v6  ;;  %v10286_v14 = vld [vmem:[%s15936_s1 + $0xc4c] sm:$0xf0]  ;;  %5091 = vmatpush.bf16.msrb.mxu0 %v8151_v10 }
  0x77   :  { %v8134_v13 = vld [vmem:[%s15936_s1 + $0xc40] sm:$0xf]  ;;  %v8535_v16 = vor.u32 %v10386_v9, %v8534_v8  ;;  %v10318_v17 = vld [vmem:[%s15936_s1 + $0xd4c] sm:$0xf0]  ;;  %5104 = vmatpush.bf16.msrb.mxu1 %v8279_v11  ;;  %v870_v8 = vunpack.c.l.b16 %v27_v59 }
  0x78   :  { %v8262_v15 = vld [vmem:[%s15936_s1 + $0xd40] sm:$0xf]  ;;  %v10350_v23 = vld [vmem:[%s15936_s1 + $0xe4c] sm:$0xf0]  ;;  %v8135_v27 = vor.u32 %v10286_v14, %v8134_v13  ;;  %5117 = vmatpush.bf16.msrb.mxu2 %v8407_v12  ;;  %v871_v12 = vunpack.c.h.b16 %v27_v59 }
  0x79   :  { %v8390_v21 = vld [vmem:[%s15936_s1 + $0xe40] sm:$0xf]  ;;  %v10382_v26 = vld [vmem:[%s15936_s1 + $0xf4c] sm:$0xf0]  ;;  %v8263_v28 = vor.u32 %v10318_v17, %v8262_v15  ;;  %5130 = vmatpush.bf16.msrb.mxu3 %v8535_v16 }
  0x7a   :  { %v8518_v24 = vld [vmem:[%s15936_s1 + $0xf40] sm:$0xf]  ;;  %v8391_v31 = vor.u32 %v10350_v23, %v8390_v21  ;;  %v10282_v34 = vld [vmem:[%s15936_s1 + $0xc2c] sm:$0xf0]  ;;  %5092 = vmatpush.bf16.msrb.mxu0 %v8135_v27 }
  0x7b   :  { %v8118_v32 = vld [vmem:[%s15936_s1 + $0xc20] sm:$0xf]  ;;  %v8519_v36 = vor.u32 %v10382_v26, %v8518_v24  ;;  %v10314_v37 = vld [vmem:[%s15936_s1 + $0xd2c] sm:$0xf0]  ;;  %5105 = vmatpush.bf16.msrb.mxu1 %v8263_v28  ;;  %v11630_v28 = vpack.c.b16 %v870_v8, %v870_v8 }
  0x7c   :  { %v8246_v35 = vld [vmem:[%s15936_s1 + $0xd20] sm:$0xf]  ;;  %v10346_v40 = vld [vmem:[%s15936_s1 + $0xe2c] sm:$0xf0]  ;;  %v8119_v47 = vor.u32 %v10282_v34, %v8118_v32  ;;  %5118 = vmatpush.bf16.msrb.mxu2 %v8391_v31 }
  0x7d   :  { %v8374_v39 = vld [vmem:[%s15936_s1 + $0xe20] sm:$0xf]  ;;  %v10378_v45 = vld [vmem:[%s15936_s1 + $0xf2c] sm:$0xf0]  ;;  %v8247_v51 = vor.u32 %v10314_v37, %v8246_v35  ;;  %5131 = vmatpush.bf16.msrb.mxu3 %v8519_v36  ;;  %v11640_v35 = vpack.c.b16 %v871_v12, %v871_v12 }
  0x7e   :  { %v8502_v43 = vld [vmem:[%s15936_s1 + $0xf20] sm:$0xf]  ;;  %v10278_v48 = vld [vmem:[%s15936_s1 + $0xc0c] sm:$0xf0]  ;;  %v8375_v52 = vor.u32 %v10346_v40, %v8374_v39  ;;  %5093 = vmatpush.bf16.msrb.mxu0 %v8119_v47 }
  0x7f   :  { %v8102_v46 = vld [vmem:[%s15936_s1 + $0xc00] sm:$0xf]  ;;  %v10310_v50 = vld [vmem:[%s15936_s1 + $0xd0c] sm:$0xf0]  ;;  %v8503_v56 = vor.u32 %v10378_v45, %v8502_v43  ;;  %5106 = vmatpush.bf16.msrb.mxu1 %v8247_v51 }
  0x80   :  { %v8230_v49 = vld [vmem:[%s15936_s1 + $0xd00] sm:$0xf]  ;;  %v10342_v54 = vld [vmem:[%s15936_s1 + $0xe0c] sm:$0xf0]  ;;  %v8103_v63 = vor.u32 %v10278_v48, %v8102_v46  ;;  %5119 = vmatpush.bf16.msrb.mxu2 %v8375_v52 }
  0x81   :  { %v8358_v53 = vld [vmem:[%s15936_s1 + $0xe00] sm:$0xf]  ;;  %v26_v55 = vld [vmem:[%s15937_s0 + $0x30] sm:$0xff]  ;;  %v8231_v4 = vor.u32 %v10310_v50, %v8230_v49  ;;  %5132 = vmatpush.bf16.msrb.mxu3 %v8503_v56 }
  0x82   :  { %v8486_v57 = vld [vmem:[%s15936_s1 + $0xf00] sm:$0xf]  ;;  %v10374_v58 = vld [vmem:[%s15936_s1 + $0xf0c] sm:$0xf0]  ;;  %v868_v3 = vunpack.c.l.b16 %v26_v55  ;;  %v8359_v5 = vor.u32 %v10342_v54, %v8358_v53  ;;  %v869_v9 = vunpack.c.h.b16 %v26_v55  ;;  %5094 = vmatpush.bf16.msrb.mxu0 %v8103_v63 }
  0x83   :  { %v8726_v60 = vld [vmem:[%s15936_s1 + $0x10e0] sm:$0xf]  ;;  %v10434_v61 = vld [vmem:[%s15936_s1 + $0x10ec] sm:$0xf0]  ;;  %v8487_v10 = vor.u32 %v10374_v58, %v8486_v57  ;;  %5107 = vmatpush.bf16.msrb.mxu1 %v8231_v4 }
  0x84   :  { %v8854_v62 = vld [vmem:[%s15936_s1 + $0x11e0] sm:$0xf]  ;;  %v10466_v0 = vld [vmem:[%s15936_s1 + $0x11ec] sm:$0xf0]  ;;  %v8727_v11 = vor.u32 %v10434_v61, %v8726_v60  ;;  %v11619_v23 = vpack.c.b16 %v868_v3, %v868_v3  ;;  %5120 = vmatpush.bf16.msrb.mxu2 %v8359_v5  ;;  %v11632_v31 = vpack.c.b16 %v869_v9, %v869_v9 }
  0x85   :  { %v8982_v1 = vld [vmem:[%s15936_s1 + $0x12e0] sm:$0xf]  ;;  %v10498_v2 = vld [vmem:[%s15936_s1 + $0x12ec] sm:$0xf0]  ;;  %v8855_v13 = vor.u32 %v10466_v0, %v8854_v62  ;;  %5133 = vmatpush.bf16.msrb.mxu3 %v8487_v10 }
  0x86   :  { %v9110_v6 = vld [vmem:[%s15936_s1 + $0x13e0] sm:$0xf]  ;;  %v10530_v7 = vld [vmem:[%s15936_s1 + $0x13ec] sm:$0xf0]  ;;  %v8983_v14 = vor.u32 %v10498_v2, %v8982_v1  ;;  %5139 = vmatpush.bf16.msra.mxu0 %v8727_v11  ;;  %5108 = vmatmul.bf16.vlgmr.msrb.gmra.mxu1 %v11632_v31 }
  0x87   :  { %v8710_v15 = vld [vmem:[%s15936_s1 + $0x10c0] sm:$0xf]  ;;  %v10430_v16 = vld [vmem:[%s15936_s1 + $0x10cc] sm:$0xf0]  ;;  %v9111_v21 = vor.u32 %v10530_v7, %v9110_v6  ;;  %5152 = vmatpush.bf16.msra.mxu1 %v8855_v13  ;;  %5095 = vmatmul.bf16.vlgmr.msrb.gmra.mxu0 %v11619_v23 }
  0x88   :  { %v8838_v17 = vld [vmem:[%s15936_s1 + $0x11c0] sm:$0xf]  ;;  %v10462_v24 = vld [vmem:[%s15936_s1 + $0x11cc] sm:$0xf0]  ;;  %v8711_v36 = vor.u32 %v10430_v16, %v8710_v15  ;;  %5165 = vmatpush.bf16.msra.mxu2 %v8983_v14  ;;  %5134 = vmatmul.bf16.vlgmr.msrb.gmra.mxu3 %v11640_v35 }
  0x89   :  { %v8966_v26 = vld [vmem:[%s15936_s1 + $0x12c0] sm:$0xf]  ;;  %v10494_v27 = vld [vmem:[%s15936_s1 + $0x12cc] sm:$0xf0]  ;;  %v8839_v37 = vor.u32 %v10462_v24, %v8838_v17  ;;  %5178 = vmatpush.bf16.msra.mxu3 %v9111_v21  ;;  %5121 = vmatmul.bf16.vlgmr.msrb.gmra.mxu2 %v11630_v28 }
  0x8a   :  { %v9094_v32 = vld [vmem:[%s15936_s1 + $0x13c0] sm:$0xf]  ;;  %v10526_v34 = vld [vmem:[%s15936_s1 + $0x13cc] sm:$0xf0]  ;;  %v8967_v39 = vor.u32 %v10494_v27, %v8966_v26  ;;  %5140 = vmatpush.bf16.msra.mxu0 %v8711_v36 }
  0x8b   :  { %v8694_v40 = vld [vmem:[%s15936_s1 + $0x10a0] sm:$0xf]  ;;  %v10426_v43 = vld [vmem:[%s15936_s1 + $0x10ac] sm:$0xf0]  ;;  %v9095_v46 = vor.u32 %v10526_v34, %v9094_v32  ;;  %5153 = vmatpush.bf16.msra.mxu1 %v8839_v37 }
  0x8c   :  { %v8822_v45 = vld [vmem:[%s15936_s1 + $0x11a0] sm:$0xf]  ;;  %v10458_v47 = vld [vmem:[%s15936_s1 + $0x11ac] sm:$0xf0]  ;;  %v8695_v52 = vor.u32 %v10426_v43, %v8694_v40  ;;  %5166 = vmatpush.bf16.msra.mxu2 %v8967_v39 }
  0x8d   :  { %v8950_v48 = vld [vmem:[%s15936_s1 + $0x12a0] sm:$0xf]  ;;  %v10490_v49 = vld [vmem:[%s15936_s1 + $0x12ac] sm:$0xf0]  ;;  %v8823_v53 = vor.u32 %v10458_v47, %v8822_v45  ;;  %5179 = vmatpush.bf16.msra.mxu3 %v9095_v46 }
  0x8e   :  { %v9078_v50 = vld [vmem:[%s15936_s1 + $0x13a0] sm:$0xf]  ;;  %v10522_v51 = vld [vmem:[%s15936_s1 + $0x13ac] sm:$0xf0]  ;;  %v8951_v54 = vor.u32 %v10490_v49, %v8950_v48  ;;  %5141 = vmatpush.bf16.msra.mxu0 %v8695_v52 }
  0x8f   :  { %v8678_v55 = vld [vmem:[%s15936_s1 + $0x1080] sm:$0xf]  ;;  %v10422_v56 = vld [vmem:[%s15936_s1 + $0x108c] sm:$0xf0]  ;;  %v9079_v58 = vor.u32 %v10522_v51, %v9078_v50  ;;  %5154 = vmatpush.bf16.msra.mxu1 %v8823_v53 }
  0x90   :  { %v8806_v57 = vld [vmem:[%s15936_s1 + $0x1180] sm:$0xf]  ;;  %v10454_v59 = vld [vmem:[%s15936_s1 + $0x118c] sm:$0xf0]  ;;  %v8679_v0 = vor.u32 %v10422_v56, %v8678_v55  ;;  %5167 = vmatpush.bf16.msra.mxu2 %v8951_v54 }
  0x91   :  { %v8934_v60 = vld [vmem:[%s15936_s1 + $0x1280] sm:$0xf]  ;;  %v10486_v61 = vld [vmem:[%s15936_s1 + $0x128c] sm:$0xf0]  ;;  %v8807_v1 = vor.u32 %v10454_v59, %v8806_v57  ;;  %5180 = vmatpush.bf16.msra.mxu3 %v9079_v58 }
  0x92   :  { %v9062_v62 = vld [vmem:[%s15936_s1 + $0x1380] sm:$0xf]  ;;  %v10518_v63 = vld [vmem:[%s15936_s1 + $0x138c] sm:$0xf0]  ;;  %v8935_v2 = vor.u32 %v10486_v61, %v8934_v60  ;;  %5142 = vmatpush.bf16.msra.mxu0 %v8679_v0 }
  0x93   :  { %v8662_v3 = vld [vmem:[%s15936_s1 + $0x1060] sm:$0xf]  ;;  %v10418_v4 = vld [vmem:[%s15936_s1 + $0x106c] sm:$0xf0]  ;;  %v9063_v6 = vor.u32 %v10518_v63, %v9062_v62  ;;  %5155 = vmatpush.bf16.msra.mxu1 %v8807_v1  ;;  %v29_v1 = vld [vmem:[%s15937_s0 + $0x48] sm:$0xff] }
  0x94   :  { %v8790_v5 = vld [vmem:[%s15936_s1 + $0x1160] sm:$0xf]  ;;  %v10450_v7 = vld [vmem:[%s15936_s1 + $0x116c] sm:$0xf0]  ;;  %v8663_v12 = vor.u32 %v10418_v4, %v8662_v3  ;;  %5168 = vmatpush.bf16.msra.mxu2 %v8935_v2 }
  0x95   :  { %v8918_v8 = vld [vmem:[%s15936_s1 + $0x1260] sm:$0xf]  ;;  %v10482_v9 = vld [vmem:[%s15936_s1 + $0x126c] sm:$0xf0]  ;;  %v8791_v13 = vor.u32 %v10450_v7, %v8790_v5  ;;  %5181 = vmatpush.bf16.msra.mxu3 %v9063_v6 }
  0x96   :  { %v9046_v10 = vld [vmem:[%s15936_s1 + $0x1360] sm:$0xf]  ;;  %v10514_v11 = vld [vmem:[%s15936_s1 + $0x136c] sm:$0xf0]  ;;  %v8919_v14 = vor.u32 %v10482_v9, %v8918_v8  ;;  %5143 = vmatpush.bf16.msra.mxu0 %v8663_v12 }
  0x97   :  { %v8646_v15 = vld [vmem:[%s15936_s1 + $0x1040] sm:$0xf]  ;;  %v10414_v16 = vld [vmem:[%s15936_s1 + $0x104c] sm:$0xf0]  ;;  %v9047_v21 = vor.u32 %v10514_v11, %v9046_v10  ;;  %5156 = vmatpush.bf16.msra.mxu1 %v8791_v13 }
  0x98   :  { %v8774_v17 = vld [vmem:[%s15936_s1 + $0x1140] sm:$0xf]  ;;  %v10446_v24 = vld [vmem:[%s15936_s1 + $0x114c] sm:$0xf0]  ;;  %v8647_v36 = vor.u32 %v10414_v16, %v8646_v15  ;;  %5169 = vmatpush.bf16.msra.mxu2 %v8919_v14  ;;  %v874_v14 = vunpack.c.l.b16 %v29_v1 }
  0x99   :  { %v8902_v26 = vld [vmem:[%s15936_s1 + $0x1240] sm:$0xf]  ;;  %v10478_v27 = vld [vmem:[%s15936_s1 + $0x124c] sm:$0xf0]  ;;  %v8775_v37 = vor.u32 %v10446_v24, %v8774_v17  ;;  %5182 = vmatpush.bf16.msra.mxu3 %v9047_v21  ;;  %v875_v21 = vunpack.c.h.b16 %v29_v1 }
  0x9a   :  { %v9030_v32 = vld [vmem:[%s15936_s1 + $0x1340] sm:$0xf]  ;;  %v10510_v34 = vld [vmem:[%s15936_s1 + $0x134c] sm:$0xf0]  ;;  %v8903_v39 = vor.u32 %v10478_v27, %v8902_v26  ;;  %5144 = vmatpush.bf16.msra.mxu0 %v8647_v36 }
  0x9b   :  { %v8630_v40 = vld [vmem:[%s15936_s1 + $0x1020] sm:$0xf]  ;;  %v10410_v43 = vld [vmem:[%s15936_s1 + $0x102c] sm:$0xf0]  ;;  %v9031_v46 = vor.u32 %v10510_v34, %v9030_v32  ;;  %5157 = vmatpush.bf16.msra.mxu1 %v8775_v37 }
  0x9c   :  { %v8758_v45 = vld [vmem:[%s15936_s1 + $0x1120] sm:$0xf]  ;;  %v10442_v47 = vld [vmem:[%s15936_s1 + $0x112c] sm:$0xf0]  ;;  %v8631_v53 = vor.u32 %v10410_v43, %v8630_v40  ;;  %5170 = vmatpush.bf16.msra.mxu2 %v8903_v39 }
  0x9d   :  { %v8886_v48 = vld [vmem:[%s15936_s1 + $0x1220] sm:$0xf]  ;;  %v10474_v49 = vld [vmem:[%s15936_s1 + $0x122c] sm:$0xf0]  ;;  %v8759_v57 = vor.u32 %v10442_v47, %v8758_v45  ;;  %5183 = vmatpush.bf16.msra.mxu3 %v9031_v46  ;;  %v11840_v45 = vpack.c.b16 %v874_v14, %v874_v14 }
  0x9e   :  { %v9014_v50 = vld [vmem:[%s15936_s1 + $0x1320] sm:$0xf]  ;;  %v10506_v51 = vld [vmem:[%s15936_s1 + $0x132c] sm:$0xf0]  ;;  %v8887_v58 = vor.u32 %v10474_v49, %v8886_v48  ;;  %5145 = vmatpush.bf16.msra.mxu0 %v8631_v53  ;;  %v11850_v49 = vpack.c.b16 %v875_v21, %v875_v21 }
  0x9f   :  { %v8614_v52 = vld [vmem:[%s15936_s1 + $0x1000] sm:$0xf]  ;;  %v10406_v54 = vld [vmem:[%s15936_s1 + $0x100c] sm:$0xf0]  ;;  %v9015_v62 = vor.u32 %v10506_v51, %v9014_v50  ;;  %5158 = vmatpush.bf16.msra.mxu1 %v8759_v57 }
  0xa0   :  { %v8742_v55 = vld [vmem:[%s15936_s1 + $0x1100] sm:$0xf]  ;;  %v10438_v56 = vld [vmem:[%s15936_s1 + $0x110c] sm:$0xf0]  ;;  %v8615_v5 = vor.u32 %v10406_v54, %v8614_v52  ;;  %5171 = vmatpush.bf16.msra.mxu2 %v8887_v58 }
  0xa1   :  { %v8870_v59 = vld [vmem:[%s15936_s1 + $0x1200] sm:$0xf]  ;;  %v10470_v60 = vld [vmem:[%s15936_s1 + $0x120c] sm:$0xf0]  ;;  %v8743_v10 = vor.u32 %v10438_v56, %v8742_v55  ;;  %5184 = vmatpush.bf16.msra.mxu3 %v9015_v62 }
  0xa2   :  { %v28_v61 = vld [vmem:[%s15937_s0 + $0x40] sm:$0xff]  ;;  %v10502_v0 = vld [vmem:[%s15936_s1 + $0x130c] sm:$0xf0]  ;;  %v8871_v11 = vor.u32 %v10470_v60, %v8870_v59  ;;  %5146 = vmatpush.bf16.msra.mxu0 %v8615_v5 }
  0xa3   :  { %v8998_v63 = vld [vmem:[%s15936_s1 + $0x1300] sm:$0xf]  ;;  %v10562_v3 = vld [vmem:[%s15936_s1 + $0x14ec] sm:$0xf0]  ;;  %v872_v9 = vunpack.c.l.b16 %v28_v61  ;;  %v873_v15 = vunpack.c.h.b16 %v28_v61  ;;  %5159 = vmatpush.bf16.msra.mxu1 %v8743_v10 }
  0xa4   :  { %v9238_v2 = vld [vmem:[%s15936_s1 + $0x14e0] sm:$0xf]  ;;  %v10594_v6 = vld [vmem:[%s15936_s1 + $0x15ec] sm:$0xf0]  ;;  %v8999_v16 = vor.u32 %v10502_v0, %v8998_v63  ;;  %5172 = vmatpush.bf16.msra.mxu2 %v8871_v11 }
  0xa5   :  { %v9366_v4 = vld [vmem:[%s15936_s1 + $0x15e0] sm:$0xf]  ;;  %v10626_v8 = vld [vmem:[%s15936_s1 + $0x16ec] sm:$0xf0]  ;;  %v9239_v17 = vor.u32 %v10562_v3, %v9238_v2  ;;  %v11829_v37 = vpack.c.b16 %v872_v9, %v872_v9  ;;  %v11842_v46 = vpack.c.b16 %v873_v15, %v873_v15 }
  0xa6   :  { %v9494_v7 = vld [vmem:[%s15936_s1 + $0x16e0] sm:$0xf]  ;;  %v10658_v13 = vld [vmem:[%s15936_s1 + $0x17ec] sm:$0xf0]  ;;  %v9367_v24 = vor.u32 %v10594_v6, %v9366_v4  ;;  %5185 = vmatpush.bf16.msra.mxu3 %v8999_v16 }
  0xa7   :  { %v9622_v12 = vld [vmem:[%s15936_s1 + $0x17e0] sm:$0xf]  ;;  %v9495_v26 = vor.u32 %v10626_v8, %v9494_v7  ;;  %v10558_v32 = vld [vmem:[%s15936_s1 + $0x14cc] sm:$0xf0]  ;;  %5191 = vmatpush.bf16.msrb.mxu0 %v9239_v17  ;;  %5173 = vmatmul.bf16.vlgmr.msra.gmra.mxu2 %v11840_v45 }
  0xa8   :  { %v9222_v27 = vld [vmem:[%s15936_s1 + $0x14c0] sm:$0xf]  ;;  %v9623_v36 = vor.u32 %v10658_v13, %v9622_v12  ;;  %v10590_v39 = vld [vmem:[%s15936_s1 + $0x15cc] sm:$0xf0]  ;;  %5204 = vmatpush.bf16.msrb.mxu1 %v9367_v24  ;;  %5147 = vmatmul.bf16.vlgmr.msra.gmra.mxu0 %v11829_v37 }
  0xa9   :  { %v9350_v34 = vld [vmem:[%s15936_s1 + $0x15c0] sm:$0xf]  ;;  %v10622_v43 = vld [vmem:[%s15936_s1 + $0x16cc] sm:$0xf0]  ;;  %v9223_v50 = vor.u32 %v10558_v32, %v9222_v27  ;;  %5217 = vmatpush.bf16.msrb.mxu2 %v9495_v26  ;;  %5160 = vmatmul.bf16.vlgmr.msra.gmra.mxu1 %v11842_v46 }
  0xaa   :  { %v9478_v40 = vld [vmem:[%s15936_s1 + $0x16c0] sm:$0xf]  ;;  %v10654_v48 = vld [vmem:[%s15936_s1 + $0x17cc] sm:$0xf0]  ;;  %v9351_v51 = vor.u32 %v10590_v39, %v9350_v34  ;;  %5230 = vmatpush.bf16.msrb.mxu3 %v9623_v36 }
  0xab   :  { %v9606_v47 = vld [vmem:[%s15936_s1 + $0x17c0] sm:$0xf]  ;;  %v9479_v52 = vor.u32 %v10622_v43, %v9478_v40  ;;  %v10554_v54 = vld [vmem:[%s15936_s1 + $0x14ac] sm:$0xf0]  ;;  %5186 = vmatmul.bf16.vlgmr.msra.gmra.mxu3 %v11850_v49  ;;  %5192 = vmatpush.bf16.msrb.mxu0 %v9223_v50 }
  0xac   :  { %v9206_v53 = vld [vmem:[%s15936_s1 + $0x14a0] sm:$0xf]  ;;  %v9607_v56 = vor.u32 %v10654_v48, %v9606_v47  ;;  %v10586_v57 = vld [vmem:[%s15936_s1 + $0x15ac] sm:$0xf0]  ;;  %5205 = vmatpush.bf16.msrb.mxu1 %v9351_v51 }
  0xad   :  { %v9334_v55 = vld [vmem:[%s15936_s1 + $0x15a0] sm:$0xf]  ;;  %v10618_v59 = vld [vmem:[%s15936_s1 + $0x16ac] sm:$0xf0]  ;;  %v9207_v62 = vor.u32 %v10554_v54, %v9206_v53  ;;  %5218 = vmatpush.bf16.msrb.mxu2 %v9479_v52 }
  0xae   :  { %v9462_v58 = vld [vmem:[%s15936_s1 + $0x16a0] sm:$0xf]  ;;  %v10650_v61 = vld [vmem:[%s15936_s1 + $0x17ac] sm:$0xf0]  ;;  %v9335_v63 = vor.u32 %v10586_v57, %v9334_v55  ;;  %5231 = vmatpush.bf16.msrb.mxu3 %v9607_v56 }
  0xaf   :  { %v9590_v60 = vld [vmem:[%s15936_s1 + $0x17a0] sm:$0xf]  ;;  %v9463_v0 = vor.u32 %v10618_v59, %v9462_v58  ;;  %v10550_v2 = vld [vmem:[%s15936_s1 + $0x148c] sm:$0xf0]  ;;  %5193 = vmatpush.bf16.msrb.mxu0 %v9207_v62  ;;  %v4940_v57 = vpop.f32.mrf.mxu0 }
  0xb0   :  { %v9190_v1 = vld [vmem:[%s15936_s1 + $0x1480] sm:$0xf]  ;;  %v9591_v4 = vor.u32 %v10650_v61, %v9590_v60  ;;  %v10582_v5 = vld [vmem:[%s15936_s1 + $0x158c] sm:$0xf0]  ;;  %5206 = vmatpush.bf16.msrb.mxu1 %v9335_v63 }
  0xb1   :  { %v9318_v3 = vld [vmem:[%s15936_s1 + $0x1580] sm:$0xf]  ;;  %v10614_v7 = vld [vmem:[%s15936_s1 + $0x168c] sm:$0xf0]  ;;  %v9191_v10 = vor.u32 %v10550_v2, %v9190_v1  ;;  %5219 = vmatpush.bf16.msrb.mxu2 %v9463_v0  ;;  %v4953_v0 = vpop.f32.mrf.mxu1 }
  0xb2   :  { %v9446_v6 = vld [vmem:[%s15936_s1 + $0x1680] sm:$0xf]  ;;  %v10646_v9 = vld [vmem:[%s15936_s1 + $0x178c] sm:$0xf0]  ;;  %v9319_v12 = vor.u32 %v10582_v5, %v9318_v3  ;;  %5232 = vmatpush.bf16.msrb.mxu3 %v9591_v4 }
  0xb3   :  { %v9574_v8 = vld [vmem:[%s15936_s1 + $0x1780] sm:$0xf]  ;;  %v9447_v13 = vor.u32 %v10614_v7, %v9446_v6  ;;  %v10546_v14 = vld [vmem:[%s15936_s1 + $0x146c] sm:$0xf0]  ;;  %5194 = vmatpush.bf16.msrb.mxu0 %v9191_v10 }
  0xb4   :  { %v9174_v11 = vld [vmem:[%s15936_s1 + $0x1460] sm:$0xf]  ;;  %v10578_v16 = vld [vmem:[%s15936_s1 + $0x156c] sm:$0xf0]  ;;  %v9575_v17 = vor.u32 %v10646_v9, %v9574_v8  ;;  %5207 = vmatpush.bf16.msrb.mxu1 %v9319_v12 }
  0xb5   :  { %v9302_v15 = vld [vmem:[%s15936_s1 + $0x1560] sm:$0xf]  ;;  %v10610_v24 = vld [vmem:[%s15936_s1 + $0x166c] sm:$0xf0]  ;;  %v9175_v34 = vor.u32 %v10546_v14, %v9174_v11  ;;  %5220 = vmatpush.bf16.msrb.mxu2 %v9447_v13 }
  0xb6   :  { %v9430_v21 = vld [vmem:[%s15936_s1 + $0x1660] sm:$0xf]  ;;  %v10642_v32 = vld [vmem:[%s15936_s1 + $0x176c] sm:$0xf0]  ;;  %v9303_v39 = vor.u32 %v10578_v16, %v9302_v15  ;;  %5233 = vmatpush.bf16.msrb.mxu3 %v9575_v17 }
  0xb7   :  { %v833_v26 = vld [vmem:[%s15938_s2] sm:$0xf]  ;;  %v9431_v40 = vor.u32 %v10610_v24, %v9430_v21  ;;  %v10542_v43 = vld [vmem:[%s15936_s1 + $0x144c] sm:$0xf0]  ;;  %5195 = vmatpush.bf16.msrb.mxu0 %v9175_v34  ;;  %v4966_v21 = vpop.f32.mrf.mxu2 }
  0xb8   :  { %v9558_v27 = vld [vmem:[%s15936_s1 + $0x1760] sm:$0xf]  ;;  %v835_v48 = vperm.slane %v833_v26, 0  ;;  %v10574_v51 = vld [vmem:[%s15936_s1 + $0x154c] sm:$0xf0]  ;;  %5208 = vmatpush.bf16.msrb.mxu1 %v9303_v39 }
  0xb9   :  { %v9158_v36 = vld [vmem:[%s15936_s1 + $0x1440] sm:$0xf]  ;;  %v9559_v50 = vor.u32 %v10642_v32, %v9558_v27  ;;  %v10606_v53 = vld [vmem:[%s15936_s1 + $0x164c] sm:$0xf0]  ;;  %5221 = vmatpush.bf16.msrb.mxu2 %v9431_v40  ;;  %v31_v32 = vld [vmem:[%s15937_s0 + $0x58] sm:$0xff] }
  0xba   :  { %v9286_v47 = vld [vmem:[%s15936_s1 + $0x1540] sm:$0xf]  ;;  %v10638_v55 = vld [vmem:[%s15936_s1 + $0x174c] sm:$0xf0]  ;;  %v9159_v56 = vor.u32 %v10542_v43, %v9158_v36  ;;  %v4941_v63 = vadd.f32 %v4940_v57, %v835_v48  ;;  %v4979_v36 = vpop.f32.mrf.mxu3  ;;  %v9920_v43 = vld [vmem:[%s15936_s1 + $0xe4] sm:$0xf] }
  0xbb   :  { %v9414_v52 = vld [vmem:[%s15936_s1 + $0x1640] sm:$0xf]  ;;  %v9287_v58 = vor.u32 %v10574_v51, %v9286_v47  ;;  %v10538_v61 = vld [vmem:[%s15936_s1 + $0x142c] sm:$0xf0]  ;;  %5234 = vmatpush.bf16.msrb.mxu3 %v9559_v50  ;;  %v6680_v48 = vld [vmem:[%s15936_s1 + $0xf0] sm:$0xf0] }
  0xbc   :  { %v9542_v54 = vld [vmem:[%s15936_s1 + $0x1740] sm:$0xf]  ;;  %v9415_v59 = vor.u32 %v10606_v53, %v9414_v52  ;;  %v10570_v2 = vld [vmem:[%s15936_s1 + $0x152c] sm:$0xf0]  ;;  %v4954_v8 = vadd.f32 %v4953_v0, %v4941_v63  ;;  %5196 = vmatpush.bf16.msrb.mxu0 %v9159_v56  ;;  %v9952_v50 = vld [vmem:[%s15936_s1 + $0x1e4] sm:$0xf]  ;;  %v879_v0 = vunpack.c.h.b16 %v31_v32 }
  0xbd   :  { %v9142_v60 = vld [vmem:[%s15936_s1 + $0x1420] sm:$0xf]  ;;  %v9543_v1 = vor.u32 %v10638_v55, %v9542_v54  ;;  %v10602_v4 = vld [vmem:[%s15936_s1 + $0x162c] sm:$0xf0]  ;;  %5209 = vmatpush.bf16.msrb.mxu1 %v9287_v58  ;;  %v6808_v51 = vld [vmem:[%s15936_s1 + $0x1f0] sm:$0xf0]  ;;  %v4942_v54 = vpop.f32.mrf.mxu0 }
  0xbe   :  { %v9270_v62 = vld [vmem:[%s15936_s1 + $0x1520] sm:$0xf]  ;;  %v10634_v6 = vld [vmem:[%s15936_s1 + $0x172c] sm:$0xf0]  ;;  %v9143_v9 = vor.u32 %v10538_v61, %v9142_v60  ;;  %5222 = vmatpush.bf16.msrb.mxu2 %v9415_v59  ;;  %v4967_v34 = vadd.f32 %v4966_v21, %v4954_v8  ;;  %v9984_v57 = vld [vmem:[%s15936_s1 + $0x2e4] sm:$0xf]  ;;  %v878_v59 = vunpack.c.l.b16 %v31_v32  ;;  %v4955_v61 = vpop.f32.mrf.mxu1 }
  0xbf   :  { %v9398_v3 = vld [vmem:[%s15936_s1 + $0x1620] sm:$0xf]  ;;  %v10534_v10 = vld [vmem:[%s15936_s1 + $0x140c] sm:$0xf0]  ;;  %v9271_v13 = vor.u32 %v10570_v2, %v9270_v62  ;;  %5235 = vmatpush.bf16.msrb.mxu3 %v9543_v1  ;;  %v6936_v58 = vld [vmem:[%s15936_s1 + $0x2f0] sm:$0xf0]  ;;  %v6683_v1 = vor.u32 %v9920_v43, %v6680_v48  ;;  %v6811_v2 = vor.u32 %v9952_v50, %v6808_v51 }
  0xc0   :  { %v9526_v5 = vld [vmem:[%s15936_s1 + $0x1720] sm:$0xf]  ;;  %v10566_v12 = vld [vmem:[%s15936_s1 + $0x150c] sm:$0xf0]  ;;  %v9399_v14 = vor.u32 %v10602_v4, %v9398_v3  ;;  %5197 = vmatpush.bf16.msrb.mxu0 %v9143_v9  ;;  %v12027_v53 = vadd.f32 %v4979_v36, %v4967_v34  ;;  %v6664_v8 = vld [vmem:[%s15936_s1 + $0xd0] sm:$0xf0] }
  0xc1   :  { %v9126_v7 = vld [vmem:[%s15936_s1 + $0x1400] sm:$0xf]  ;;  %v10598_v16 = vld [vmem:[%s15936_s1 + $0x160c] sm:$0xf0]  ;;  %v9527_v24 = vor.u32 %v10634_v6, %v9526_v5  ;;  %5210 = vmatpush.bf16.msrb.mxu1 %v9271_v13  ;;  %v9916_v5 = vld [vmem:[%s15936_s1 + $0xc4] sm:$0xf]  ;;  %v6939_v6 = vor.u32 %v9984_v57, %v6936_v58 }
  0xc2   :  { %v9254_v11 = vld [vmem:[%s15936_s1 + $0x1500] sm:$0xf]  ;;  %v30_v17 = vld [vmem:[%s15937_s0 + $0x50] sm:$0xff]  ;;  %v9127_v47 = vor.u32 %v10534_v10, %v9126_v7  ;;  %5223 = vmatpush.bf16.msrb.mxu2 %v9399_v14  ;;  %v9948_v9 = vld [vmem:[%s15936_s1 + $0x1c4] sm:$0xf]  ;;  %v4981_v21 = vpop.f32.mrf.mxu3 }
  0xc3   :  { %v9382_v15 = vld [vmem:[%s15936_s1 + $0x1600] sm:$0xf]  ;;  %v10630_v27 = vld [vmem:[%s15936_s1 + $0x170c] sm:$0xf0]  ;;  %v876_v52 = vunpack.c.l.b16 %v30_v17  ;;  %v9255_v55 = vor.u32 %v10566_v12, %v9254_v11  ;;  %v877_v60 = vunpack.c.h.b16 %v30_v17  ;;  %5236 = vmatpush.bf16.msrb.mxu3 %v9527_v24  ;;  %v6792_v10 = vld [vmem:[%s15936_s1 + $0x1d0] sm:$0xf0]  ;;  %v12055_v11 = vpack.c.b16 %v878_v59, %v878_v59 }
  0xc4   :  { %v9510_v26 = vld [vmem:[%s15936_s1 + $0x1700] sm:$0xf]  ;;  %v10690_v40 = vld [vmem:[%s15936_s1 + $0x18ec] sm:$0xf0]  ;;  %v9383_v56 = vor.u32 %v10598_v16, %v9382_v15  ;;  %5198 = vmatpush.bf16.msrb.mxu0 %v9127_v47  ;;  %v9980_v13 = vld [vmem:[%s15936_s1 + $0x2c4] sm:$0xf]  ;;  %v4968_v15 = vpop.f32.mrf.mxu2  ;;  %v12065_v16 = vpack.c.b16 %v879_v0, %v879_v0  ;;  %v6667_v24 = vor.u32 %v9916_v5, %v6664_v8 }
  0xc5   :  { %v9750_v39 = vld [vmem:[%s15936_s1 + $0x18e0] sm:$0xf]  ;;  %v9511_v62 = vor.u32 %v10630_v27, %v9510_v26  ;;  %v10686_v4 = vld [vmem:[%s15936_s1 + $0x18cc] sm:$0xf0]  ;;  %v12044_v7 = vpack.c.b16 %v876_v52, %v876_v52  ;;  %5211 = vmatpush.bf16.msrb.mxu1 %v9255_v55  ;;  %v12057_v12 = vpack.c.b16 %v877_v60, %v877_v60  ;;  %v6920_v14 = vld [vmem:[%s15936_s1 + $0x2d0] sm:$0xf0]  ;;  %v6795_v26 = vor.u32 %v9948_v9, %v6792_v10  ;;  %v4992_v0 = vpop.f32.mrf.mxu0 }
  0xc6   :  { %v9751_v63 = vor.u32 %v10690_v40, %v9750_v39  ;;  %v9734_v3 = vld [vmem:[%s15936_s1 + $0x18c0] sm:$0xf]  ;;  %5224 = vmatpush.bf16.msrb.mxu2 %v9383_v56  ;;  %v10682_v32 = vld [vmem:[%s15936_s1 + $0x18ac] sm:$0xf0]  ;;  %v9912_v34 = vld [vmem:[%s15936_s1 + $0xa4] sm:$0xf]  ;;  %v6923_v36 = vor.u32 %v9980_v13, %v6920_v14  ;;  %v5005_v8 = vpop.f32.mrf.mxu1 }
  0xc7   :  { %5237 = vmatpush.bf16.msrb.mxu3 %v9511_v62  ;;  %v9735_v17 = vor.u32 %v10686_v4, %v9734_v3  ;;  %v9718_v27 = vld [vmem:[%s15936_s1 + $0x18a0] sm:$0xf]  ;;  %5199 = vmatmul.bf16.vlgmr.msrb.gmra.mxu0 %v12044_v7  ;;  %v6648_v39 = vld [vmem:[%s15936_s1 + $0xb0] sm:$0xf0]  ;;  %v9944_v40 = vld [vmem:[%s15936_s1 + $0x1a4] sm:$0xf] }
  0xc8   :  { %5243 = vmatpush.bf16.msra.mxu0 %v9751_v63  ;;  %v6776_v43 = vld [vmem:[%s15936_s1 + $0x1b0] sm:$0xf0]  ;;  %5212 = vmatmul.bf16.vlgmr.msrb.gmra.mxu1 %v12057_v12  ;;  %v9976_v47 = vld [vmem:[%s15936_s1 + $0x2a4] sm:$0xf]  ;;  %v9719_v50 = vor.u32 %v10682_v32, %v9718_v27  ;;  %v6651_v51 = vor.u32 %v9912_v34, %v6648_v39  ;;  %v9702_v54 = vld [vmem:[%s15936_s1 + $0x1880] sm:$0xf] }
  0xc9   :  { %5256 = vmatpush.bf16.msra.mxu1 %v6683_v1  ;;  %5225 = vmatmul.bf16.vlgmr.msrb.gmra.mxu2 %v12055_v11  ;;  %v6904_v48 = vld [vmem:[%s15936_s1 + $0x2b0] sm:$0xf0]  ;;  %v6779_v52 = vor.u32 %v9944_v40, %v6776_v43  ;;  %v10678_v55 = vld [vmem:[%s15936_s1 + $0x188c] sm:$0xf0]  ;;  %v9908_v56 = vld [vmem:[%s15936_s1 + $0x84] sm:$0xf] }
  0xca   :  { %5269 = vmatpush.bf16.msra.mxu2 %v6811_v2  ;;  %5238 = vmatmul.bf16.vlgmr.msrb.gmra.mxu3 %v12065_v16  ;;  %v6907_v57 = vor.u32 %v9976_v47, %v6904_v48  ;;  %v6632_v58 = vld [vmem:[%s15936_s1 + $0x90] sm:$0xf0]  ;;  %v9940_v59 = vld [vmem:[%s15936_s1 + $0x184] sm:$0xf]  ;;  %v9703_v63 = vor.u32 %v10678_v55, %v9702_v54  ;;  %v9686_v3 = vld [vmem:[%s15936_s1 + $0x1860] sm:$0xf] }
  0xcb   :  { %5282 = vmatpush.bf16.msra.mxu3 %v6939_v6  ;;  %v6760_v60 = vld [vmem:[%s15936_s1 + $0x190] sm:$0xf0]  ;;  %v9972_v61 = vld [vmem:[%s15936_s1 + $0x284] sm:$0xf]  ;;  %v6635_v1 = vor.u32 %v9908_v56, %v6632_v58  ;;  %v10674_v4 = vld [vmem:[%s15936_s1 + $0x186c] sm:$0xf0]  ;;  %v4993_v6 = vadd.f32 %v4992_v0, %v12027_v53 }
  0xcc   :  { %5244 = vmatpush.bf16.msra.mxu0 %v9735_v17  ;;  %v6888_v62 = vld [vmem:[%s15936_s1 + $0x290] sm:$0xf0]  ;;  %v6763_v2 = vor.u32 %v9940_v59, %v6760_v60  ;;  %v9904_v5 = vld [vmem:[%s15936_s1 + $0x64] sm:$0xf]  ;;  %v9687_v21 = vor.u32 %v10674_v4, %v9686_v3  ;;  %v9670_v27 = vld [vmem:[%s15936_s1 + $0x1840] sm:$0xf] }
  0xcd   :  { %5257 = vmatpush.bf16.msra.mxu1 %v6667_v24  ;;  %v6891_v9 = vor.u32 %v9972_v61, %v6888_v62  ;;  %v6616_v10 = vld [vmem:[%s15936_s1 + $0x70] sm:$0xf0]  ;;  %v9936_v13 = vld [vmem:[%s15936_s1 + $0x164] sm:$0xf]  ;;  %v5006_v17 = vadd.f32 %v5005_v8, %v4993_v6  ;;  %v10670_v32 = vld [vmem:[%s15936_s1 + $0x184c] sm:$0xf0]  ;;  %v4994_v56 = vpop.f32.mrf.mxu0 }
  0xce   :  { %5270 = vmatpush.bf16.msra.mxu2 %v6795_v26  ;;  %v6744_v14 = vld [vmem:[%s15936_s1 + $0x170] sm:$0xf0]  ;;  %v9968_v15 = vld [vmem:[%s15936_s1 + $0x264] sm:$0xf]  ;;  %v6619_v24 = vor.u32 %v9904_v5, %v6616_v10  ;;  %v9671_v54 = vor.u32 %v10670_v32, %v9670_v27  ;;  %v9654_v59 = vld [vmem:[%s15936_s1 + $0x1820] sm:$0xf]  ;;  %v5007_v62 = vpop.f32.mrf.mxu1 }
  0xcf   :  { %5283 = vmatpush.bf16.msra.mxu3 %v6923_v36  ;;  %v6872_v53 = vld [vmem:[%s15936_s1 + $0x270] sm:$0xf0]  ;;  %v6747_v26 = vor.u32 %v9936_v13, %v6744_v14  ;;  %v9900_v34 = vld [vmem:[%s15936_s1 + $0x44] sm:$0xf]  ;;  %v5018_v36 = vpop.f32.mrf.mxu2  ;;  %v10666_v60 = vld [vmem:[%s15936_s1 + $0x182c] sm:$0xf0] }
  0xd0   :  { %5245 = vmatpush.bf16.msra.mxu0 %v9719_v50  ;;  %v6875_v39 = vor.u32 %v9968_v15, %v6872_v53  ;;  %v6600_v40 = vld [vmem:[%s15936_s1 + $0x50] sm:$0xf0]  ;;  %v9932_v43 = vld [vmem:[%s15936_s1 + $0x144] sm:$0xf]  ;;  %v5019_v48 = vadd.f32 %v5018_v36, %v5006_v17  ;;  %v5031_v50 = vpop.f32.mrf.mxu3  ;;  %v9655_v5 = vor.u32 %v10666_v60, %v9654_v59  ;;  %v9638_v6 = vld [vmem:[%s15936_s1 + $0x1800] sm:$0xf] }
  0xd1   :  { %5258 = vmatpush.bf16.msra.mxu1 %v6651_v51  ;;  %v6728_v47 = vld [vmem:[%s15936_s1 + $0x150] sm:$0xf0]  ;;  %v9964_v51 = vld [vmem:[%s15936_s1 + $0x244] sm:$0xf]  ;;  %v10662_v8 = vld [vmem:[%s15936_s1 + $0x180c] sm:$0xf0] }
  0xd2   :  { %5271 = vmatpush.bf16.msra.mxu2 %v6779_v52  ;;  %v6856_v52 = vld [vmem:[%s15936_s1 + $0x250] sm:$0xf0]  ;;  %v12168_v55 = vadd.f32 %v5031_v50, %v5019_v48  ;;  %v6731_v58 = vor.u32 %v9932_v43, %v6728_v47  ;;  %v9896_v61 = vld [vmem:[%s15936_s1 + $0x24] sm:$0xf]  ;;  %v32_v53 = vld [vmem:[%s15937_s0 + $0x60] sm:$0xf] }
  0xd3   :  { %5284 = vmatpush.bf16.msra.mxu3 %v6907_v57  ;;  %v6603_v57 = vor.u32 %v9900_v34, %v6600_v40  ;;  %v6584_v0 = vld [vmem:[%s15936_s1 + $0x30] sm:$0xf0]  ;;  %v9960_v3 = vld [vmem:[%s15936_s1 + $0x224] sm:$0xf]  ;;  %v9639_v40 = vor.u32 %v10662_v8, %v9638_v6  ;;  %v880_v50 = vunpack.c.l.b16 %v32_v53 }
  0xd4   :  { %5246 = vmatpush.bf16.msra.mxu0 %v9703_v63  ;;  %v6859_v63 = vor.u32 %v9964_v51, %v6856_v52  ;;  %v6840_v4 = vld [vmem:[%s15936_s1 + $0x230] sm:$0xf0]  ;;  %v6587_v10 = vor.u32 %v9896_v61, %v6584_v0  ;;  %v9924_v15 = vld [vmem:[%s15936_s1 + $0x104] sm:$0xf] }
  0xd5   :  { %5259 = vmatpush.bf16.msra.mxu1 %v6635_v1  ;;  %v9928_v1 = vld [vmem:[%s15936_s1 + $0x124] sm:$0xf]  ;;  %v6568_v14 = vld [vmem:[%s15936_s1 + $0x10] sm:$0xf0] }
  0xd6   :  { %5272 = vmatpush.bf16.msra.mxu2 %v6763_v2  ;;  %v6712_v2 = vld [vmem:[%s15936_s1 + $0x130] sm:$0xf0]  ;;  %v10016_v34 = vld [vmem:[%s15936_s1 + $0x3e4] sm:$0xf] }
  0xd7   :  { %5285 = vmatpush.bf16.msra.mxu3 %v6891_v9  ;;  %v9892_v9 = vld [vmem:[%s15936_s1 + $0x4] sm:$0xf]  ;;  %v6715_v13 = vor.u32 %v9928_v1, %v6712_v2  ;;  %v5020_v17 = vpop.f32.mrf.mxu2  ;;  %v6824_v27 = vld [vmem:[%s15936_s1 + $0x210] sm:$0xf0]  ;;  %v12254_v1 = vpack.c.b16 %v880_v50, %v880_v50 }
  0xd8   :  { %5247 = vmatpush.bf16.msra.mxu0 %v9687_v21  ;;  %v6843_v21 = vor.u32 %v9960_v3, %v6840_v4  ;;  %v5033_v32 = vpop.f32.mrf.mxu3  ;;  %v7064_v36 = vld [vmem:[%s15936_s1 + $0x3f0] sm:$0xf0]  ;;  %v10080_v47 = vld [vmem:[%s15936_s1 + $0x5e4] sm:$0xf]  ;;  %v6571_v51 = vor.u32 %v9892_v9, %v6568_v14 }
  0xd9   :  { %5260 = vmatpush.bf16.msra.mxu1 %v6619_v24  ;;  %v6696_v24 = vld [vmem:[%s15936_s1 + $0x110] sm:$0xf0]  ;;  %v10012_v61 = vld [vmem:[%s15936_s1 + $0x3c4] sm:$0xf] }
  0xda   :  { %5273 = vmatpush.bf16.msra.mxu2 %v6747_v26  ;;  %v9956_v26 = vld [vmem:[%s15936_s1 + $0x204] sm:$0xf]  ;;  %v7192_v43 = vld [vmem:[%s15936_s1 + $0x4f0] sm:$0xf0]  ;;  %v6699_v52 = vor.u32 %v9924_v15, %v6696_v24 }
  0xdb   :  { %5286 = vmatpush.bf16.msra.mxu3 %v6875_v39  ;;  %v10048_v39 = vld [vmem:[%s15936_s1 + $0x4e4] sm:$0xf]  ;;  %v7320_v48 = vld [vmem:[%s15936_s1 + $0x5f0] sm:$0xf0] }
  0xdc   :  { %5248 = vmatpush.bf16.msra.mxu0 %v9671_v54  ;;  %v10112_v54 = vld [vmem:[%s15936_s1 + $0x6e4] sm:$0xf]  ;;  %v7448_v56 = vld [vmem:[%s15936_s1 + $0x6f0] sm:$0xf0]  ;;  %v7195_v59 = vor.u32 %v10048_v39, %v7192_v43  ;;  %v7323_v60 = vor.u32 %v10080_v47, %v7320_v48 }
  0xdd   :  { %5261 = vmatpush.bf16.msra.mxu1 %v6603_v57  ;;  %v6827_v57 = vor.u32 %v9956_v26, %v6824_v27  ;;  %v7048_v62 = vld [vmem:[%s15936_s1 + $0x3d0] sm:$0xf0]  ;;  %v7451_v0 = vor.u32 %v10112_v54, %v7448_v56  ;;  %v10076_v3 = vld [vmem:[%s15936_s1 + $0x5c4] sm:$0xf] }
  0xde   :  { %5274 = vmatpush.bf16.msra.mxu2 %v6731_v58  ;;  %v7067_v58 = vor.u32 %v10016_v34, %v7064_v36  ;;  %v7176_v2 = vld [vmem:[%s15936_s1 + $0x4d0] sm:$0xf0]  ;;  %v7051_v8 = vor.u32 %v10012_v61, %v7048_v62  ;;  %v10040_v15 = vld [vmem:[%s15936_s1 + $0x4a4] sm:$0xf] }
  0xdf   :  { %5287 = vmatpush.bf16.msra.mxu3 %v6859_v63  ;;  %v10044_v63 = vld [vmem:[%s15936_s1 + $0x4c4] sm:$0xf]  ;;  %v7304_v4 = vld [vmem:[%s15936_s1 + $0x5d0] sm:$0xf0] }
  0xe0   :  { %5249 = vmatpush.bf16.msra.mxu0 %v9655_v5  ;;  %v10108_v5 = vld [vmem:[%s15936_s1 + $0x6c4] sm:$0xf]  ;;  %v7432_v6 = vld [vmem:[%s15936_s1 + $0x6d0] sm:$0xf0]  ;;  %v7179_v9 = vor.u32 %v10044_v63, %v7176_v2 }
  0xe1   :  { %5262 = vmatpush.bf16.msra.mxu1 %v6587_v10  ;;  %v7307_v10 = vor.u32 %v10076_v3, %v7304_v4  ;;  %v7032_v14 = vld [vmem:[%s15936_s1 + $0x3b0] sm:$0xf0]  ;;  %v7435_v53 = vor.u32 %v10108_v5, %v7432_v6  ;;  %v10104_v26 = vld [vmem:[%s15936_s1 + $0x6a4] sm:$0xf] }
  0xe2   :  { %5275 = vmatpush.bf16.msra.mxu2 %v6715_v13  ;;  %v10008_v13 = vld [vmem:[%s15936_s1 + $0x3a4] sm:$0xf]  ;;  %v7160_v17 = vld [vmem:[%s15936_s1 + $0x4b0] sm:$0xf0] }
  0xe3   :  { %5288 = vmatpush.bf16.msra.mxu3 %v6843_v21  ;;  %v10072_v21 = vld [vmem:[%s15936_s1 + $0x5a4] sm:$0xf]  ;;  %v7288_v24 = vld [vmem:[%s15936_s1 + $0x5b0] sm:$0xf0]  ;;  %v7035_v32 = vor.u32 %v10008_v13, %v7032_v14  ;;  %v7163_v34 = vor.u32 %v10040_v15, %v7160_v17 }
  0xe4   :  { %5250 = vmatpush.bf16.msra.mxu0 %v9639_v40  ;;  %v7416_v27 = vld [vmem:[%s15936_s1 + $0x6b0] sm:$0xf0]  ;;  %v7291_v36 = vor.u32 %v10072_v21, %v7288_v24  ;;  %v10004_v39 = vld [vmem:[%s15936_s1 + $0x384] sm:$0xf] }
  0xe5   :  { %5263 = vmatpush.bf16.msra.mxu1 %v6571_v51  ;;  %v7016_v40 = vld [vmem:[%s15936_s1 + $0x390] sm:$0xf0]  ;;  %v10036_v43 = vld [vmem:[%s15936_s1 + $0x484] sm:$0xf]  ;;  %v7419_v47 = vor.u32 %v10104_v26, %v7416_v27 }
  0xe6   :  { %5276 = vmatpush.bf16.msra.mxu2 %v6699_v52  ;;  %v7144_v48 = vld [vmem:[%s15936_s1 + $0x490] sm:$0xf0]  ;;  %v10068_v50 = vld [vmem:[%s15936_s1 + $0x584] sm:$0xf]  ;;  %v5044_v52 = vpop.f32.mrf.mxu0 }
  0xe7   :  { %5289 = vmatpush.bf16.msra.mxu3 %v6827_v57  ;;  %5251 = vmatmul.bf16.vlgmr.msra.gmra.mxu0 %v12254_v1  ;;  %v7272_v51 = vld [vmem:[%s15936_s1 + $0x590] sm:$0xf0]  ;;  %v10100_v54 = vld [vmem:[%s15936_s1 + $0x684] sm:$0xf]  ;;  %v5045_v57 = vadd.f32 %v5044_v52, %v12168_v55 }
  0xe8   :  { %5295 = vmatpush.bf16.msrb.mxu0 %v7067_v58  ;;  %5264 = vmatmul.bf16.vlgmr.msra.gmra.mxu1 %v11054_v19  ;;  %v7400_v56 = vld [vmem:[%s15936_s1 + $0x690] sm:$0xf0]  ;;  %v7019_v58 = vor.u32 %v10004_v39, %v7016_v40  ;;  %v7275_v61 = vor.u32 %v10068_v50, %v7272_v51  ;;  %v10000_v62 = vld [vmem:[%s15936_s1 + $0x364] sm:$0xf] }
  0xe9   :  { %5308 = vmatpush.bf16.msrb.mxu1 %v7195_v59  ;;  %5277 = vmatmul.bf16.vlgmr.msra.gmra.mxu2 %v11058_v22  ;;  %v5057_v59 = vpop.f32.mrf.mxu1  ;;  %v7000_v63 = vld [vmem:[%s15936_s1 + $0x370] sm:$0xf0]  ;;  %v7403_v55 = vor.u32 %v10100_v54, %v7400_v56  ;;  %v10064_v4 = vld [vmem:[%s15936_s1 + $0x564] sm:$0xf]  ;;  %v5070_v21 = vpop.f32.mrf.mxu2 }
  0xea   :  { %5321 = vmatpush.bf16.msrb.mxu2 %v7323_v60  ;;  %5290 = vmatmul.bf16.vlgmr.msra.gmra.mxu3 %v11052_v18  ;;  %v7147_v60 = vor.u32 %v10036_v43, %v7144_v48  ;;  %v5058_v2 = vadd.f32 %v5057_v59, %v5045_v57  ;;  %v7128_v3 = vld [vmem:[%s15936_s1 + $0x470] sm:$0xf0]  ;;  %v10096_v6 = vld [vmem:[%s15936_s1 + $0x664] sm:$0xf] }
  0xeb   :  { %5334 = vmatpush.bf16.msrb.mxu3 %v7451_v0  ;;  %v10032_v0 = vld [vmem:[%s15936_s1 + $0x464] sm:$0xf]  ;;  %v7256_v5 = vld [vmem:[%s15936_s1 + $0x570] sm:$0xf0] }
  0xec   :  { %5296 = vmatpush.bf16.msrb.mxu0 %v7051_v8  ;;  %v7384_v8 = vld [vmem:[%s15936_s1 + $0x670] sm:$0xf0]  ;;  %v7259_v13 = vor.u32 %v10064_v4, %v7256_v5  ;;  %v9996_v14 = vld [vmem:[%s15936_s1 + $0x344] sm:$0xf] }
  0xed   :  { %5309 = vmatpush.bf16.msrb.mxu1 %v7179_v9  ;;  %v7003_v9 = vor.u32 %v10000_v62, %v7000_v63  ;;  %v6984_v15 = vld [vmem:[%s15936_s1 + $0x350] sm:$0xf0]  ;;  %v7387_v17 = vor.u32 %v10096_v6, %v7384_v8  ;;  %v10060_v26 = vld [vmem:[%s15936_s1 + $0x544] sm:$0xf] }
  0xee   :  { %5322 = vmatpush.bf16.msrb.mxu2 %v7307_v10  ;;  %v7131_v10 = vor.u32 %v10032_v0, %v7128_v3  ;;  %v7112_v24 = vld [vmem:[%s15936_s1 + $0x450] sm:$0xf0]  ;;  %v5046_v40 = vpop.f32.mrf.mxu0  ;;  %v6987_v43 = vor.u32 %v9996_v14, %v6984_v15  ;;  %v9992_v52 = vld [vmem:[%s15936_s1 + $0x324] sm:$0xf] }
  0xef   :  { %5335 = vmatpush.bf16.msrb.mxu3 %v7435_v53  ;;  %v10028_v53 = vld [vmem:[%s15936_s1 + $0x444] sm:$0xf]  ;;  %v7240_v27 = vld [vmem:[%s15936_s1 + $0x550] sm:$0xf0] }
  0xf0   :  { %5297 = vmatpush.bf16.msrb.mxu0 %v7035_v32  ;;  %v5071_v32 = vadd.f32 %v5070_v21, %v5058_v2  ;;  %v7368_v39 = vld [vmem:[%s15936_s1 + $0x650] sm:$0xf0]  ;;  %v7115_v50 = vor.u32 %v10028_v53, %v7112_v24  ;;  %v7243_v51 = vor.u32 %v10060_v26, %v7240_v27  ;;  %v10024_v56 = vld [vmem:[%s15936_s1 + $0x424] sm:$0xf] }
  0xf1   :  { %5310 = vmatpush.bf16.msrb.mxu1 %v7163_v34  ;;  %v5083_v34 = vpop.f32.mrf.mxu3  ;;  %v6968_v54 = vld [vmem:[%s15936_s1 + $0x330] sm:$0xf0]  ;;  %v10056_v59 = vld [vmem:[%s15936_s1 + $0x524] sm:$0xf]  ;;  %v5072_v14 = vpop.f32.mrf.mxu2 }
  0xf2   :  { %5323 = vmatpush.bf16.msrb.mxu2 %v7291_v36  ;;  %v10092_v36 = vld [vmem:[%s15936_s1 + $0x644] sm:$0xf]  ;;  %v12372_v48 = vadd.f32 %v5083_v34, %v5071_v32  ;;  %v7352_v62 = vld [vmem:[%s15936_s1 + $0x630] sm:$0xf0]  ;;  %v6971_v63 = vor.u32 %v9992_v52, %v6968_v54 }
  0xf3   :  { %5336 = vmatpush.bf16.msrb.mxu3 %v7419_v47  ;;  %v5059_v47 = vpop.f32.mrf.mxu1  ;;  %v7371_v57 = vor.u32 %v10092_v36, %v7368_v39  ;;  %v9988_v0 = vld [vmem:[%s15936_s1 + $0x304] sm:$0xf]  ;;  %v7080_v5 = vld [vmem:[%s15936_s1 + $0x410] sm:$0xf0] }
  0xf4   :  { %5298 = vmatpush.bf16.msrb.mxu0 %v7019_v58  ;;  %v7096_v58 = vld [vmem:[%s15936_s1 + $0x430] sm:$0xf0]  ;;  %v10020_v4 = vld [vmem:[%s15936_s1 + $0x404] sm:$0xf] }
  0xf5   :  { %5311 = vmatpush.bf16.msrb.mxu1 %v7147_v60  ;;  %v7224_v60 = vld [vmem:[%s15936_s1 + $0x530] sm:$0xf0]  ;;  %v7099_v2 = vor.u32 %v10024_v56, %v7096_v58  ;;  %v10052_v6 = vld [vmem:[%s15936_s1 + $0x504] sm:$0xf]  ;;  %v7083_v34 = vor.u32 %v10020_v4, %v7080_v5 }
  0xf6   :  { %5324 = vmatpush.bf16.msrb.mxu2 %v7275_v61  ;;  %v10088_v61 = vld [vmem:[%s15936_s1 + $0x624] sm:$0xf]  ;;  %v7227_v3 = vor.u32 %v10056_v59, %v7224_v60  ;;  %v7576_v53 = vld [vmem:[%s15936_s1 + $0x7f0] sm:$0xf0] }
  0xf7   :  { %5337 = vmatpush.bf16.msrb.mxu3 %v7403_v55  ;;  %v6952_v55 = vld [vmem:[%s15936_s1 + $0x310] sm:$0xf0]  ;;  %v7355_v8 = vor.u32 %v10088_v61, %v7352_v62  ;;  %v10144_v15 = vld [vmem:[%s15936_s1 + $0x7e4] sm:$0xf] }
  0xf8   :  { %5299 = vmatpush.bf16.msrb.mxu0 %v7003_v9  ;;  %v7208_v9 = vld [vmem:[%s15936_s1 + $0x510] sm:$0xf0]  ;;  %v6955_v24 = vor.u32 %v9988_v0, %v6952_v55  ;;  %v10208_v27 = vld [vmem:[%s15936_s1 + $0x9e4] sm:$0xf]  ;;  %v7579_v47 = vor.u32 %v10144_v15, %v7576_v53 }
  0xf9   :  { %5312 = vmatpush.bf16.msrb.mxu1 %v7131_v10  ;;  %v10084_v10 = vld [vmem:[%s15936_s1 + $0x604] sm:$0xf]  ;;  %v5085_v21 = vpop.f32.mrf.mxu3  ;;  %v7704_v26 = vld [vmem:[%s15936_s1 + $0x8f0] sm:$0xf0]  ;;  %v7211_v36 = vor.u32 %v10052_v6, %v7208_v9 }
  0xfa   :  { %5325 = vmatpush.bf16.msrb.mxu2 %v7259_v13  ;;  %v7336_v13 = vld [vmem:[%s15936_s1 + $0x610] sm:$0xf0]  ;;  %v10240_v39 = vld [vmem:[%s15936_s1 + $0xae4] sm:$0xf] }
  0xfb   :  { %5338 = vmatpush.bf16.msrb.mxu3 %v7387_v17  ;;  %v10176_v17 = vld [vmem:[%s15936_s1 + $0x8e4] sm:$0xf]  ;;  %v7832_v32 = vld [vmem:[%s15936_s1 + $0x9f0] sm:$0xf0] }
  0xfc   :  { %5300 = vmatpush.bf16.msrb.mxu0 %v6987_v43  ;;  %v7960_v40 = vld [vmem:[%s15936_s1 + $0xaf0] sm:$0xf0]  ;;  %v7339_v43 = vor.u32 %v10084_v10, %v7336_v13  ;;  %v10140_v52 = vld [vmem:[%s15936_s1 + $0x7c4] sm:$0xf] }
  0xfd   :  { %5313 = vmatpush.bf16.msrb.mxu1 %v7115_v50  ;;  %v7707_v50 = vor.u32 %v10176_v17, %v7704_v26  ;;  %v7560_v54 = vld [vmem:[%s15936_s1 + $0x7d0] sm:$0xf0]  ;;  %v10172_v56 = vld [vmem:[%s15936_s1 + $0x8c4] sm:$0xf] }
  0xfe   :  { %5326 = vmatpush.bf16.msrb.mxu2 %v7243_v51  ;;  %v7835_v51 = vor.u32 %v10208_v27, %v7832_v32  ;;  %v7688_v58 = vld [vmem:[%s15936_s1 + $0x8d0] sm:$0xf0]  ;;  %v10204_v59 = vld [vmem:[%s15936_s1 + $0x9c4] sm:$0xf] }
  0xff   :  { %5339 = vmatpush.bf16.msrb.mxu3 %v7371_v57  ;;  %v7963_v57 = vor.u32 %v10240_v39, %v7960_v40  ;;  %v7816_v60 = vld [vmem:[%s15936_s1 + $0x9d0] sm:$0xf0]  ;;  %v10236_v61 = vld [vmem:[%s15936_s1 + $0xac4] sm:$0xf]  ;;  %v7691_v0 = vor.u32 %v10172_v56, %v7688_v58 }
 0x100   :  { %5301 = vmatpush.bf16.msrb.mxu0 %v6971_v63  ;;  %v7944_v62 = vld [vmem:[%s15936_s1 + $0xad0] sm:$0xf0]  ;;  %v7563_v63 = vor.u32 %v10140_v52, %v7560_v54  ;;  %v7819_v55 = vor.u32 %v10204_v59, %v7816_v60  ;;  %v10168_v4 = vld [vmem:[%s15936_s1 + $0x8a4] sm:$0xf] }
 0x101   :  { %5314 = vmatpush.bf16.msrb.mxu1 %v7099_v2  ;;  %v10136_v2 = vld [vmem:[%s15936_s1 + $0x7a4] sm:$0xf]  ;;  %v7947_v5 = vor.u32 %v10236_v61, %v7944_v62  ;;  %v7672_v6 = vld [vmem:[%s15936_s1 + $0x8b0] sm:$0xf0] }
 0x102   :  { %5327 = vmatpush.bf16.msrb.mxu2 %v7227_v3  ;;  %v7544_v3 = vld [vmem:[%s15936_s1 + $0x7b0] sm:$0xf0]  ;;  %v10232_v10 = vld [vmem:[%s15936_s1 + $0xaa4] sm:$0xf]  ;;  %v7675_v15 = vor.u32 %v10168_v4, %v7672_v6 }
 0x103   :  { %5340 = vmatpush.bf16.msrb.mxu3 %v7355_v8  ;;  %v10200_v8 = vld [vmem:[%s15936_s1 + $0x9a4] sm:$0xf]  ;;  %v7800_v9 = vld [vmem:[%s15936_s1 + $0x9b0] sm:$0xf0]  ;;  %v7547_v14 = vor.u32 %v10136_v2, %v7544_v3 }
 0x104   :  { %5302 = vmatpush.bf16.msrb.mxu0 %v6955_v24  ;;  %v7928_v13 = vld [vmem:[%s15936_s1 + $0xab0] sm:$0xf0]  ;;  %v7803_v53 = vor.u32 %v10200_v8, %v7800_v9  ;;  %v10132_v17 = vld [vmem:[%s15936_s1 + $0x784] sm:$0xf] }
 0x105   :  { %5315 = vmatpush.bf16.msrb.mxu1 %v7083_v34  ;;  %v7528_v21 = vld [vmem:[%s15936_s1 + $0x790] sm:$0xf0]  ;;  %v10164_v24 = vld [vmem:[%s15936_s1 + $0x884] sm:$0xf]  ;;  %v7931_v26 = vor.u32 %v10232_v10, %v7928_v13 }
 0x106   :  { %5328 = vmatpush.bf16.msrb.mxu2 %v7211_v36  ;;  %v7656_v27 = vld [vmem:[%s15936_s1 + $0x890] sm:$0xf0]  ;;  %v10196_v32 = vld [vmem:[%s15936_s1 + $0x984] sm:$0xf]  ;;  %v5096_v36 = vpop.f32.mrf.mxu0 }
 0x107   :  { %5341 = vmatpush.bf16.msrb.mxu3 %v7339_v43  ;;  %5303 = vmatmul.bf16.vlgmr.msrb.gmra.mxu0 %v11056_v20  ;;  %v7784_v34 = vld [vmem:[%s15936_s1 + $0x990] sm:$0xf0]  ;;  %v10228_v39 = vld [vmem:[%s15936_s1 + $0xa84] sm:$0xf]  ;;  %v5097_v43 = vadd.f32 %v5096_v36, %v12372_v48 }
 0x108   :  { %5347 = vmatpush.bf16.msra.mxu0 %v7579_v47  ;;  %5316 = vmatmul.bf16.vlgmr.msrb.gmra.mxu1 %v11216_v41  ;;  %v7912_v40 = vld [vmem:[%s15936_s1 + $0xa90] sm:$0xf0]  ;;  %v7531_v47 = vor.u32 %v10132_v17, %v7528_v21  ;;  %v7787_v52 = vor.u32 %v10196_v32, %v7784_v34  ;;  %v10128_v54 = vld [vmem:[%s15936_s1 + $0x764] sm:$0xf] }
 0x109   :  { %5360 = vmatpush.bf16.msra.mxu1 %v7707_v50  ;;  %5329 = vmatmul.bf16.vlgmr.msrb.gmra.mxu2 %v11220_v44  ;;  %v5109_v50 = vpop.f32.mrf.mxu1  ;;  %v7512_v56 = vld [vmem:[%s15936_s1 + $0x770] sm:$0xf0]  ;;  %v7915_v48 = vor.u32 %v10228_v39, %v7912_v40  ;;  %v10192_v60 = vld [vmem:[%s15936_s1 + $0x964] sm:$0xf] }
 0x10a   :  { %5373 = vmatpush.bf16.msra.mxu2 %v7835_v51  ;;  %5342 = vmatmul.bf16.vlgmr.msrb.gmra.mxu3 %v11208_v38  ;;  %v7659_v51 = vor.u32 %v10164_v24, %v7656_v27  ;;  %v5110_v58 = vadd.f32 %v5109_v50, %v5097_v43  ;;  %v7640_v59 = vld [vmem:[%s15936_s1 + $0x870] sm:$0xf0]  ;;  %v10224_v62 = vld [vmem:[%s15936_s1 + $0xa64] sm:$0xf] }
 0x10b   :  { %5386 = vmatpush.bf16.msra.mxu3 %v7963_v57  ;;  %v10160_v57 = vld [vmem:[%s15936_s1 + $0x864] sm:$0xf]  ;;  %v7768_v61 = vld [vmem:[%s15936_s1 + $0x970] sm:$0xf0] }
 0x10c   :  { %5348 = vmatpush.bf16.msra.mxu0 %v7563_v63  ;;  %v7896_v63 = vld [vmem:[%s15936_s1 + $0xa70] sm:$0xf0]  ;;  %v7771_v2 = vor.u32 %v10192_v60, %v7768_v61  ;;  %v10124_v3 = vld [vmem:[%s15936_s1 + $0x744] sm:$0xf]  ;;  %v5122_v8 = vpop.f32.mrf.mxu2 }
 0x10d   :  { %5361 = vmatpush.bf16.msra.mxu1 %v7691_v0  ;;  %v7515_v0 = vor.u32 %v10128_v54, %v7512_v56  ;;  %v7496_v4 = vld [vmem:[%s15936_s1 + $0x750] sm:$0xf0]  ;;  %v7899_v6 = vor.u32 %v10224_v62, %v7896_v63  ;;  %v10188_v10 = vld [vmem:[%s15936_s1 + $0x944] sm:$0xf] }
 0x10e   :  { %5374 = vmatpush.bf16.msra.mxu2 %v7819_v55  ;;  %v7643_v55 = vor.u32 %v10160_v57, %v7640_v59  ;;  %v7624_v9 = vld [vmem:[%s15936_s1 + $0x850] sm:$0xf0]  ;;  %v5098_v21 = vpop.f32.mrf.mxu0  ;;  %v7499_v24 = vor.u32 %v10124_v3, %v7496_v4  ;;  %v10120_v36 = vld [vmem:[%s15936_s1 + $0x724] sm:$0xf] }
 0x10f   :  { %5387 = vmatpush.bf16.msra.mxu3 %v7947_v5  ;;  %v10156_v5 = vld [vmem:[%s15936_s1 + $0x844] sm:$0xf]  ;;  %v7752_v13 = vld [vmem:[%s15936_s1 + $0x950] sm:$0xf0] }
 0x110   :  { %5349 = vmatpush.bf16.msra.mxu0 %v7547_v14  ;;  %v5123_v14 = vadd.f32 %v5122_v8, %v5110_v58  ;;  %v7880_v17 = vld [vmem:[%s15936_s1 + $0xa50] sm:$0xf0]  ;;  %v7627_v32 = vor.u32 %v10156_v5, %v7624_v9  ;;  %v7755_v34 = vor.u32 %v10188_v10, %v7752_v13  ;;  %v10152_v40 = vld [vmem:[%s15936_s1 + $0x824] sm:$0xf] }
 0x111   :  { %5362 = vmatpush.bf16.msra.mxu1 %v7675_v15  ;;  %v5135_v15 = vpop.f32.mrf.mxu3  ;;  %v7480_v39 = vld [vmem:[%s15936_s1 + $0x730] sm:$0xf0]  ;;  %v10184_v50 = vld [vmem:[%s15936_s1 + $0x924] sm:$0xf] }
 0x112   :  { %5375 = vmatpush.bf16.msra.mxu2 %v7803_v53  ;;  %v10220_v53 = vld [vmem:[%s15936_s1 + $0xa44] sm:$0xf]  ;;  %v12571_v27 = vadd.f32 %v5135_v15, %v5123_v14  ;;  %v7864_v54 = vld [vmem:[%s15936_s1 + $0xa30] sm:$0xf0]  ;;  %v7483_v56 = vor.u32 %v10120_v36, %v7480_v39 }
 0x113   :  { %5388 = vmatpush.bf16.msra.mxu3 %v7931_v26  ;;  %v5111_v26 = vpop.f32.mrf.mxu1  ;;  %v7883_v43 = vor.u32 %v10220_v53, %v7880_v17  ;;  %v10116_v57 = vld [vmem:[%s15936_s1 + $0x704] sm:$0xf]  ;;  %v7592_v61 = vld [vmem:[%s15936_s1 + $0x810] sm:$0xf0] }
 0x114   :  { %5350 = vmatpush.bf16.msra.mxu0 %v7531_v47  ;;  %v7608_v47 = vld [vmem:[%s15936_s1 + $0x830] sm:$0xf0]  ;;  %v10148_v60 = vld [vmem:[%s15936_s1 + $0x804] sm:$0xf]  ;;  %v5124_v3 = vpop.f32.mrf.mxu2 }
 0x115   :  { %5363 = vmatpush.bf16.msra.mxu1 %v7659_v51  ;;  %v7736_v51 = vld [vmem:[%s15936_s1 + $0x930] sm:$0xf0]  ;;  %v7611_v58 = vor.u32 %v10152_v40, %v7608_v47  ;;  %v10180_v62 = vld [vmem:[%s15936_s1 + $0x904] sm:$0xf]  ;;  %v7595_v15 = vor.u32 %v10148_v60, %v7592_v61 }
 0x116   :  { %5376 = vmatpush.bf16.msra.mxu2 %v7787_v52  ;;  %v10216_v52 = vld [vmem:[%s15936_s1 + $0xa24] sm:$0xf]  ;;  %v7739_v59 = vor.u32 %v10184_v50, %v7736_v51  ;;  %v8088_v5 = vld [vmem:[%s15936_s1 + $0xbf0] sm:$0xf0] }
 0x117   :  { %5389 = vmatpush.bf16.msra.mxu3 %v7915_v48  ;;  %v7464_v48 = vld [vmem:[%s15936_s1 + $0x710] sm:$0xf0]  ;;  %v7867_v63 = vor.u32 %v10216_v52, %v7864_v54  ;;  %v10272_v4 = vld [vmem:[%s15936_s1 + $0xbe4] sm:$0xf] }
 0x118   :  { %5351 = vmatpush.bf16.msra.mxu0 %v7515_v0  ;;  %v7720_v0 = vld [vmem:[%s15936_s1 + $0x910] sm:$0xf0]  ;;  %v7467_v9 = vor.u32 %v10116_v57, %v7464_v48  ;;  %v10336_v13 = vld [vmem:[%s15936_s1 + $0xde4] sm:$0xf]  ;;  %v8091_v26 = vor.u32 %v10272_v4, %v8088_v5 }
 0x119   :  { %5364 = vmatpush.bf16.msra.mxu1 %v7643_v55  ;;  %v10212_v55 = vld [vmem:[%s15936_s1 + $0xa04] sm:$0xf]  ;;  %v5137_v8 = vpop.f32.mrf.mxu3  ;;  %v8216_v10 = vld [vmem:[%s15936_s1 + $0xcf0] sm:$0xf0]  ;;  %v7723_v53 = vor.u32 %v10180_v62, %v7720_v0 }
 0x11a   :  { %5377 = vmatpush.bf16.msra.mxu2 %v7771_v2  ;;  %v7848_v2 = vld [vmem:[%s15936_s1 + $0xa10] sm:$0xf0]  ;;  %v10368_v17 = vld [vmem:[%s15936_s1 + $0xee4] sm:$0xf] }
 0x11b   :  { %5390 = vmatpush.bf16.msra.mxu3 %v7899_v6  ;;  %v10304_v6 = vld [vmem:[%s15936_s1 + $0xce4] sm:$0xf]  ;;  %v8344_v14 = vld [vmem:[%s15936_s1 + $0xdf0] sm:$0xf0] }
 0x11c   :  { %5352 = vmatpush.bf16.msra.mxu0 %v7499_v24  ;;  %v8472_v21 = vld [vmem:[%s15936_s1 + $0xef0] sm:$0xf0]  ;;  %v7851_v24 = vor.u32 %v10212_v55, %v7848_v2  ;;  %v10268_v36 = vld [vmem:[%s15936_s1 + $0xbc4] sm:$0xf] }
 0x11d   :  { %5365 = vmatpush.bf16.msra.mxu1 %v7627_v32  ;;  %v8219_v32 = vor.u32 %v10304_v6, %v8216_v10  ;;  %v8072_v39 = vld [vmem:[%s15936_s1 + $0xbd0] sm:$0xf0]  ;;  %v10300_v40 = vld [vmem:[%s15936_s1 + $0xcc4] sm:$0xf] }
 0x11e   :  { %5378 = vmatpush.bf16.msra.mxu2 %v7755_v34  ;;  %v8347_v34 = vor.u32 %v10336_v13, %v8344_v14  ;;  %v8200_v47 = vld [vmem:[%s15936_s1 + $0xcd0] sm:$0xf0]  ;;  %v10332_v50 = vld [vmem:[%s15936_s1 + $0xdc4] sm:$0xf] }
 0x11f   :  { %5391 = vmatpush.bf16.msra.mxu3 %v7883_v43  ;;  %v8475_v43 = vor.u32 %v10368_v17, %v8472_v21  ;;  %v8328_v51 = vld [vmem:[%s15936_s1 + $0xdd0] sm:$0xf0]  ;;  %v10364_v52 = vld [vmem:[%s15936_s1 + $0xec4] sm:$0xf]  ;;  %v8203_v57 = vor.u32 %v10300_v40, %v8200_v47 }
 0x120   :  { %5353 = vmatpush.bf16.msra.mxu0 %v7483_v56  ;;  %v8456_v54 = vld [vmem:[%s15936_s1 + $0xed0] sm:$0xf0]  ;;  %v8075_v56 = vor.u32 %v10268_v36, %v8072_v39  ;;  %v8331_v48 = vor.u32 %v10332_v50, %v8328_v51  ;;  %v10296_v60 = vld [vmem:[%s15936_s1 + $0xca4] sm:$0xf] }
 0x121   :  { %5366 = vmatpush.bf16.msra.mxu1 %v7611_v58  ;;  %v10264_v58 = vld [vmem:[%s15936_s1 + $0xba4] sm:$0xf]  ;;  %v8459_v61 = vor.u32 %v10364_v52, %v8456_v54  ;;  %v8184_v62 = vld [vmem:[%s15936_s1 + $0xcb0] sm:$0xf0] }
 0x122   :  { %5379 = vmatpush.bf16.msra.mxu2 %v7739_v59  ;;  %v8056_v59 = vld [vmem:[%s15936_s1 + $0xbb0] sm:$0xf0]  ;;  %v10360_v55 = vld [vmem:[%s15936_s1 + $0xea4] sm:$0xf]  ;;  %v8187_v4 = vor.u32 %v10296_v60, %v8184_v62 }
 0x123   :  { %5392 = vmatpush.bf16.msra.mxu3 %v7867_v63  ;;  %v10328_v63 = vld [vmem:[%s15936_s1 + $0xda4] sm:$0xf]  ;;  %v8312_v0 = vld [vmem:[%s15936_s1 + $0xdb0] sm:$0xf0]  ;;  %v8059_v3 = vor.u32 %v10264_v58, %v8056_v59 }
 0x124   :  { %5354 = vmatpush.bf16.msra.mxu0 %v7467_v9  ;;  %v8440_v2 = vld [vmem:[%s15936_s1 + $0xeb0] sm:$0xf0]  ;;  %v8315_v5 = vor.u32 %v10328_v63, %v8312_v0  ;;  %v10260_v6 = vld [vmem:[%s15936_s1 + $0xb84] sm:$0xf] }
 0x125   :  { %5367 = vmatpush.bf16.msra.mxu1 %v7595_v15  ;;  %v8040_v8 = vld [vmem:[%s15936_s1 + $0xb90] sm:$0xf0]  ;;  %v10292_v9 = vld [vmem:[%s15936_s1 + $0xc84] sm:$0xf]  ;;  %v8443_v10 = vor.u32 %v10360_v55, %v8440_v2 }
 0x126   :  { %5380 = vmatpush.bf16.msra.mxu2 %v7723_v53  ;;  %v8168_v13 = vld [vmem:[%s15936_s1 + $0xc90] sm:$0xf0]  ;;  %v10324_v14 = vld [vmem:[%s15936_s1 + $0xd84] sm:$0xf]  ;;  %v5148_v53 = vpop.f32.mrf.mxu0 }
 0x127   :  { %5393 = vmatpush.bf16.msra.mxu3 %v7851_v24  ;;  %5355 = vmatmul.bf16.vlgmr.msra.gmra.mxu0 %v11218_v42  ;;  %v8296_v15 = vld [vmem:[%s15936_s1 + $0xd90] sm:$0xf0]  ;;  %v10356_v17 = vld [vmem:[%s15936_s1 + $0xe84] sm:$0xf]  ;;  %v5149_v24 = vadd.f32 %v5148_v53, %v12571_v27 }
 0x128   :  { %5399 = vmatpush.bf16.msrb.mxu0 %v8091_v26  ;;  %5368 = vmatmul.bf16.vlgmr.msra.gmra.mxu1 %v11409_v25  ;;  %v8424_v21 = vld [vmem:[%s15936_s1 + $0xe90] sm:$0xf0]  ;;  %v8043_v26 = vor.u32 %v10260_v6, %v8040_v8  ;;  %v8299_v36 = vor.u32 %v10324_v14, %v8296_v15  ;;  %v10256_v39 = vld [vmem:[%s15936_s1 + $0xb64] sm:$0xf] }
 0x129   :  { %5412 = vmatpush.bf16.msrb.mxu1 %v8219_v32  ;;  %5381 = vmatmul.bf16.vlgmr.msra.gmra.mxu2 %v11422_v30  ;;  %v5161_v32 = vpop.f32.mrf.mxu1  ;;  %v8024_v40 = vld [vmem:[%s15936_s1 + $0xb70] sm:$0xf0]  ;;  %v8427_v27 = vor.u32 %v10356_v17, %v8424_v21  ;;  %v10320_v51 = vld [vmem:[%s15936_s1 + $0xd64] sm:$0xf] }
 0x12a   :  { %5425 = vmatpush.bf16.msrb.mxu2 %v8347_v34  ;;  %5394 = vmatmul.bf16.vlgmr.msra.gmra.mxu3 %v11420_v29  ;;  %v8171_v34 = vor.u32 %v10292_v9, %v8168_v13  ;;  %v5162_v47 = vadd.f32 %v5161_v32, %v5149_v24  ;;  %v8152_v50 = vld [vmem:[%s15936_s1 + $0xc70] sm:$0xf0]  ;;  %v10352_v54 = vld [vmem:[%s15936_s1 + $0xe64] sm:$0xf]  ;;  %v5174_v63 = vpop.f32.mrf.mxu2 }
 0x12b   :  { %5438 = vmatpush.bf16.msrb.mxu3 %v8475_v43  ;;  %v10288_v43 = vld [vmem:[%s15936_s1 + $0xc64] sm:$0xf]  ;;  %v8280_v52 = vld [vmem:[%s15936_s1 + $0xd70] sm:$0xf0] }
 0x12c   :  { %5400 = vmatpush.bf16.msrb.mxu0 %v8075_v56  ;;  %v8408_v56 = vld [vmem:[%s15936_s1 + $0xe70] sm:$0xf0]  ;;  %v8283_v58 = vor.u32 %v10320_v51, %v8280_v52  ;;  %v10252_v59 = vld [vmem:[%s15936_s1 + $0xb44] sm:$0xf] }
 0x12d   :  { %5413 = vmatpush.bf16.msrb.mxu1 %v8203_v57  ;;  %v8027_v57 = vor.u32 %v10256_v39, %v8024_v40  ;;  %v8008_v60 = vld [vmem:[%s15936_s1 + $0xb50] sm:$0xf0]  ;;  %v8411_v62 = vor.u32 %v10352_v54, %v8408_v56  ;;  %v10316_v55 = vld [vmem:[%s15936_s1 + $0xd44] sm:$0xf] }
 0x12e   :  { %5426 = vmatpush.bf16.msrb.mxu2 %v8331_v48  ;;  %v8155_v48 = vor.u32 %v10288_v43, %v8152_v50  ;;  %v8136_v0 = vld [vmem:[%s15936_s1 + $0xc50] sm:$0xf0]  ;;  %v5150_v8 = vpop.f32.mrf.mxu0  ;;  %v8011_v9 = vor.u32 %v10252_v59, %v8008_v60  ;;  %v10248_v53 = vld [vmem:[%s15936_s1 + $0xb24] sm:$0xf] }
 0x12f   :  { %5439 = vmatpush.bf16.msrb.mxu3 %v8459_v61  ;;  %v10284_v61 = vld [vmem:[%s15936_s1 + $0xc44] sm:$0xf]  ;;  %v8264_v2 = vld [vmem:[%s15936_s1 + $0xd50] sm:$0xf0] }
 0x130   :  { %5401 = vmatpush.bf16.msrb.mxu0 %v8059_v3  ;;  %v5175_v3 = vadd.f32 %v5174_v63, %v5162_v47  ;;  %v8392_v6 = vld [vmem:[%s15936_s1 + $0xe50] sm:$0xf0]  ;;  %v8139_v14 = vor.u32 %v10284_v61, %v8136_v0  ;;  %v8267_v15 = vor.u32 %v10316_v55, %v8264_v2  ;;  %v10280_v21 = vld [vmem:[%s15936_s1 + $0xc24] sm:$0xf] }
 0x131   :  { %5414 = vmatpush.bf16.msrb.mxu1 %v8187_v4  ;;  %v5187_v4 = vpop.f32.mrf.mxu3  ;;  %v7992_v17 = vld [vmem:[%s15936_s1 + $0xb30] sm:$0xf0]  ;;  %v10312_v32 = vld [vmem:[%s15936_s1 + $0xd24] sm:$0xf] }
 0x132   :  { %5427 = vmatpush.bf16.msrb.mxu2 %v8315_v5  ;;  %v10348_v5 = vld [vmem:[%s15936_s1 + $0xe44] sm:$0xf]  ;;  %v12770_v13 = vadd.f32 %v5187_v4, %v5175_v3  ;;  %v8376_v39 = vld [vmem:[%s15936_s1 + $0xe30] sm:$0xf0]  ;;  %v7995_v40 = vor.u32 %v10248_v53, %v7992_v17  ;;  %v5176_v59 = vpop.f32.mrf.mxu2 }
 0x133   :  { %5440 = vmatpush.bf16.msrb.mxu3 %v8443_v10  ;;  %v5163_v10 = vpop.f32.mrf.mxu1  ;;  %v8395_v24 = vor.u32 %v10348_v5, %v8392_v6  ;;  %v10244_v43 = vld [vmem:[%s15936_s1 + $0xb04] sm:$0xf]  ;;  %v8104_v52 = vld [vmem:[%s15936_s1 + $0xc10] sm:$0xf0] }
 0x134   :  { %5402 = vmatpush.bf16.msrb.mxu0 %v8043_v26  ;;  %v8120_v26 = vld [vmem:[%s15936_s1 + $0xc30] sm:$0xf0]  ;;  %v10276_v51 = vld [vmem:[%s15936_s1 + $0xc04] sm:$0xf] }
 0x135   :  { %5415 = vmatpush.bf16.msrb.mxu1 %v8171_v34  ;;  %v8248_v34 = vld [vmem:[%s15936_s1 + $0xd30] sm:$0xf0]  ;;  %v8123_v47 = vor.u32 %v10280_v21, %v8120_v26  ;;  %v10308_v54 = vld [vmem:[%s15936_s1 + $0xd04] sm:$0xf]  ;;  %v8107_v4 = vor.u32 %v10276_v51, %v8104_v52 }
 0x136   :  { %5428 = vmatpush.bf16.msrb.mxu2 %v8299_v36  ;;  %v10344_v36 = vld [vmem:[%s15936_s1 + $0xe24] sm:$0xf]  ;;  %v8251_v50 = vor.u32 %v10312_v32, %v8248_v34  ;;  %v8600_v61 = vld [vmem:[%s15936_s1 + $0xff0] sm:$0xf0] }
 0x137   :  { %5441 = vmatpush.bf16.msrb.mxu3 %v8427_v27  ;;  %v7976_v27 = vld [vmem:[%s15936_s1 + $0xb10] sm:$0xf0]  ;;  %v8379_v56 = vor.u32 %v10344_v36, %v8376_v39  ;;  %v10400_v60 = vld [vmem:[%s15936_s1 + $0xfe4] sm:$0xf] }
 0x138   :  { %5403 = vmatpush.bf16.msrb.mxu0 %v8027_v57  ;;  %v8232_v57 = vld [vmem:[%s15936_s1 + $0xd10] sm:$0xf0]  ;;  %v7979_v0 = vor.u32 %v10244_v43, %v7976_v27  ;;  %v10464_v2 = vld [vmem:[%s15936_s1 + $0x11e4] sm:$0xf]  ;;  %v8603_v10 = vor.u32 %v10400_v60, %v8600_v61 }
 0x139   :  { %5416 = vmatpush.bf16.msrb.mxu1 %v8155_v48  ;;  %v10340_v48 = vld [vmem:[%s15936_s1 + $0xe04] sm:$0xf]  ;;  %v5189_v63 = vpop.f32.mrf.mxu3  ;;  %v8728_v55 = vld [vmem:[%s15936_s1 + $0x10f0] sm:$0xf0]  ;;  %v8235_v5 = vor.u32 %v10308_v54, %v8232_v57 }
 0x13a   :  { %5429 = vmatpush.bf16.msrb.mxu2 %v8283_v58  ;;  %v8360_v58 = vld [vmem:[%s15936_s1 + $0xe10] sm:$0xf0]  ;;  %v10496_v6 = vld [vmem:[%s15936_s1 + $0x12e4] sm:$0xf] }
 0x13b   :  { %5442 = vmatpush.bf16.msrb.mxu3 %v8411_v62  ;;  %v10432_v62 = vld [vmem:[%s15936_s1 + $0x10e4] sm:$0xf]  ;;  %v8856_v3 = vld [vmem:[%s15936_s1 + $0x11f0] sm:$0xf0] }
 0x13c   :  { %5404 = vmatpush.bf16.msrb.mxu0 %v8011_v9  ;;  %v8984_v8 = vld [vmem:[%s15936_s1 + $0x12f0] sm:$0xf0]  ;;  %v8363_v9 = vor.u32 %v10340_v48, %v8360_v58  ;;  %v10396_v53 = vld [vmem:[%s15936_s1 + $0xfc4] sm:$0xf] }
 0x13d   :  { %5417 = vmatpush.bf16.msrb.mxu1 %v8139_v14  ;;  %v8731_v14 = vor.u32 %v10432_v62, %v8728_v55  ;;  %v8584_v17 = vld [vmem:[%s15936_s1 + $0xfd0] sm:$0xf0]  ;;  %v10428_v21 = vld [vmem:[%s15936_s1 + $0x10c4] sm:$0xf] }
 0x13e   :  { %5430 = vmatpush.bf16.msrb.mxu2 %v8267_v15  ;;  %v8859_v15 = vor.u32 %v10464_v2, %v8856_v3  ;;  %v8712_v26 = vld [vmem:[%s15936_s1 + $0x10d0] sm:$0xf0]  ;;  %v10460_v32 = vld [vmem:[%s15936_s1 + $0x11c4] sm:$0xf] }
 0x13f   :  { %5443 = vmatpush.bf16.msrb.mxu3 %v8395_v24  ;;  %v8987_v24 = vor.u32 %v10496_v6, %v8984_v8  ;;  %v8840_v34 = vld [vmem:[%s15936_s1 + $0x11d0] sm:$0xf0]  ;;  %v10492_v36 = vld [vmem:[%s15936_s1 + $0x12c4] sm:$0xf]  ;;  %v8715_v43 = vor.u32 %v10428_v21, %v8712_v26 }
 0x140   :  { %5405 = vmatpush.bf16.msrb.mxu0 %v7995_v40  ;;  %v8968_v39 = vld [vmem:[%s15936_s1 + $0x12d0] sm:$0xf0]  ;;  %v8587_v40 = vor.u32 %v10396_v53, %v8584_v17  ;;  %v8843_v27 = vor.u32 %v10460_v32, %v8840_v34  ;;  %v10424_v51 = vld [vmem:[%s15936_s1 + $0x10a4] sm:$0xf] }
 0x141   :  { %5418 = vmatpush.bf16.msrb.mxu1 %v8123_v47  ;;  %v10392_v47 = vld [vmem:[%s15936_s1 + $0xfa4] sm:$0xf]  ;;  %v8971_v52 = vor.u32 %v10492_v36, %v8968_v39  ;;  %v8696_v54 = vld [vmem:[%s15936_s1 + $0x10b0] sm:$0xf0] }
 0x142   :  { %5431 = vmatpush.bf16.msrb.mxu2 %v8251_v50  ;;  %v8568_v50 = vld [vmem:[%s15936_s1 + $0xfb0] sm:$0xf0]  ;;  %v10488_v48 = vld [vmem:[%s15936_s1 + $0x12a4] sm:$0xf]  ;;  %v8699_v60 = vor.u32 %v10424_v51, %v8696_v54 }
 0x143   :  { %5444 = vmatpush.bf16.msrb.mxu3 %v8379_v56  ;;  %v10456_v56 = vld [vmem:[%s15936_s1 + $0x11a4] sm:$0xf]  ;;  %v8824_v57 = vld [vmem:[%s15936_s1 + $0x11b0] sm:$0xf0]  ;;  %v8571_v59 = vor.u32 %v10392_v47, %v8568_v50 }
 0x144   :  { %5406 = vmatpush.bf16.msrb.mxu0 %v7979_v0  ;;  %v8952_v58 = vld [vmem:[%s15936_s1 + $0x12b0] sm:$0xf0]  ;;  %v8827_v61 = vor.u32 %v10456_v56, %v8824_v57  ;;  %v10388_v62 = vld [vmem:[%s15936_s1 + $0xf84] sm:$0xf] }
 0x145   :  { %5419 = vmatpush.bf16.msrb.mxu1 %v8107_v4  ;;  %v8552_v63 = vld [vmem:[%s15936_s1 + $0xf90] sm:$0xf0]  ;;  %v10420_v0 = vld [vmem:[%s15936_s1 + $0x1084] sm:$0xf]  ;;  %v8955_v55 = vor.u32 %v10488_v48, %v8952_v58 }
 0x146   :  { %5432 = vmatpush.bf16.msrb.mxu2 %v8235_v5  ;;  %v8680_v2 = vld [vmem:[%s15936_s1 + $0x1090] sm:$0xf0]  ;;  %v10452_v3 = vld [vmem:[%s15936_s1 + $0x1184] sm:$0xf]  ;;  %v5200_v5 = vpop.f32.mrf.mxu0 }
 0x147   :  { %5445 = vmatpush.bf16.msrb.mxu3 %v8363_v9  ;;  %5407 = vmatmul.bf16.vlgmr.msrb.gmra.mxu0 %v11430_v33  ;;  %v8808_v4 = vld [vmem:[%s15936_s1 + $0x1190] sm:$0xf0]  ;;  %v10484_v6 = vld [vmem:[%s15936_s1 + $0x1284] sm:$0xf]  ;;  %v5201_v9 = vadd.f32 %v5200_v5, %v12770_v13 }
 0x148   :  { %5451 = vmatpush.bf16.msra.mxu0 %v8603_v10  ;;  %5420 = vmatmul.bf16.vlgmr.msrb.gmra.mxu1 %v11619_v23  ;;  %v8936_v8 = vld [vmem:[%s15936_s1 + $0x1290] sm:$0xf0]  ;;  %v8555_v10 = vor.u32 %v10388_v62, %v8552_v63  ;;  %v8811_v53 = vor.u32 %v10452_v3, %v8808_v4  ;;  %v10384_v17 = vld [vmem:[%s15936_s1 + $0xf64] sm:$0xf] }
 0x149   :  { %5464 = vmatpush.bf16.msra.mxu1 %v8731_v14  ;;  %5433 = vmatmul.bf16.vlgmr.msrb.gmra.mxu2 %v11632_v31  ;;  %v5213_v14 = vpop.f32.mrf.mxu1  ;;  %v8536_v21 = vld [vmem:[%s15936_s1 + $0xf70] sm:$0xf0]  ;;  %v8939_v13 = vor.u32 %v10484_v6, %v8936_v8  ;;  %v10448_v34 = vld [vmem:[%s15936_s1 + $0x1164] sm:$0xf] }
 0x14a   :  { %5477 = vmatpush.bf16.msra.mxu2 %v8859_v15  ;;  %5446 = vmatmul.bf16.vlgmr.msrb.gmra.mxu3 %v11630_v28  ;;  %v8683_v15 = vor.u32 %v10420_v0, %v8680_v2  ;;  %v5214_v26 = vadd.f32 %v5213_v14, %v5201_v9  ;;  %v8664_v32 = vld [vmem:[%s15936_s1 + $0x1070] sm:$0xf0]  ;;  %v10480_v39 = vld [vmem:[%s15936_s1 + $0x1264] sm:$0xf] }
 0x14b   :  { %5490 = vmatpush.bf16.msra.mxu3 %v8987_v24  ;;  %v10416_v24 = vld [vmem:[%s15936_s1 + $0x1064] sm:$0xf]  ;;  %v8792_v36 = vld [vmem:[%s15936_s1 + $0x1170] sm:$0xf0] }
 0x14c   :  { %5452 = vmatpush.bf16.msra.mxu0 %v8587_v40  ;;  %v8920_v40 = vld [vmem:[%s15936_s1 + $0x1270] sm:$0xf0]  ;;  %v8795_v47 = vor.u32 %v10448_v34, %v8792_v36  ;;  %v10380_v50 = vld [vmem:[%s15936_s1 + $0xf44] sm:$0xf]  ;;  %v5226_v56 = vpop.f32.mrf.mxu2 }
 0x14d   :  { %5465 = vmatpush.bf16.msra.mxu1 %v8715_v43  ;;  %v8539_v43 = vor.u32 %v10384_v17, %v8536_v21  ;;  %v8520_v51 = vld [vmem:[%s15936_s1 + $0xf50] sm:$0xf0]  ;;  %v8923_v54 = vor.u32 %v10480_v39, %v8920_v40  ;;  %v10444_v48 = vld [vmem:[%s15936_s1 + $0x1144] sm:$0xf] }
 0x14e   :  { %5478 = vmatpush.bf16.msra.mxu2 %v8843_v27  ;;  %v8667_v27 = vor.u32 %v10416_v24, %v8664_v32  ;;  %v8648_v57 = vld [vmem:[%s15936_s1 + $0x1050] sm:$0xf0]  ;;  %v5202_v63 = vpop.f32.mrf.mxu0  ;;  %v8523_v0 = vor.u32 %v10380_v50, %v8520_v51  ;;  %v10376_v5 = vld [vmem:[%s15936_s1 + $0xf24] sm:$0xf] }
 0x14f   :  { %5491 = vmatpush.bf16.msra.mxu3 %v8971_v52  ;;  %v10412_v52 = vld [vmem:[%s15936_s1 + $0x1044] sm:$0xf]  ;;  %v8776_v58 = vld [vmem:[%s15936_s1 + $0x1150] sm:$0xf0] }
 0x150   :  { %5453 = vmatpush.bf16.msra.mxu0 %v8571_v59  ;;  %v5227_v59 = vadd.f32 %v5226_v56, %v5214_v26  ;;  %v8904_v62 = vld [vmem:[%s15936_s1 + $0x1250] sm:$0xf0]  ;;  %v8651_v3 = vor.u32 %v10412_v52, %v8648_v57  ;;  %v8779_v4 = vor.u32 %v10444_v48, %v8776_v58  ;;  %v10408_v8 = vld [vmem:[%s15936_s1 + $0x1024] sm:$0xf] }
 0x151   :  { %5466 = vmatpush.bf16.msra.mxu1 %v8699_v60  ;;  %v5239_v60 = vpop.f32.mrf.mxu3  ;;  %v8504_v6 = vld [vmem:[%s15936_s1 + $0xf30] sm:$0xf0]  ;;  %v10440_v14 = vld [vmem:[%s15936_s1 + $0x1124] sm:$0xf] }
 0x152   :  { %5479 = vmatpush.bf16.msra.mxu2 %v8827_v61  ;;  %v10476_v61 = vld [vmem:[%s15936_s1 + $0x1244] sm:$0xf]  ;;  %v12969_v2 = vadd.f32 %v5239_v60, %v5227_v59  ;;  %v8888_v17 = vld [vmem:[%s15936_s1 + $0x1230] sm:$0xf0]  ;;  %v8507_v21 = vor.u32 %v10376_v5, %v8504_v6 }
 0x153   :  { %5492 = vmatpush.bf16.msra.mxu3 %v8955_v55  ;;  %v5215_v55 = vpop.f32.mrf.mxu1  ;;  %v8907_v9 = vor.u32 %v10476_v61, %v8904_v62  ;;  %v10372_v24 = vld [vmem:[%s15936_s1 + $0xf04] sm:$0xf]  ;;  %v8616_v36 = vld [vmem:[%s15936_s1 + $0x1010] sm:$0xf0] }
 0x154   :  { %5454 = vmatpush.bf16.msra.mxu0 %v8555_v10  ;;  %v8632_v10 = vld [vmem:[%s15936_s1 + $0x1030] sm:$0xf0]  ;;  %v10404_v34 = vld [vmem:[%s15936_s1 + $0x1004] sm:$0xf]  ;;  %v5228_v50 = vpop.f32.mrf.mxu2 }
 0x155   :  { %5467 = vmatpush.bf16.msra.mxu1 %v8683_v15  ;;  %v8760_v15 = vld [vmem:[%s15936_s1 + $0x1130] sm:$0xf0]  ;;  %v8635_v26 = vor.u32 %v10408_v8, %v8632_v10  ;;  %v10436_v39 = vld [vmem:[%s15936_s1 + $0x1104] sm:$0xf]  ;;  %v8619_v60 = vor.u32 %v10404_v34, %v8616_v36 }
 0x156   :  { %5480 = vmatpush.bf16.msra.mxu2 %v8811_v53  ;;  %v10472_v53 = vld [vmem:[%s15936_s1 + $0x1224] sm:$0xf]  ;;  %v8763_v32 = vor.u32 %v10440_v14, %v8760_v15  ;;  %v9112_v52 = vld [vmem:[%s15936_s1 + $0x13f0] sm:$0xf0] }
 0x157   :  { %5493 = vmatpush.bf16.msra.mxu3 %v8939_v13  ;;  %v8488_v13 = vld [vmem:[%s15936_s1 + $0xf10] sm:$0xf0]  ;;  %v8891_v40 = vor.u32 %v10472_v53, %v8888_v17  ;;  %v10528_v51 = vld [vmem:[%s15936_s1 + $0x13e4] sm:$0xf] }
 0x158   :  { %5455 = vmatpush.bf16.msra.mxu0 %v8539_v43  ;;  %v8744_v43 = vld [vmem:[%s15936_s1 + $0x1110] sm:$0xf0]  ;;  %v8491_v57 = vor.u32 %v10372_v24, %v8488_v13  ;;  %v10592_v58 = vld [vmem:[%s15936_s1 + $0x15e4] sm:$0xf]  ;;  %v9115_v55 = vor.u32 %v10528_v51, %v9112_v52 }
 0x159   :  { %5468 = vmatpush.bf16.msra.mxu1 %v8667_v27  ;;  %v10468_v27 = vld [vmem:[%s15936_s1 + $0x1204] sm:$0xf]  ;;  %v5241_v56 = vpop.f32.mrf.mxu3  ;;  %v9240_v48 = vld [vmem:[%s15936_s1 + $0x14f0] sm:$0xf0]  ;;  %v8747_v61 = vor.u32 %v10436_v39, %v8744_v43 }
 0x15a   :  { %5481 = vmatpush.bf16.msra.mxu2 %v8795_v47  ;;  %v8872_v47 = vld [vmem:[%s15936_s1 + $0x1210] sm:$0xf0]  ;;  %v10624_v62 = vld [vmem:[%s15936_s1 + $0x16e4] sm:$0xf] }
 0x15b   :  { %5494 = vmatpush.bf16.msra.mxu3 %v8923_v54  ;;  %v10560_v54 = vld [vmem:[%s15936_s1 + $0x14e4] sm:$0xf]  ;;  %v9368_v59 = vld [vmem:[%s15936_s1 + $0x15f0] sm:$0xf0] }
 0x15c   :  { %5456 = vmatpush.bf16.msra.mxu0 %v8523_v0  ;;  %v9496_v63 = vld [vmem:[%s15936_s1 + $0x16f0] sm:$0xf0]  ;;  %v8875_v0 = vor.u32 %v10468_v27, %v8872_v47  ;;  %v10524_v5 = vld [vmem:[%s15936_s1 + $0x13c4] sm:$0xf] }
 0x15d   :  { %5469 = vmatpush.bf16.msra.mxu1 %v8651_v3  ;;  %v9243_v3 = vor.u32 %v10560_v54, %v9240_v48  ;;  %v9096_v6 = vld [vmem:[%s15936_s1 + $0x13d0] sm:$0xf0]  ;;  %v10556_v8 = vld [vmem:[%s15936_s1 + $0x14c4] sm:$0xf] }
 0x15e   :  { %5482 = vmatpush.bf16.msra.mxu2 %v8779_v4  ;;  %v9371_v4 = vor.u32 %v10592_v58, %v9368_v59  ;;  %v9224_v10 = vld [vmem:[%s15936_s1 + $0x14d0] sm:$0xf0]  ;;  %v10588_v14 = vld [vmem:[%s15936_s1 + $0x15c4] sm:$0xf] }
 0x15f   :  { %5495 = vmatpush.bf16.msra.mxu3 %v8907_v9  ;;  %v9499_v9 = vor.u32 %v10624_v62, %v9496_v63  ;;  %v9352_v15 = vld [vmem:[%s15936_s1 + $0x15d0] sm:$0xf0]  ;;  %v10620_v53 = vld [vmem:[%s15936_s1 + $0x16c4] sm:$0xf]  ;;  %v9227_v24 = vor.u32 %v10556_v8, %v9224_v10 }
 0x160   :  { %5457 = vmatpush.bf16.msra.mxu0 %v8507_v21  ;;  %v9480_v17 = vld [vmem:[%s15936_s1 + $0x16d0] sm:$0xf0]  ;;  %v9099_v21 = vor.u32 %v10524_v5, %v9096_v6  ;;  %v9355_v13 = vor.u32 %v10588_v14, %v9352_v15  ;;  %v10552_v34 = vld [vmem:[%s15936_s1 + $0x14a4] sm:$0xf] }
 0x161   :  { %5470 = vmatpush.bf16.msra.mxu1 %v8635_v26  ;;  %v10520_v26 = vld [vmem:[%s15936_s1 + $0x13a4] sm:$0xf]  ;;  %v9483_v36 = vor.u32 %v10620_v53, %v9480_v17  ;;  %v9208_v39 = vld [vmem:[%s15936_s1 + $0x14b0] sm:$0xf0] }
 0x162   :  { %5483 = vmatpush.bf16.msra.mxu2 %v8763_v32  ;;  %v9080_v32 = vld [vmem:[%s15936_s1 + $0x13b0] sm:$0xf0]  ;;  %v10616_v27 = vld [vmem:[%s15936_s1 + $0x16a4] sm:$0xf]  ;;  %v9211_v51 = vor.u32 %v10552_v34, %v9208_v39 }
 0x163   :  { %5496 = vmatpush.bf16.msra.mxu3 %v8891_v40  ;;  %v10584_v40 = vld [vmem:[%s15936_s1 + $0x15a4] sm:$0xf]  ;;  %v9336_v43 = vld [vmem:[%s15936_s1 + $0x15b0] sm:$0xf0]  ;;  %v9083_v50 = vor.u32 %v10520_v26, %v9080_v32 }
 0x164   :  { %5458 = vmatpush.bf16.msra.mxu0 %v8491_v57  ;;  %v9464_v47 = vld [vmem:[%s15936_s1 + $0x16b0] sm:$0xf0]  ;;  %v9339_v52 = vor.u32 %v10584_v40, %v9336_v43  ;;  %v10516_v54 = vld [vmem:[%s15936_s1 + $0x1384] sm:$0xf] }
 0x165   :  { %5471 = vmatpush.bf16.msra.mxu1 %v8619_v60  ;;  %v9064_v56 = vld [vmem:[%s15936_s1 + $0x1390] sm:$0xf0]  ;;  %v10548_v57 = vld [vmem:[%s15936_s1 + $0x1484] sm:$0xf]  ;;  %v9467_v48 = vor.u32 %v10616_v27, %v9464_v47  ;;  %v5265_v14 = vpop.f32.mrf.mxu1 }
 0x166   :  { %5484 = vmatpush.bf16.msra.mxu2 %v8747_v61  ;;  %v9192_v58 = vld [vmem:[%s15936_s1 + $0x1490] sm:$0xf0]  ;;  %v10580_v59 = vld [vmem:[%s15936_s1 + $0x1584] sm:$0xf]  ;;  %v5252_v61 = vpop.f32.mrf.mxu0 }
 0x167   :  { %5497 = vmatpush.bf16.msra.mxu3 %v8875_v0  ;;  %5459 = vmatmul.bf16.vlgmr.msra.gmra.mxu0 %v11640_v35  ;;  %v9320_v60 = vld [vmem:[%s15936_s1 + $0x1590] sm:$0xf0]  ;;  %v10612_v62 = vld [vmem:[%s15936_s1 + $0x1684] sm:$0xf]  ;;  %v10725_v0 = vld [vmem:[%s15938_s2] sm:$0xf]  ;;  %v9195_v5 = vor.u32 %v10548_v57, %v9192_v58 }
 0x168   :  { %5503 = vmatpush.bf16.msrb.mxu0 %v9115_v55  ;;  %5472 = vmatmul.bf16.vlgmr.msra.gmra.mxu1 %v11829_v37  ;;  %v9448_v63 = vld [vmem:[%s15936_s1 + $0x1690] sm:$0xf0]  ;;  %v836_v55 = vperm.slane %v10725_v0, 1  ;;  %v9323_v6 = vor.u32 %v10580_v59, %v9320_v60  ;;  %v10512_v8 = vld [vmem:[%s15936_s1 + $0x1364] sm:$0xf] }
 0x169   :  { %5516 = vmatpush.bf16.msrb.mxu1 %v9243_v3  ;;  %5485 = vmatmul.bf16.vlgmr.msra.gmra.mxu2 %v11842_v46  ;;  %v13123_v3 = vadd.f32 %v5252_v61, %v12969_v2  ;;  %v10544_v10 = vld [vmem:[%s15936_s1 + $0x1464] sm:$0xf]  ;;  %v9451_v2 = vor.u32 %v10612_v62, %v9448_v63  ;;  %v9176_v15 = vld [vmem:[%s15936_s1 + $0x1470] sm:$0xf0] }
 0x16a   :  { %5529 = vmatpush.bf16.msrb.mxu2 %v9371_v4  ;;  %5498 = vmatmul.bf16.vlgmr.msra.gmra.mxu3 %v11840_v45  ;;  %v9067_v4 = vor.u32 %v10516_v54, %v9064_v56  ;;  %v10576_v53 = vld [vmem:[%s15936_s1 + $0x1564] sm:$0xf]  ;;  %v9304_v17 = vld [vmem:[%s15936_s1 + $0x1570] sm:$0xf0]  ;;  %v9179_v32 = vor.u32 %v10544_v10, %v9176_v15 }
 0x16b   :  { %5542 = vmatpush.bf16.msrb.mxu3 %v9499_v9  ;;  %v9048_v9 = vld [vmem:[%s15936_s1 + $0x1370] sm:$0xf0]  ;;  %v9307_v34 = vor.u32 %v10576_v53, %v9304_v17  ;;  %v10540_v40 = vld [vmem:[%s15936_s1 + $0x1444] sm:$0xf]  ;;  %vm6231_vm0 = vcmp.gt.f32.partialorder %v13123_v3, 0.0 }
 0x16c   :  { %5504 = vmatpush.bf16.msrb.mxu0 %v9099_v21  ;;  %v10608_v21 = vld [vmem:[%s15936_s1 + $0x1664] sm:$0xf]  ;;  %v9051_v26 = vor.u32 %v10512_v8, %v9048_v9  ;;  %v9032_v39 = vld [vmem:[%s15936_s1 + $0x1350] sm:$0xf0] }
 0x16d   :  { %5517 = vmatpush.bf16.msrb.mxu1 %v9227_v24  ;;  %v9432_v24 = vld [vmem:[%s15936_s1 + $0x1670] sm:$0xf0]  ;;  %v10572_v47 = vld [vmem:[%s15936_s1 + $0x1544] sm:$0xf] }
 0x16e   :  { %5530 = vmatpush.bf16.msrb.mxu2 %v9355_v13  ;;  %v5266_v13 = vadd.f32 %v5265_v14, %v836_v55  ;;  %v9435_v43 = vor.u32 %v10608_v21, %v9432_v24  ;;  %v9160_v27 = vld [vmem:[%s15936_s1 + $0x1450] sm:$0xf0]  ;;  %v10604_v54 = vld [vmem:[%s15936_s1 + $0x1644] sm:$0xf]  ;;  %v5267_v55 = vpop.f32.mrf.mxu1 }
 0x16f   :  { %5543 = vmatpush.bf16.msrb.mxu3 %v9483_v36  ;;  %v10508_v36 = vld [vmem:[%s15936_s1 + $0x1344] sm:$0xf]  ;;  %v9416_v56 = vld [vmem:[%s15936_s1 + $0x1650] sm:$0xf0]  ;;  %v9163_v59 = vor.u32 %v10540_v40, %v9160_v27 }
 0x170   :  { %5505 = vmatpush.bf16.msrb.mxu0 %v9083_v50  ;;  %v9288_v50 = vld [vmem:[%s15936_s1 + $0x1550] sm:$0xf0]  ;;  %v9035_v58 = vor.u32 %v10508_v36, %v9032_v39  ;;  %v10504_v61 = vld [vmem:[%s15936_s1 + $0x1324] sm:$0xf] }
 0x171   :  { %5518 = vmatpush.bf16.msrb.mxu1 %v9211_v51  ;;  %v5278_v51 = vpop.f32.mrf.mxu2  ;;  %v9291_v60 = vor.u32 %v10572_v47, %v9288_v50  ;;  %v9016_v62 = vld [vmem:[%s15936_s1 + $0x1330] sm:$0xf0]  ;;  %v10536_v63 = vld [vmem:[%s15936_s1 + $0x1424] sm:$0xf] }
 0x172   :  { %5531 = vmatpush.bf16.msrb.mxu2 %v9339_v52  ;;  %v5291_v52 = vpop.f32.mrf.mxu3  ;;  %v5279_v57 = vadd.f32 %v5278_v51, %v5266_v13  ;;  %v9272_v8 = vld [vmem:[%s15936_s1 + $0x1530] sm:$0xf0]  ;;  %v10600_v9 = vld [vmem:[%s15936_s1 + $0x1624] sm:$0xf]  ;;  %v9019_v14 = vor.u32 %v10504_v61, %v9016_v62 }
 0x173   :  { %5544 = vmatpush.bf16.msrb.mxu3 %v9467_v48  ;;  %v5254_v48 = vpop.f32.mrf.mxu0  ;;  %v9400_v10 = vld [vmem:[%s15936_s1 + $0x1630] sm:$0xf0]  ;;  %v10532_v21 = vld [vmem:[%s15936_s1 + $0x1404] sm:$0xf] }
 0x174   :  { %5506 = vmatpush.bf16.msrb.mxu0 %v9067_v4  ;;  %v13182_v0 = vadd.f32 %v5291_v52, %v5279_v57  ;;  %v9419_v4 = vor.u32 %v10604_v54, %v9416_v56  ;;  %v9000_v15 = vld [vmem:[%s15936_s1 + $0x1310] sm:$0xf0]  ;;  %v10564_v13 = vld [vmem:[%s15936_s1 + $0x1504] sm:$0xf]  ;;  %v6686_v52 = vld [vmem:[%s15936_s1 + $0xe8] sm:$0xf] }
 0x175   :  { %5519 = vmatpush.bf16.msrb.mxu1 %v9195_v5  ;;  %v9144_v5 = vld [vmem:[%s15936_s1 + $0x1430] sm:$0xf0]  ;;  %v10688_v47 = vld [vmem:[%s15936_s1 + $0x18e4] sm:$0xf]  ;;  %v9923_v54 = vld [vmem:[%s15936_s1 + $0xf4] sm:$0xf0] }
 0x176   :  { %5532 = vmatpush.bf16.msrb.mxu2 %v9323_v6  ;;  %v10568_v6 = vld [vmem:[%s15936_s1 + $0x1524] sm:$0xf]  ;;  %v9147_v53 = vor.u32 %v10536_v63, %v9144_v5  ;;  %v9128_v24 = vld [vmem:[%s15936_s1 + $0x1410] sm:$0xf0]  ;;  %v6814_v48 = vld [vmem:[%s15936_s1 + $0x1e8] sm:$0xf]  ;;  %v6687_v62 = vor.u32 %v9923_v54, %v6686_v52 }
 0x177   :  { %5545 = vmatpush.bf16.msrb.mxu3 %v9451_v2  ;;  %v10500_v2 = vld [vmem:[%s15936_s1 + $0x1304] sm:$0xf]  ;;  %v9275_v17 = vor.u32 %v10568_v6, %v9272_v8  ;;  %v9384_v36 = vld [vmem:[%s15936_s1 + $0x1610] sm:$0xf0]  ;;  %v9131_v56 = vor.u32 %v10532_v21, %v9128_v24  ;;  %v6670_v8 = vld [vmem:[%s15936_s1 + $0xc8] sm:$0xf] }
 0x178   :  { %5507 = vmatpush.bf16.msrb.mxu0 %v9051_v26  ;;  %v9403_v26 = vor.u32 %v10600_v9, %v9400_v10  ;;  %v9624_v27 = vld [vmem:[%s15936_s1 + $0x17f0] sm:$0xf0]  ;;  %v9003_v50 = vor.u32 %v10500_v2, %v9000_v15  ;;  %v10652_v63 = vld [vmem:[%s15936_s1 + $0x17c4] sm:$0xf]  ;;  %v9919_v9 = vld [vmem:[%s15936_s1 + $0xd4] sm:$0xf0] }
 0x179   :  { %5520 = vmatpush.bf16.msrb.mxu1 %v9179_v32  ;;  %v9256_v32 = vld [vmem:[%s15936_s1 + $0x1510] sm:$0xf0]  ;;  %v5280_v39 = vpop.f32.mrf.mxu2  ;;  %v6798_v10 = vld [vmem:[%s15936_s1 + $0x1c8] sm:$0xf]  ;;  %v10680_v24 = vld [vmem:[%s15936_s1 + $0x18a4] sm:$0xf] }
 0x17a   :  { %5533 = vmatpush.bf16.msrb.mxu2 %v9307_v34  ;;  %v10596_v34 = vld [vmem:[%s15936_s1 + $0x1604] sm:$0xf]  ;;  %v5293_v40 = vpop.f32.mrf.mxu3  ;;  %v9752_v51 = vld [vmem:[%s15936_s1 + $0x18f0] sm:$0xf0]  ;;  %v9259_v57 = vor.u32 %v10564_v13, %v9256_v32  ;;  %v6654_v32 = vld [vmem:[%s15936_s1 + $0xa8] sm:$0xf] }
 0x17b   :  { %5546 = vmatpush.bf16.msrb.mxu3 %v9435_v43  ;;  %v10656_v43 = vld [vmem:[%s15936_s1 + $0x17e4] sm:$0xf]  ;;  %v9755_v61 = vor.u32 %v10688_v47, %v9752_v51  ;;  %v9608_v55 = vld [vmem:[%s15936_s1 + $0x17d0] sm:$0xf0]  ;;  %v9947_v39 = vld [vmem:[%s15936_s1 + $0x1b4] sm:$0xf0] }
 0x17c   :  { %5508 = vmatpush.bf16.msrb.mxu0 %v9035_v58  ;;  %v9955_v58 = vld [vmem:[%s15936_s1 + $0x1f4] sm:$0xf0]  ;;  %v9736_v6 = vld [vmem:[%s15936_s1 + $0x18d0] sm:$0xf0]  ;;  %v9611_v2 = vor.u32 %v10652_v63, %v9608_v55  ;;  %v10644_v47 = vld [vmem:[%s15936_s1 + $0x1784] sm:$0xf] }
 0x17d   :  { %5521 = vmatpush.bf16.msrb.mxu1 %v9163_v59  ;;  %v9387_v59 = vor.u32 %v10596_v34, %v9384_v36  ;;  %v6815_v5 = vor.u32 %v9955_v58, %v6814_v48  ;;  %v9592_v21 = vld [vmem:[%s15936_s1 + $0x17b0] sm:$0xf0]  ;;  %v9915_v34 = vld [vmem:[%s15936_s1 + $0xb4] sm:$0xf0]  ;;  %v6782_v36 = vld [vmem:[%s15936_s1 + $0x1a8] sm:$0xf] }
 0x17e   :  { %5534 = vmatpush.bf16.msrb.mxu2 %v9291_v60  ;;  %v9627_v60 = vor.u32 %v10656_v43, %v9624_v27  ;;  %v6655_v27 = vor.u32 %v9915_v34, %v6654_v32  ;;  %v10676_v51 = vld [vmem:[%s15936_s1 + $0x1884] sm:$0xf]  ;;  %v6783_v52 = vor.u32 %v9947_v39, %v6782_v36  ;;  %v9704_v54 = vld [vmem:[%s15936_s1 + $0x1890] sm:$0xf0]  ;;  %v6766_v48 = vld [vmem:[%s15936_s1 + $0x188] sm:$0xf] }
 0x17f   :  { %5547 = vmatpush.bf16.msrb.mxu3 %v9419_v4  ;;  %v10684_v4 = vld [vmem:[%s15936_s1 + $0x18c4] sm:$0xf]  ;;  %v9943_v58 = vld [vmem:[%s15936_s1 + $0x194] sm:$0xf0]  ;;  %v9560_v55 = vld [vmem:[%s15936_s1 + $0x1770] sm:$0xf0] }
 0x180   :  { %5509 = vmatpush.bf16.msrb.mxu0 %v9019_v14  ;;  %v9951_v14 = vld [vmem:[%s15936_s1 + $0x1d4] sm:$0xf0]  ;;  %v9739_v15 = vor.u32 %v10684_v4, %v9736_v6  ;;  %v10640_v63 = vld [vmem:[%s15936_s1 + $0x1764] sm:$0xf]  ;;  %v9672_v36 = vld [vmem:[%s15936_s1 + $0x1850] sm:$0xf0] }
 0x181   :  { %5522 = vmatpush.bf16.msrb.mxu1 %v9147_v53  ;;  %v6671_v53 = vor.u32 %v9919_v9, %v6670_v8  ;;  %v6799_v13 = vor.u32 %v9951_v14, %v6798_v10  ;;  %v10672_v4 = vld [vmem:[%s15936_s1 + $0x1864] sm:$0xf]  ;;  %v6767_v8 = vor.u32 %v9943_v58, %v6766_v48  ;;  %v9688_v9 = vld [vmem:[%s15936_s1 + $0x1870] sm:$0xf0]  ;;  %v6622_v10 = vld [vmem:[%s15936_s1 + $0x68] sm:$0xf] }
 0x182   :  { %5535 = vmatpush.bf16.msrb.mxu2 %v9275_v17  ;;  %v10648_v17 = vld [vmem:[%s15936_s1 + $0x17a4] sm:$0xf]  ;;  %v9907_v14 = vld [vmem:[%s15936_s1 + $0x74] sm:$0xf0]  ;;  %v6606_v39 = vld [vmem:[%s15936_s1 + $0x48] sm:$0xf] }
 0x183   :  { %5548 = vmatpush.bf16.msrb.mxu3 %v9403_v26  ;;  %v9720_v26 = vld [vmem:[%s15936_s1 + $0x18b0] sm:$0xf0]  ;;  %v9595_v40 = vor.u32 %v10648_v17, %v9592_v21  ;;  %v9691_v17 = vor.u32 %v10672_v4, %v9688_v9  ;;  %v6623_v21 = vor.u32 %v9907_v14, %v6622_v10  ;;  %v10632_v48 = vld [vmem:[%s15936_s1 + $0x1724] sm:$0xf]  ;;  %v6718_v4 = vld [vmem:[%s15936_s1 + $0x128] sm:$0xf] }
 0x184   :  { %5510 = vmatpush.bf16.msrb.mxu0 %v9003_v50  ;;  %v9723_v43 = vor.u32 %v10680_v24, %v9720_v26  ;;  %v9576_v50 = vld [vmem:[%s15936_s1 + $0x1790] sm:$0xf0]  ;;  %v10636_v24 = vld [vmem:[%s15936_s1 + $0x1744] sm:$0xf] }
 0x185   :  { %5523 = vmatpush.bf16.msrb.mxu1 %v9131_v56  ;;  %v6638_v56 = vld [vmem:[%s15936_s1 + $0x88] sm:$0xf]  ;;  %v5317_v6 = vpop.f32.mrf.mxu1  ;;  %v10668_v26 = vld [vmem:[%s15936_s1 + $0x1844] sm:$0xf]  ;;  %v9528_v58 = vld [vmem:[%s15936_s1 + $0x1730] sm:$0xf0] }
 0x186   :  { %5536 = vmatpush.bf16.msrb.mxu2 %v9259_v57  ;;  %v9911_v57 = vld [vmem:[%s15936_s1 + $0x94] sm:$0xf0]  ;;  %v9512_v9 = vld [vmem:[%s15936_s1 + $0x1710] sm:$0xf0] }
 0x187   :  { %5549 = vmatpush.bf16.msrb.mxu3 %v9387_v59  ;;  %5511 = vmatmul.bf16.vlgmr.msrb.gmra.mxu0 %v11850_v49  ;;  %v9579_v59 = vor.u32 %v10644_v47, %v9576_v50  ;;  %v6734_v47 = vld [vmem:[%s15936_s1 + $0x148] sm:$0xf]  ;;  %v9935_v50 = vld [vmem:[%s15936_s1 + $0x154] sm:$0xf0] }
 0x188   :  { %5555 = vmatpush.bf16.msra.mxu0 %v9627_v60  ;;  %5524 = vmatmul.bf16.vlgmr.msrb.gmra.mxu1 %v12044_v7  ;;  %v5304_v60 = vpop.f32.mrf.mxu0 }
 0x189   :  { %5568 = vmatpush.bf16.msra.mxu1 %v9755_v61  ;;  %5537 = vmatmul.bf16.vlgmr.msrb.gmra.mxu2 %v12057_v12  ;;  %v9707_v61 = vor.u32 %v10676_v51, %v9704_v54 }
 0x18a   :  { %5581 = vmatpush.bf16.msra.mxu2 %v6687_v62  ;;  %5550 = vmatmul.bf16.vlgmr.msrb.gmra.mxu3 %v12055_v11  ;;  %v6639_v62 = vor.u32 %v9911_v57, %v6638_v56  ;;  %v9675_v56 = vor.u32 %v10668_v26, %v9672_v36  ;;  %v7070_v36 = vld [vmem:[%s15936_s1 + $0x3e8] sm:$0xf] }
 0x18b   :  { %5594 = vmatpush.bf16.msra.mxu3 %v6815_v5  ;;  %v5305_v5 = vadd.f32 %v5304_v60, %v13182_v0  ;;  %v9939_v0 = vld [vmem:[%s15936_s1 + $0x174] sm:$0xf0] }
 0x18c   :  { %5556 = vmatpush.bf16.msra.mxu0 %v9611_v2  ;;  %v6750_v2 = vld [vmem:[%s15936_s1 + $0x168] sm:$0xf]  ;;  %v5330_v32 = vpop.f32.mrf.mxu2 }
 0x18d   :  { %5569 = vmatpush.bf16.msra.mxu1 %v9739_v15  ;;  %v5318_v15 = vadd.f32 %v5317_v6, %v5305_v5  ;;  %v6751_v34 = vor.u32 %v9939_v0, %v6750_v2  ;;  %v5319_v60 = vpop.f32.mrf.mxu1  ;;  %v9931_v5 = vld [vmem:[%s15936_s1 + $0x134] sm:$0xf0]  ;;  %v9531_v6 = vor.u32 %v10632_v48, %v9528_v58  ;;  %v10660_v2 = vld [vmem:[%s15936_s1 + $0x1804] sm:$0xf]  ;;  %v9640_v0 = vld [vmem:[%s15936_s1 + $0x1810] sm:$0xf0] }
 0x18e   :  { %5582 = vmatpush.bf16.msra.mxu2 %v6671_v53  ;;  %v9563_v53 = vor.u32 %v10640_v63, %v9560_v55  ;;  %v6590_v63 = vld [vmem:[%s15936_s1 + $0x28] sm:$0xf]  ;;  %v9899_v55 = vld [vmem:[%s15936_s1 + $0x34] sm:$0xf0] }
 0x18f   :  { %5595 = vmatpush.bf16.msra.mxu3 %v6799_v13  ;;  %v9544_v13 = vld [vmem:[%s15936_s1 + $0x1750] sm:$0xf0]  ;;  %v6591_v14 = vor.u32 %v9899_v55, %v6590_v63  ;;  %v9983_v60 = vld [vmem:[%s15936_s1 + $0x2d4] sm:$0xf0]  ;;  %v7182_v55 = vld [vmem:[%s15936_s1 + $0x4c8] sm:$0xf] }
 0x190   :  { %5557 = vmatpush.bf16.msra.mxu0 %v9595_v40  ;;  %v9903_v40 = vld [vmem:[%s15936_s1 + $0x54] sm:$0xf0]  ;;  %v9547_v51 = vor.u32 %v10636_v24, %v9544_v13  ;;  %v5306_v54 = vpop.f32.mrf.mxu0  ;;  %v6702_v24 = vld [vmem:[%s15936_s1 + $0x108] sm:$0xf] }
 0x191   :  { %5570 = vmatpush.bf16.msra.mxu1 %v9723_v43  ;;  %v5331_v43 = vadd.f32 %v5330_v32, %v5318_v15  ;;  %v6607_v57 = vor.u32 %v9903_v40, %v6606_v39  ;;  %v6574_v15 = vld [vmem:[%s15936_s1 + $0x8] sm:$0xf]  ;;  %v9927_v13 = vld [vmem:[%s15936_s1 + $0x114] sm:$0xf0] }
 0x192   :  { %5583 = vmatpush.bf16.msra.mxu2 %v6655_v27  ;;  %v5343_v27 = vpop.f32.mrf.mxu3  ;;  %v6942_v32 = vld [vmem:[%s15936_s1 + $0x2e8] sm:$0xf]  ;;  %v10019_v40 = vld [vmem:[%s15936_s1 + $0x3f4] sm:$0xf0] }
 0x193   :  { %5596 = vmatpush.bf16.msra.mxu3 %v6783_v52  ;;  %v13372_v52 = vadd.f32 %v5343_v27, %v5331_v43  ;;  %v7198_v43 = vld [vmem:[%s15936_s1 + $0x4e8] sm:$0xf]  ;;  %v10051_v27 = vld [vmem:[%s15936_s1 + $0x4f4] sm:$0xf0]  ;;  %v7071_v48 = vor.u32 %v10019_v40, %v7070_v36 }
 0x194   :  { %5558 = vmatpush.bf16.msra.mxu0 %v9579_v59  ;;  %v10664_v59 = vld [vmem:[%s15936_s1 + $0x1824] sm:$0xf]  ;;  %v10083_v54 = vld [vmem:[%s15936_s1 + $0x5f4] sm:$0xf0]  ;;  %v7199_v58 = vor.u32 %v10051_v27, %v7198_v43  ;;  %v6894_v36 = vld [vmem:[%s15936_s1 + $0x288] sm:$0xf] }
 0x195   :  { %5571 = vmatpush.bf16.msra.mxu1 %v9707_v61  ;;  %v6735_v61 = vor.u32 %v9935_v50, %v6734_v47  ;;  %v9643_v47 = vor.u32 %v10660_v2, %v9640_v0  ;;  %v10015_v63 = vld [vmem:[%s15936_s1 + $0x3d4] sm:$0xf0]  ;;  %v7038_v0 = vld [vmem:[%s15936_s1 + $0x3a8] sm:$0xf] }
 0x196   :  { %5584 = vmatpush.bf16.msra.mxu2 %v6639_v62  ;;  %v9656_v62 = vld [vmem:[%s15936_s1 + $0x1830] sm:$0xf0]  ;;  %v9979_v2 = vld [vmem:[%s15936_s1 + $0x2b4] sm:$0xf0]  ;;  %v7022_v40 = vld [vmem:[%s15936_s1 + $0x388] sm:$0xf] }
 0x197   :  { %5597 = vmatpush.bf16.msra.mxu3 %v6767_v8  ;;  %v10628_v8 = vld [vmem:[%s15936_s1 + $0x1704] sm:$0xf]  ;;  %v9659_v10 = vor.u32 %v10664_v59, %v9656_v62  ;;  %v6926_v59 = vld [vmem:[%s15936_s1 + $0x2c8] sm:$0xf]  ;;  %v10007_v27 = vld [vmem:[%s15936_s1 + $0x394] sm:$0xf0] }
 0x198   :  { %5559 = vmatpush.bf16.msra.mxu0 %v9563_v53  ;;  %v5332_v53 = vpop.f32.mrf.mxu2  ;;  %v9515_v39 = vor.u32 %v10628_v8, %v9512_v9  ;;  %v6927_v8 = vor.u32 %v9983_v60, %v6926_v59  ;;  %v7023_v59 = vor.u32 %v10007_v27, %v7022_v40 }
 0x199   :  { %5572 = vmatpush.bf16.msra.mxu1 %v9691_v17  ;;  %v6719_v17 = vor.u32 %v9931_v5, %v6718_v4  ;;  %v10047_v4 = vld [vmem:[%s15936_s1 + $0x4d4] sm:$0xf0]  ;;  %v7310_v5 = vld [vmem:[%s15936_s1 + $0x5c8] sm:$0xf] }
 0x19a   :  { %5585 = vmatpush.bf16.msra.mxu2 %v6623_v21  ;;  %v9895_v21 = vld [vmem:[%s15936_s1 + $0x14] sm:$0xf0]  ;;  %v5345_v26 = vpop.f32.mrf.mxu3 }
 0x19b   :  { %5598 = vmatpush.bf16.msra.mxu3 %v6751_v34  ;;  %v9987_v34 = vld [vmem:[%s15936_s1 + $0x2f4] sm:$0xf0]  ;;  %v6575_v50 = vor.u32 %v9895_v21, %v6574_v15 }
 0x19c   :  { %5560 = vmatpush.bf16.msra.mxu0 %v9547_v51  ;;  %v7326_v51 = vld [vmem:[%s15936_s1 + $0x5e8] sm:$0xf]  ;;  %v10011_v53 = vld [vmem:[%s15936_s1 + $0x3b4] sm:$0xf0] }
 0x19d   :  { %5573 = vmatpush.bf16.msra.mxu1 %v9675_v56  ;;  %v6703_v56 = vor.u32 %v9927_v13, %v6702_v24  ;;  %v7327_v62 = vor.u32 %v10083_v54, %v7326_v51  ;;  %v10043_v21 = vld [vmem:[%s15936_s1 + $0x4b4] sm:$0xf0]  ;;  %v7294_v24 = vld [vmem:[%s15936_s1 + $0x5a8] sm:$0xf] }
 0x19e   :  { %5586 = vmatpush.bf16.msra.mxu2 %v6607_v57  ;;  %v6943_v57 = vor.u32 %v9987_v34, %v6942_v32  ;;  %v10075_v13 = vld [vmem:[%s15936_s1 + $0x5b4] sm:$0xf0]  ;;  %v7039_v32 = vor.u32 %v10011_v53, %v7038_v0  ;;  %v7278_v54 = vld [vmem:[%s15936_s1 + $0x588] sm:$0xf] }
 0x19f   :  { %5599 = vmatpush.bf16.msra.mxu3 %v6735_v61  ;;  %v7054_v61 = vld [vmem:[%s15936_s1 + $0x3c8] sm:$0xf]  ;;  %v7295_v43 = vor.u32 %v10075_v13, %v7294_v24  ;;  %v9999_v24 = vld [vmem:[%s15936_s1 + $0x354] sm:$0xf0] }
 0x1a0   :  { %5561 = vmatpush.bf16.msra.mxu0 %v9531_v6  ;;  %v10079_v6 = vld [vmem:[%s15936_s1 + $0x5d4] sm:$0xf0]  ;;  %v7055_v9 = vor.u32 %v10015_v63, %v7054_v61  ;;  %v6878_v61 = vld [vmem:[%s15936_s1 + $0x268] sm:$0xf] }
 0x1a1   :  { %5574 = vmatpush.bf16.msra.mxu1 %v9659_v10  ;;  %v7183_v10 = vor.u32 %v10047_v4, %v7182_v55  ;;  %v7311_v15 = vor.u32 %v10079_v6, %v7310_v5  ;;  %v7006_v63 = vld [vmem:[%s15936_s1 + $0x368] sm:$0xf]  ;;  %v10003_v4 = vld [vmem:[%s15936_s1 + $0x374] sm:$0xf0] }
 0x1a2   :  { %5587 = vmatpush.bf16.msra.mxu2 %v6591_v14  ;;  %v6910_v14 = vld [vmem:[%s15936_s1 + $0x2a8] sm:$0xf]  ;;  %v10035_v6 = vld [vmem:[%s15936_s1 + $0x474] sm:$0xf0] }
 0x1a3   :  { %5600 = vmatpush.bf16.msra.mxu3 %v6719_v17  ;;  %v7166_v17 = vld [vmem:[%s15936_s1 + $0x4a8] sm:$0xf]  ;;  %v6911_v26 = vor.u32 %v9979_v2, %v6910_v14  ;;  %v7007_v14 = vor.u32 %v10003_v4, %v7006_v63 }
 0x1a4   :  { %5562 = vmatpush.bf16.msra.mxu0 %v9515_v39  ;;  %v7167_v34 = vor.u32 %v10043_v21, %v7166_v17  ;;  %v9975_v39 = vld [vmem:[%s15936_s1 + $0x294] sm:$0xf0]  ;;  %v5356_v51 = vpop.f32.mrf.mxu0  ;;  %v7134_v5 = vld [vmem:[%s15936_s1 + $0x468] sm:$0xf] }
 0x1a5   :  { %5575 = vmatpush.bf16.msra.mxu1 %v9643_v47  ;;  %v7150_v47 = vld [vmem:[%s15936_s1 + $0x488] sm:$0xf]  ;;  %v7135_v2 = vor.u32 %v10035_v6, %v7134_v5 }
 0x1a6   :  { %5588 = vmatpush.bf16.msra.mxu2 %v6575_v50  ;;  %v10039_v50 = vld [vmem:[%s15936_s1 + $0x494] sm:$0xf0]  ;;  %v6862_v0 = vld [vmem:[%s15936_s1 + $0x248] sm:$0xf] }
 0x1a7   :  { %5601 = vmatpush.bf16.msra.mxu3 %v6703_v56  ;;  %5563 = vmatmul.bf16.vlgmr.msra.gmra.mxu0 %v12065_v16  ;;  %v10071_v56 = vld [vmem:[%s15936_s1 + $0x594] sm:$0xf0]  ;;  %v7151_v60 = vor.u32 %v10039_v50, %v7150_v47  ;;  %v6990_v53 = vld [vmem:[%s15936_s1 + $0x348] sm:$0xf] }
 0x1a8   :  { %5607 = vmatpush.bf16.msrb.mxu0 %v6943_v57  ;;  %5576 = vmatmul.bf16.vlgmr.msra.gmra.mxu1 %v12254_v1  ;;  %v5357_v57 = vadd.f32 %v5356_v51, %v13372_v52  ;;  %v7279_v52 = vor.u32 %v10071_v56, %v7278_v54  ;;  %v7118_v13 = vld [vmem:[%s15936_s1 + $0x448] sm:$0xf]  ;;  %v6991_v50 = vor.u32 %v9999_v24, %v6990_v53  ;;  %v9963_v56 = vld [vmem:[%s15936_s1 + $0x234] sm:$0xf0] }
 0x1a9   :  { %5620 = vmatpush.bf16.msrb.mxu1 %v7071_v48  ;;  %5589 = vmatmul.bf16.vlgmr.msra.gmra.mxu2 %v11054_v19  ;;  %v6895_v48 = vor.u32 %v9975_v39, %v6894_v36  ;;  %v7246_v36 = vld [vmem:[%s15936_s1 + $0x548] sm:$0xf]  ;;  %v10063_v39 = vld [vmem:[%s15936_s1 + $0x554] sm:$0xf0] }
 0x1aa   :  { %5633 = vmatpush.bf16.msrb.mxu2 %v7199_v58  ;;  %5602 = vmatmul.bf16.vlgmr.msra.gmra.mxu3 %v11058_v22  ;;  %v5369_v58 = vpop.f32.mrf.mxu1  ;;  %v6846_v54 = vld [vmem:[%s15936_s1 + $0x228] sm:$0xf] }
 0x1ab   :  { %5646 = vmatpush.bf16.msrb.mxu3 %v7327_v62  ;;  %v9971_v62 = vld [vmem:[%s15936_s1 + $0x274] sm:$0xf0]  ;;  %v5370_v55 = vadd.f32 %v5369_v58, %v5357_v57  ;;  %v6974_v57 = vld [vmem:[%s15936_s1 + $0x328] sm:$0xf]  ;;  %v6847_v63 = vor.u32 %v9963_v56, %v6846_v54 }
 0x1ac   :  { %5608 = vmatpush.bf16.msrb.mxu0 %v6927_v8  ;;  %v7262_v8 = vld [vmem:[%s15936_s1 + $0x568] sm:$0xf]  ;;  %v5382_v21 = vpop.f32.mrf.mxu2  ;;  %v5358_v40 = vpop.f32.mrf.mxu0  ;;  %v9995_v58 = vld [vmem:[%s15936_s1 + $0x334] sm:$0xf0] }
 0x1ad   :  { %5621 = vmatpush.bf16.msrb.mxu1 %v7055_v9  ;;  %v10067_v9 = vld [vmem:[%s15936_s1 + $0x574] sm:$0xf0]  ;;  %v6975_v4 = vor.u32 %v9995_v58, %v6974_v57  ;;  %v6958_v6 = vld [vmem:[%s15936_s1 + $0x308] sm:$0xf] }
 0x1ae   :  { %5634 = vmatpush.bf16.msrb.mxu2 %v7183_v10  ;;  %v6879_v10 = vor.u32 %v9971_v62, %v6878_v61  ;;  %v7263_v17 = vor.u32 %v10067_v9, %v7262_v8  ;;  %v7230_v61 = vld [vmem:[%s15936_s1 + $0x528] sm:$0xf]  ;;  %v10059_v62 = vld [vmem:[%s15936_s1 + $0x534] sm:$0xf0] }
 0x1af   :  { %5647 = vmatpush.bf16.msrb.mxu3 %v7311_v15  ;;  %v9967_v15 = vld [vmem:[%s15936_s1 + $0x254] sm:$0xf0]  ;;  %v7086_v9 = vld [vmem:[%s15936_s1 + $0x408] sm:$0xf] }
 0x1b0   :  { %5609 = vmatpush.bf16.msrb.mxu0 %v6911_v26  ;;  %v10031_v26 = vld [vmem:[%s15936_s1 + $0x454] sm:$0xf0]  ;;  %v7454_v53 = vld [vmem:[%s15936_s1 + $0x6e8] sm:$0xf] }
 0x1b1   :  { %5622 = vmatpush.bf16.msrb.mxu1 %v7039_v32  ;;  %v5383_v32 = vadd.f32 %v5382_v21, %v5370_v55  ;;  %v7119_v51 = vor.u32 %v10031_v26, %v7118_v13  ;;  %v9959_v55 = vld [vmem:[%s15936_s1 + $0x214] sm:$0xf0]  ;;  %v7582_v21 = vld [vmem:[%s15936_s1 + $0x7e8] sm:$0xf] }
 0x1b2   :  { %5635 = vmatpush.bf16.msrb.mxu2 %v7167_v34  ;;  %v5395_v34 = vpop.f32.mrf.mxu3  ;;  %v5371_v27 = vpop.f32.mrf.mxu1  ;;  %v9991_v8 = vld [vmem:[%s15936_s1 + $0x314] sm:$0xf0]  ;;  %v7838_v40 = vld [vmem:[%s15936_s1 + $0x9e8] sm:$0xf] }
 0x1b3   :  { %5648 = vmatpush.bf16.msrb.mxu3 %v7295_v43  ;;  %v6863_v43 = vor.u32 %v9967_v15, %v6862_v0  ;;  %v13571_v47 = vadd.f32 %v5395_v34, %v5383_v32  ;;  %v10055_v0 = vld [vmem:[%s15936_s1 + $0x514] sm:$0xf0]  ;;  %v7710_v32 = vld [vmem:[%s15936_s1 + $0x8e8] sm:$0xf] }
 0x1b4   :  { %5610 = vmatpush.bf16.msrb.mxu0 %v6895_v48  ;;  %v7247_v48 = vor.u32 %v10063_v39, %v7246_v36  ;;  %v5384_v15 = vpop.f32.mrf.mxu2  ;;  %v10147_v26 = vld [vmem:[%s15936_s1 + $0x7f4] sm:$0xf0]  ;;  %v6959_v36 = vor.u32 %v9991_v8, %v6958_v6  ;;  %v7438_v56 = vld [vmem:[%s15936_s1 + $0x6c8] sm:$0xf] }
 0x1b5   :  { %5623 = vmatpush.bf16.msrb.mxu1 %v7023_v59  ;;  %v7102_v59 = vld [vmem:[%s15936_s1 + $0x428] sm:$0xf]  ;;  %v10179_v34 = vld [vmem:[%s15936_s1 + $0x8f4] sm:$0xf0] }
 0x1b6   :  { %5636 = vmatpush.bf16.msrb.mxu2 %v7151_v60  ;;  %v10027_v60 = vld [vmem:[%s15936_s1 + $0x434] sm:$0xf0]  ;;  %v7711_v54 = vor.u32 %v10179_v34, %v7710_v32  ;;  %v7550_v8 = vld [vmem:[%s15936_s1 + $0x7a8] sm:$0xf] }
 0x1b7   :  { %5649 = vmatpush.bf16.msrb.mxu3 %v7279_v52  ;;  %v6830_v52 = vld [vmem:[%s15936_s1 + $0x208] sm:$0xf]  ;;  %v7103_v5 = vor.u32 %v10027_v60, %v7102_v59  ;;  %v10111_v57 = vld [vmem:[%s15936_s1 + $0x6d4] sm:$0xf0] }
 0x1b8   :  { %5611 = vmatpush.bf16.msrb.mxu0 %v6879_v10  ;;  %v7231_v10 = vor.u32 %v10059_v62, %v7230_v61  ;;  %v6831_v13 = vor.u32 %v9959_v55, %v6830_v52  ;;  %v10143_v59 = vld [vmem:[%s15936_s1 + $0x7d4] sm:$0xf0]  ;;  %v7694_v60 = vld [vmem:[%s15936_s1 + $0x8c8] sm:$0xf]  ;;  %v7439_v52 = vor.u32 %v10111_v57, %v7438_v56 }
 0x1b9   :  { %5624 = vmatpush.bf16.msrb.mxu1 %v7007_v14  ;;  %v10023_v14 = vld [vmem:[%s15936_s1 + $0x414] sm:$0xf0]  ;;  %v7822_v62 = vld [vmem:[%s15936_s1 + $0x9c8] sm:$0xf] }
 0x1ba   :  { %5637 = vmatpush.bf16.msrb.mxu2 %v7135_v2  ;;  %v7214_v2 = vld [vmem:[%s15936_s1 + $0x508] sm:$0xf]  ;;  %v5397_v24 = vpop.f32.mrf.mxu3  ;;  %v7087_v39 = vor.u32 %v10023_v14, %v7086_v9  ;;  %v10175_v61 = vld [vmem:[%s15936_s1 + $0x8d4] sm:$0xf0] }
 0x1bb   :  { %5650 = vmatpush.bf16.msrb.mxu3 %v7263_v17  ;;  %v10115_v17 = vld [vmem:[%s15936_s1 + $0x6f4] sm:$0xf0]  ;;  %v7215_v27 = vor.u32 %v10055_v0, %v7214_v2  ;;  %v7678_v14 = vld [vmem:[%s15936_s1 + $0x8a8] sm:$0xf] }
 0x1bc   :  { %5612 = vmatpush.bf16.msrb.mxu0 %v6863_v43  ;;  %v10211_v43 = vld [vmem:[%s15936_s1 + $0x9f4] sm:$0xf0]  ;;  %v7806_v0 = vld [vmem:[%s15936_s1 + $0x9a8] sm:$0xf] }
 0x1bd   :  { %5625 = vmatpush.bf16.msrb.mxu1 %v6991_v50  ;;  %v7455_v50 = vor.u32 %v10115_v17, %v7454_v53  ;;  %v7839_v58 = vor.u32 %v10211_v43, %v7838_v40  ;;  %v10107_v6 = vld [vmem:[%s15936_s1 + $0x6b4] sm:$0xf0]  ;;  %v7406_v24 = vld [vmem:[%s15936_s1 + $0x688] sm:$0xf] }
 0x1be   :  { %5638 = vmatpush.bf16.msrb.mxu2 %v7119_v51  ;;  %v7583_v51 = vor.u32 %v10147_v26, %v7582_v21  ;;  %v10171_v2 = vld [vmem:[%s15936_s1 + $0x8b4] sm:$0xf0]  ;;  %v7534_v26 = vld [vmem:[%s15936_s1 + $0x788] sm:$0xf] }
 0x1bf   :  { %5651 = vmatpush.bf16.msrb.mxu3 %v7247_v48  ;;  %v7566_v48 = vld [vmem:[%s15936_s1 + $0x7c8] sm:$0xf]  ;;  %v10203_v15 = vld [vmem:[%s15936_s1 + $0x9b4] sm:$0xf0]  ;;  %v7679_v21 = vor.u32 %v10171_v2, %v7678_v14 }
 0x1c0   :  { %5613 = vmatpush.bf16.msrb.mxu0 %v6847_v63  ;;  %v10207_v63 = vld [vmem:[%s15936_s1 + $0x9d4] sm:$0xf0]  ;;  %v7567_v55 = vor.u32 %v10143_v59, %v7566_v48  ;;  %v7807_v32 = vor.u32 %v10203_v15, %v7806_v0  ;;  %v7790_v43 = vld [vmem:[%s15936_s1 + $0x988] sm:$0xf] }
 0x1c1   :  { %5626 = vmatpush.bf16.msrb.mxu1 %v6975_v4  ;;  %v7695_v4 = vor.u32 %v10175_v61, %v7694_v60  ;;  %v7823_v9 = vor.u32 %v10207_v63, %v7822_v62  ;;  %v10135_v34 = vld [vmem:[%s15936_s1 + $0x794] sm:$0xf0]  ;;  %v7390_v48 = vld [vmem:[%s15936_s1 + $0x668] sm:$0xf] }
 0x1c2   :  { %5639 = vmatpush.bf16.msrb.mxu2 %v7103_v5  ;;  %v7422_v5 = vld [vmem:[%s15936_s1 + $0x6a8] sm:$0xf]  ;;  %v7535_v56 = vor.u32 %v10135_v34, %v7534_v26  ;;  %v10131_v61 = vld [vmem:[%s15936_s1 + $0x774] sm:$0xf0] }
 0x1c3   :  { %5652 = vmatpush.bf16.msrb.mxu3 %v7231_v10  ;;  %v10139_v10 = vld [vmem:[%s15936_s1 + $0x7b4] sm:$0xf0]  ;;  %v7423_v53 = vor.u32 %v10107_v6, %v7422_v5  ;;  %v7518_v59 = vld [vmem:[%s15936_s1 + $0x768] sm:$0xf] }
 0x1c4   :  { %5614 = vmatpush.bf16.msrb.mxu0 %v6831_v13  ;;  %v7551_v17 = vor.u32 %v10139_v10, %v7550_v8  ;;  %v10103_v13 = vld [vmem:[%s15936_s1 + $0x694] sm:$0xf0]  ;;  %v5408_v40 = vpop.f32.mrf.mxu0  ;;  %v7646_v62 = vld [vmem:[%s15936_s1 + $0x868] sm:$0xf]  ;;  %v7519_v5 = vor.u32 %v10131_v61, %v7518_v59 }
 0x1c5   :  { %5627 = vmatpush.bf16.msrb.mxu1 %v6959_v36  ;;  %v7662_v36 = vld [vmem:[%s15936_s1 + $0x888] sm:$0xf]  ;;  %v10163_v63 = vld [vmem:[%s15936_s1 + $0x874] sm:$0xf0] }
 0x1c6   :  { %5640 = vmatpush.bf16.msrb.mxu2 %v7087_v39  ;;  %v10167_v39 = vld [vmem:[%s15936_s1 + $0x894] sm:$0xf0]  ;;  %v7647_v6 = vor.u32 %v10163_v63, %v7646_v62  ;;  %v7374_v8 = vld [vmem:[%s15936_s1 + $0x648] sm:$0xf] }
 0x1c7   :  { %5653 = vmatpush.bf16.msrb.mxu3 %v7215_v27  ;;  %5615 = vmatmul.bf16.vlgmr.msrb.gmra.mxu0 %v11052_v18  ;;  %v10199_v27 = vld [vmem:[%s15936_s1 + $0x994] sm:$0xf0]  ;;  %v7663_v57 = vor.u32 %v10167_v39, %v7662_v36  ;;  %v7502_v10 = vld [vmem:[%s15936_s1 + $0x748] sm:$0xf] }
 0x1c8   :  { %5659 = vmatpush.bf16.msra.mxu0 %v7455_v50  ;;  %5628 = vmatmul.bf16.vlgmr.msrb.gmra.mxu1 %v11056_v20  ;;  %v5409_v50 = vadd.f32 %v5408_v40, %v13571_v47  ;;  %v7791_v47 = vor.u32 %v10199_v27, %v7790_v43  ;;  %v10127_v0 = vld [vmem:[%s15936_s1 + $0x754] sm:$0xf0]  ;;  %v7630_v15 = vld [vmem:[%s15936_s1 + $0x848] sm:$0xf] }
 0x1c9   :  { %5672 = vmatpush.bf16.msra.mxu1 %v7583_v51  ;;  %5641 = vmatmul.bf16.vlgmr.msrb.gmra.mxu2 %v11216_v41  ;;  %v7407_v51 = vor.u32 %v10103_v13, %v7406_v24  ;;  %v7758_v24 = vld [vmem:[%s15936_s1 + $0x948] sm:$0xf]  ;;  %v10191_v13 = vld [vmem:[%s15936_s1 + $0x954] sm:$0xf0]  ;;  %v7503_v39 = vor.u32 %v10127_v0, %v7502_v10 }
 0x1ca   :  { %5685 = vmatpush.bf16.msra.mxu2 %v7711_v54  ;;  %5654 = vmatmul.bf16.vlgmr.msrb.gmra.mxu3 %v11220_v44  ;;  %v5421_v54 = vpop.f32.mrf.mxu1  ;;  %v7358_v43 = vld [vmem:[%s15936_s1 + $0x628] sm:$0xf]  ;;  %v10091_v27 = vld [vmem:[%s15936_s1 + $0x634] sm:$0xf0] }
 0x1cb   :  { %5698 = vmatpush.bf16.msra.mxu3 %v7839_v58  ;;  %v10099_v58 = vld [vmem:[%s15936_s1 + $0x674] sm:$0xf0]  ;;  %v5422_v60 = vadd.f32 %v5421_v54, %v5409_v50  ;;  %v7486_v50 = vld [vmem:[%s15936_s1 + $0x728] sm:$0xf]  ;;  %v7359_v59 = vor.u32 %v10091_v27, %v7358_v43 }
 0x1cc   :  { %5660 = vmatpush.bf16.msra.mxu0 %v7439_v52  ;;  %v7774_v52 = vld [vmem:[%s15936_s1 + $0x968] sm:$0xf]  ;;  %v5434_v2 = vpop.f32.mrf.mxu2  ;;  %v5410_v26 = vpop.f32.mrf.mxu0  ;;  %v10123_v54 = vld [vmem:[%s15936_s1 + $0x734] sm:$0xf0] }
 0x1cd   :  { %5673 = vmatpush.bf16.msra.mxu1 %v7567_v55  ;;  %v10195_v55 = vld [vmem:[%s15936_s1 + $0x974] sm:$0xf0]  ;;  %v7487_v61 = vor.u32 %v10123_v54, %v7486_v50  ;;  %v7470_v63 = vld [vmem:[%s15936_s1 + $0x708] sm:$0xf] }
 0x1ce   :  { %5686 = vmatpush.bf16.msra.mxu2 %v7695_v4  ;;  %v7391_v4 = vor.u32 %v10099_v58, %v7390_v48  ;;  %v7775_v14 = vor.u32 %v10195_v55, %v7774_v52  ;;  %v7742_v48 = vld [vmem:[%s15936_s1 + $0x928] sm:$0xf]  ;;  %v10187_v58 = vld [vmem:[%s15936_s1 + $0x934] sm:$0xf0] }
 0x1cf   :  { %5699 = vmatpush.bf16.msra.mxu3 %v7823_v9  ;;  %v10095_v9 = vld [vmem:[%s15936_s1 + $0x654] sm:$0xf0]  ;;  %v7598_v55 = vld [vmem:[%s15936_s1 + $0x808] sm:$0xf] }
 0x1d0   :  { %5661 = vmatpush.bf16.msra.mxu0 %v7423_v53  ;;  %v10159_v53 = vld [vmem:[%s15936_s1 + $0x854] sm:$0xf0]  ;;  %v7966_v10 = vld [vmem:[%s15936_s1 + $0xae8] sm:$0xf] }
 0x1d1   :  { %5674 = vmatpush.bf16.msra.mxu1 %v7551_v17  ;;  %v5435_v17 = vadd.f32 %v5434_v2, %v5422_v60  ;;  %v7631_v40 = vor.u32 %v10159_v53, %v7630_v15  ;;  %v10087_v60 = vld [vmem:[%s15936_s1 + $0x614] sm:$0xf0]  ;;  %v8094_v2 = vld [vmem:[%s15936_s1 + $0xbe8] sm:$0xf] }
 0x1d2   :  { %5687 = vmatpush.bf16.msra.mxu2 %v7679_v21  ;;  %v5447_v21 = vpop.f32.mrf.mxu3  ;;  %v5423_v34 = vpop.f32.mrf.mxu1  ;;  %v10119_v52 = vld [vmem:[%s15936_s1 + $0x714] sm:$0xf0]  ;;  %v8350_v26 = vld [vmem:[%s15936_s1 + $0xde8] sm:$0xf] }
 0x1d3   :  { %5700 = vmatpush.bf16.msra.mxu3 %v7807_v32  ;;  %v7375_v32 = vor.u32 %v10095_v9, %v7374_v8  ;;  %v13770_v36 = vadd.f32 %v5447_v21, %v5435_v17  ;;  %v10183_v8 = vld [vmem:[%s15936_s1 + $0x914] sm:$0xf0]  ;;  %v8222_v17 = vld [vmem:[%s15936_s1 + $0xce8] sm:$0xf] }
 0x1d4   :  { %5662 = vmatpush.bf16.msra.mxu0 %v7407_v51  ;;  %v7759_v51 = vor.u32 %v10191_v13, %v7758_v24  ;;  %v5436_v9 = vpop.f32.mrf.mxu2  ;;  %v10275_v53 = vld [vmem:[%s15936_s1 + $0xbf4] sm:$0xf0]  ;;  %v7471_v24 = vor.u32 %v10119_v52, %v7470_v63  ;;  %v7950_v27 = vld [vmem:[%s15936_s1 + $0xac8] sm:$0xf] }
 0x1d5   :  { %5675 = vmatpush.bf16.msra.mxu1 %v7535_v56  ;;  %v7614_v56 = vld [vmem:[%s15936_s1 + $0x828] sm:$0xf]  ;;  %v10307_v21 = vld [vmem:[%s15936_s1 + $0xcf4] sm:$0xf0] }
 0x1d6   :  { %5688 = vmatpush.bf16.msra.mxu2 %v7663_v57  ;;  %v10155_v57 = vld [vmem:[%s15936_s1 + $0x834] sm:$0xf0]  ;;  %v8223_v43 = vor.u32 %v10307_v21, %v8222_v17  ;;  %v8062_v52 = vld [vmem:[%s15936_s1 + $0xba8] sm:$0xf] }
 0x1d7   :  { %5701 = vmatpush.bf16.msra.mxu3 %v7791_v47  ;;  %v7342_v47 = vld [vmem:[%s15936_s1 + $0x608] sm:$0xf]  ;;  %v7615_v62 = vor.u32 %v10155_v57, %v7614_v56  ;;  %v10239_v50 = vld [vmem:[%s15936_s1 + $0xad4] sm:$0xf0] }
 0x1d8   :  { %5663 = vmatpush.bf16.msra.mxu0 %v7391_v4  ;;  %v7743_v4 = vor.u32 %v10187_v58, %v7742_v48  ;;  %v7343_v15 = vor.u32 %v10087_v60, %v7342_v47  ;;  %v10271_v56 = vld [vmem:[%s15936_s1 + $0xbd4] sm:$0xf0]  ;;  %v8206_v57 = vld [vmem:[%s15936_s1 + $0xcc8] sm:$0xf]  ;;  %v7951_v47 = vor.u32 %v10239_v50, %v7950_v27 }
 0x1d9   :  { %5676 = vmatpush.bf16.msra.mxu1 %v7519_v5  ;;  %v10151_v5 = vld [vmem:[%s15936_s1 + $0x814] sm:$0xf0]  ;;  %v8334_v58 = vld [vmem:[%s15936_s1 + $0xdc8] sm:$0xf] }
 0x1da   :  { %5689 = vmatpush.bf16.msra.mxu2 %v7647_v6  ;;  %v7726_v6 = vld [vmem:[%s15936_s1 + $0x908] sm:$0xf]  ;;  %v5449_v0 = vpop.f32.mrf.mxu3  ;;  %v7599_v13 = vor.u32 %v10151_v5, %v7598_v55  ;;  %v10303_v48 = vld [vmem:[%s15936_s1 + $0xcd4] sm:$0xf0] }
 0x1db   :  { %5702 = vmatpush.bf16.msra.mxu3 %v7775_v14  ;;  %v10243_v14 = vld [vmem:[%s15936_s1 + $0xaf4] sm:$0xf0]  ;;  %v7727_v34 = vor.u32 %v10183_v8, %v7726_v6  ;;  %v8190_v5 = vld [vmem:[%s15936_s1 + $0xca8] sm:$0xf] }
 0x1dc   :  { %5664 = vmatpush.bf16.msra.mxu0 %v7375_v32  ;;  %v10339_v32 = vld [vmem:[%s15936_s1 + $0xdf4] sm:$0xf0]  ;;  %v8318_v8 = vld [vmem:[%s15936_s1 + $0xda8] sm:$0xf] }
 0x1dd   :  { %5677 = vmatpush.bf16.msra.mxu1 %v7503_v39  ;;  %v7967_v39 = vor.u32 %v10243_v14, %v7966_v10  ;;  %v8351_v54 = vor.u32 %v10339_v32, %v8350_v26  ;;  %v10235_v63 = vld [vmem:[%s15936_s1 + $0xab4] sm:$0xf0]  ;;  %v7918_v0 = vld [vmem:[%s15936_s1 + $0xa88] sm:$0xf] }
 0x1de   :  { %5690 = vmatpush.bf16.msra.mxu2 %v7631_v40  ;;  %v8095_v40 = vor.u32 %v10275_v53, %v8094_v2  ;;  %v10299_v6 = vld [vmem:[%s15936_s1 + $0xcb4] sm:$0xf0]  ;;  %v8046_v53 = vld [vmem:[%s15936_s1 + $0xb88] sm:$0xf] }
 0x1df   :  { %5703 = vmatpush.bf16.msra.mxu3 %v7759_v51  ;;  %v8078_v51 = vld [vmem:[%s15936_s1 + $0xbc8] sm:$0xf]  ;;  %v10331_v9 = vld [vmem:[%s15936_s1 + $0xdb4] sm:$0xf0]  ;;  %v8191_v2 = vor.u32 %v10299_v6, %v8190_v5 }
 0x1e0   :  { %5665 = vmatpush.bf16.msra.mxu0 %v7359_v59  ;;  %v10335_v59 = vld [vmem:[%s15936_s1 + $0xdd4] sm:$0xf0]  ;;  %v8079_v60 = vor.u32 %v10271_v56, %v8078_v51  ;;  %v8319_v17 = vor.u32 %v10331_v9, %v8318_v8  ;;  %v8302_v32 = vld [vmem:[%s15936_s1 + $0xd88] sm:$0xf] }
 0x1e1   :  { %5678 = vmatpush.bf16.msra.mxu1 %v7487_v61  ;;  %v8207_v61 = vor.u32 %v10303_v48, %v8206_v57  ;;  %v8335_v55 = vor.u32 %v10335_v59, %v8334_v58  ;;  %v10263_v21 = vld [vmem:[%s15936_s1 + $0xb94] sm:$0xf0]  ;;  %v7902_v51 = vld [vmem:[%s15936_s1 + $0xa68] sm:$0xf] }
 0x1e2   :  { %5691 = vmatpush.bf16.msra.mxu2 %v7615_v62  ;;  %v7934_v62 = vld [vmem:[%s15936_s1 + $0xaa8] sm:$0xf]  ;;  %v8047_v27 = vor.u32 %v10263_v21, %v8046_v53  ;;  %v10259_v48 = vld [vmem:[%s15936_s1 + $0xb74] sm:$0xf0] }
 0x1e3   :  { %5704 = vmatpush.bf16.msra.mxu3 %v7743_v4  ;;  %v10267_v4 = vld [vmem:[%s15936_s1 + $0xbb4] sm:$0xf0]  ;;  %v7935_v10 = vor.u32 %v10235_v63, %v7934_v62  ;;  %v8030_v56 = vld [vmem:[%s15936_s1 + $0xb68] sm:$0xf] }
 0x1e4   :  { %5666 = vmatpush.bf16.msra.mxu0 %v7343_v15  ;;  %v8063_v14 = vor.u32 %v10267_v4, %v8062_v52  ;;  %v10231_v15 = vld [vmem:[%s15936_s1 + $0xa94] sm:$0xf0]  ;;  %v5460_v26 = vpop.f32.mrf.mxu0  ;;  %v8158_v58 = vld [vmem:[%s15936_s1 + $0xc68] sm:$0xf]  ;;  %v8031_v62 = vor.u32 %v10259_v48, %v8030_v56 }
 0x1e5   :  { %5679 = vmatpush.bf16.msra.mxu1 %v7471_v24  ;;  %v8174_v24 = vld [vmem:[%s15936_s1 + $0xc88] sm:$0xf]  ;;  %v10291_v59 = vld [vmem:[%s15936_s1 + $0xc74] sm:$0xf0] }
 0x1e6   :  { %5692 = vmatpush.bf16.msra.mxu2 %v7599_v13  ;;  %v10295_v13 = vld [vmem:[%s15936_s1 + $0xc94] sm:$0xf0]  ;;  %v8159_v63 = vor.u32 %v10291_v59, %v8158_v58  ;;  %v7886_v52 = vld [vmem:[%s15936_s1 + $0xa48] sm:$0xf] }
 0x1e7   :  { %5705 = vmatpush.bf16.msra.mxu3 %v7727_v34  ;;  %5667 = vmatmul.bf16.vlgmr.msra.gmra.mxu0 %v11208_v38  ;;  %v10327_v34 = vld [vmem:[%s15936_s1 + $0xd94] sm:$0xf0]  ;;  %v8175_v50 = vor.u32 %v10295_v13, %v8174_v24  ;;  %v8014_v4 = vld [vmem:[%s15936_s1 + $0xb48] sm:$0xf] }
 0x1e8   :  { %5711 = vmatpush.bf16.msrb.mxu0 %v7967_v39  ;;  %5680 = vmatmul.bf16.vlgmr.msra.gmra.mxu1 %v11218_v42  ;;  %v5461_v39 = vadd.f32 %v5460_v26, %v13770_v36  ;;  %v8303_v36 = vor.u32 %v10327_v34, %v8302_v32  ;;  %v10255_v8 = vld [vmem:[%s15936_s1 + $0xb54] sm:$0xf0]  ;;  %v8142_v9 = vld [vmem:[%s15936_s1 + $0xc48] sm:$0xf] }
 0x1e9   :  { %5724 = vmatpush.bf16.msrb.mxu1 %v8095_v40  ;;  %5693 = vmatmul.bf16.vlgmr.msra.gmra.mxu2 %v11409_v25  ;;  %v7919_v40 = vor.u32 %v10231_v15, %v7918_v0  ;;  %v8270_v0 = vld [vmem:[%s15936_s1 + $0xd48] sm:$0xf]  ;;  %v10319_v15 = vld [vmem:[%s15936_s1 + $0xd54] sm:$0xf0]  ;;  %v8015_v13 = vor.u32 %v10255_v8, %v8014_v4 }
 0x1ea   :  { %5737 = vmatpush.bf16.msrb.mxu2 %v8223_v43  ;;  %5706 = vmatmul.bf16.vlgmr.msra.gmra.mxu3 %v11422_v30  ;;  %v5473_v43 = vpop.f32.mrf.mxu1  ;;  %v7870_v32 = vld [vmem:[%s15936_s1 + $0xa28] sm:$0xf]  ;;  %v10219_v34 = vld [vmem:[%s15936_s1 + $0xa34] sm:$0xf0] }
 0x1eb   :  { %5750 = vmatpush.bf16.msrb.mxu3 %v8351_v54  ;;  %v10227_v54 = vld [vmem:[%s15936_s1 + $0xa74] sm:$0xf0]  ;;  %v5474_v57 = vadd.f32 %v5473_v43, %v5461_v39  ;;  %v7998_v39 = vld [vmem:[%s15936_s1 + $0xb28] sm:$0xf]  ;;  %v7871_v56 = vor.u32 %v10219_v34, %v7870_v32 }
 0x1ec   :  { %5712 = vmatpush.bf16.msrb.mxu0 %v7951_v47  ;;  %v8286_v47 = vld [vmem:[%s15936_s1 + $0xd68] sm:$0xf]  ;;  %v5486_v6 = vpop.f32.mrf.mxu2  ;;  %v5462_v53 = vpop.f32.mrf.mxu0  ;;  %v10251_v43 = vld [vmem:[%s15936_s1 + $0xb34] sm:$0xf0] }
 0x1ed   :  { %5725 = vmatpush.bf16.msrb.mxu1 %v8079_v60  ;;  %v10323_v60 = vld [vmem:[%s15936_s1 + $0xd74] sm:$0xf0]  ;;  %v7999_v48 = vor.u32 %v10251_v43, %v7998_v39  ;;  %v7982_v59 = vld [vmem:[%s15936_s1 + $0xb08] sm:$0xf] }
 0x1ee   :  { %5738 = vmatpush.bf16.msrb.mxu2 %v8207_v61  ;;  %v7903_v61 = vor.u32 %v10227_v54, %v7902_v51  ;;  %v8287_v5 = vor.u32 %v10323_v60, %v8286_v47  ;;  %v8254_v51 = vld [vmem:[%s15936_s1 + $0xd28] sm:$0xf]  ;;  %v10315_v54 = vld [vmem:[%s15936_s1 + $0xd34] sm:$0xf0] }
 0x1ef   :  { %5751 = vmatpush.bf16.msrb.mxu3 %v8335_v55  ;;  %v10223_v55 = vld [vmem:[%s15936_s1 + $0xa54] sm:$0xf0]  ;;  %v8110_v60 = vld [vmem:[%s15936_s1 + $0xc08] sm:$0xf] }
 0x1f0   :  { %5713 = vmatpush.bf16.msrb.mxu0 %v7935_v10  ;;  %v10287_v10 = vld [vmem:[%s15936_s1 + $0xc54] sm:$0xf0]  ;;  %v8478_v4 = vld [vmem:[%s15936_s1 + $0xee8] sm:$0xf] }
 0x1f1   :  { %5726 = vmatpush.bf16.msrb.mxu1 %v8063_v14  ;;  %v5487_v14 = vadd.f32 %v5486_v6, %v5474_v57  ;;  %v8143_v26 = vor.u32 %v10287_v10, %v8142_v9  ;;  %v10215_v57 = vld [vmem:[%s15936_s1 + $0xa14] sm:$0xf0]  ;;  %v8606_v6 = vld [vmem:[%s15936_s1 + $0xfe8] sm:$0xf] }
 0x1f2   :  { %5739 = vmatpush.bf16.msrb.mxu2 %v8191_v2  ;;  %v5499_v2 = vpop.f32.mrf.mxu3  ;;  %v5475_v21 = vpop.f32.mrf.mxu1  ;;  %v10247_v47 = vld [vmem:[%s15936_s1 + $0xb14] sm:$0xf0]  ;;  %v8862_v53 = vld [vmem:[%s15936_s1 + $0x11e8] sm:$0xf] }
 0x1f3   :  { %5752 = vmatpush.bf16.msrb.mxu3 %v8319_v17  ;;  %v7887_v17 = vor.u32 %v10223_v55, %v7886_v52  ;;  %v13969_v24 = vadd.f32 %v5499_v2, %v5487_v14  ;;  %v10311_v52 = vld [vmem:[%s15936_s1 + $0xd14] sm:$0xf0]  ;;  %v8734_v14 = vld [vmem:[%s15936_s1 + $0x10e8] sm:$0xf] }
 0x1f4   :  { %5714 = vmatpush.bf16.msrb.mxu0 %v7919_v40  ;;  %v8271_v40 = vor.u32 %v10319_v15, %v8270_v0  ;;  %v5488_v55 = vpop.f32.mrf.mxu2  ;;  %v10403_v10 = vld [vmem:[%s15936_s1 + $0xff4] sm:$0xf0]  ;;  %v7983_v0 = vor.u32 %v10247_v47, %v7982_v59  ;;  %v8462_v34 = vld [vmem:[%s15936_s1 + $0xec8] sm:$0xf] }
 0x1f5   :  { %5727 = vmatpush.bf16.msrb.mxu1 %v8047_v27  ;;  %v8126_v27 = vld [vmem:[%s15936_s1 + $0xc28] sm:$0xf]  ;;  %v10435_v2 = vld [vmem:[%s15936_s1 + $0x10f4] sm:$0xf0] }
 0x1f6   :  { %5740 = vmatpush.bf16.msrb.mxu2 %v8175_v50  ;;  %v10283_v50 = vld [vmem:[%s15936_s1 + $0xc34] sm:$0xf0]  ;;  %v8735_v32 = vor.u32 %v10435_v2, %v8734_v14  ;;  %v8574_v47 = vld [vmem:[%s15936_s1 + $0xfa8] sm:$0xf] }
 0x1f7   :  { %5753 = vmatpush.bf16.msrb.mxu3 %v8303_v36  ;;  %v7854_v36 = vld [vmem:[%s15936_s1 + $0xa08] sm:$0xf]  ;;  %v8127_v58 = vor.u32 %v10283_v50, %v8126_v27  ;;  %v10367_v39 = vld [vmem:[%s15936_s1 + $0xed4] sm:$0xf0] }
 0x1f8   :  { %5715 = vmatpush.bf16.msrb.mxu0 %v7903_v61  ;;  %v8255_v61 = vor.u32 %v10315_v54, %v8254_v51  ;;  %v7855_v9 = vor.u32 %v10215_v57, %v7854_v36  ;;  %v10399_v27 = vld [vmem:[%s15936_s1 + $0xfd4] sm:$0xf0]  ;;  %v8718_v50 = vld [vmem:[%s15936_s1 + $0x10c8] sm:$0xf]  ;;  %v8463_v36 = vor.u32 %v10367_v39, %v8462_v34 }
 0x1f9   :  { %5728 = vmatpush.bf16.msrb.mxu1 %v8031_v62  ;;  %v10279_v62 = vld [vmem:[%s15936_s1 + $0xc14] sm:$0xf0]  ;;  %v8846_v54 = vld [vmem:[%s15936_s1 + $0x11c8] sm:$0xf] }
 0x1fa   :  { %5741 = vmatpush.bf16.msrb.mxu2 %v8159_v63  ;;  %v8238_v63 = vld [vmem:[%s15936_s1 + $0xd08] sm:$0xf]  ;;  %v5501_v8 = vpop.f32.mrf.mxu3  ;;  %v8111_v15 = vor.u32 %v10279_v62, %v8110_v60  ;;  %v10431_v51 = vld [vmem:[%s15936_s1 + $0x10d4] sm:$0xf0] }
 0x1fb   :  { %5754 = vmatpush.bf16.msrb.mxu3 %v8287_v5  ;;  %v10371_v5 = vld [vmem:[%s15936_s1 + $0xef4] sm:$0xf0]  ;;  %v8239_v21 = vor.u32 %v10311_v52, %v8238_v63  ;;  %v8702_v62 = vld [vmem:[%s15936_s1 + $0x10a8] sm:$0xf] }
 0x1fc   :  { %5716 = vmatpush.bf16.msrb.mxu0 %v7887_v17  ;;  %v10467_v17 = vld [vmem:[%s15936_s1 + $0x11f4] sm:$0xf0]  ;;  %v8830_v52 = vld [vmem:[%s15936_s1 + $0x11a8] sm:$0xf] }
 0x1fd   :  { %5729 = vmatpush.bf16.msrb.mxu1 %v8015_v13  ;;  %v8479_v13 = vor.u32 %v10371_v5, %v8478_v4  ;;  %v8863_v43 = vor.u32 %v10467_v17, %v8862_v53  ;;  %v10363_v59 = vld [vmem:[%s15936_s1 + $0xeb4] sm:$0xf0]  ;;  %v8430_v8 = vld [vmem:[%s15936_s1 + $0xe88] sm:$0xf] }
 0x1fe   :  { %5742 = vmatpush.bf16.msrb.mxu2 %v8143_v26  ;;  %v8607_v26 = vor.u32 %v10403_v10, %v8606_v6  ;;  %v10427_v63 = vld [vmem:[%s15936_s1 + $0x10b4] sm:$0xf0]  ;;  %v8558_v10 = vld [vmem:[%s15936_s1 + $0xf88] sm:$0xf] }
 0x1ff   :  { %5755 = vmatpush.bf16.msrb.mxu3 %v8271_v40  ;;  %v8590_v40 = vld [vmem:[%s15936_s1 + $0xfc8] sm:$0xf]  ;;  %v10459_v55 = vld [vmem:[%s15936_s1 + $0x11b4] sm:$0xf0]  ;;  %v8703_v6 = vor.u32 %v10427_v63, %v8702_v62 }
 0x200   :  { %5717 = vmatpush.bf16.msrb.mxu0 %v7871_v56  ;;  %v10463_v56 = vld [vmem:[%s15936_s1 + $0x11d4] sm:$0xf0]  ;;  %v8591_v57 = vor.u32 %v10399_v27, %v8590_v40  ;;  %v8831_v14 = vor.u32 %v10459_v55, %v8830_v52  ;;  %v8814_v17 = vld [vmem:[%s15936_s1 + $0x1188] sm:$0xf] }
 0x201   :  { %5730 = vmatpush.bf16.msrb.mxu1 %v7999_v48  ;;  %v8719_v48 = vor.u32 %v10431_v51, %v8718_v50  ;;  %v8847_v60 = vor.u32 %v10463_v56, %v8846_v54  ;;  %v10391_v2 = vld [vmem:[%s15936_s1 + $0xf94] sm:$0xf0]  ;;  %v8414_v40 = vld [vmem:[%s15936_s1 + $0xe68] sm:$0xf] }
 0x202   :  { %5743 = vmatpush.bf16.msrb.mxu2 %v8127_v58  ;;  %v8446_v58 = vld [vmem:[%s15936_s1 + $0xea8] sm:$0xf]  ;;  %v8559_v34 = vor.u32 %v10391_v2, %v8558_v10  ;;  %v10387_v51 = vld [vmem:[%s15936_s1 + $0xf74] sm:$0xf0] }
 0x203   :  { %5756 = vmatpush.bf16.msrb.mxu3 %v8255_v61  ;;  %v10395_v61 = vld [vmem:[%s15936_s1 + $0xfb4] sm:$0xf0]  ;;  %v8447_v4 = vor.u32 %v10363_v59, %v8446_v58  ;;  %v8542_v27 = vld [vmem:[%s15936_s1 + $0xf68] sm:$0xf] }
 0x204   :  { %5718 = vmatpush.bf16.msrb.mxu0 %v7855_v9  ;;  %v8575_v5 = vor.u32 %v10395_v61, %v8574_v47  ;;  %v10359_v9 = vld [vmem:[%s15936_s1 + $0xe94] sm:$0xf0]  ;;  %v5512_v53 = vpop.f32.mrf.mxu0  ;;  %v8670_v54 = vld [vmem:[%s15936_s1 + $0x1068] sm:$0xf]  ;;  %v8543_v58 = vor.u32 %v10387_v51, %v8542_v27 }
 0x205   :  { %5731 = vmatpush.bf16.msrb.mxu1 %v7983_v0  ;;  %v8686_v0 = vld [vmem:[%s15936_s1 + $0x1088] sm:$0xf]  ;;  %v10419_v56 = vld [vmem:[%s15936_s1 + $0x1074] sm:$0xf0] }
 0x206   :  { %5744 = vmatpush.bf16.msrb.mxu2 %v8111_v15  ;;  %v10423_v15 = vld [vmem:[%s15936_s1 + $0x1094] sm:$0xf0]  ;;  %v8671_v59 = vor.u32 %v10419_v56, %v8670_v54  ;;  %v8398_v47 = vld [vmem:[%s15936_s1 + $0xe48] sm:$0xf] }
 0x207   :  { %5757 = vmatpush.bf16.msrb.mxu3 %v8239_v21  ;;  %5719 = vmatmul.bf16.vlgmr.msrb.gmra.mxu0 %v11420_v29  ;;  %v10455_v21 = vld [vmem:[%s15936_s1 + $0x1194] sm:$0xf0]  ;;  %v8687_v39 = vor.u32 %v10423_v15, %v8686_v0  ;;  %v8526_v61 = vld [vmem:[%s15936_s1 + $0xf48] sm:$0xf] }
 0x208   :  { %5763 = vmatpush.bf16.msra.mxu0 %v8479_v13  ;;  %5732 = vmatmul.bf16.vlgmr.msrb.gmra.mxu1 %v11430_v33  ;;  %v5513_v13 = vadd.f32 %v5512_v53, %v13969_v24  ;;  %v8815_v24 = vor.u32 %v10455_v21, %v8814_v17  ;;  %v10383_v52 = vld [vmem:[%s15936_s1 + $0xf54] sm:$0xf0]  ;;  %v8654_v55 = vld [vmem:[%s15936_s1 + $0x1048] sm:$0xf] }
 0x209   :  { %5776 = vmatpush.bf16.msra.mxu1 %v8607_v26  ;;  %5745 = vmatmul.bf16.vlgmr.msrb.gmra.mxu2 %v11619_v23  ;;  %v8431_v26 = vor.u32 %v10359_v9, %v8430_v8  ;;  %v8782_v8 = vld [vmem:[%s15936_s1 + $0x1148] sm:$0xf]  ;;  %v10447_v9 = vld [vmem:[%s15936_s1 + $0x1154] sm:$0xf0]  ;;  %v8527_v15 = vor.u32 %v10383_v52, %v8526_v61 }
 0x20a   :  { %5789 = vmatpush.bf16.msra.mxu2 %v8735_v32  ;;  %5758 = vmatmul.bf16.vlgmr.msrb.gmra.mxu3 %v11632_v31  ;;  %v5525_v32 = vpop.f32.mrf.mxu1  ;;  %v8382_v17 = vld [vmem:[%s15936_s1 + $0xe28] sm:$0xf]  ;;  %v10347_v21 = vld [vmem:[%s15936_s1 + $0xe34] sm:$0xf0] }
 0x20b   :  { %5802 = vmatpush.bf16.msra.mxu3 %v8863_v43  ;;  %v10355_v43 = vld [vmem:[%s15936_s1 + $0xe74] sm:$0xf0]  ;;  %v5526_v50 = vadd.f32 %v5525_v32, %v5513_v13  ;;  %v8510_v13 = vld [vmem:[%s15936_s1 + $0xf28] sm:$0xf]  ;;  %v8383_v27 = vor.u32 %v10347_v21, %v8382_v17 }
 0x20c   :  { %5764 = vmatpush.bf16.msra.mxu0 %v8463_v36  ;;  %v8798_v36 = vld [vmem:[%s15936_s1 + $0x1168] sm:$0xf]  ;;  %v5538_v63 = vpop.f32.mrf.mxu2  ;;  %v5514_v10 = vpop.f32.mrf.mxu0  ;;  %v10379_v32 = vld [vmem:[%s15936_s1 + $0xf34] sm:$0xf0] }
 0x20d   :  { %5777 = vmatpush.bf16.msra.mxu1 %v8591_v57  ;;  %v10451_v57 = vld [vmem:[%s15936_s1 + $0x1174] sm:$0xf0]  ;;  %v8511_v51 = vor.u32 %v10379_v32, %v8510_v13  ;;  %v8494_v56 = vld [vmem:[%s15936_s1 + $0xf08] sm:$0xf] }
 0x20e   :  { %5790 = vmatpush.bf16.msra.mxu2 %v8719_v48  ;;  %v8415_v48 = vor.u32 %v10355_v43, %v8414_v40  ;;  %v8799_v62 = vor.u32 %v10451_v57, %v8798_v36  ;;  %v8766_v40 = vld [vmem:[%s15936_s1 + $0x1128] sm:$0xf]  ;;  %v10443_v43 = vld [vmem:[%s15936_s1 + $0x1134] sm:$0xf0] }
 0x20f   :  { %5803 = vmatpush.bf16.msra.mxu3 %v8847_v60  ;;  %v10351_v60 = vld [vmem:[%s15936_s1 + $0xe54] sm:$0xf0]  ;;  %v8622_v57 = vld [vmem:[%s15936_s1 + $0x1008] sm:$0xf] }
 0x210   :  { %5765 = vmatpush.bf16.msra.mxu0 %v8447_v4  ;;  %v10415_v4 = vld [vmem:[%s15936_s1 + $0x1054] sm:$0xf0]  ;;  %v8990_v61 = vld [vmem:[%s15936_s1 + $0x12e8] sm:$0xf] }
 0x211   :  { %5778 = vmatpush.bf16.msra.mxu1 %v8575_v5  ;;  %v5539_v5 = vadd.f32 %v5538_v63, %v5526_v50  ;;  %v8655_v53 = vor.u32 %v10415_v4, %v8654_v55  ;;  %v10343_v50 = vld [vmem:[%s15936_s1 + $0xe14] sm:$0xf0]  ;;  %v9118_v63 = vld [vmem:[%s15936_s1 + $0x13e8] sm:$0xf] }
 0x212   :  { %5791 = vmatpush.bf16.msra.mxu2 %v8703_v6  ;;  %v5551_v6 = vpop.f32.mrf.mxu3  ;;  %v5527_v2 = vpop.f32.mrf.mxu1  ;;  %v10375_v36 = vld [vmem:[%s15936_s1 + $0xf14] sm:$0xf0]  ;;  %v9374_v10 = vld [vmem:[%s15936_s1 + $0x15e8] sm:$0xf] }
 0x213   :  { %5804 = vmatpush.bf16.msra.mxu3 %v8831_v14  ;;  %v8399_v14 = vor.u32 %v10351_v60, %v8398_v47  ;;  %v14168_v0 = vadd.f32 %v5551_v6, %v5539_v5  ;;  %v10439_v47 = vld [vmem:[%s15936_s1 + $0x1114] sm:$0xf0]  ;;  %v9246_v5 = vld [vmem:[%s15936_s1 + $0x14e8] sm:$0xf] }
 0x214   :  { %5766 = vmatpush.bf16.msra.mxu0 %v8431_v26  ;;  %v8783_v26 = vor.u32 %v10447_v9, %v8782_v8  ;;  %v5540_v60 = vpop.f32.mrf.mxu2  ;;  %v10531_v4 = vld [vmem:[%s15936_s1 + $0x13f4] sm:$0xf0]  ;;  %v8495_v8 = vor.u32 %v10375_v36, %v8494_v56  ;;  %v8974_v21 = vld [vmem:[%s15936_s1 + $0x12c8] sm:$0xf] }
 0x215   :  { %5779 = vmatpush.bf16.msra.mxu1 %v8559_v34  ;;  %v8638_v34 = vld [vmem:[%s15936_s1 + $0x1028] sm:$0xf]  ;;  %v10563_v6 = vld [vmem:[%s15936_s1 + $0x14f4] sm:$0xf0] }
 0x216   :  { %5792 = vmatpush.bf16.msra.mxu2 %v8687_v39  ;;  %v10411_v39 = vld [vmem:[%s15936_s1 + $0x1034] sm:$0xf0]  ;;  %v9247_v17 = vor.u32 %v10563_v6, %v9246_v5  ;;  %v9086_v36 = vld [vmem:[%s15936_s1 + $0x13a8] sm:$0xf] }
 0x217   :  { %5805 = vmatpush.bf16.msra.mxu3 %v8815_v24  ;;  %v8366_v24 = vld [vmem:[%s15936_s1 + $0xe08] sm:$0xf]  ;;  %v8639_v54 = vor.u32 %v10411_v39, %v8638_v34  ;;  %v10495_v13 = vld [vmem:[%s15936_s1 + $0x12d4] sm:$0xf0] }
 0x218   :  { %5767 = vmatpush.bf16.msra.mxu0 %v8415_v48  ;;  %v8767_v48 = vor.u32 %v10443_v43, %v8766_v40  ;;  %v8367_v55 = vor.u32 %v10343_v50, %v8366_v24  ;;  %v10527_v34 = vld [vmem:[%s15936_s1 + $0x13d4] sm:$0xf0]  ;;  %v9230_v39 = vld [vmem:[%s15936_s1 + $0x14c8] sm:$0xf]  ;;  %v8975_v24 = vor.u32 %v10495_v13, %v8974_v21 }
 0x219   :  { %5780 = vmatpush.bf16.msra.mxu1 %v8543_v58  ;;  %v10407_v58 = vld [vmem:[%s15936_s1 + $0x1014] sm:$0xf0]  ;;  %v9358_v43 = vld [vmem:[%s15936_s1 + $0x15c8] sm:$0xf] }
 0x21a   :  { %5793 = vmatpush.bf16.msra.mxu2 %v8671_v59  ;;  %v8750_v59 = vld [vmem:[%s15936_s1 + $0x1108] sm:$0xf]  ;;  %v5553_v52 = vpop.f32.mrf.mxu3  ;;  %v8623_v9 = vor.u32 %v10407_v58, %v8622_v57  ;;  %v10559_v40 = vld [vmem:[%s15936_s1 + $0x14d4] sm:$0xf0] }
 0x21b   :  { %5806 = vmatpush.bf16.msra.mxu3 %v8799_v62  ;;  %v10499_v62 = vld [vmem:[%s15936_s1 + $0x12f4] sm:$0xf0]  ;;  %v8751_v2 = vor.u32 %v10439_v47, %v8750_v59  ;;  %v9214_v58 = vld [vmem:[%s15936_s1 + $0x14a8] sm:$0xf] }
 0x21c   :  { %5768 = vmatpush.bf16.msra.mxu0 %v8399_v14  ;;  %v10595_v14 = vld [vmem:[%s15936_s1 + $0x15f4] sm:$0xf0]  ;;  %v9342_v47 = vld [vmem:[%s15936_s1 + $0x15a8] sm:$0xf] }
 0x21d   :  { %5781 = vmatpush.bf16.msra.mxu1 %v8527_v15  ;;  %v8991_v15 = vor.u32 %v10499_v62, %v8990_v61  ;;  %v9375_v32 = vor.u32 %v10595_v14, %v9374_v10  ;;  %v10491_v56 = vld [vmem:[%s15936_s1 + $0x12b4] sm:$0xf0]  ;;  %v8942_v52 = vld [vmem:[%s15936_s1 + $0x1288] sm:$0xf] }
 0x21e   :  { %5794 = vmatpush.bf16.msra.mxu2 %v8655_v53  ;;  %v9119_v53 = vor.u32 %v10531_v4, %v9118_v63  ;;  %v10555_v59 = vld [vmem:[%s15936_s1 + $0x14b4] sm:$0xf0]  ;;  %v9070_v4 = vld [vmem:[%s15936_s1 + $0x1388] sm:$0xf] }
 0x21f   :  { %5807 = vmatpush.bf16.msra.mxu3 %v8783_v26  ;;  %v9102_v26 = vld [vmem:[%s15936_s1 + $0x13c8] sm:$0xf]  ;;  %v10587_v60 = vld [vmem:[%s15936_s1 + $0x15b4] sm:$0xf0]  ;;  %v9215_v63 = vor.u32 %v10555_v59, %v9214_v58 }
 0x220   :  { %5769 = vmatpush.bf16.msra.mxu0 %v8383_v27  ;;  %v10591_v27 = vld [vmem:[%s15936_s1 + $0x15d4] sm:$0xf0]  ;;  %v9103_v50 = vor.u32 %v10527_v34, %v9102_v26  ;;  %v9343_v5 = vor.u32 %v10587_v60, %v9342_v47  ;;  %v9326_v14 = vld [vmem:[%s15936_s1 + $0x1588] sm:$0xf] }
 0x221   :  { %5782 = vmatpush.bf16.msra.mxu1 %v8511_v51  ;;  %v9231_v51 = vor.u32 %v10559_v40, %v9230_v39  ;;  %v9359_v57 = vor.u32 %v10591_v27, %v9358_v43  ;;  %v10519_v6 = vld [vmem:[%s15936_s1 + $0x1394] sm:$0xf0]  ;;  %v8926_v26 = vld [vmem:[%s15936_s1 + $0x1268] sm:$0xf] }
 0x222   :  { %5795 = vmatpush.bf16.msra.mxu2 %v8639_v54  ;;  %v8958_v54 = vld [vmem:[%s15936_s1 + $0x12a8] sm:$0xf]  ;;  %v9071_v21 = vor.u32 %v10519_v6, %v9070_v4  ;;  %v10515_v40 = vld [vmem:[%s15936_s1 + $0x1374] sm:$0xf0] }
 0x223   :  { %5808 = vmatpush.bf16.msra.mxu3 %v8767_v48  ;;  %v10523_v48 = vld [vmem:[%s15936_s1 + $0x13b4] sm:$0xf0]  ;;  %v8959_v61 = vor.u32 %v10491_v56, %v8958_v54  ;;  %v9054_v34 = vld [vmem:[%s15936_s1 + $0x1368] sm:$0xf] }
 0x224   :  { %5770 = vmatpush.bf16.msra.mxu0 %v8367_v55  ;;  %v9087_v62 = vor.u32 %v10523_v48, %v9086_v36  ;;  %v10487_v55 = vld [vmem:[%s15936_s1 + $0x1294] sm:$0xf0]  ;;  %v5564_v10 = vpop.f32.mrf.mxu0  ;;  %v9182_v43 = vld [vmem:[%s15936_s1 + $0x1468] sm:$0xf]  ;;  %v9055_v36 = vor.u32 %v10515_v40, %v9054_v34 }
 0x225   :  { %5783 = vmatpush.bf16.msra.mxu1 %v8495_v8  ;;  %v9198_v8 = vld [vmem:[%s15936_s1 + $0x1488] sm:$0xf]  ;;  %v10547_v27 = vld [vmem:[%s15936_s1 + $0x1474] sm:$0xf0] }
 0x226   :  { %5796 = vmatpush.bf16.msra.mxu2 %v8623_v9  ;;  %v10551_v9 = vld [vmem:[%s15936_s1 + $0x1494] sm:$0xf0]  ;;  %v8910_v48 = vld [vmem:[%s15936_s1 + $0x1248] sm:$0xf] }
 0x227   :  { %5809 = vmatpush.bf16.msra.mxu3 %v8751_v2  ;;  %5771 = vmatmul.bf16.vlgmr.msra.gmra.mxu0 %v11630_v28  ;;  %v10583_v2 = vld [vmem:[%s15936_s1 + $0x1594] sm:$0xf0]  ;;  %v9199_v13 = vor.u32 %v10551_v9, %v9198_v8  ;;  %v9038_v59 = vld [vmem:[%s15936_s1 + $0x1348] sm:$0xf] }
 0x228   :  { %5815 = vmatpush.bf16.msrb.mxu0 %v8991_v15  ;;  %5784 = vmatmul.bf16.vlgmr.msra.gmra.mxu1 %v11640_v35  ;;  %v5565_v15 = vadd.f32 %v5564_v10, %v14168_v0  ;;  %v9327_v0 = vor.u32 %v10583_v2, %v9326_v14  ;;  %v10479_v58 = vld [vmem:[%s15936_s1 + $0x1254] sm:$0xf0]  ;;  %v8894_v2 = vld [vmem:[%s15936_s1 + $0x1228] sm:$0xf] }
 0x229   :  { %5828 = vmatpush.bf16.msrb.mxu1 %v9119_v53  ;;  %5797 = vmatmul.bf16.vlgmr.msra.gmra.mxu2 %v11829_v37  ;;  %v8943_v53 = vor.u32 %v10487_v55, %v8942_v52  ;;  %v10511_v60 = vld [vmem:[%s15936_s1 + $0x1354] sm:$0xf0]  ;;  %v9294_v52 = vld [vmem:[%s15936_s1 + $0x1548] sm:$0xf]  ;;  %v8911_v8 = vor.u32 %v10479_v58, %v8910_v48 }
 0x22a   :  { %5841 = vmatpush.bf16.msrb.mxu2 %v9247_v17  ;;  %5810 = vmatmul.bf16.vlgmr.msra.gmra.mxu3 %v11842_v46  ;;  %v5577_v17 = vpop.f32.mrf.mxu1  ;;  %v10575_v55 = vld [vmem:[%s15936_s1 + $0x1554] sm:$0xf0]  ;;  %v9039_v10 = vor.u32 %v10511_v60, %v9038_v59  ;;  %v9278_v34 = vld [vmem:[%s15936_s1 + $0x1528] sm:$0xf] }
 0x22b   :  { %5854 = vmatpush.bf16.msrb.mxu3 %v9375_v32  ;;  %v10483_v32 = vld [vmem:[%s15936_s1 + $0x1274] sm:$0xf0]  ;;  %v14328_v39 = vadd.f32 %v5577_v17, %v5565_v15  ;;  %v9262_v48 = vld [vmem:[%s15936_s1 + $0x1508] sm:$0xf] }
 0x22c   :  { %5816 = vmatpush.bf16.msrb.mxu0 %v8975_v24  ;;  %v9310_v24 = vld [vmem:[%s15936_s1 + $0x1568] sm:$0xf]  ;;  %v8927_v56 = vor.u32 %v10483_v32, %v8926_v26  ;;  %v5566_v6 = vpop.f32.mrf.mxu0  ;;  %v10475_v15 = vld [vmem:[%s15936_s1 + $0x1234] sm:$0xf0] }
 0x22d   :  { %5829 = vmatpush.bf16.msrb.mxu1 %v9103_v50  ;;  %v10579_v50 = vld [vmem:[%s15936_s1 + $0x1574] sm:$0xf0]  ;;  %v9150_v26 = vld [vmem:[%s15936_s1 + $0x1428] sm:$0xf]  ;;  %v8895_v40 = vor.u32 %v10475_v15, %v8894_v2  ;;  %vm6232_vm1 = vcmp.gt.f32.partialorder %v14328_v39, 0.0 }
 0x22e   :  { %5842 = vmatpush.bf16.msrb.mxu2 %v9231_v51  ;;  %v10726_v51 = vld [vmem:[%s15938_s2] sm:$0xf]  ;;  %v9311_v47 = vor.u32 %v10579_v50, %v9310_v24  ;;  %v10539_v32 = vld [vmem:[%s15936_s1 + $0x1434] sm:$0xf0] }
 0x22f   :  { %5855 = vmatpush.bf16.msrb.mxu3 %v9359_v57  ;;  %v837_v54 = vperm.slane %v10726_v51, 2  ;;  %v9183_v57 = vor.u32 %v10547_v27, %v9182_v43  ;;  %v8878_v43 = vld [vmem:[%s15936_s1 + $0x1208] sm:$0xf]  ;;  %v10471_v27 = vld [vmem:[%s15936_s1 + $0x1214] sm:$0xf0]  ;;  %v9151_v50 = vor.u32 %v10539_v32, %v9150_v26 }
 0x230   :  { %5817 = vmatpush.bf16.msrb.mxu0 %v8959_v61  ;;  %v9166_v61 = vld [vmem:[%s15936_s1 + $0x1448] sm:$0xf]  ;;  %v10567_v58 = vld [vmem:[%s15936_s1 + $0x1514] sm:$0xf0] }
 0x231   :  { %5830 = vmatpush.bf16.msrb.mxu1 %v9087_v62  ;;  %v10543_v62 = vld [vmem:[%s15936_s1 + $0x1454] sm:$0xf0]  ;;  %v9006_v51 = vld [vmem:[%s15936_s1 + $0x1308] sm:$0xf] }
 0x232   :  { %5843 = vmatpush.bf16.msrb.mxu2 %v9215_v63  ;;  %v5590_v63 = vpop.f32.mrf.mxu2  ;;  %v5579_v9 = vpop.f32.mrf.mxu1  ;;  %v9167_v14 = vor.u32 %v10543_v62, %v9166_v61  ;;  %v10627_v60 = vld [vmem:[%s15936_s1 + $0x16f4] sm:$0xf0]  ;;  %v9630_v61 = vld [vmem:[%s15936_s1 + $0x17e8] sm:$0xf] }
 0x233   :  { %5856 = vmatpush.bf16.msrb.mxu3 %v9343_v5  ;;  %v5591_v4 = vadd.f32 %v5590_v63, %v837_v54  ;;  %v5603_v5 = vpop.f32.mrf.mxu3  ;;  %v10503_v54 = vld [vmem:[%s15936_s1 + $0x1314] sm:$0xf0]  ;;  %v8879_v63 = vor.u32 %v10471_v27, %v8878_v43  ;;  %v6688_v9 = vld [vmem:[%s15936_s1 + $0xf8] sm:$0xf0] }
 0x234   :  { %5818 = vmatpush.bf16.msrb.mxu0 %v8943_v53  ;;  %v9022_v53 = vld [vmem:[%s15936_s1 + $0x1328] sm:$0xf]  ;;  %v10655_v32 = vld [vmem:[%s15936_s1 + $0x17d4] sm:$0xf0]  ;;  %v6672_v43 = vld [vmem:[%s15936_s1 + $0xd8] sm:$0xf0] }
 0x235   :  { %5831 = vmatpush.bf16.msrb.mxu1 %v9071_v21  ;;  %v14381_v17 = vadd.f32 %v5603_v5, %v5591_v4  ;;  %v9295_v21 = vor.u32 %v10575_v55, %v9294_v52  ;;  %v10659_v52 = vld [vmem:[%s15936_s1 + $0x17f4] sm:$0xf0]  ;;  %v9758_v55 = vld [vmem:[%s15936_s1 + $0x18e8] sm:$0xf]  ;;  %v9007_v5 = vor.u32 %v10503_v54, %v9006_v51 }
 0x236   :  { %5844 = vmatpush.bf16.msrb.mxu2 %v9199_v13  ;;  %v10507_v13 = vld [vmem:[%s15936_s1 + $0x1334] sm:$0xf0]  ;;  %v9631_v2 = vor.u32 %v10659_v52, %v9630_v61  ;;  %v9470_v51 = vld [vmem:[%s15936_s1 + $0x16a8] sm:$0xf] }
 0x237   :  { %5857 = vmatpush.bf16.msrb.mxu3 %v9327_v0  ;;  %v10571_v0 = vld [vmem:[%s15936_s1 + $0x1534] sm:$0xf0]  ;;  %v9023_v24 = vor.u32 %v10507_v13, %v9022_v53  ;;  %v9486_v53 = vld [vmem:[%s15936_s1 + $0x16c8] sm:$0xf] }
 0x238   :  { %5819 = vmatpush.bf16.msrb.mxu0 %v8927_v56  ;;  %v9134_v56 = vld [vmem:[%s15936_s1 + $0x1408] sm:$0xf]  ;;  %v10691_v4 = vld [vmem:[%s15936_s1 + $0x18f4] sm:$0xf0] }
 0x239   :  { %5832 = vmatpush.bf16.msrb.mxu1 %v9055_v36  ;;  %v9279_v36 = vor.u32 %v10571_v0, %v9278_v34  ;;  %v9759_v15 = vor.u32 %v10691_v4, %v9758_v55  ;;  %v9614_v13 = vld [vmem:[%s15936_s1 + $0x17c8] sm:$0xf]  ;;  %v10687_v0 = vld [vmem:[%s15936_s1 + $0x18d4] sm:$0xf0] }
 0x23a   :  { %5845 = vmatpush.bf16.msrb.mxu2 %v9183_v57  ;;  %v10535_v57 = vld [vmem:[%s15936_s1 + $0x1414] sm:$0xf0]  ;;  %v5592_v59 = vpop.f32.mrf.mxu2  ;;  %v9742_v34 = vld [vmem:[%s15936_s1 + $0x18c8] sm:$0xf] }
 0x23b   :  { %5858 = vmatpush.bf16.msrb.mxu3 %v9311_v47  ;;  %v9502_v47 = vld [vmem:[%s15936_s1 + $0x16e8] sm:$0xf]  ;;  %v5605_v62 = vpop.f32.mrf.mxu3  ;;  %v9135_v6 = vor.u32 %v10535_v57, %v9134_v56  ;;  %v10619_v54 = vld [vmem:[%s15936_s1 + $0x16b4] sm:$0xf0]  ;;  %v9913_v59 = vld [vmem:[%s15936_s1 + $0xac] sm:$0xf] }
 0x23c   :  { %5820 = vmatpush.bf16.msrb.mxu0 %v8911_v8  ;;  %v9921_v8 = vld [vmem:[%s15936_s1 + $0xec] sm:$0xf]  ;;  %v9598_v56 = vld [vmem:[%s15936_s1 + $0x17a8] sm:$0xf]  ;;  %v10651_v57 = vld [vmem:[%s15936_s1 + $0x17b4] sm:$0xf0] }
 0x23d   :  { %5833 = vmatpush.bf16.msrb.mxu1 %v9039_v10  ;;  %v9263_v10 = vor.u32 %v10567_v58, %v9262_v48  ;;  %v6691_v26 = vor.u32 %v9921_v8, %v6688_v9  ;;  %v9726_v48 = vld [vmem:[%s15936_s1 + $0x18a8] sm:$0xf]  ;;  %v10683_v58 = vld [vmem:[%s15936_s1 + $0x18b4] sm:$0xf0]  ;;  %v9599_v61 = vor.u32 %v10651_v57, %v9598_v56  ;;  %v9909_v9 = vld [vmem:[%s15936_s1 + $0x8c] sm:$0xf] }
 0x23e   :  { %5846 = vmatpush.bf16.msrb.mxu2 %v9167_v14  ;;  %v9503_v14 = vor.u32 %v10627_v60, %v9502_v47  ;;  %v6656_v47 = vld [vmem:[%s15936_s1 + $0xb8] sm:$0xf0]  ;;  %v9471_v60 = vor.u32 %v10619_v54, %v9470_v51  ;;  %v9727_v62 = vor.u32 %v10683_v58, %v9726_v48  ;;  %v10615_v52 = vld [vmem:[%s15936_s1 + $0x1694] sm:$0xf0]  ;;  %v9582_v55 = vld [vmem:[%s15936_s1 + $0x1788] sm:$0xf] }
 0x23f   :  { %5859 = vmatpush.bf16.msrb.mxu3 %v9295_v21  ;;  %v10623_v21 = vld [vmem:[%s15936_s1 + $0x16d4] sm:$0xf0]  ;;  %v6659_v4 = vor.u32 %v9913_v59, %v6656_v47  ;;  %v9550_v48 = vld [vmem:[%s15936_s1 + $0x1748] sm:$0xf] }
 0x240   :  { %5821 = vmatpush.bf16.msrb.mxu0 %v8895_v40  ;;  %v9917_v40 = vld [vmem:[%s15936_s1 + $0xcc] sm:$0xf]  ;;  %v9487_v27 = vor.u32 %v10623_v21, %v9486_v53  ;;  %v10679_v8 = vld [vmem:[%s15936_s1 + $0x1894] sm:$0xf0]  ;;  %v9438_v21 = vld [vmem:[%s15936_s1 + $0x1668] sm:$0xf] }
 0x241   :  { %5834 = vmatpush.bf16.msrb.mxu1 %v9023_v24  ;;  %v9615_v24 = vor.u32 %v10655_v32, %v9614_v13  ;;  %v10611_v13 = vld [vmem:[%s15936_s1 + $0x1674] sm:$0xf0] }
 0x242   :  { %5847 = vmatpush.bf16.msrb.mxu2 %v9151_v50  ;;  %v9743_v50 = vor.u32 %v10687_v0, %v9742_v34  ;;  %v9439_v51 = vor.u32 %v10611_v13, %v9438_v21  ;;  %v10607_v57 = vld [vmem:[%s15936_s1 + $0x1654] sm:$0xf0]  ;;  %v9662_v13 = vld [vmem:[%s15936_s1 + $0x1828] sm:$0xf] }
 0x243   :  { %5860 = vmatpush.bf16.msrb.mxu3 %v9279_v36  ;;  %v6675_v36 = vor.u32 %v9917_v40, %v6672_v43  ;;  %v10643_v40 = vld [vmem:[%s15936_s1 + $0x1774] sm:$0xf0]  ;;  %v9694_v43 = vld [vmem:[%s15936_s1 + $0x1868] sm:$0xf] }
 0x244   :  { %5822 = vmatpush.bf16.msrb.mxu0 %v8879_v63  ;;  %v9454_v63 = vld [vmem:[%s15936_s1 + $0x1688] sm:$0xf]  ;;  %v10639_v47 = vld [vmem:[%s15936_s1 + $0x1754] sm:$0xf0] }
 0x245   :  { %5835 = vmatpush.bf16.msrb.mxu1 %v9007_v5  ;;  %v10647_v5 = vld [vmem:[%s15936_s1 + $0x1794] sm:$0xf0]  ;;  %v5629_v34 = vpop.f32.mrf.mxu1 }
 0x246   :  { %5848 = vmatpush.bf16.msrb.mxu2 %v9135_v6  ;;  %v9710_v6 = vld [vmem:[%s15936_s1 + $0x1888] sm:$0xf]  ;;  %v10635_v21 = vld [vmem:[%s15936_s1 + $0x1734] sm:$0xf0] }
 0x247   :  { %5861 = vmatpush.bf16.msrb.mxu3 %v9263_v10  ;;  %5823 = vmatmul.bf16.vlgmr.msrb.gmra.mxu0 %v11840_v45  ;;  %v6640_v10 = vld [vmem:[%s15936_s1 + $0x98] sm:$0xf0]  ;;  %v9711_v53 = vor.u32 %v10679_v8, %v9710_v6  ;;  %v9551_v8 = vor.u32 %v10639_v47, %v9550_v48 }
 0x248   :  { %5867 = vmatpush.bf16.msra.mxu0 %v9503_v14  ;;  %5836 = vmatmul.bf16.vlgmr.msrb.gmra.mxu1 %v11850_v49  ;;  %v9455_v14 = vor.u32 %v10615_v52, %v9454_v63  ;;  %v6643_v0 = vor.u32 %v9909_v9, %v6640_v10  ;;  %v9901_v52 = vld [vmem:[%s15936_s1 + $0x4c] sm:$0xf]  ;;  %v9406_v10 = vld [vmem:[%s15936_s1 + $0x1628] sm:$0xf]  ;;  %v6576_v48 = vld [vmem:[%s15936_s1 + $0x18] sm:$0xf0] }
 0x249   :  { %5880 = vmatpush.bf16.msra.mxu1 %v9631_v2  ;;  %5849 = vmatmul.bf16.vlgmr.msrb.gmra.mxu2 %v12044_v7  ;;  %v5616_v2 = vpop.f32.mrf.mxu0  ;;  %v6816_v47 = vld [vmem:[%s15936_s1 + $0x1f8] sm:$0xf0] }
 0x24a   :  { %5893 = vmatpush.bf16.msra.mxu2 %v9759_v15  ;;  %5862 = vmatmul.bf16.vlgmr.msrb.gmra.mxu3 %v12057_v12  ;;  %v9583_v15 = vor.u32 %v10647_v5, %v9582_v55  ;;  %v5617_v32 = vadd.f32 %v5616_v2, %v14381_v17  ;;  %v6624_v17 = vld [vmem:[%s15936_s1 + $0x78] sm:$0xf0]  ;;  %v9534_v2 = vld [vmem:[%s15936_s1 + $0x1728] sm:$0xf] }
 0x24b   :  { %5906 = vmatpush.bf16.msra.mxu3 %v6691_v26  ;;  %v9566_v26 = vld [vmem:[%s15936_s1 + $0x1768] sm:$0xf]  ;;  %v6608_v55 = vld [vmem:[%s15936_s1 + $0x58] sm:$0xf0] }
 0x24c   :  { %5868 = vmatpush.bf16.msra.mxu0 %v9487_v27  ;;  %v10675_v27 = vld [vmem:[%s15936_s1 + $0x1874] sm:$0xf0]  ;;  %v9567_v54 = vor.u32 %v10643_v40, %v9566_v26  ;;  %v5642_v58 = vpop.f32.mrf.mxu2  ;;  %v9390_v40 = vld [vmem:[%s15936_s1 + $0x1608] sm:$0xf] }
 0x24d   :  { %5881 = vmatpush.bf16.msra.mxu1 %v9615_v24  ;;  %v9905_v24 = vld [vmem:[%s15936_s1 + $0x6c] sm:$0xf]  ;;  %v9695_v56 = vor.u32 %v10675_v27, %v9694_v43  ;;  %v5655_v63 = vpop.f32.mrf.mxu3  ;;  %v10667_v26 = vld [vmem:[%s15936_s1 + $0x1834] sm:$0xf0]  ;;  %v9535_v27 = vor.u32 %v10635_v21, %v9534_v2 }
 0x24e   :  { %5894 = vmatpush.bf16.msra.mxu2 %v9743_v50  ;;  %v5630_v50 = vadd.f32 %v5629_v34, %v5617_v32  ;;  %v6627_v59 = vor.u32 %v9905_v24, %v6624_v17  ;;  %v9897_v32 = vld [vmem:[%s15936_s1 + $0x2c] sm:$0xf]  ;;  %v6592_v34 = vld [vmem:[%s15936_s1 + $0x38] sm:$0xf0]  ;;  %v10599_v43 = vld [vmem:[%s15936_s1 + $0x1614] sm:$0xf0]  ;;  %v9663_v24 = vor.u32 %v10667_v26, %v9662_v13 }
 0x24f   :  { %5907 = vmatpush.bf16.msra.mxu3 %v6675_v36  ;;  %v9422_v36 = vld [vmem:[%s15936_s1 + $0x1648] sm:$0xf]  ;;  %v9981_v21 = vld [vmem:[%s15936_s1 + $0x2cc] sm:$0xf]  ;;  %v6928_v26 = vld [vmem:[%s15936_s1 + $0x2d8] sm:$0xf0] }
 0x250   :  { %5869 = vmatpush.bf16.msra.mxu0 %v9471_v60  ;;  %v9678_v60 = vld [vmem:[%s15936_s1 + $0x1848] sm:$0xf] }
 0x251   :  { %5882 = vmatpush.bf16.msra.mxu1 %v9599_v61  ;;  %v10671_v61 = vld [vmem:[%s15936_s1 + $0x1854] sm:$0xf0]  ;;  %v5618_v6 = vpop.f32.mrf.mxu0  ;;  %v9518_v17 = vld [vmem:[%s15936_s1 + $0x1708] sm:$0xf] }
 0x252   :  { %5895 = vmatpush.bf16.msra.mxu2 %v9727_v62  ;;  %v5643_v62 = vadd.f32 %v5642_v58, %v5630_v50  ;;  %v9679_v9 = vor.u32 %v10671_v61, %v9678_v60  ;;  %v10631_v50 = vld [vmem:[%s15936_s1 + $0x1714] sm:$0xf0]  ;;  %v9985_v60 = vld [vmem:[%s15936_s1 + $0x2ec] sm:$0xf]  ;;  %v9391_v61 = vor.u32 %v10599_v43, %v9390_v40  ;;  %v7184_v40 = vld [vmem:[%s15936_s1 + $0x4d8] sm:$0xf0] }
 0x253   :  { %5908 = vmatpush.bf16.msra.mxu3 %v6659_v4  ;;  %v9423_v4 = vor.u32 %v10607_v57, %v9422_v36  ;;  %v10663_v36 = vld [vmem:[%s15936_s1 + $0x1814] sm:$0xf0]  ;;  %v9893_v57 = vld [vmem:[%s15936_s1 + $0xc] sm:$0xf] }
 0x254   :  { %5870 = vmatpush.bf16.msra.mxu0 %v9455_v14  ;;  %v14571_v5 = vadd.f32 %v5655_v63, %v5643_v62  ;;  %v10603_v14 = vld [vmem:[%s15936_s1 + $0x1634] sm:$0xf0]  ;;  %v6944_v62 = vld [vmem:[%s15936_s1 + $0x2f8] sm:$0xf0]  ;;  %v10017_v63 = vld [vmem:[%s15936_s1 + $0x3ec] sm:$0xf] }
 0x255   :  { %5883 = vmatpush.bf16.msra.mxu1 %v9583_v15  ;;  %v5631_v15 = vpop.f32.mrf.mxu1  ;;  %v5657_v58 = vpop.f32.mrf.mxu3  ;;  %v10049_v6 = vld [vmem:[%s15936_s1 + $0x4ec] sm:$0xf] }
 0x256   :  { %5896 = vmatpush.bf16.msra.mxu2 %v9711_v53  ;;  %v6611_v53 = vor.u32 %v9901_v52, %v6608_v55  ;;  %v7072_v52 = vld [vmem:[%s15936_s1 + $0x3f8] sm:$0xf0]  ;;  %v9519_v55 = vor.u32 %v10631_v50, %v9518_v17  ;;  %v9949_v15 = vld [vmem:[%s15936_s1 + $0x1cc] sm:$0xf] }
 0x257   :  { %5909 = vmatpush.bf16.msra.mxu3 %v6643_v0  ;;  %v9407_v0 = vor.u32 %v10603_v14, %v9406_v10  ;;  %v6947_v14 = vor.u32 %v9985_v60, %v6944_v62  ;;  %v7075_v2 = vor.u32 %v10017_v63, %v7072_v52  ;;  %v9945_v17 = vld [vmem:[%s15936_s1 + $0x1ac] sm:$0xf]  ;;  %v6784_v50 = vld [vmem:[%s15936_s1 + $0x1b8] sm:$0xf0] }
 0x258   :  { %5871 = vmatpush.bf16.msra.mxu0 %v9439_v51  ;;  %v9646_v51 = vld [vmem:[%s15936_s1 + $0x1808] sm:$0xf]  ;;  %v7168_v58 = vld [vmem:[%s15936_s1 + $0x4b8] sm:$0xf0]  ;;  %v9973_v63 = vld [vmem:[%s15936_s1 + $0x28c] sm:$0xf] }
 0x259   :  { %5884 = vmatpush.bf16.msra.mxu1 %v9567_v54  ;;  %v5644_v54 = vpop.f32.mrf.mxu2  ;;  %v6768_v62 = vld [vmem:[%s15936_s1 + $0x198] sm:$0xf0] }
 0x25a   :  { %5897 = vmatpush.bf16.msra.mxu2 %v9695_v56  ;;  %v6595_v56 = vor.u32 %v9897_v32, %v6592_v34  ;;  %v10013_v32 = vld [vmem:[%s15936_s1 + $0x3cc] sm:$0xf]  ;;  %v7056_v34 = vld [vmem:[%s15936_s1 + $0x3d8] sm:$0xf0] }
 0x25b   :  { %5910 = vmatpush.bf16.msra.mxu3 %v6627_v59  ;;  %v9953_v59 = vld [vmem:[%s15936_s1 + $0x1ec] sm:$0xf] }
 0x25c   :  { %5872 = vmatpush.bf16.msra.mxu0 %v9423_v4  ;;  %v9647_v4 = vor.u32 %v10663_v36, %v9646_v51  ;;  %v6819_v10 = vor.u32 %v9953_v59, %v6816_v47  ;;  %v9977_v51 = vld [vmem:[%s15936_s1 + $0x2ac] sm:$0xf]  ;;  %v6787_v59 = vor.u32 %v9945_v17, %v6784_v50 }
 0x25d   :  { %5885 = vmatpush.bf16.msra.mxu1 %v9551_v8  ;;  %v7200_v8 = vld [vmem:[%s15936_s1 + $0x4f8] sm:$0xf0]  ;;  %v10009_v36 = vld [vmem:[%s15936_s1 + $0x3ac] sm:$0xf] }
 0x25e   :  { %5898 = vmatpush.bf16.msra.mxu2 %v9679_v9  ;;  %v6579_v9 = vor.u32 %v9893_v57, %v6576_v48  ;;  %v7203_v13 = vor.u32 %v10049_v6, %v7200_v8  ;;  %v7040_v57 = vld [vmem:[%s15936_s1 + $0x3b8] sm:$0xf0]  ;;  %v10041_v48 = vld [vmem:[%s15936_s1 + $0x4ac] sm:$0xf] }
 0x25f   :  { %5911 = vmatpush.bf16.msra.mxu3 %v6611_v53  ;;  %v6800_v53 = vld [vmem:[%s15936_s1 + $0x1d8] sm:$0xf0]  ;;  %v7043_v60 = vor.u32 %v10009_v36, %v7040_v57  ;;  %v7171_v52 = vor.u32 %v10041_v48, %v7168_v58  ;;  %v10037_v8 = vld [vmem:[%s15936_s1 + $0x48c] sm:$0xf] }
 0x260   :  { %5873 = vmatpush.bf16.msra.mxu0 %v9407_v0  ;;  %v10045_v0 = vld [vmem:[%s15936_s1 + $0x4cc] sm:$0xf]  ;;  %v6803_v43 = vor.u32 %v9949_v15, %v6800_v53  ;;  %v6864_v48 = vld [vmem:[%s15936_s1 + $0x258] sm:$0xf0] }
 0x261   :  { %5886 = vmatpush.bf16.msra.mxu1 %v9535_v27  ;;  %v6931_v27 = vor.u32 %v9981_v21, %v6928_v26  ;;  %v7187_v54 = vor.u32 %v10045_v0, %v7184_v40  ;;  %v9937_v21 = vld [vmem:[%s15936_s1 + $0x16c] sm:$0xf]  ;;  %v7008_v40 = vld [vmem:[%s15936_s1 + $0x378] sm:$0xf0] }
 0x262   :  { %5899 = vmatpush.bf16.msra.mxu2 %v9663_v24  ;;  %v7059_v24 = vor.u32 %v10013_v32, %v7056_v34  ;;  %v9969_v26 = vld [vmem:[%s15936_s1 + $0x26c] sm:$0xf]  ;;  %v6880_v34 = vld [vmem:[%s15936_s1 + $0x278] sm:$0xf0] }
 0x263   :  { %5912 = vmatpush.bf16.msra.mxu3 %v6595_v56  ;;  %v6912_v56 = vld [vmem:[%s15936_s1 + $0x2b8] sm:$0xf0]  ;;  %v10001_v0 = vld [vmem:[%s15936_s1 + $0x36c] sm:$0xf]  ;;  %v6883_v17 = vor.u32 %v9969_v26, %v6880_v34 }
 0x264   :  { %5874 = vmatpush.bf16.msra.mxu0 %v9391_v61  ;;  %v6915_v47 = vor.u32 %v9977_v51, %v6912_v56  ;;  %v9941_v61 = vld [vmem:[%s15936_s1 + $0x18c] sm:$0xf]  ;;  %v5668_v6 = vpop.f32.mrf.mxu0  ;;  %v7011_v50 = vor.u32 %v10001_v0, %v7008_v40 }
 0x265   :  { %5887 = vmatpush.bf16.msra.mxu1 %v9519_v55  ;;  %v10005_v55 = vld [vmem:[%s15936_s1 + $0x38c] sm:$0xf] }
 0x266   :  { %5900 = vmatpush.bf16.msra.mxu2 %v9647_v4  ;;  %v7024_v4 = vld [vmem:[%s15936_s1 + $0x398] sm:$0xf0]  ;;  %v9933_v51 = vld [vmem:[%s15936_s1 + $0x14c] sm:$0xf] }
 0x267   :  { %5913 = vmatpush.bf16.msra.mxu3 %v6579_v9  ;;  %5875 = vmatmul.bf16.vlgmr.msra.gmra.mxu0 %v12055_v11  ;;  %v7152_v9 = vld [vmem:[%s15936_s1 + $0x498] sm:$0xf0]  ;;  %v7027_v53 = vor.u32 %v10005_v55, %v7024_v4  ;;  %v9965_v56 = vld [vmem:[%s15936_s1 + $0x24c] sm:$0xf] }
 0x268   :  { %5919 = vmatpush.bf16.msrb.mxu0 %v6819_v10  ;;  %5888 = vmatmul.bf16.vlgmr.msra.gmra.mxu1 %v12065_v16  ;;  %v5669_v10 = vadd.f32 %v5668_v6, %v14571_v5  ;;  %v7155_v5 = vor.u32 %v10037_v8, %v7152_v9  ;;  %v9997_v58 = vld [vmem:[%s15936_s1 + $0x34c] sm:$0xf]  ;;  %v6867_v4 = vor.u32 %v9965_v56, %v6864_v48  ;;  %v6720_v9 = vld [vmem:[%s15936_s1 + $0x138] sm:$0xf0] }
 0x269   :  { %5932 = vmatpush.bf16.msrb.mxu1 %v6947_v14  ;;  %5901 = vmatmul.bf16.vlgmr.msra.gmra.mxu2 %v12254_v1  ;;  %v6771_v14 = vor.u32 %v9941_v61, %v6768_v62  ;;  %v10029_v61 = vld [vmem:[%s15936_s1 + $0x44c] sm:$0xf]  ;;  %v7120_v62 = vld [vmem:[%s15936_s1 + $0x458] sm:$0xf0] }
 0x26a   :  { %5945 = vmatpush.bf16.msrb.mxu2 %v7075_v2  ;;  %5914 = vmatmul.bf16.vlgmr.msra.gmra.mxu3 %v11054_v19  ;;  %v6896_v19 = vld [vmem:[%s15936_s1 + $0x298] sm:$0xf0]  ;;  %v5681_v2 = vpop.f32.mrf.mxu1  ;;  %v9929_v8 = vld [vmem:[%s15936_s1 + $0x12c] sm:$0xf] }
 0x26b   :  { %5958 = vmatpush.bf16.msrb.mxu3 %v7203_v13  ;;  %v6899_v15 = vor.u32 %v9973_v63, %v6896_v19  ;;  %v6752_v13 = vld [vmem:[%s15936_s1 + $0x178] sm:$0xf0]  ;;  %v5682_v32 = vadd.f32 %v5681_v2, %v5669_v10  ;;  %v9961_v10 = vld [vmem:[%s15936_s1 + $0x22c] sm:$0xf]  ;;  %v6723_v26 = vor.u32 %v9929_v8, %v6720_v9 }
 0x26c   :  { %5920 = vmatpush.bf16.msrb.mxu0 %v6803_v43  ;;  %v10033_v43 = vld [vmem:[%s15936_s1 + $0x46c] sm:$0xf]  ;;  %v5694_v57 = vpop.f32.mrf.mxu2  ;;  %v5670_v63 = vpop.f32.mrf.mxu0  ;;  %v6848_v2 = vld [vmem:[%s15936_s1 + $0x238] sm:$0xf0] }
 0x26d   :  { %5933 = vmatpush.bf16.msrb.mxu1 %v6931_v27  ;;  %v7136_v27 = vld [vmem:[%s15936_s1 + $0x478] sm:$0xf0]  ;;  %v6851_v34 = vor.u32 %v9961_v10, %v6848_v2  ;;  %v9957_v40 = vld [vmem:[%s15936_s1 + $0x20c] sm:$0xf] }
 0x26e   :  { %5946 = vmatpush.bf16.msrb.mxu2 %v7059_v24  ;;  %v6755_v24 = vor.u32 %v9937_v21, %v6752_v13  ;;  %v7139_v36 = vor.u32 %v10033_v43, %v7136_v27  ;;  %v10025_v21 = vld [vmem:[%s15936_s1 + $0x42c] sm:$0xf]  ;;  %v7104_v13 = vld [vmem:[%s15936_s1 + $0x438] sm:$0xf0] }
 0x26f   :  { %5959 = vmatpush.bf16.msrb.mxu3 %v7187_v54  ;;  %v6736_v54 = vld [vmem:[%s15936_s1 + $0x158] sm:$0xf0]  ;;  %v9989_v27 = vld [vmem:[%s15936_s1 + $0x30c] sm:$0xf] }
 0x270   :  { %5921 = vmatpush.bf16.msrb.mxu0 %v6787_v59  ;;  %v6992_v59 = vld [vmem:[%s15936_s1 + $0x358] sm:$0xf0]  ;;  %v10081_v56 = vld [vmem:[%s15936_s1 + $0x5ec] sm:$0xf] }
 0x271   :  { %5934 = vmatpush.bf16.msrb.mxu1 %v6915_v47  ;;  %v5695_v47 = vadd.f32 %v5694_v57, %v5682_v32  ;;  %v6995_v6 = vor.u32 %v9997_v58, %v6992_v59  ;;  %v6704_v32 = vld [vmem:[%s15936_s1 + $0x118] sm:$0xf0]  ;;  %v10113_v57 = vld [vmem:[%s15936_s1 + $0x6ec] sm:$0xf] }
 0x272   :  { %5947 = vmatpush.bf16.msrb.mxu2 %v7043_v60  ;;  %v5707_v60 = vpop.f32.mrf.mxu3  ;;  %v5683_v19 = vpop.f32.mrf.mxu1  ;;  %v6832_v43 = vld [vmem:[%s15936_s1 + $0x218] sm:$0xf0]  ;;  %v10177_v63 = vld [vmem:[%s15936_s1 + $0x8ec] sm:$0xf] }
 0x273   :  { %5960 = vmatpush.bf16.msrb.mxu3 %v7171_v52  ;;  %v6739_v52 = vor.u32 %v9933_v51, %v6736_v54  ;;  %v14770_v55 = vadd.f32 %v5707_v60, %v5695_v47  ;;  %v7088_v51 = vld [vmem:[%s15936_s1 + $0x418] sm:$0xf0]  ;;  %v10145_v47 = vld [vmem:[%s15936_s1 + $0x7ec] sm:$0xf] }
 0x274   :  { %5922 = vmatpush.bf16.msrb.mxu0 %v6771_v14  ;;  %v7123_v14 = vor.u32 %v10029_v61, %v7120_v62  ;;  %v5696_v54 = vpop.f32.mrf.mxu2  ;;  %v7456_v59 = vld [vmem:[%s15936_s1 + $0x6f8] sm:$0xf0]  ;;  %v6835_v61 = vor.u32 %v9957_v40, %v6832_v43  ;;  %v10077_v9 = vld [vmem:[%s15936_s1 + $0x5cc] sm:$0xf] }
 0x275   :  { %5935 = vmatpush.bf16.msrb.mxu1 %v6899_v15  ;;  %v9993_v15 = vld [vmem:[%s15936_s1 + $0x32c] sm:$0xf]  ;;  %v7584_v60 = vld [vmem:[%s15936_s1 + $0x7f8] sm:$0xf0] }
 0x276   :  { %5948 = vmatpush.bf16.msrb.mxu2 %v7027_v53  ;;  %v6976_v53 = vld [vmem:[%s15936_s1 + $0x338] sm:$0xf0]  ;;  %v7587_v8 = vor.u32 %v10145_v47, %v7584_v60  ;;  %v10105_v43 = vld [vmem:[%s15936_s1 + $0x6ac] sm:$0xf] }
 0x277   :  { %5961 = vmatpush.bf16.msrb.mxu3 %v7155_v5  ;;  %v9925_v5 = vld [vmem:[%s15936_s1 + $0x10c] sm:$0xf]  ;;  %v6979_v0 = vor.u32 %v9993_v15, %v6976_v53  ;;  %v7312_v10 = vld [vmem:[%s15936_s1 + $0x5d8] sm:$0xf0] }
 0x278   :  { %5923 = vmatpush.bf16.msrb.mxu0 %v6755_v24  ;;  %v7107_v24 = vor.u32 %v10025_v21, %v7104_v13  ;;  %v6707_v58 = vor.u32 %v9925_v5, %v6704_v32  ;;  %v7440_v15 = vld [vmem:[%s15936_s1 + $0x6d8] sm:$0xf0]  ;;  %v10141_v53 = vld [vmem:[%s15936_s1 + $0x7cc] sm:$0xf]  ;;  %v7315_v5 = vor.u32 %v10077_v9, %v7312_v10 }
 0x279   :  { %5936 = vmatpush.bf16.msrb.mxu1 %v6883_v17  ;;  %v6960_v17 = vld [vmem:[%s15936_s1 + $0x318] sm:$0xf0]  ;;  %v10173_v13 = vld [vmem:[%s15936_s1 + $0x8cc] sm:$0xf] }
 0x27a   :  { %5949 = vmatpush.bf16.msrb.mxu2 %v7011_v50  ;;  %v10021_v50 = vld [vmem:[%s15936_s1 + $0x40c] sm:$0xf]  ;;  %v5709_v48 = vpop.f32.mrf.mxu3  ;;  %v6963_v62 = vor.u32 %v9989_v27, %v6960_v17  ;;  %v7568_v21 = vld [vmem:[%s15936_s1 + $0x7d8] sm:$0xf0] }
 0x27b   :  { %5962 = vmatpush.bf16.msrb.mxu3 %v7139_v36  ;;  %v7328_v36 = vld [vmem:[%s15936_s1 + $0x5f8] sm:$0xf0]  ;;  %v7091_v19 = vor.u32 %v10021_v50, %v7088_v51  ;;  %v10137_v17 = vld [vmem:[%s15936_s1 + $0x7ac] sm:$0xf] }
 0x27c   :  { %5924 = vmatpush.bf16.msrb.mxu0 %v6739_v52  ;;  %v7712_v52 = vld [vmem:[%s15936_s1 + $0x8f8] sm:$0xf0]  ;;  %v10169_v51 = vld [vmem:[%s15936_s1 + $0x8ac] sm:$0xf] }
 0x27d   :  { %5937 = vmatpush.bf16.msrb.mxu1 %v6867_v4  ;;  %v7331_v4 = vor.u32 %v10081_v56, %v7328_v36  ;;  %v7715_v2 = vor.u32 %v10177_v63, %v7712_v52  ;;  %v7296_v40 = vld [vmem:[%s15936_s1 + $0x5b8] sm:$0xf0]  ;;  %v10165_v60 = vld [vmem:[%s15936_s1 + $0x88c] sm:$0xf] }
 0x27e   :  { %5950 = vmatpush.bf16.msrb.mxu2 %v6995_v6  ;;  %v7459_v6 = vor.u32 %v10113_v57, %v7456_v59  ;;  %v7552_v50 = vld [vmem:[%s15936_s1 + $0x7b8] sm:$0xf0]  ;;  %v10069_v57 = vld [vmem:[%s15936_s1 + $0x58c] sm:$0xf] }
 0x27f   :  { %5963 = vmatpush.bf16.msrb.mxu3 %v7123_v14  ;;  %v10109_v14 = vld [vmem:[%s15936_s1 + $0x6cc] sm:$0xf]  ;;  %v7555_v36 = vor.u32 %v10137_v17, %v7552_v50  ;;  %v7280_v48 = vld [vmem:[%s15936_s1 + $0x598] sm:$0xf0] }
 0x280   :  { %5925 = vmatpush.bf16.msrb.mxu0 %v6723_v26  ;;  %v7696_v26 = vld [vmem:[%s15936_s1 + $0x8d8] sm:$0xf0]  ;;  %v7443_v32 = vor.u32 %v10109_v14, %v7440_v15  ;;  %v7283_v63 = vor.u32 %v10069_v57, %v7280_v48  ;;  %v10097_v9 = vld [vmem:[%s15936_s1 + $0x66c] sm:$0xf] }
 0x281   :  { %5938 = vmatpush.bf16.msrb.mxu1 %v6851_v34  ;;  %v7571_v34 = vor.u32 %v10141_v53, %v7568_v21  ;;  %v7699_v27 = vor.u32 %v10173_v13, %v7696_v26  ;;  %v7536_v59 = vld [vmem:[%s15936_s1 + $0x798] sm:$0xf0]  ;;  %v10161_v53 = vld [vmem:[%s15936_s1 + $0x86c] sm:$0xf] }
 0x282   :  { %5951 = vmatpush.bf16.msrb.mxu2 %v6979_v0  ;;  %v10073_v0 = vld [vmem:[%s15936_s1 + $0x5ac] sm:$0xf]  ;;  %v7392_v14 = vld [vmem:[%s15936_s1 + $0x678] sm:$0xf0] }
 0x283   :  { %5964 = vmatpush.bf16.msrb.mxu3 %v7107_v24  ;;  %v7424_v24 = vld [vmem:[%s15936_s1 + $0x6b8] sm:$0xf0]  ;;  %v7299_v54 = vor.u32 %v10073_v0, %v7296_v40  ;;  %v7395_v26 = vor.u32 %v10097_v9, %v7392_v14  ;;  %v10093_v0 = vld [vmem:[%s15936_s1 + $0x64c] sm:$0xf] }
 0x284   :  { %5926 = vmatpush.bf16.msrb.mxu0 %v6707_v58  ;;  %v7427_v56 = vor.u32 %v10105_v43, %v7424_v24  ;;  %v10133_v58 = vld [vmem:[%s15936_s1 + $0x78c] sm:$0xf]  ;;  %v5720_v47 = vpop.f32.mrf.mxu0  ;;  %v7520_v15 = vld [vmem:[%s15936_s1 + $0x778] sm:$0xf0] }
 0x285   :  { %5939 = vmatpush.bf16.msrb.mxu1 %v6835_v61  ;;  %v7664_v61 = vld [vmem:[%s15936_s1 + $0x898] sm:$0xf0]  ;;  %v5733_v52 = vpop.f32.mrf.mxu1  ;;  %v10125_v24 = vld [vmem:[%s15936_s1 + $0x74c] sm:$0xf] }
 0x286   :  { %5952 = vmatpush.bf16.msrb.mxu2 %v6963_v62  ;;  %v5721_v62 = vadd.f32 %v5720_v47, %v14770_v55  ;;  %v7667_v55 = vor.u32 %v10165_v60, %v7664_v61  ;;  %v7648_v21 = vld [vmem:[%s15936_s1 + $0x878] sm:$0xf0]  ;;  %v10121_v61 = vld [vmem:[%s15936_s1 + $0x72c] sm:$0xf] }
 0x287   :  { %5965 = vmatpush.bf16.msrb.mxu3 %v7091_v19  ;;  %5927 = vmatmul.bf16.vlgmr.msrb.gmra.mxu0 %v11058_v22  ;;  %v10101_v22 = vld [vmem:[%s15936_s1 + $0x68c] sm:$0xf]  ;;  %v7651_v40 = vor.u32 %v10161_v53, %v7648_v21  ;;  %v7504_v17 = vld [vmem:[%s15936_s1 + $0x758] sm:$0xf0] }
 0x288   :  { %5971 = vmatpush.bf16.msra.mxu0 %v7331_v4  ;;  %5940 = vmatmul.bf16.vlgmr.msrb.gmra.mxu1 %v11052_v18  ;;  %v7408_v18 = vld [vmem:[%s15936_s1 + $0x698] sm:$0xf0]  ;;  %v7539_v4 = vor.u32 %v10133_v58, %v7536_v59  ;;  %v5734_v10 = vadd.f32 %v5733_v52, %v5721_v62  ;;  %v10089_v59 = vld [vmem:[%s15936_s1 + $0x62c] sm:$0xf] }
 0x289   :  { %5984 = vmatpush.bf16.msra.mxu1 %v7459_v6  ;;  %5953 = vmatmul.bf16.vlgmr.msrb.gmra.mxu2 %v11056_v20  ;;  %v7680_v20 = vld [vmem:[%s15936_s1 + $0x8b8] sm:$0xf0]  ;;  %v7411_v19 = vor.u32 %v10101_v22, %v7408_v18  ;;  %v10065_v6 = vld [vmem:[%s15936_s1 + $0x56c] sm:$0xf] }
 0x28a   :  { %5997 = vmatpush.bf16.msra.mxu2 %v7587_v8  ;;  %5966 = vmatmul.bf16.vlgmr.msrb.gmra.mxu3 %v11216_v41  ;;  %v7683_v41 = vor.u32 %v10169_v51, %v7680_v20  ;;  %v7264_v8 = vld [vmem:[%s15936_s1 + $0x578] sm:$0xf0]  ;;  %v10157_v20 = vld [vmem:[%s15936_s1 + $0x84c] sm:$0xf] }
 0x28b   :  { %6010 = vmatpush.bf16.msra.mxu3 %v7715_v2  ;;  %v10129_v2 = vld [vmem:[%s15936_s1 + $0x76c] sm:$0xf]  ;;  %v7267_v13 = vor.u32 %v10065_v6, %v7264_v8  ;;  %v7232_v58 = vld [vmem:[%s15936_s1 + $0x538] sm:$0xf0] }
 0x28c   :  { %5972 = vmatpush.bf16.msra.mxu0 %v7315_v5  ;;  %v7523_v5 = vor.u32 %v10129_v2, %v7520_v15  ;;  %v5746_v43 = vpop.f32.mrf.mxu2  ;;  %v10057_v18 = vld [vmem:[%s15936_s1 + $0x52c] sm:$0xf]  ;;  %v7360_v60 = vld [vmem:[%s15936_s1 + $0x638] sm:$0xf0] }
 0x28d   :  { %5985 = vmatpush.bf16.msra.mxu1 %v7443_v32  ;;  %v10061_v32 = vld [vmem:[%s15936_s1 + $0x54c] sm:$0xf]  ;;  %v5747_v50 = vadd.f32 %v5746_v43, %v5734_v10  ;;  %v5759_v51 = vpop.f32.mrf.mxu3  ;;  %v5735_v57 = vpop.f32.mrf.mxu1  ;;  %v7488_v62 = vld [vmem:[%s15936_s1 + $0x738] sm:$0xf0]  ;;  %v7363_v8 = vor.u32 %v10089_v59, %v7360_v60 }
 0x28e   :  { %5998 = vmatpush.bf16.msra.mxu2 %v7571_v34  ;;  %v7248_v34 = vld [vmem:[%s15936_s1 + $0x558] sm:$0xf0]  ;;  %v7491_v9 = vor.u32 %v10121_v61, %v7488_v62  ;;  %v10117_v14 = vld [vmem:[%s15936_s1 + $0x70c] sm:$0xf] }
 0x28f   :  { %6011 = vmatpush.bf16.msra.mxu3 %v7699_v27  ;;  %v7376_v27 = vld [vmem:[%s15936_s1 + $0x658] sm:$0xf0]  ;;  %v14969_v48 = vadd.f32 %v5759_v51, %v5747_v50  ;;  %v10149_v53 = vld [vmem:[%s15936_s1 + $0x80c] sm:$0xf] }
 0x290   :  { %5973 = vmatpush.bf16.msra.mxu0 %v7299_v54  ;;  %v7632_v54 = vld [vmem:[%s15936_s1 + $0x858] sm:$0xf0]  ;;  %v7379_v22 = vor.u32 %v10093_v0, %v7376_v27  ;;  %v10273_v43 = vld [vmem:[%s15936_s1 + $0xbec] sm:$0xf] }
 0x291   :  { %5986 = vmatpush.bf16.msra.mxu1 %v7427_v56  ;;  %v5722_v56 = vpop.f32.mrf.mxu0  ;;  %v7635_v47 = vor.u32 %v10157_v20, %v7632_v54  ;;  %v7616_v52 = vld [vmem:[%s15936_s1 + $0x838] sm:$0xf0]  ;;  %v10305_v50 = vld [vmem:[%s15936_s1 + $0xcec] sm:$0xf] }
 0x292   :  { %5999 = vmatpush.bf16.msra.mxu2 %v7555_v36  ;;  %v7251_v36 = vor.u32 %v10061_v32, %v7248_v34  ;;  %v7216_v6 = vld [vmem:[%s15936_s1 + $0x518] sm:$0xf0]  ;;  %v10241_v32 = vld [vmem:[%s15936_s1 + $0xaec] sm:$0xf] }
 0x293   :  { %6012 = vmatpush.bf16.msra.mxu3 %v7683_v41  ;;  %v7507_v41 = vor.u32 %v10125_v24, %v7504_v17  ;;  %v7344_v10 = vld [vmem:[%s15936_s1 + $0x618] sm:$0xf0]  ;;  %v10205_v57 = vld [vmem:[%s15936_s1 + $0x9cc] sm:$0xf] }
 0x294   :  { %5974 = vmatpush.bf16.msra.mxu0 %v7283_v63  ;;  %v10153_v63 = vld [vmem:[%s15936_s1 + $0x82c] sm:$0xf]  ;;  %v7472_v15 = vld [vmem:[%s15936_s1 + $0x718] sm:$0xf0] }
 0x295   :  { %5987 = vmatpush.bf16.msra.mxu1 %v7411_v19  ;;  %v7235_v19 = vor.u32 %v10057_v18, %v7232_v58  ;;  %v7619_v2 = vor.u32 %v10153_v63, %v7616_v52  ;;  %v7600_v21 = vld [vmem:[%s15936_s1 + $0x818] sm:$0xf0]  ;;  %v5761_v34 = vpop.f32.mrf.mxu3  ;;  %v7475_v17 = vor.u32 %v10117_v14, %v7472_v15  ;;  %v10269_v59 = vld [vmem:[%s15936_s1 + $0xbcc] sm:$0xf] }
 0x296   :  { %6000 = vmatpush.bf16.msra.mxu2 %v7539_v4  ;;  %v10053_v4 = vld [vmem:[%s15936_s1 + $0x50c] sm:$0xf]  ;;  %v8096_v27 = vld [vmem:[%s15936_s1 + $0xbf8] sm:$0xf0]  ;;  %v7603_v20 = vor.u32 %v10149_v53, %v7600_v21 }
 0x297   :  { %6013 = vmatpush.bf16.msra.mxu3 %v7667_v55  ;;  %v10085_v55 = vld [vmem:[%s15936_s1 + $0x60c] sm:$0xf]  ;;  %v7219_v0 = vor.u32 %v10053_v4, %v7216_v6  ;;  %v8224_v51 = vld [vmem:[%s15936_s1 + $0xcf8] sm:$0xf0] }
 0x298   :  { %5975 = vmatpush.bf16.msra.mxu0 %v7267_v13  ;;  %v5748_v13 = vpop.f32.mrf.mxu2  ;;  %v7347_v24 = vor.u32 %v10085_v55, %v7344_v10  ;;  %v8227_v18 = vor.u32 %v10305_v50, %v8224_v51  ;;  %v7952_v58 = vld [vmem:[%s15936_s1 + $0xad8] sm:$0xf0]  ;;  %v10301_v60 = vld [vmem:[%s15936_s1 + $0xccc] sm:$0xf] }
 0x299   :  { %5988 = vmatpush.bf16.msra.mxu1 %v7395_v26  ;;  %v10209_v26 = vld [vmem:[%s15936_s1 + $0x9ec] sm:$0xf]  ;;  %v8208_v61 = vld [vmem:[%s15936_s1 + $0xcd8] sm:$0xf0] }
 0x29a   :  { %6001 = vmatpush.bf16.msra.mxu2 %v7523_v5  ;;  %v7840_v5 = vld [vmem:[%s15936_s1 + $0x9f8] sm:$0xf0]  ;;  %v10233_v6 = vld [vmem:[%s15936_s1 + $0xaac] sm:$0xf] }
 0x29b   :  { %6014 = vmatpush.bf16.msra.mxu3 %v7651_v40  ;;  %v7968_v40 = vld [vmem:[%s15936_s1 + $0xaf8] sm:$0xf0]  ;;  %v7843_v54 = vor.u32 %v10209_v26, %v7840_v5  ;;  %v10265_v55 = vld [vmem:[%s15936_s1 + $0xbac] sm:$0xf] }
 0x29c   :  { %5976 = vmatpush.bf16.msra.mxu0 %v7251_v36  ;;  %v7971_v56 = vor.u32 %v10241_v32, %v7968_v40  ;;  %v8099_v36 = vor.u32 %v10273_v43, %v8096_v27  ;;  %v7808_v4 = vld [vmem:[%s15936_s1 + $0x9b8] sm:$0xf0]  ;;  %v10229_v21 = vld [vmem:[%s15936_s1 + $0xa8c] sm:$0xf] }
 0x29d   :  { %5989 = vmatpush.bf16.msra.mxu1 %v7379_v22  ;;  %v7824_v22 = vld [vmem:[%s15936_s1 + $0x9d8] sm:$0xf0]  ;;  %v10261_v26 = vld [vmem:[%s15936_s1 + $0xb8c] sm:$0xf] }
 0x29e   :  { %6002 = vmatpush.bf16.msra.mxu2 %v7507_v41  ;;  %v10237_v41 = vld [vmem:[%s15936_s1 + $0xacc] sm:$0xf]  ;;  %v7827_v62 = vor.u32 %v10205_v57, %v7824_v22  ;;  %v8064_v10 = vld [vmem:[%s15936_s1 + $0xbb8] sm:$0xf0] }
 0x29f   :  { %6015 = vmatpush.bf16.msra.mxu3 %v7635_v47  ;;  %v8080_v47 = vld [vmem:[%s15936_s1 + $0xbd8] sm:$0xf0]  ;;  %v7955_v63 = vor.u32 %v10237_v41, %v7952_v58  ;;  %v8067_v53 = vor.u32 %v10265_v55, %v8064_v10  ;;  %v10293_v34 = vld [vmem:[%s15936_s1 + $0xc8c] sm:$0xf] }
 0x2a0   :  { %5977 = vmatpush.bf16.msra.mxu0 %v7235_v19  ;;  %v8083_v52 = vor.u32 %v10269_v59, %v8080_v47  ;;  %v10201_v19 = vld [vmem:[%s15936_s1 + $0x9ac] sm:$0xf]  ;;  %v8192_v14 = vld [vmem:[%s15936_s1 + $0xcb8] sm:$0xf0] }
 0x2a1   :  { %5990 = vmatpush.bf16.msra.mxu1 %v7363_v8  ;;  %v8211_v8 = vor.u32 %v10301_v60, %v8208_v61  ;;  %v7920_v13 = vld [vmem:[%s15936_s1 + $0xa98] sm:$0xf0]  ;;  %v10193_v50 = vld [vmem:[%s15936_s1 + $0x96c] sm:$0xf] }
 0x2a2   :  { %6003 = vmatpush.bf16.msra.mxu2 %v7491_v9  ;;  %v7936_v9 = vld [vmem:[%s15936_s1 + $0xab8] sm:$0xf0]  ;;  %v10289_v22 = vld [vmem:[%s15936_s1 + $0xc6c] sm:$0xf] }
 0x2a3   :  { %6016 = vmatpush.bf16.msra.mxu3 %v7619_v2  ;;  %v7811_v2 = vor.u32 %v10201_v19, %v7808_v4  ;;  %v7939_v15 = vor.u32 %v10233_v6, %v7936_v9  ;;  %v8048_v5 = vld [vmem:[%s15936_s1 + $0xb98] sm:$0xf0]  ;;  %v10189_v47 = vld [vmem:[%s15936_s1 + $0x94c] sm:$0xf] }
 0x2a4   :  { %5978 = vmatpush.bf16.msra.mxu0 %v7219_v0  ;;  %v5772_v32 = vpop.f32.mrf.mxu0  ;;  %v8176_v0 = vld [vmem:[%s15936_s1 + $0xc98] sm:$0xf0]  ;;  %v10221_v61 = vld [vmem:[%s15936_s1 + $0xa4c] sm:$0xf] }
 0x2a5   :  { %5991 = vmatpush.bf16.msra.mxu1 %v7347_v24  ;;  %v5773_v40 = vadd.f32 %v5772_v32, %v14969_v48  ;;  %v5785_v27 = vpop.f32.mrf.mxu1  ;;  %v7923_v24 = vor.u32 %v10229_v21, %v7920_v13  ;;  %v7776_v51 = vld [vmem:[%s15936_s1 + $0x978] sm:$0xf0]  ;;  %v8179_v48 = vor.u32 %v10293_v34, %v8176_v0  ;;  %v10253_v19 = vld [vmem:[%s15936_s1 + $0xb4c] sm:$0xf] }
 0x2a6   :  { %6004 = vmatpush.bf16.msra.mxu2 %v7475_v17  ;;  %v8051_v17 = vor.u32 %v10261_v26, %v8048_v5  ;;  %v8032_v57 = vld [vmem:[%s15936_s1 + $0xb78] sm:$0xf0]  ;;  %v10285_v9 = vld [vmem:[%s15936_s1 + $0xc4c] sm:$0xf] }
 0x2a7   :  { %6017 = vmatpush.bf16.msra.mxu3 %v7603_v20  ;;  %5979 = vmatmul.bf16.vlgmr.msra.gmra.mxu0 %v11220_v44  ;;  %v10297_v44 = vld [vmem:[%s15936_s1 + $0xcac] sm:$0xf]  ;;  %v8160_v41 = vld [vmem:[%s15936_s1 + $0xc78] sm:$0xf0] }
 0x2a8   :  { %6023 = vmatpush.bf16.msrb.mxu0 %v7843_v54  ;;  %5992 = vmatmul.bf16.vlgmr.msra.gmra.mxu1 %v11208_v38  ;;  %v10197_v38 = vld [vmem:[%s15936_s1 + $0x98c] sm:$0xf]  ;;  %v5786_v54 = vadd.f32 %v5785_v27, %v5773_v40  ;;  %v7760_v60 = vld [vmem:[%s15936_s1 + $0x958] sm:$0xf0] }
 0x2a9   :  { %6036 = vmatpush.bf16.msrb.mxu1 %v7971_v56  ;;  %6005 = vmatmul.bf16.vlgmr.msra.gmra.mxu2 %v11218_v42  ;;  %v7792_v42 = vld [vmem:[%s15936_s1 + $0x998] sm:$0xf0]  ;;  %v10225_v20 = vld [vmem:[%s15936_s1 + $0xa6c] sm:$0xf] }
 0x2aa   :  { %6049 = vmatpush.bf16.msrb.mxu2 %v8099_v36  ;;  %6018 = vmatmul.bf16.vlgmr.msra.gmra.mxu3 %v11409_v25  ;;  %v8195_v25 = vor.u32 %v10297_v44, %v8192_v14  ;;  %v7795_v43 = vor.u32 %v10197_v38, %v7792_v42  ;;  %v7904_v56 = vld [vmem:[%s15936_s1 + $0xa78] sm:$0xf0]  ;;  %v10257_v36 = vld [vmem:[%s15936_s1 + $0xb6c] sm:$0xf]  ;;  %v7763_v44 = vor.u32 %v10189_v47, %v7760_v60 }
 0x2ab   :  { %6062 = vmatpush.bf16.msrb.mxu3 %v8227_v18  ;;  %v7779_v18 = vor.u32 %v10193_v50, %v7776_v51  ;;  %v7907_v58 = vor.u32 %v10225_v20, %v7904_v56  ;;  %v8035_v59 = vor.u32 %v10257_v36, %v8032_v57  ;;  %v8016_v4 = vld [vmem:[%s15936_s1 + $0xb58] sm:$0xf0]  ;;  %v10185_v38 = vld [vmem:[%s15936_s1 + $0x92c] sm:$0xf] }
 0x2ac   :  { %6024 = vmatpush.bf16.msrb.mxu0 %v7827_v62  ;;  %v8163_v62 = vor.u32 %v10289_v22, %v8160_v41  ;;  %v8144_v55 = vld [vmem:[%s15936_s1 + $0xc58] sm:$0xf0]  ;;  %v5774_v10 = vpop.f32.mrf.mxu0  ;;  %v10217_v21 = vld [vmem:[%s15936_s1 + $0xa2c] sm:$0xf] }
 0x2ad   :  { %6037 = vmatpush.bf16.msrb.mxu1 %v7955_v63  ;;  %v5798_v63 = vpop.f32.mrf.mxu2  ;;  %v5787_v14 = vpop.f32.mrf.mxu1  ;;  %v7744_v42 = vld [vmem:[%s15936_s1 + $0x938] sm:$0xf0]  ;;  %v10249_v26 = vld [vmem:[%s15936_s1 + $0xb2c] sm:$0xf] }
 0x2ae   :  { %6050 = vmatpush.bf16.msrb.mxu2 %v8083_v52  ;;  %v7888_v52 = vld [vmem:[%s15936_s1 + $0xa58] sm:$0xf0]  ;;  %v5799_v6 = vadd.f32 %v5798_v63, %v5786_v54  ;;  %v10281_v32 = vld [vmem:[%s15936_s1 + $0xc2c] sm:$0xf]  ;;  %v7747_v0 = vor.u32 %v10185_v38, %v7744_v42 }
 0x2af   :  { %6063 = vmatpush.bf16.msrb.mxu3 %v8211_v8  ;;  %v5811_v8 = vpop.f32.mrf.mxu3  ;;  %v7872_v13 = vld [vmem:[%s15936_s1 + $0xa38] sm:$0xf0]  ;;  %v10181_v40 = vld [vmem:[%s15936_s1 + $0x90c] sm:$0xf] }
 0x2b0   :  { %6025 = vmatpush.bf16.msrb.mxu0 %v7811_v2  ;;  %v15168_v2 = vadd.f32 %v5811_v8, %v5799_v6  ;;  %v8000_v5 = vld [vmem:[%s15936_s1 + $0xb38] sm:$0xf0]  ;;  %v7875_v27 = vor.u32 %v10217_v21, %v7872_v13  ;;  %v10245_v51 = vld [vmem:[%s15936_s1 + $0xb0c] sm:$0xf] }
 0x2b1   :  { %6038 = vmatpush.bf16.msrb.mxu1 %v7939_v15  ;;  %v7891_v15 = vor.u32 %v10221_v61, %v7888_v52  ;;  %v8128_v34 = vld [vmem:[%s15936_s1 + $0xc38] sm:$0xf0]  ;;  %v10277_v54 = vld [vmem:[%s15936_s1 + $0xc0c] sm:$0xf] }
 0x2b2   :  { %6051 = vmatpush.bf16.msrb.mxu2 %v8067_v53  ;;  %v8019_v53 = vor.u32 %v10253_v19, %v8016_v4  ;;  %v7856_v50 = vld [vmem:[%s15936_s1 + $0xa18] sm:$0xf0]  ;;  %v8131_v20 = vor.u32 %v10281_v32, %v8128_v34  ;;  %v10337_v57 = vld [vmem:[%s15936_s1 + $0xdec] sm:$0xf] }
 0x2b3   :  { %6064 = vmatpush.bf16.msrb.mxu3 %v8195_v25  ;;  %v8147_v25 = vor.u32 %v10285_v9, %v8144_v55  ;;  %v8112_v56 = vld [vmem:[%s15936_s1 + $0xc18] sm:$0xf0]  ;;  %v10369_v41 = vld [vmem:[%s15936_s1 + $0xeec] sm:$0xf] }
 0x2b4   :  { %6026 = vmatpush.bf16.msrb.mxu0 %v7795_v43  ;;  %v7728_v43 = vld [vmem:[%s15936_s1 + $0x918] sm:$0xf0]  ;;  %v10401_v47 = vld [vmem:[%s15936_s1 + $0xfec] sm:$0xf]  ;;  %v8115_v19 = vor.u32 %v10277_v54, %v8112_v56 }
 0x2b5   :  { %6039 = vmatpush.bf16.msrb.mxu1 %v7923_v24  ;;  %v8003_v24 = vor.u32 %v10249_v26, %v8000_v5  ;;  %v5800_v36 = vpop.f32.mrf.mxu2  ;;  %v8352_v22 = vld [vmem:[%s15936_s1 + $0xdf8] sm:$0xf0]  ;;  %v10433_v63 = vld [vmem:[%s15936_s1 + $0x10ec] sm:$0xf] }
 0x2b6   :  { %6052 = vmatpush.bf16.msrb.mxu2 %v8051_v17  ;;  %v10213_v17 = vld [vmem:[%s15936_s1 + $0xa0c] sm:$0xf]  ;;  %v8608_v60 = vld [vmem:[%s15936_s1 + $0xff8] sm:$0xf0]  ;;  %v8355_v4 = vor.u32 %v10337_v57, %v8352_v22 }
 0x2b7   :  { %6065 = vmatpush.bf16.msrb.mxu3 %v8179_v48  ;;  %v7984_v48 = vld [vmem:[%s15936_s1 + $0xb18] sm:$0xf0]  ;;  %v7859_v61 = vor.u32 %v10213_v17, %v7856_v50  ;;  %v8611_v8 = vor.u32 %v10401_v47, %v8608_v60  ;;  %v10333_v9 = vld [vmem:[%s15936_s1 + $0xdcc] sm:$0xf] }
 0x2b8   :  { %6027 = vmatpush.bf16.msrb.mxu0 %v7779_v18  ;;  %v5813_v18 = vpop.f32.mrf.mxu3  ;;  %v8736_v52 = vld [vmem:[%s15936_s1 + $0x10f8] sm:$0xf0]  ;;  %v10365_v10 = vld [vmem:[%s15936_s1 + $0xecc] sm:$0xf] }
 0x2b9   :  { %6040 = vmatpush.bf16.msrb.mxu1 %v7907_v58  ;;  %v7731_v58 = vor.u32 %v10181_v40, %v7728_v43  ;;  %v8336_v55 = vld [vmem:[%s15936_s1 + $0xdd8] sm:$0xf0]  ;;  %v10429_v38 = vld [vmem:[%s15936_s1 + $0x10cc] sm:$0xf] }
 0x2ba   :  { %6053 = vmatpush.bf16.msrb.mxu2 %v8035_v59  ;;  %v8480_v59 = vld [vmem:[%s15936_s1 + $0xef8] sm:$0xf0]  ;;  %v8339_v21 = vor.u32 %v10333_v9, %v8336_v55  ;;  %v10329_v26 = vld [vmem:[%s15936_s1 + $0xdac] sm:$0xf] }
 0x2bb   :  { %6066 = vmatpush.bf16.msrb.mxu3 %v8163_v62  ;;  %v7987_v62 = vor.u32 %v10245_v51, %v7984_v48  ;;  %v8483_v6 = vor.u32 %v10369_v41, %v8480_v59  ;;  %v8464_v14 = vld [vmem:[%s15936_s1 + $0xed8] sm:$0xf0]  ;;  %v10361_v32 = vld [vmem:[%s15936_s1 + $0xeac] sm:$0xf] }
 0x2bc   :  { %6028 = vmatpush.bf16.msrb.mxu0 %v7763_v44  ;;  %v8739_v44 = vor.u32 %v10433_v63, %v8736_v52  ;;  %v8720_v42 = vld [vmem:[%s15936_s1 + $0x10d8] sm:$0xf0]  ;;  %v10393_v40 = vld [vmem:[%s15936_s1 + $0xfac] sm:$0xf] }
 0x2bd   :  { %6041 = vmatpush.bf16.msrb.mxu1 %v7891_v15  ;;  %v10397_v15 = vld [vmem:[%s15936_s1 + $0xfcc] sm:$0xf]  ;;  %v8320_v5 = vld [vmem:[%s15936_s1 + $0xdb8] sm:$0xf0]  ;;  %v8723_v34 = vor.u32 %v10429_v38, %v8720_v42 }
 0x2be   :  { %6054 = vmatpush.bf16.msrb.mxu2 %v8019_v53  ;;  %v8592_v53 = vld [vmem:[%s15936_s1 + $0xfd8] sm:$0xf0]  ;;  %v10357_v51 = vld [vmem:[%s15936_s1 + $0xe8c] sm:$0xf] }
 0x2bf   :  { %6067 = vmatpush.bf16.msrb.mxu3 %v8147_v25  ;;  %v8467_v25 = vor.u32 %v10365_v10, %v8464_v14  ;;  %v8595_v13 = vor.u32 %v10397_v15, %v8592_v53  ;;  %v8576_v43 = vld [vmem:[%s15936_s1 + $0xfb8] sm:$0xf0]  ;;  %v10389_v48 = vld [vmem:[%s15936_s1 + $0xf8c] sm:$0xf] }
 0x2c0   :  { %6029 = vmatpush.bf16.msrb.mxu0 %v7747_v0  ;;  %v8448_v0 = vld [vmem:[%s15936_s1 + $0xeb8] sm:$0xf0]  ;;  %v8579_v50 = vor.u32 %v10393_v40, %v8576_v43  ;;  %v10421_v36 = vld [vmem:[%s15936_s1 + $0x108c] sm:$0xf] }
 0x2c1   :  { %6042 = vmatpush.bf16.msrb.mxu1 %v7875_v27  ;;  %v8704_v27 = vld [vmem:[%s15936_s1 + $0x10b8] sm:$0xf0]  ;;  %v8451_v17 = vor.u32 %v10361_v32, %v8448_v0  ;;  %v10321_v47 = vld [vmem:[%s15936_s1 + $0xd6c] sm:$0xf] }
 0x2c2   :  { %6055 = vmatpush.bf16.msrb.mxu2 %v8003_v24  ;;  %v8323_v24 = vor.u32 %v10329_v26, %v8320_v5  ;;  %v8560_v54 = vld [vmem:[%s15936_s1 + $0xf98] sm:$0xf0]  ;;  %v10385_v52 = vld [vmem:[%s15936_s1 + $0xf6c] sm:$0xf] }
 0x2c3   :  { %6068 = vmatpush.bf16.msrb.mxu3 %v8131_v20  ;;  %v8432_v20 = vld [vmem:[%s15936_s1 + $0xe98] sm:$0xf0]  ;;  %v8563_v59 = vor.u32 %v10389_v48, %v8560_v54  ;;  %v10317_v10 = vld [vmem:[%s15936_s1 + $0xd4c] sm:$0xf] }
 0x2c4   :  { %6030 = vmatpush.bf16.msrb.mxu0 %v7731_v58  ;;  %v5824_v56 = vpop.f32.mrf.mxu0  ;;  %v8688_v57 = vld [vmem:[%s15936_s1 + $0x1098] sm:$0xf0]  ;;  %v8435_v58 = vor.u32 %v10357_v51, %v8432_v20  ;;  %v10349_v14 = vld [vmem:[%s15936_s1 + $0xe4c] sm:$0xf] }
 0x2c5   :  { %6043 = vmatpush.bf16.msrb.mxu1 %v7859_v61  ;;  %v5825_v22 = vadd.f32 %v5824_v56, %v15168_v2  ;;  %v5837_v18 = vpop.f32.mrf.mxu1  ;;  %v8288_v60 = vld [vmem:[%s15936_s1 + $0xd78] sm:$0xf0]  ;;  %v10353_v61 = vld [vmem:[%s15936_s1 + $0xe6c] sm:$0xf]  ;;  %v8691_v2 = vor.u32 %v10421_v36, %v8688_v57 }
 0x2c6   :  { %6056 = vmatpush.bf16.msrb.mxu2 %v7987_v62  ;;  %v8416_v63 = vld [vmem:[%s15936_s1 + $0xe78] sm:$0xf0]  ;;  %v10381_v42 = vld [vmem:[%s15936_s1 + $0xf4c] sm:$0xf] }
 0x2c7   :  { %6069 = vmatpush.bf16.msrb.mxu3 %v8115_v19  ;;  %6031 = vmatmul.bf16.vlgmr.msrb.gmra.mxu0 %v11422_v30  ;;  %v10425_v30 = vld [vmem:[%s15936_s1 + $0x10ac] sm:$0xf]  ;;  %v5838_v62 = vadd.f32 %v5837_v18, %v5825_v22  ;;  %v8544_v19 = vld [vmem:[%s15936_s1 + $0xf78] sm:$0xf0]  ;;  %v8419_v9 = vor.u32 %v10353_v61, %v8416_v63 }
 0x2c8   :  { %6075 = vmatpush.bf16.msra.mxu0 %v8355_v4  ;;  %6044 = vmatmul.bf16.vlgmr.msrb.gmra.mxu1 %v11420_v29  ;;  %v10325_v29 = vld [vmem:[%s15936_s1 + $0xd8c] sm:$0xf]  ;;  %v8547_v55 = vor.u32 %v10385_v52, %v8544_v19  ;;  %v8400_v38 = vld [vmem:[%s15936_s1 + $0xe58] sm:$0xf0] }
 0x2c9   :  { %6088 = vmatpush.bf16.msra.mxu1 %v8483_v6  ;;  %6057 = vmatmul.bf16.vlgmr.msrb.gmra.mxu2 %v11430_v33  ;;  %v8304_v33 = vld [vmem:[%s15936_s1 + $0xd98] sm:$0xf0]  ;;  %v10417_v4 = vld [vmem:[%s15936_s1 + $0x106c] sm:$0xf]  ;;  %v8403_v43 = vor.u32 %v10349_v14, %v8400_v38 }
 0x2ca   :  { %6101 = vmatpush.bf16.msra.mxu2 %v8611_v8  ;;  %6070 = vmatmul.bf16.vlgmr.msrb.gmra.mxu3 %v11619_v23  ;;  %v8707_v23 = vor.u32 %v10425_v30, %v8704_v27  ;;  %v8307_v41 = vor.u32 %v10325_v29, %v8304_v33  ;;  %v8672_v6 = vld [vmem:[%s15936_s1 + $0x1078] sm:$0xf0]  ;;  %v8291_v8 = vor.u32 %v10321_v47, %v8288_v60  ;;  %v10413_v26 = vld [vmem:[%s15936_s1 + $0x104c] sm:$0xf] }
 0x2cb   :  { %6114 = vmatpush.bf16.msra.mxu3 %v8739_v44  ;;  %v8272_v44 = vld [vmem:[%s15936_s1 + $0xd58] sm:$0xf0]  ;;  %v8675_v15 = vor.u32 %v10417_v4, %v8672_v6  ;;  %v10313_v27 = vld [vmem:[%s15936_s1 + $0xd2c] sm:$0xf] }
 0x2cc   :  { %6076 = vmatpush.bf16.msra.mxu0 %v8339_v21  ;;  %v5850_v53 = vpop.f32.mrf.mxu2  ;;  %v8528_v21 = vld [vmem:[%s15936_s1 + $0xf58] sm:$0xf0]  ;;  %v5826_v32 = vpop.f32.mrf.mxu0  ;;  %v10377_v33 = vld [vmem:[%s15936_s1 + $0xf2c] sm:$0xf] }
 0x2cd   :  { %6089 = vmatpush.bf16.msra.mxu1 %v8467_v25  ;;  %v5851_v25 = vadd.f32 %v5850_v53, %v5838_v62  ;;  %v8656_v5 = vld [vmem:[%s15936_s1 + $0x1058] sm:$0xf0]  ;;  %v5839_v0 = vpop.f32.mrf.mxu1  ;;  %v8531_v30 = vor.u32 %v10381_v42, %v8528_v21  ;;  %v10309_v54 = vld [vmem:[%s15936_s1 + $0xd0c] sm:$0xf] }
 0x2ce   :  { %6102 = vmatpush.bf16.msra.mxu2 %v8595_v13  ;;  %v5863_v13 = vpop.f32.mrf.mxu3  ;;  %v8384_v29 = vld [vmem:[%s15936_s1 + $0xe38] sm:$0xf0]  ;;  %v10341_v22 = vld [vmem:[%s15936_s1 + $0xe0c] sm:$0xf] }
 0x2cf   :  { %6115 = vmatpush.bf16.msra.mxu3 %v8723_v34  ;;  %v8275_v34 = vor.u32 %v10317_v10, %v8272_v44  ;;  %v15367_v40 = vadd.f32 %v5863_v13, %v5851_v25  ;;  %v8512_v51 = vld [vmem:[%s15936_s1 + $0xf38] sm:$0xf0]  ;;  %v10373_v18 = vld [vmem:[%s15936_s1 + $0xf0c] sm:$0xf] }
 0x2d0   :  { %6077 = vmatpush.bf16.msra.mxu0 %v8323_v24  ;;  %v8256_v24 = vld [vmem:[%s15936_s1 + $0xd38] sm:$0xf0]  ;;  %v8515_v57 = vor.u32 %v10377_v33, %v8512_v51  ;;  %v10405_v47 = vld [vmem:[%s15936_s1 + $0x100c] sm:$0xf] }
 0x2d1   :  { %6090 = vmatpush.bf16.msra.mxu1 %v8451_v17  ;;  %v10345_v17 = vld [vmem:[%s15936_s1 + $0xe2c] sm:$0xf]  ;;  %v8640_v20 = vld [vmem:[%s15936_s1 + $0x1038] sm:$0xf0]  ;;  %v8259_v48 = vor.u32 %v10313_v27, %v8256_v24 }
 0x2d2   :  { %6103 = vmatpush.bf16.msra.mxu2 %v8579_v50  ;;  %v8659_v50 = vor.u32 %v10413_v26, %v8656_v5  ;;  %v8240_v56 = vld [vmem:[%s15936_s1 + $0xd18] sm:$0xf0]  ;;  %v8387_v36 = vor.u32 %v10345_v17, %v8384_v29  ;;  %v10497_v63 = vld [vmem:[%s15936_s1 + $0x12ec] sm:$0xf] }
 0x2d3   :  { %6116 = vmatpush.bf16.msra.mxu3 %v8707_v23  ;;  %v10409_v23 = vld [vmem:[%s15936_s1 + $0x102c] sm:$0xf]  ;;  %v8624_v60 = vld [vmem:[%s15936_s1 + $0x1018] sm:$0xf0]  ;;  %v8243_v19 = vor.u32 %v10309_v54, %v8240_v56 }
 0x2d4   :  { %6078 = vmatpush.bf16.msra.mxu0 %v8307_v41  ;;  %v8368_v41 = vld [vmem:[%s15936_s1 + $0xe18] sm:$0xf0]  ;;  %v5852_v61 = vpop.f32.mrf.mxu2  ;;  %v10529_v6 = vld [vmem:[%s15936_s1 + $0x13ec] sm:$0xf]  ;;  %v8627_v14 = vor.u32 %v10405_v47, %v8624_v60 }
 0x2d5   :  { %6091 = vmatpush.bf16.msra.mxu1 %v8435_v58  ;;  %v8643_v58 = vor.u32 %v10409_v23, %v8640_v20  ;;  %v8864_v62 = vld [vmem:[%s15936_s1 + $0x11f8] sm:$0xf0]  ;;  %v10561_v10 = vld [vmem:[%s15936_s1 + $0x14ec] sm:$0xf] }
 0x2d6   :  { %6104 = vmatpush.bf16.msra.mxu2 %v8563_v59  ;;  %v8496_v59 = vld [vmem:[%s15936_s1 + $0xf18] sm:$0xf0]  ;;  %v5865_v52 = vpop.f32.mrf.mxu3  ;;  %v10461_v42 = vld [vmem:[%s15936_s1 + $0x11cc] sm:$0xf] }
 0x2d7   :  { %6117 = vmatpush.bf16.msra.mxu3 %v8691_v2  ;;  %v10465_v2 = vld [vmem:[%s15936_s1 + $0x11ec] sm:$0xf]  ;;  %v8992_v4 = vld [vmem:[%s15936_s1 + $0x12f8] sm:$0xf0] }
 0x2d8   :  { %6079 = vmatpush.bf16.msra.mxu0 %v8291_v8  ;;  %v9120_v8 = vld [vmem:[%s15936_s1 + $0x13f8] sm:$0xf0]  ;;  %v8995_v53 = vor.u32 %v10497_v63, %v8992_v4  ;;  %v10493_v25 = vld [vmem:[%s15936_s1 + $0x12cc] sm:$0xf] }
 0x2d9   :  { %6092 = vmatpush.bf16.msra.mxu1 %v8419_v9  ;;  %v8371_v9 = vor.u32 %v10341_v22, %v8368_v41  ;;  %v9248_v44 = vld [vmem:[%s15936_s1 + $0x14f8] sm:$0xf0]  ;;  %v9123_v38 = vor.u32 %v10529_v6, %v9120_v8  ;;  %v10525_v5 = vld [vmem:[%s15936_s1 + $0x13cc] sm:$0xf] }
 0x2da   :  { %6105 = vmatpush.bf16.msra.mxu2 %v8547_v55  ;;  %v8499_v55 = vor.u32 %v10373_v18, %v8496_v59  ;;  %v8848_v21 = vld [vmem:[%s15936_s1 + $0x11d8] sm:$0xf0]  ;;  %v9251_v13 = vor.u32 %v10561_v10, %v9248_v44  ;;  %v10457_v24 = vld [vmem:[%s15936_s1 + $0x11ac] sm:$0xf] }
 0x2db   :  { %6118 = vmatpush.bf16.msra.mxu3 %v8675_v15  ;;  %v8867_v15 = vor.u32 %v10465_v2, %v8864_v62  ;;  %v8976_v26 = vld [vmem:[%s15936_s1 + $0x12d8] sm:$0xf0]  ;;  %v10521_v51 = vld [vmem:[%s15936_s1 + $0x13ac] sm:$0xf] }
 0x2dc   :  { %6080 = vmatpush.bf16.msra.mxu0 %v8275_v34  ;;  %v9104_v32 = vld [vmem:[%s15936_s1 + $0x13d8] sm:$0xf0]  ;;  %v10557_v34 = vld [vmem:[%s15936_s1 + $0x14cc] sm:$0xf] }
 0x2dd   :  { %6093 = vmatpush.bf16.msra.mxu1 %v8403_v43  ;;  %v9232_v0 = vld [vmem:[%s15936_s1 + $0x14d8] sm:$0xf0]  ;;  %v8851_v43 = vor.u32 %v10461_v42, %v8848_v21  ;;  %v9107_v27 = vor.u32 %v10525_v5, %v9104_v32  ;;  %v10517_v22 = vld [vmem:[%s15936_s1 + $0x138c] sm:$0xf] }
 0x2de   :  { %6106 = vmatpush.bf16.msra.mxu2 %v8531_v30  ;;  %v8979_v30 = vor.u32 %v10493_v25, %v8976_v26  ;;  %v8832_v17 = vld [vmem:[%s15936_s1 + $0x11b8] sm:$0xf0]  ;;  %v9235_v29 = vor.u32 %v10557_v34, %v9232_v0  ;;  %v10449_v63 = vld [vmem:[%s15936_s1 + $0x116c] sm:$0xf] }
 0x2df   :  { %6119 = vmatpush.bf16.msra.mxu3 %v8659_v50  ;;  %v10489_v50 = vld [vmem:[%s15936_s1 + $0x12ac] sm:$0xf]  ;;  %v8960_v33 = vld [vmem:[%s15936_s1 + $0x12b8] sm:$0xf0] }
 0x2e0   :  { %6081 = vmatpush.bf16.msra.mxu0 %v8259_v48  ;;  %v9088_v23 = vld [vmem:[%s15936_s1 + $0x13b8] sm:$0xf0]  ;;  %v8835_v48 = vor.u32 %v10457_v24, %v8832_v17  ;;  %v8963_v54 = vor.u32 %v10489_v50, %v8960_v33  ;;  %v10513_v8 = vld [vmem:[%s15936_s1 + $0x136c] sm:$0xf] }
 0x2e1   :  { %6094 = vmatpush.bf16.msra.mxu1 %v8387_v36  ;;  %v9216_v20 = vld [vmem:[%s15936_s1 + $0x14b8] sm:$0xf0]  ;;  %v9091_v56 = vor.u32 %v10521_v51, %v9088_v23  ;;  %v10485_v36 = vld [vmem:[%s15936_s1 + $0x128c] sm:$0xf] }
 0x2e2   :  { %6107 = vmatpush.bf16.msra.mxu2 %v8515_v57  ;;  %v8944_v57 = vld [vmem:[%s15936_s1 + $0x1298] sm:$0xf0]  ;;  %v10477_v42 = vld [vmem:[%s15936_s1 + $0x124c] sm:$0xf] }
 0x2e3   :  { %6120 = vmatpush.bf16.msra.mxu3 %v8643_v58  ;;  %v9072_v41 = vld [vmem:[%s15936_s1 + $0x1398] sm:$0xf0]  ;;  %v10549_v58 = vld [vmem:[%s15936_s1 + $0x148c] sm:$0xf]  ;;  %v8947_v2 = vor.u32 %v10485_v36, %v8944_v57 }
 0x2e4   :  { %6082 = vmatpush.bf16.msra.mxu0 %v8243_v19  ;;  %v5876_v18 = vpop.f32.mrf.mxu0  ;;  %v9200_v59 = vld [vmem:[%s15936_s1 + $0x1498] sm:$0xf0]  ;;  %v9075_v62 = vor.u32 %v10517_v22, %v9072_v41  ;;  %v10481_v19 = vld [vmem:[%s15936_s1 + $0x126c] sm:$0xf] }
 0x2e5   :  { %6095 = vmatpush.bf16.msra.mxu1 %v8371_v9  ;;  %v5877_v47 = vadd.f32 %v5876_v18, %v15367_v40  ;;  %v5889_v61 = vpop.f32.mrf.mxu1  ;;  %v8800_v52 = vld [vmem:[%s15936_s1 + $0x1178] sm:$0xf0]  ;;  %v9203_v40 = vor.u32 %v10549_v58, %v9200_v59  ;;  %v10509_v26 = vld [vmem:[%s15936_s1 + $0x134c] sm:$0xf] }
 0x2e6   :  { %6108 = vmatpush.bf16.msra.mxu2 %v8499_v55  ;;  %v8928_v6 = vld [vmem:[%s15936_s1 + $0x1278] sm:$0xf0]  ;;  %v10545_v55 = vld [vmem:[%s15936_s1 + $0x146c] sm:$0xf]  ;;  %v8803_v44 = vor.u32 %v10449_v63, %v8800_v52 }
 0x2e7   :  { %6121 = vmatpush.bf16.msra.mxu3 %v8627_v14  ;;  %6083 = vmatmul.bf16.vlgmr.msra.gmra.mxu0 %v11632_v31  ;;  %v10553_v31 = vld [vmem:[%s15936_s1 + $0x14ac] sm:$0xf]  ;;  %v5890_v4 = vadd.f32 %v5889_v61, %v5877_v47  ;;  %v9056_v9 = vld [vmem:[%s15936_s1 + $0x1378] sm:$0xf0]  ;;  %v8931_v14 = vor.u32 %v10481_v19, %v8928_v6 }
 0x2e8   :  { %6127 = vmatpush.bf16.msrb.mxu0 %v8867_v15  ;;  %6096 = vmatmul.bf16.vlgmr.msra.gmra.mxu1 %v11630_v28  ;;  %v10453_v28 = vld [vmem:[%s15936_s1 + $0x118c] sm:$0xf]  ;;  %v9184_v10 = vld [vmem:[%s15936_s1 + $0x1478] sm:$0xf0]  ;;  %v9059_v15 = vor.u32 %v10513_v8, %v9056_v9 }
 0x2e9   :  { %6140 = vmatpush.bf16.msrb.mxu1 %v8995_v53  ;;  %6109 = vmatmul.bf16.vlgmr.msra.gmra.mxu2 %v11640_v35  ;;  %v8816_v35 = vld [vmem:[%s15936_s1 + $0x1198] sm:$0xf0]  ;;  %v10445_v53 = vld [vmem:[%s15936_s1 + $0x114c] sm:$0xf]  ;;  %v9187_v21 = vor.u32 %v10545_v55, %v9184_v10 }
 0x2ea   :  { %6153 = vmatpush.bf16.msrb.mxu2 %v9123_v38  ;;  %6122 = vmatmul.bf16.vlgmr.msra.gmra.mxu3 %v11829_v37  ;;  %v9219_v37 = vor.u32 %v10553_v31, %v9216_v20  ;;  %v8819_v60 = vor.u32 %v10453_v28, %v8816_v35  ;;  %v8784_v38 = vld [vmem:[%s15936_s1 + $0x1158] sm:$0xf0]  ;;  %v10541_v34 = vld [vmem:[%s15936_s1 + $0x144c] sm:$0xf] }
 0x2eb   :  { %6166 = vmatpush.bf16.msrb.mxu3 %v9251_v13  ;;  %v8912_v13 = vld [vmem:[%s15936_s1 + $0x1258] sm:$0xf0]  ;;  %v10473_v51 = vld [vmem:[%s15936_s1 + $0x122c] sm:$0xf] }
 0x2ec   :  { %6128 = vmatpush.bf16.msrb.mxu0 %v8851_v43  ;;  %v5902_v25 = vpop.f32.mrf.mxu2  ;;  %v9040_v5 = vld [vmem:[%s15936_s1 + $0x1358] sm:$0xf0]  ;;  %v8915_v17 = vor.u32 %v10477_v42, %v8912_v13  ;;  %v10505_v20 = vld [vmem:[%s15936_s1 + $0x132c] sm:$0xf] }
 0x2ed   :  { %6141 = vmatpush.bf16.msrb.mxu1 %v8979_v30  ;;  %v15560_v32 = vadd.f32 %v5902_v25, %v5890_v4  ;;  %v9168_v0 = vld [vmem:[%s15936_s1 + $0x1458] sm:$0xf0]  ;;  %v15568_v43 = vpop.f32.mrf.mxu3  ;;  %v5878_v30 = vpop.f32.mrf.mxu0  ;;  %v9043_v50 = vor.u32 %v10509_v26, %v9040_v5  ;;  %v10437_v35 = vld [vmem:[%s15936_s1 + $0x110c] sm:$0xf] }
 0x2ee   :  { %6154 = vmatpush.bf16.msrb.mxu2 %v9107_v27  ;;  %v8787_v27 = vor.u32 %v10445_v53, %v8784_v38  ;;  %v5891_v24 = vpop.f32.mrf.mxu1  ;;  %v8768_v33 = vld [vmem:[%s15936_s1 + $0x1138] sm:$0xf0]  ;;  %v9171_v23 = vor.u32 %v10541_v34, %v9168_v0  ;;  %v10469_v22 = vld [vmem:[%s15936_s1 + $0x120c] sm:$0xf] }
 0x2ef   :  { %6167 = vmatpush.bf16.msrb.mxu3 %v9235_v29  ;;  %v10441_v29 = vld [vmem:[%s15936_s1 + $0x112c] sm:$0xf]  ;;  %v8896_v31 = vld [vmem:[%s15936_s1 + $0x1238] sm:$0xf0]  ;;  %vm6233_vm2 = vcmp.gt.f32.partialorder %v15560_v32, 0.0 }
 0x2f0   :  { %6129 = vmatpush.bf16.msrb.mxu0 %v8835_v48  ;;  %v9024_v48 = vld [vmem:[%s15936_s1 + $0x1338] sm:$0xf0]  ;;  %v8771_v28 = vor.u32 %v10441_v29, %v8768_v33  ;;  %v10501_v18 = vld [vmem:[%s15936_s1 + $0x130c] sm:$0xf]  ;;  %v10727_v33 = vld [vmem:[%s15938_s2] sm:$0xf] }
 0x2f1   :  { %6142 = vmatpush.bf16.msrb.mxu1 %v8963_v54  ;;  %v10537_v54 = vld [vmem:[%s15936_s1 + $0x142c] sm:$0xf]  ;;  %v8752_v36 = vld [vmem:[%s15936_s1 + $0x1118] sm:$0xf0]  ;;  %v9027_v57 = vor.u32 %v10505_v20, %v9024_v48 }
 0x2f2   :  { %6155 = vmatpush.bf16.msrb.mxu2 %v9091_v56  ;;  %v9152_v56 = vld [vmem:[%s15936_s1 + $0x1438] sm:$0xf0]  ;;  %v10533_v47 = vld [vmem:[%s15936_s1 + $0x140c] sm:$0xf]  ;;  %v8755_v19 = vor.u32 %v10437_v35, %v8752_v36 }
 0x2f3   :  { %6168 = vmatpush.bf16.msrb.mxu3 %v9219_v37  ;;  %v8899_v37 = vor.u32 %v10473_v51, %v8896_v31  ;;  %v8880_v41 = vld [vmem:[%s15936_s1 + $0x1218] sm:$0xf0]  ;;  %v9155_v58 = vor.u32 %v10537_v54, %v9152_v56  ;;  %v10625_v63 = vld [vmem:[%s15936_s1 + $0x16ec] sm:$0xf]  ;;  %v838_v51 = vperm.slane %v10727_v33, 3 }
 0x2f4   :  { %6130 = vmatpush.bf16.msrb.mxu0 %v8819_v60  ;;  %v9008_v59 = vld [vmem:[%s15936_s1 + $0x1318] sm:$0xf0]  ;;  %v5904_v61 = vpop.f32.mrf.mxu2  ;;  %v10657_v4 = vld [vmem:[%s15936_s1 + $0x17ec] sm:$0xf]  ;;  %v8883_v8 = vor.u32 %v10469_v22, %v8880_v41 }
 0x2f5   :  { %6143 = vmatpush.bf16.msrb.mxu1 %v8947_v2  ;;  %v9136_v60 = vld [vmem:[%s15936_s1 + $0x1418] sm:$0xf0]  ;;  %v10593_v2 = vld [vmem:[%s15936_s1 + $0x15ec] sm:$0xf]  ;;  %v5917_v52 = vpop.f32.mrf.mxu3  ;;  %v9011_v9 = vor.u32 %v10501_v18, %v9008_v59 }
 0x2f6   :  { %6156 = vmatpush.bf16.msrb.mxu2 %v9075_v62  ;;  %v9376_v62 = vld [vmem:[%s15936_s1 + $0x15f8] sm:$0xf0]  ;;  %v10689_v55 = vld [vmem:[%s15936_s1 + $0x18ec] sm:$0xf] }
 0x2f7   :  { %6169 = vmatpush.bf16.msrb.mxu3 %v9203_v40  ;;  %v9504_v40 = vld [vmem:[%s15936_s1 + $0x16f8] sm:$0xf0]  ;;  %v10589_v38 = vld [vmem:[%s15936_s1 + $0x15cc] sm:$0xf] }
 0x2f8   :  { %6131 = vmatpush.bf16.msrb.mxu0 %v8803_v44  ;;  %v9632_v6 = vld [vmem:[%s15936_s1 + $0x17f8] sm:$0xf0]  ;;  %v9139_v44 = vor.u32 %v10533_v47, %v9136_v60  ;;  %v10653_v26 = vld [vmem:[%s15936_s1 + $0x17cc] sm:$0xf] }
 0x2f9   :  { %6144 = vmatpush.bf16.msrb.mxu1 %v8931_v14  ;;  %v9760_v10 = vld [vmem:[%s15936_s1 + $0x18f8] sm:$0xf0]  ;;  %v9379_v14 = vor.u32 %v10593_v2, %v9376_v62  ;;  %v9635_v53 = vor.u32 %v10657_v4, %v9632_v6  ;;  %v10685_v34 = vld [vmem:[%s15936_s1 + $0x18cc] sm:$0xf] }
 0x2fa   :  { %6157 = vmatpush.bf16.msrb.mxu2 %v9059_v15  ;;  %v9507_v15 = vor.u32 %v10625_v63, %v9504_v40  ;;  %v9360_v42 = vld [vmem:[%s15936_s1 + $0x15d8] sm:$0xf0]  ;;  %v9763_v25 = vor.u32 %v10689_v55, %v9760_v10  ;;  %v10617_v29 = vld [vmem:[%s15936_s1 + $0x16ac] sm:$0xf] }
 0x2fb   :  { %6170 = vmatpush.bf16.msrb.mxu3 %v9187_v21  ;;  %v10621_v21 = vld [vmem:[%s15936_s1 + $0x16cc] sm:$0xf]  ;;  %v9488_v13 = vld [vmem:[%s15936_s1 + $0x16d8] sm:$0xf0]  ;;  %v9363_v30 = vor.u32 %v10589_v38, %v9360_v42 }
 0x2fc   :  { %6132 = vmatpush.bf16.msrb.mxu0 %v8787_v27  ;;  %v9616_v5 = vld [vmem:[%s15936_s1 + $0x17d8] sm:$0xf0]  ;;  %v10585_v27 = vld [vmem:[%s15936_s1 + $0x15ac] sm:$0xf]  ;;  %v9491_v24 = vor.u32 %v10621_v21, %v9488_v13 }
 0x2fd   :  { %6145 = vmatpush.bf16.msrb.mxu1 %v8915_v17  ;;  %v9744_v0 = vld [vmem:[%s15936_s1 + $0x18d8] sm:$0xf0]  ;;  %v9619_v17 = vor.u32 %v10653_v26, %v9616_v5  ;;  %v10649_v20 = vld [vmem:[%s15936_s1 + $0x17ac] sm:$0xf] }
 0x2fe   :  { %6158 = vmatpush.bf16.msrb.mxu2 %v9043_v50  ;;  %v9344_v50 = vld [vmem:[%s15936_s1 + $0x15b8] sm:$0xf0]  ;;  %v10677_v41 = vld [vmem:[%s15936_s1 + $0x188c] sm:$0xf] }
 0x2ff   :  { %6171 = vmatpush.bf16.msrb.mxu3 %v9171_v23  ;;  %v9747_v23 = vor.u32 %v10685_v34, %v9744_v0  ;;  %v9472_v31 = vld [vmem:[%s15936_s1 + $0x16b8] sm:$0xf0]  ;;  %v9347_v56 = vor.u32 %v10585_v27, %v9344_v50  ;;  %v10577_v61 = vld [vmem:[%s15936_s1 + $0x156c] sm:$0xf] }
 0x300   :  { %6133 = vmatpush.bf16.msrb.mxu0 %v8771_v28  ;;  %v9600_v48 = vld [vmem:[%s15936_s1 + $0x17b8] sm:$0xf0]  ;;  %v9475_v28 = vor.u32 %v10617_v29, %v9472_v31  ;;  %v10609_v62 = vld [vmem:[%s15936_s1 + $0x166c] sm:$0xf] }
 0x301   :  { %6146 = vmatpush.bf16.msrb.mxu1 %v8899_v37  ;;  %v9728_v54 = vld [vmem:[%s15936_s1 + $0x18b8] sm:$0xf0]  ;;  %v9603_v35 = vor.u32 %v10649_v20, %v9600_v48  ;;  %v10641_v4 = vld [vmem:[%s15936_s1 + $0x176c] sm:$0xf] }
 0x302   :  { %6159 = vmatpush.bf16.msrb.mxu2 %v9027_v57  ;;  %v9328_v36 = vld [vmem:[%s15936_s1 + $0x1598] sm:$0xf0]  ;;  %v10605_v38 = vld [vmem:[%s15936_s1 + $0x164c] sm:$0xf] }
 0x303   :  { %6172 = vmatpush.bf16.msrb.mxu3 %v9155_v58  ;;  %v9456_v57 = vld [vmem:[%s15936_s1 + $0x1698] sm:$0xf0]  ;;  %v10637_v13 = vld [vmem:[%s15936_s1 + $0x174c] sm:$0xf] }
 0x304   :  { %6134 = vmatpush.bf16.msrb.mxu0 %v8755_v19  ;;  %v9584_v22 = vld [vmem:[%s15936_s1 + $0x1798] sm:$0xf0]  ;;  %v5928_v59 = vpop.f32.mrf.mxu0  ;;  %v10669_v0 = vld [vmem:[%s15936_s1 + $0x184c] sm:$0xf] }
 0x305   :  { %6147 = vmatpush.bf16.msrb.mxu1 %v8883_v8  ;;  %v9712_v18 = vld [vmem:[%s15936_s1 + $0x1898] sm:$0xf0]  ;;  %v5941_v52 = vpop.f32.mrf.mxu1  ;;  %v10673_v8 = vld [vmem:[%s15936_s1 + $0x186c] sm:$0xf] }
 0x306   :  { %6160 = vmatpush.bf16.msrb.mxu2 %v9011_v9  ;;  %v9312_v2 = vld [vmem:[%s15936_s1 + $0x1578] sm:$0xf0]  ;;  %v9715_v19 = vor.u32 %v10677_v41, %v9712_v18  ;;  %v10569_v33 = vld [vmem:[%s15936_s1 + $0x152c] sm:$0xf] }
 0x307   :  { %6173 = vmatpush.bf16.msrb.mxu3 %v9139_v44  ;;  %6135 = vmatmul.bf16.vlgmr.msrb.gmra.mxu0 %v11842_v46  ;;  %v10681_v46 = vld [vmem:[%s15936_s1 + $0x18ac] sm:$0xf]  ;;  %v9440_v40 = vld [vmem:[%s15936_s1 + $0x1678] sm:$0xf0]  ;;  %v9315_v10 = vor.u32 %v10577_v61, %v9312_v2 }
 0x308   :  { %6179 = vmatpush.bf16.msra.mxu0 %v9379_v14  ;;  %6148 = vmatmul.bf16.vlgmr.msrb.gmra.mxu1 %v11840_v45  ;;  %v10581_v45 = vld [vmem:[%s15936_s1 + $0x158c] sm:$0xf]  ;;  %v9731_v37 = vor.u32 %v10681_v46, %v9728_v54  ;;  %v9568_v6 = vld [vmem:[%s15936_s1 + $0x1778] sm:$0xf0]  ;;  %v9443_v44 = vor.u32 %v10609_v62, %v9440_v40  ;;  %v10698_v40 = vld [vmem:[%s15939_s3 + $0x30] sm:$0xff] }
 0x309   :  { %6192 = vmatpush.bf16.msra.mxu1 %v9507_v15  ;;  %6161 = vmatmul.bf16.vlgmr.msrb.gmra.mxu2 %v11850_v49  ;;  %v5916_v49 = vadd.f32 %v15568_v43, %v838_v51  ;;  %v10645_v43 = vld [vmem:[%s15936_s1 + $0x178c] sm:$0xf]  ;;  %v9331_v58 = vor.u32 %v10581_v45, %v9328_v36  ;;  %v9696_v9 = vld [vmem:[%s15936_s1 + $0x1878] sm:$0xf0]  ;;  %v9571_v14 = vor.u32 %v10641_v4, %v9568_v6  ;;  %v10706_v4 = vld [vmem:[%s15939_s3 + $0x70] sm:$0xff] }
 0x30a   :  { %6205 = vmatpush.bf16.msra.mxu2 %v9635_v53  ;;  %6174 = vmatmul.bf16.vlgmr.msrb.gmra.mxu3 %v12044_v7  ;;  %v10613_v7 = vld [vmem:[%s15936_s1 + $0x168c] sm:$0xf]  ;;  %v9587_v60 = vor.u32 %v10645_v43, %v9584_v22  ;;  %v9296_v53 = vld [vmem:[%s15936_s1 + $0x1558] sm:$0xf0]  ;;  %v9699_v21 = vor.u32 %v10673_v8, %v9696_v9  ;;  %v10714_v6 = vld [vmem:[%s15939_s3 + $0xb0] sm:$0xff] }
 0x30b   :  { %6218 = vmatpush.bf16.msra.mxu3 %v9763_v25  ;;  %v9459_v47 = vor.u32 %v10613_v7, %v9456_v57  ;;  %v5929_v63 = vadd.f32 %v5928_v59, %v5916_v49  ;;  %v10573_v15 = vld [vmem:[%s15936_s1 + $0x154c] sm:$0xf]  ;;  %v9424_v25 = vld [vmem:[%s15936_s1 + $0x1658] sm:$0xf0] }
 0x30c   :  { %6180 = vmatpush.bf16.msra.mxu0 %v9363_v30  ;;  %v5954_v42 = vpop.f32.mrf.mxu2  ;;  %v9552_v26 = vld [vmem:[%s15936_s1 + $0x1758] sm:$0xf0]  ;;  %v9299_v27 = vor.u32 %v10573_v15, %v9296_v53  ;;  %v9427_v50 = vor.u32 %v10605_v38, %v9424_v25  ;;  %v10633_v46 = vld [vmem:[%s15936_s1 + $0x172c] sm:$0xf] }
 0x30d   :  { %6193 = vmatpush.bf16.msra.mxu1 %v9491_v24  ;;  %v5942_v55 = vadd.f32 %v5941_v52, %v5929_v63  ;;  %v5967_v34 = vpop.f32.mrf.mxu3  ;;  %v9680_v30 = vld [vmem:[%s15936_s1 + $0x1858] sm:$0xf0]  ;;  %v9555_v29 = vor.u32 %v10637_v13, %v9552_v26  ;;  %v5943_v31 = vpop.f32.mrf.mxu1  ;;  %v10565_v36 = vld [vmem:[%s15936_s1 + $0x150c] sm:$0xf]  ;;  %v10694_v26 = vld [vmem:[%s15939_s3 + $0x10] sm:$0xff] }
 0x30e   :  { %6206 = vmatpush.bf16.msra.mxu2 %v9619_v17  ;;  %v5930_v17 = vpop.f32.mrf.mxu0  ;;  %v9280_v51 = vld [vmem:[%s15936_s1 + $0x1538] sm:$0xf0]  ;;  %v9683_v20 = vor.u32 %v10669_v0, %v9680_v30  ;;  %v10629_v41 = vld [vmem:[%s15936_s1 + $0x170c] sm:$0xf]  ;;  %v10702_v0 = vld [vmem:[%s15939_s3 + $0x50] sm:$0xff] }
 0x30f   :  { %6219 = vmatpush.bf16.msra.mxu3 %v9747_v23  ;;  %v5955_v5 = vadd.f32 %v5954_v42, %v5942_v55  ;;  %v10601_v23 = vld [vmem:[%s15936_s1 + $0x162c] sm:$0xf]  ;;  %v9408_v48 = vld [vmem:[%s15936_s1 + $0x1638] sm:$0xf0]  ;;  %v10710_v30 = vld [vmem:[%s15939_s3 + $0x90] sm:$0xff] }
 0x310   :  { %6181 = vmatpush.bf16.msra.mxu0 %v9347_v56  ;;  %v9536_v54 = vld [vmem:[%s15936_s1 + $0x1738] sm:$0xf0]  ;;  %v10665_v56 = vld [vmem:[%s15936_s1 + $0x182c] sm:$0xf]  ;;  %v9411_v49 = vor.u32 %v10601_v23, %v9408_v48  ;;  %v10692_v31 = vld [vmem:[%s15939_s3] sm:$0xff] }
 0x311   :  { %6194 = vmatpush.bf16.msra.mxu1 %v9475_v28  ;;  %v15770_v24 = vadd.f32 %v5967_v34, %v5955_v5  ;;  %v9664_v28 = vld [vmem:[%s15936_s1 + $0x1838] sm:$0xf0]  ;;  %v9539_v45 = vor.u32 %v10633_v46, %v9536_v54  ;;  %v10661_v59 = vld [vmem:[%s15936_s1 + $0x180c] sm:$0xf]  ;;  %v10708_v48 = vld [vmem:[%s15939_s3 + $0x80] sm:$0xff] }
 0x312   :  { %6207 = vmatpush.bf16.msra.mxu2 %v9603_v35  ;;  %v9283_v35 = vor.u32 %v10569_v33, %v9280_v51  ;;  %v9264_v7 = vld [vmem:[%s15936_s1 + $0x1518] sm:$0xf0]  ;;  %v9667_v43 = vor.u32 %v10665_v56, %v9664_v28  ;;  %v10697_v8 = vld [vmem:[%s15939_s3 + $0x28] sm:$0xff]  ;;  %v6236_v33 = vmul.f32 0.01, %v14328_v39 }
 0x313   :  { %6220 = vmatpush.bf16.msra.mxu3 %v9731_v37  ;;  %v10597_v37 = vld [vmem:[%s15936_s1 + $0x160c] sm:$0xf]  ;;  %v9392_v22 = vld [vmem:[%s15936_s1 + $0x1618] sm:$0xf0]  ;;  %v6237_v51 = vmul.f32 0.01, %v15560_v32 }
 0x314   :  { %6182 = vmatpush.bf16.msra.mxu0 %v9331_v58  ;;  %v5956_v57 = vpop.f32.mrf.mxu2  ;;  %v9520_v18 = vld [vmem:[%s15936_s1 + $0x1718] sm:$0xf0]  ;;  %v9395_v61 = vor.u32 %v10597_v37, %v9392_v22  ;;  %v10705_v9 = vld [vmem:[%s15939_s3 + $0x68] sm:$0xff]  ;;  %v6240_v54 = vsel %vm6232_vm1, %v14328_v39, %v6236_v33 }
 0x315   :  { %6195 = vmatpush.bf16.msra.mxu1 %v9459_v47  ;;  %v5969_v58 = vpop.f32.mrf.mxu3  ;;  %v9648_v47 = vld [vmem:[%s15936_s1 + $0x1818] sm:$0xf0]  ;;  %v9523_v2 = vor.u32 %v10629_v41, %v9520_v18  ;;  %v10709_v17 = vld [vmem:[%s15939_s3 + $0x88] sm:$0xff]  ;;  %v6241_v56 = vsel %vm6233_vm2, %v15560_v32, %v6237_v51 }
 0x316   :  { %6208 = vmatpush.bf16.msra.mxu2 %v9587_v60  ;;  %v9267_v60 = vor.u32 %v10565_v36, %v9264_v7  ;;  %v9651_v62 = vor.u32 %v10661_v59, %v9648_v47  ;;  %v10699_v63 = vld [vmem:[%s15939_s3 + $0x38] sm:$0xff] }
 0x317   :  { %6221 = vmatpush.bf16.msra.mxu3 %v9715_v19  ;;  %v10707_v52 = vld [vmem:[%s15939_s3 + $0x78] sm:$0xff] }
 0x318   :  { %6183 = vmatpush.bf16.msra.mxu0 %v9315_v10  ;;  %v10715_v19 = vld [vmem:[%s15939_s3 + $0xb8] sm:$0xff]  ;;  %v10704_v10 = vld [vmem:[%s15939_s3 + $0x60] sm:$0xff] }
 0x319   :  { %6196 = vmatpush.bf16.msra.mxu1 %v9443_v44  ;;  %v10712_v44 = vld [vmem:[%s15939_s3 + $0xa0] sm:$0xff]  ;;  %v10695_v15 = vld [vmem:[%s15939_s3 + $0x18] sm:$0xff] }
 0x31a   :  { %6209 = vmatpush.bf16.msra.mxu2 %v9571_v14  ;;  %v10703_v53 = vld [vmem:[%s15939_s3 + $0x58] sm:$0xff] }
 0x31b   :  { %6222 = vmatpush.bf16.msra.mxu3 %v9699_v21  ;;  %v10711_v38 = vld [vmem:[%s15939_s3 + $0x98] sm:$0xff] }
 0x31c   :  { %6184 = vmatpush.bf16.msra.mxu0 %v9299_v27  ;;  %v10693_v27 = vld [vmem:[%s15939_s3 + $0x8] sm:$0xff] }
 0x31d   :  { %6197 = vmatpush.bf16.msra.mxu1 %v9427_v50  ;;  %v6235_v50 = vmul.f32 0.01, %v13123_v3 }
 0x31e   :  { %6210 = vmatpush.bf16.msra.mxu2 %v9555_v29 }
 0x31f   :  { %6223 = vmatpush.bf16.msra.mxu3 %v9683_v20  ;;  %v10700_v20 = vld [vmem:[%s15939_s3 + $0x40] sm:$0xff]  ;;  %v6239_v46 = vsel %vm6231_vm0, %v13123_v3, %v6235_v50 }
 0x320   :  { %6185 = vmatpush.bf16.msra.mxu0 %v9283_v35  ;;  %v6243_v28 = vpack.c.bf16 %v6239_v46, %v6239_v46  ;;  %v6244_v35 = vpack.c.bf16 %v6240_v54, %v6240_v54  ;;  %v10724_v54 = vld [vmem:[%s15940_s4] ss:$0 sm:$0xff] }
 0x321   :  { %6198 = vmatpush.bf16.msra.mxu1 %v9411_v49  ;;  %v6245_v49 = vpack.c.bf16 %v6241_v56, %v6241_v56 }
 0x322   :  { %6211 = vmatpush.bf16.msra.mxu2 %v9539_v45 }
 0x323   :  { %6224 = vmatpush.bf16.msra.mxu3 %v9667_v43 }
 0x324   :  { %6186 = vmatpush.bf16.msra.mxu0 %v9267_v60 }
 0x325   :  { %6199 = vmatpush.bf16.msra.mxu1 %v9395_v61  ;;  %v5993_v55 = vpop.f32.mrf.mxu1 }
 0x326   :  { %6212 = vmatpush.bf16.msra.mxu2 %v9523_v2  ;;  %v10723_v2 = vld [vmem:[%s15939_s3 + $0xf8] sm:$0xff] }
 0x327   :  { %6225 = vmatpush.bf16.msra.mxu3 %v9651_v62  ;;  %6187 = vmatmul.bf16.vlgmr.msra.gmra.mxu0 %v12057_v12  ;;  %v10713_v12 = vld [vmem:[%s15939_s3 + $0xa8] sm:$0xff] }
 0x328   :  { %6507 = vmatpush.bf16.msrb.mxu0 %v10699_v63  ;;  %6200 = vmatmul.bf16.vlgmr.msra.gmra.mxu1 %v12055_v11  ;;  %v5980_v11 = vpop.f32.mrf.mxu0  ;;  %v10722_v63 = vld [vmem:[%s15939_s3 + $0xf0] sm:$0xff] }
 0x329   :  { %6520 = vmatpush.bf16.msrb.mxu1 %v10707_v52  ;;  %6213 = vmatmul.bf16.vlgmr.msra.gmra.mxu2 %v12065_v16  ;;  %v5981_v16 = vadd.f32 %v5980_v11, %v15770_v24  ;;  %v10701_v24 = vld [vmem:[%s15939_s3 + $0x48] sm:$0xff] }
 0x32a   :  { %6533 = vmatpush.bf16.msrb.mxu2 %v10715_v19  ;;  %6226 = vmatmul.bf16.vlgmr.msra.gmra.mxu3 %v12254_v1  ;;  %v10696_v1 = vld [vmem:[%s15939_s3 + $0x20] sm:$0xff]  ;;  %v10721_v52 = vld [vmem:[%s15939_s3 + $0xe8] sm:$0xff] }
 0x32b   :  { %v5994_v14 = vadd.f32 %v5993_v55, %v5981_v16  ;;  %6546 = vmatpush.bf16.msrb.mxu3 %v10723_v2  ;;  %v10717_v11 = vld [vmem:[%s15939_s3 + $0xc8] sm:$0xff] }
 0x32c   :  { %6508 = vmatpush.bf16.msrb.mxu0 %v10698_v40  ;;  %v6006_v42 = vpop.f32.mrf.mxu2 }
 0x32d   :  { %6521 = vmatpush.bf16.msrb.mxu1 %v10706_v4  ;;  %v6007_v21 = vadd.f32 %v6006_v42, %v5994_v14  ;;  %v6019_v25 = vpop.f32.mrf.mxu3  ;;  %v5995_v5 = vpop.f32.mrf.mxu1  ;;  %v10720_v4 = vld [vmem:[%s15939_s3 + $0xe0] sm:$0xff] }
 0x32e   :  { %6534 = vmatpush.bf16.msrb.mxu2 %v10714_v6  ;;  %v10719_v6 = vld [vmem:[%s15939_s3 + $0xd8] sm:$0xff]  ;;  %v10716_v14 = vld [vmem:[%s15939_s3 + $0xc0] sm:$0xff] }
 0x32f   :  { %v6020_v34 = vadd.f32 %v6019_v25, %v6007_v21  ;;  %6547 = vmatpush.bf16.msrb.mxu3 %v10722_v63 }
 0x330   :  { %6509 = vmatpush.bf16.msrb.mxu0 %v10697_v8  ;;  %v5982_v13 = vpop.f32.mrf.mxu0 }
 0x331   :  { %6522 = vmatpush.bf16.msrb.mxu1 %v10705_v9 }
 0x332   :  { %6535 = vmatpush.bf16.msrb.mxu2 %v10713_v12  ;;  %v10718_v12 = vld [vmem:[%s15939_s3 + $0xd0] sm:$0xff] }
 0x333   :  { %6548 = vmatpush.bf16.msrb.mxu3 %v10721_v52 }
 0x334   :  { %6510 = vmatpush.bf16.msrb.mxu0 %v10696_v1  ;;  %v6008_v29 = vpop.f32.mrf.mxu2 }
 0x335   :  { %6523 = vmatpush.bf16.msrb.mxu1 %v10704_v10  ;;  %v6021_v23 = vpop.f32.mrf.mxu3 }
 0x336   :  { %6536 = vmatpush.bf16.msrb.mxu2 %v10712_v44 }
 0x337   :  { %6549 = vmatpush.bf16.msrb.mxu3 %v10720_v4 }
 0x338   :  { %6511 = vmatpush.bf16.msrb.mxu0 %v10695_v15 }
 0x339   :  { %6524 = vmatpush.bf16.msrb.mxu1 %v10703_v53 }
 0x33a   :  { %6537 = vmatpush.bf16.msrb.mxu2 %v10711_v38 }
 0x33b   :  { %6550 = vmatpush.bf16.msrb.mxu3 %v10719_v6 }
 0x33c   :  { %6512 = vmatpush.bf16.msrb.mxu0 %v10694_v26 }
 0x33d   :  { %6525 = vmatpush.bf16.msrb.mxu1 %v10702_v0 }
 0x33e   :  { %6538 = vmatpush.bf16.msrb.mxu2 %v10710_v30 }
 0x33f   :  { %6551 = vmatpush.bf16.msrb.mxu3 %v10718_v12 }
 0x340   :  { %6513 = vmatpush.bf16.msrb.mxu0 %v10693_v27 }
 0x341   :  { %6526 = vmatpush.bf16.msrb.mxu1 %v10701_v24 }
 0x342   :  { %6539 = vmatpush.bf16.msrb.mxu2 %v10709_v17 }
 0x343   :  { %6552 = vmatpush.bf16.msrb.mxu3 %v10717_v11 }
 0x344   :  { %6514 = vmatpush.bf16.msrb.mxu0 %v10692_v31  ;;  %v6032_v45 = vpop.f32.mrf.mxu0 }
 0x345   :  { %6527 = vmatpush.bf16.msrb.mxu1 %v10700_v20  ;;  %v6033_v36 = vadd.f32 %v6032_v45, %v6020_v34  ;;  %v6045_v7 = vpop.f32.mrf.mxu1 }
 0x346   :  { %6540 = vmatpush.bf16.msrb.mxu2 %v10708_v48 }
 0x347   :  { %6515 = vmatmul.bf16.vlgmr.msrb.gmra.mxu0 %v6243_v28  ;;  %v6046_v37 = vadd.f32 %v6045_v7, %v6033_v36  ;;  %6553 = vmatpush.bf16.msrb.mxu3 %v10716_v14 }
 0x348   :  { %6528 = vmatmul.bf16.vlgmr.msrb.gmra.mxu1 %v6244_v35 }
 0x349   :  { %6541 = vmatmul.bf16.vlgmr.msrb.gmra.mxu2 %v6245_v49 }
 0x34c   :  { %v6058_v57 = vpop.f32.mrf.mxu2  ;;  %v6034_v22 = vpop.f32.mrf.mxu0 }
 0x34d   :  { %v6059_v43 = vadd.f32 %v6058_v57, %v6046_v37  ;;  %v6071_v3 = vpop.f32.mrf.mxu3  ;;  %v6047_v39 = vpop.f32.mrf.mxu1 }
 0x34f   :  { %v6072_v41 = vadd.f32 %v6071_v3, %v6059_v43 }
 0x354   :  { %v6060_v32 = vpop.f32.mrf.mxu2 }
 0x355   :  { %v6073_v18 = vpop.f32.mrf.mxu3 }
 0x364   :  { %v6084_v58 = vpop.f32.mrf.mxu0 }
 0x365   :  { %v6097_v59 = vpop.f32.mrf.mxu1  ;;  %v6085_v1 = vadd.f32 %v6084_v58, %v6072_v41 }
 0x367   :  { %v6098_v15 = vadd.f32 %v6097_v59, %v6085_v1 }
 0x36c   :  { %v6110_v47 = vpop.f32.mrf.mxu2  ;;  %v6086_v61 = vpop.f32.mrf.mxu0 }
 0x36d   :  { %v6123_v60 = vpop.f32.mrf.mxu3  ;;  %v6099_v62 = vpop.f32.mrf.mxu1  ;;  %v6111_v53 = vadd.f32 %v6110_v47, %v6098_v15 }
 0x36f   :  { %v6124_v21 = vadd.f32 %v6123_v60, %v6111_v53 }
 0x374   :  { %v6112_v19 = vpop.f32.mrf.mxu2 }
 0x375   :  { %v6125_v40 = vpop.f32.mrf.mxu3 }
 0x384   :  { %v6136_v8 = vpop.f32.mrf.mxu0 }
 0x385   :  { %v6149_v9 = vpop.f32.mrf.mxu1  ;;  %v6137_v25 = vadd.f32 %v6136_v8, %v6124_v21 }
 0x387   :  { %v6150_v13 = vadd.f32 %v6149_v9, %v6137_v25 }
 0x38c   :  { %v6162_v16 = vpop.f32.mrf.mxu2  ;;  %v6138_v10 = vpop.f32.mrf.mxu0 }
 0x38d   :  { %v6175_v55 = vpop.f32.mrf.mxu3  ;;  %v6151_v44 = vpop.f32.mrf.mxu1  ;;  %v6163_v26 = vadd.f32 %v6162_v16, %v6150_v13 }
 0x38f   :  { %v6176_v5 = vadd.f32 %v6175_v55, %v6163_v26 }
 0x394   :  { %v6164_v38 = vpop.f32.mrf.mxu2 }
 0x395   :  { %v6177_v42 = vpop.f32.mrf.mxu3 }
 0x3a4   :  { %v6188_v34 = vpop.f32.mrf.mxu0 }
 0x3a5   :  { %v6201_v0 = vpop.f32.mrf.mxu1  ;;  %v6189_v30 = vadd.f32 %v6188_v34, %v6176_v5 }
 0x3a7   :  { %v6202_v27 = vadd.f32 %v6201_v0, %v6189_v30 }
 0x3ac   :  { %v6214_v24 = vpop.f32.mrf.mxu2  ;;  %v6190_v29 = vpop.f32.mrf.mxu0 }
 0x3ad   :  { %v6227_v17 = vpop.f32.mrf.mxu3  ;;  %v6215_v50 = vadd.f32 %v6214_v24, %v6202_v27  ;;  %v6203_v33 = vpop.f32.mrf.mxu1 }
 0x3af   :  { %v6228_v51 = vadd.f32 %v6227_v17, %v6215_v50 }
 0x3b1   :  { %vm6234_vm3 = vcmp.gt.f32.partialorder %v6228_v51, 0.0  ;;  %v6238_v23 = vmul.f32 0.01, %v6228_v51 }
 0x3b3   :  { %v6242_v31 = vsel %vm6234_vm3, %v6228_v51, %v6238_v23 }
 0x3b4   :  { %v6246_v20 = vpack.c.bf16 %v6242_v31, %v6242_v31  ;;  %v6216_v48 = vpop.f32.mrf.mxu2 }
 0x3b5   :  { %v6229_v46 = vpop.f32.mrf.mxu3 }
 0x3b6   :  { %6554 = vmatmul.bf16.vlgmr.msrb.gmra.mxu3 %v6246_v20 }
 0x3c4   :  { %v6516_v56 = vpop.f32.mrf.mxu0 }
 0x3c5   :  { %v6517_v28 = vadd.f32 %v10724_v54, %v6516_v56  ;;  %v6529_v35 = vpop.f32.mrf.mxu1 }
 0x3c7   :  { %v6530_v49 = vadd.f32 %v6529_v35, %v6517_v28 }
 0x3cc   :  { %v6542_v45 = vpop.f32.mrf.mxu2  ;;  %v6518_v7 = vpop.f32.mrf.mxu0 }
 0x3cd   :  { %v6543_v36 = vadd.f32 %v6542_v45, %v6530_v49  ;;  %v6531_v37 = vpop.f32.mrf.mxu1 }
 0x3d4   :  { %v6544_v57 = vpop.f32.mrf.mxu2 }
 0x439   :  { %v6555_v43 = vpop.f32.mrf.mxu3 }
 0x43a   :  { %v6556_v3 = vadd.f32 %v6555_v43, %v6543_v36 }
 0x43c   :  { %6559 = vst [vmem:[%s15941_s5] sm:$0xff] %v6556_v3 }
 0x441   :  { %v6557_v22 = vpop.f32.mrf.mxu3 }

</bundles_post_ra>
